<compile_context>
chip_gen: v6e
topology: v6e:2x2x1
jax: 0.10.0
libtpu: 0.0.40
codegen_flags: <defaults>
</compile_context>

<pallas_src>
import functools
import math

import jax
import jax.numpy as jnp
import numpy as np
from jax.experimental import pallas as pl
from jax.experimental.pallas import tpu as pltpu

MIN_VALUE, MAX_VALUE = 1.5, 1.7


# ----------------------------------------------------------------------------
# Pallas kernel: OUT = clamp(A @ B + bias), full-M / full-K blocks, N tiled.
# ----------------------------------------------------------------------------
def _matmul_bias_clamp_kernel(a_ref, b_ref, bias_ref, o_ref, *, clamp):
    out = jnp.dot(a_ref[...], b_ref[...], preferred_element_type=jnp.float32)
    out = out + bias_ref[...]                     # (M,tn) + (1,tn)
    if clamp is not None:
        out = jnp.clip(out, clamp[0], clamp[1])
    o_ref[...] = out.astype(o_ref.dtype)


def _round_up(x, m):
    return ((x + m - 1) // m) * m


def pallas_matmul_bias_clamp(a, b, bias, *, clamp=None, tn=2048):
    """a: (M,K) f32, b: (K,N) f32, bias: (N,) -> clamp(a@b + bias), (M,N) f32.

    M and K are single full blocks (no reduction grid axis, no accumulator);
    only N is tiled, so `b` is streamed from HBM exactly once and `a` stays
    resident in VMEM for the whole grid.
    """
    M, K = a.shape
    K2, N = b.shape
    assert K == K2 and bias.shape == (N,)
    # The full-M block must fit comfortably in VMEM (true here: M = 609).
    assert M * tn * 4 * 3 < 32 * 1024 * 1024, (M, tn)

    tn = min(tn, _round_up(N, 128))
    Np = _round_up(N, tn)
    if Np != N:
        b = jnp.pad(b, ((0, 0), (0, Np - N)))
        bias = jnp.pad(bias, (0, Np - N))
    bias2 = bias.reshape(1, Np)

    kernel = functools.partial(_matmul_bias_clamp_kernel, clamp=clamp)
    out = pl.pallas_call(
        kernel,
        out_shape=jax.ShapeDtypeStruct((M, Np), jnp.float32),
        grid_spec=pltpu.PrefetchScalarGridSpec(
            num_scalar_prefetch=0,
            grid=(Np // tn,),
            in_specs=[
                pl.BlockSpec((M, K), lambda j: (0, 0)),    # A: resident
                pl.BlockSpec((K, tn), lambda j: (0, j)),   # weight: streamed 1x
                pl.BlockSpec((1, tn), lambda j: (0, j)),   # bias
            ],
            out_specs=pl.BlockSpec((M, tn), lambda j: (0, j)),
        ),
        compiler_params=pltpu.CompilerParams(
            dimension_semantics=("parallel",),
            vmem_limit_bytes=40 * 1024 * 1024),
    )(a, b, bias2)
    if Np != N:
        out = out[:, :N]
    return out


# ----------------------------------------------------------------------------
# Tiny layers 1-2: ConvTranspose2d as an equivalent direct conv (not Pallas,
# per the performance review: launch + im2col glue dominates at this size).
# ----------------------------------------------------------------------------
def conv_transpose_lax(x_nchw, w, bias, *, stride, padding):
    Cin, Cout, kh, kw = w.shape
    wc = jnp.transpose(jnp.flip(w, (2, 3)), (1, 0, 2, 3))     # (Cout,Cin,kh,kw)
    y = jax.lax.conv_general_dilated(
        x_nchw, wc, window_strides=(1, 1),
        padding=((kh - 1 - padding,) * 2, (kw - 1 - padding,) * 2),
        lhs_dilation=(stride, stride), rhs_dilation=(1, 1),
        dimension_numbers=("NCHW", "OIHW", "NCHW"),
        precision=jax.lax.Precision.HIGHEST)
    return y + bias[None, :, None, None]


# ----------------------------------------------------------------------------
# Layers 3+4 folded into one Pallas matmul (+ fused bias and clamp).
# ----------------------------------------------------------------------------
def fused_conv3_conv4_pallas(v2_nchw, w3, b3, w4, b4, *, min_value, max_value):
    N, C, H, W = v2_nchw.shape
    Cin3, Cmid = w3.shape[0], w3.shape[1]                     # (64, 512, 1, 1)
    Cmid2, Cout, kh, kw = w4.shape                            # (512, 1280, 4, 4)
    assert C == Cin3 and Cmid == Cmid2

    # Fold the 1x1 layer 3 into layer 4 (both linear; clamp comes after 4).
    hp = jax.lax.Precision.HIGHEST
    w3m = w3.reshape(Cin3, Cmid)                              # (64, 512)
    w4m = w4.reshape(Cmid, Cout * kh * kw)                    # (512, 20480), cols (c,a,b)
    w34 = jnp.dot(w3m, w4m, precision=hp)                     # (64, 20480)
    b34 = jnp.dot(b3, w4m, precision=hp) + jnp.repeat(b4, kh * kw)

    # A: one row per input pixel, channels last.
    a = jnp.transpose(v2_nchw, (0, 2, 3, 1)).reshape(N * H * W, Cin3)

    out = pallas_matmul_bias_clamp(a, w34, b34,
                                   clamp=(min_value, max_value), tn=2048)

    # (N*H*W, Cout*kh*kw) with cols (c,a,b) -> NCHW in one reshape+transpose.
    out = out.reshape(N, H, W, Cout, kh, kw)
    out = jnp.transpose(out, (0, 3, 1, 4, 2, 5))              # (N,Cout,H,kh,W,kw)
    return out.reshape(N, Cout, H * kh, W * kw)


# ----------------------------------------------------------------------------
# Model
# ----------------------------------------------------------------------------
def init_conv_transpose(key, cin, cout, k):
    kw_, kb_ = jax.random.split(key)
    bound = 1.0 / math.sqrt(cin * k * k)
    w = jax.random.uniform(kw_, (cin, cout, k, k), jnp.float32, -bound, bound)
    b = jax.random.uniform(kb_, (cout,), jnp.float32, -bound, bound)
    return w, b


def model_forward(x_nchw, params):
    (w1, b1), (w2, b2), (w3, b3), (w4, b4) = params
    v1 = conv_transpose_lax(x_nchw, w1, b1, stride=2, padding=0)
    v2 = conv_transpose_lax(v1, w2, b2, stride=2, padding=1)
    return fused_conv3_conv4_pallas(v2, w3, b3, w4, b4,
                                    min_value=MIN_VALUE, max_value=MAX_VALUE)


# ----------------------------------------------------------------------------
# Pure-XLA reference (sanity check only)
# ----------------------------------------------------------------------------
def ref_forward(x_nchw, params):
    (w1, b1), (w2, b2), (w3, b3), (w4, b4) = params
    v1 = conv_transpose_lax(x_nchw, w1, b1, stride=2, padding=0)
    v2 = conv_transpose_lax(v1, w2, b2, stride=2, padding=1)
    v3 = conv_transpose_lax(v2, w3, b3, stride=1, padding=0)
    v4 = conv_transpose_lax(v3, w4, b4, stride=4, padding=0)
    return jnp.clip(v4, MIN_VALUE, MAX_VALUE)


if __name__ == "__main__":
    key = jax.random.PRNGKey(0)
    kx, k1, k2, k3, k4 = jax.random.split(key, 5)

    # small input, same channel structure as the PyTorch module
    x1 = jax.random.normal(kx, (1, 3, 4, 6), jnp.float32)

    params = (
        init_conv_transpose(k1, 3, 64, 5),
        init_conv_transpose(k2, 64, 64, 3),
        init_conv_transpose(k3, 64, 512, 1),
        init_conv_transpose(k4, 512, 1280, 4),
    )

    fwd = jax.jit(model_forward)
    out = jax.block_until_ready(fwd(x1, params))

    # spatial: (4,6) -> (11,15) -> (21,29) -> (21,29) -> (84,116)
    assert out.shape == (1, 1280, 84, 116), out.shape

    ref = jax.block_until_ready(jax.jit(ref_forward)(x1, params))
    err = float(np.max(np.abs(np.asarray(out) - np.asarray(ref))))
    assert err < 2e-3, err

    print("KERNEL_OK")
</pallas_src>

<mosaic_0001>
module attributes {stable_mosaic.version = 11 : i64} {
  func.func @_matmul_bias_clamp_kernel(%arg0: i32, %arg1: memref<609x64xf32, #tpu.memory_space<vmem>>, %arg2: memref<64x2048xf32, #tpu.memory_space<vmem>>, %arg3: memref<1x2048xf32, #tpu.memory_space<vmem>>, %arg4: memref<609x2048xf32, #tpu.memory_space<vmem>>) attributes {dimension_semantics = [#tpu.dimension_semantics<parallel>], iteration_bounds = array<i64: 10>, scalar_prefetch = 0 : i64, scratch_operands = 0 : i64, tpu.core_type = #tpu.core_type<tc>, window_params = [{pipeline_mode = #tpu.pipeline_mode<synchronous>, transform_indices = @transform_0, window_bounds = array<i64: 609, 64>}, {transform_indices = @transform_1, window_bounds = array<i64: 64, 2048>}, {transform_indices = @transform_2, window_bounds = array<i64: 1, 2048>}, {transform_indices = @transform_3, window_bounds = array<i64: 609, 2048>}]} {
    %c0 = arith.constant 0 : index
    %c0_0 = arith.constant 0 : index
    %0 = vector.load %arg1[%c0, %c0_0] : memref<609x64xf32, #tpu.memory_space<vmem>>, vector<609x64xf32>
    %c0_1 = arith.constant 0 : index
    %c0_2 = arith.constant 0 : index
    %1 = vector.load %arg2[%c0_1, %c0_2] : memref<64x2048xf32, #tpu.memory_space<vmem>>, vector<64x2048xf32>
    %cst = arith.constant dense<0.000000e+00> : vector<609x2048xf32>
    %2 = tpu.matmul %0, %1, %cst {dimension_numbers = #tpu.dot_dimension_numbers<[1], [0], [0], [1], [0, 0, 1, 1], [], []>} : vector<609x64xf32>, vector<64x2048xf32>, vector<609x2048xf32> -> vector<609x2048xf32>
    %c0_3 = arith.constant 0 : index
    %c0_4 = arith.constant 0 : index
    %3 = vector.load %arg3[%c0_3, %c0_4] : memref<1x2048xf32, #tpu.memory_space<vmem>>, vector<1x2048xf32>
    %4 = vector.broadcast %3 : vector<1x2048xf32> to vector<609x2048xf32>
    %5 = arith.addf %2, %4 : vector<609x2048xf32>
    %cst_5 = arith.constant 1.500000e+00 : f32
    %cst_6 = arith.constant 1.700000e+00 : f32
    %6 = vector.broadcast %cst_5 : f32 to vector<609x2048xf32>
    %7 = arith.maximumf %6, %5 : vector<609x2048xf32>
    %8 = vector.broadcast %cst_6 : f32 to vector<609x2048xf32>
    %9 = arith.minimumf %8, %7 : vector<609x2048xf32>
    %c0_7 = arith.constant 0 : index
    %c0_8 = arith.constant 0 : index
    %10 = vector.load %arg4[%c0_7, %c0_8] : memref<609x2048xf32, #tpu.memory_space<vmem>>, vector<609x2048xf32>
    tpu.vector_store %arg4[%c0_7, %c0_8], %9 {strides = array<i32>} : memref<609x2048xf32, #tpu.memory_space<vmem>>, vector<609x2048xf32>,
    return
  }
  func.func @transform_0(%arg0: i32) -> (i32, i32) {
    %c0_i32 = arith.constant 0 : i32
    %c0_i32_0 = arith.constant 0 : i32
    %c0_i32_1 = arith.constant 0 : i32
    return %c0_i32, %c0_i32_0 : i32, i32
  }
  func.func @transform_1(%arg0: i32) -> (i32, i32) {
    %c0_i32 = arith.constant 0 : i32
    %c0_i32_0 = arith.constant 0 : i32
    return %c0_i32, %arg0 : i32, i32
  }
  func.func @transform_2(%arg0: i32) -> (i32, i32) {
    %c0_i32 = arith.constant 0 : i32
    %c0_i32_0 = arith.constant 0 : i32
    return %c0_i32, %arg0 : i32, i32
  }
  func.func @transform_3(%arg0: i32) -> (i32, i32) {
    %c0_i32 = arith.constant 0 : i32
    %c0_i32_0 = arith.constant 0 : i32
    return %c0_i32, %arg0 : i32, i32
  }
}

</mosaic_0001>

<bundles_post_ra>
// kernel: model_forward.1
= control target key start
LH: loop header
LB: loop body
LE: loop exit
PB: predicated region body
PF: predicated region fallthrough
CT: control target
= control target key end

     0   :  { %8 = vsyncpa [#allocation4], 0  ;;  %s15190_s0 = inlined_call_operand.vmem [shape: f32[609,64], index: 0, kind: input, shape index: {}]   ;;  %s15191_s1 = inlined_call_operand.vmem [shape: f32[64,20480], index: 1, kind: input, shape index: {}]   ;;  %s15192_s2 = inlined_call_operand.vmem [shape: f32[1,20480], index: 2, kind: input, shape index: {}]   ;;  %s15193_s3 = inlined_call_operand.hbm [shape: f32[609,20480], index: 3, kind: output, shape index: {}]  }
   0x1   :  { %10 = vsyncpa [#allocation4 + $0x1], 0  ;;  %s9983_s12 = smov 0   ;;  %s9985_s13 = smov 0  }
   0x2   :  { %s9987_s14 = smov 0   ;;  %s9989_s15 = smov 0  }
   0x3 LB: > { %s10004_s16 = sadd.s32 4294967295, %s9956_s15   ;;  %s8988_s17 = sadd.s32 4294967294, %s9956_s15   ;;  %s9956_s15 = sphi %s9989_s15, %s15199_s15   ;;  %s9952_s14 = sphi %s9987_s14, %s15198_s14   ;;  %s9948_s13 = sphi %s9985_s13, %s15197_s13   ;;  %s9944_s12 = sphi %s9983_s12, %s15196_s12  }
   0x4   : > { %s10008_s18 = sadd.s32 1, %s9956_s15   ;;  %s44_s19 = sadd.s32 1, %s9952_s14 }
   0x5   : > { %s41_s20 = ssub.s32 %s9956_s15, %s10008_s18  ;;  %p51_p0 = scmp.ne.s32.totalorder %s9952_s14, %s9948_s13 }
   0x6   : > { %p42_p1 = scmp.eq.s32.totalorder %s41_s20, 0  ;;  %p52_p2 = scmp.eq.s32.totalorder %s9956_s15, 0 }
   0x7   : > { %p107_p3 = scmp.eq.s32.totalorder %s10004_s16, 9  ;;  %p112_p4 = scmp.ne.s32.totalorder %s9948_s13, %s9944_s12 }
   0x8   : > { %s10020_s21 = scalar_select %p42_p1, %s9952_s14, %s44_s19  }
   0x9   : > { %p53_p5 = por %p52_p2, %p51_p0  ;;  %p10022_p6 = por %p107_p3, %p51_p0 }
   0xa   : > { %p113_p7 = scmp.eq.s32.totalorder %s8988_s17, 9  ;;  %p8990_p9 = scmp.ge.s32.totalorder %s9956_s15, 10 }
   0xc   : > { %p10026_p8 = por %p113_p7, %p112_p4  ;;  %132 = sbr.rel (%p8990_p9) target bundleno = 85 (0x55), region = 20 }
  0x11   : > { %135 = sbr.rel (!%p53_p5) target bundleno = 85 (0x55), region = 24  ;;  %s137_s24 = sand.u32 (%p53_p5), 1, %s9952_s14  }
  0x12   : > { %s9617_s25 = sshll.u32 (%p53_p5), %s9956_s15, 7  ;;  %s8991_s26 = sshll.u32 (%p53_p5), %s137_s24, 10 }
  0x13   : > { %s10036_s29 = scalar_lea.vmem (%p53_p5), %s15191_s1, %s9617_s25  ;;  %s10041_s30 = scalar_lea.vmem (%p53_p5), [#allocation2], %s8991_s26 }
  0x14   : > { %v155_v0 = vld [vmem:[%s10036_s29] sm:$0xff] (%p53_p5)  ;;  %v157_v1 = vld [vmem:[%s10036_s29 + $0x8] sm:$0xff] (%p53_p5)  ;;  %v159_v2 = vld [vmem:[%s10036_s29 + $0x10] sm:$0xff] (%p53_p5) }
  0x15   : > { %156 = vst [vmem:[%s10041_s30] sm:$0xff] (%p53_p5), %v155_v0  ;;  %158 = vst [vmem:[%s10041_s30 + $0x8] sm:$0xff] (%p53_p5), %v157_v1  ;;  %v161_v3 = vld [vmem:[%s10036_s29 + $0x18] sm:$0xff] (%p53_p5)  ;;  %v163_v4 = vld [vmem:[%s10036_s29 + $0x20] sm:$0xff] (%p53_p5) }
  0x16   : > { %160 = vst [vmem:[%s10041_s30 + $0x10] sm:$0xff] %v159_v2  ;;  %v165_v5 = vld [vmem:[%s10036_s29 + $0x28] sm:$0xff]  ;;  %162 = vst [vmem:[%s10041_s30 + $0x18] sm:$0xff] %v161_v3  ;;  %v167_v6 = vld [vmem:[%s10036_s29 + $0x30] sm:$0xff] }
  0x17   : > { %164 = vst [vmem:[%s10041_s30 + $0x20] sm:$0xff] %v163_v4  ;;  %166 = vst [vmem:[%s10041_s30 + $0x28] sm:$0xff] %v165_v5  ;;  %v169_v7 = vld [vmem:[%s10036_s29 + $0x38] sm:$0xff]  ;;  %v171_v8 = vld [vmem:[%s10036_s29 + $0x40] sm:$0xff] }
  0x18   : > { %168 = vst [vmem:[%s10041_s30 + $0x30] sm:$0xff] %v167_v6  ;;  %170 = vst [vmem:[%s10041_s30 + $0x38] sm:$0xff] %v169_v7  ;;  %v173_v9 = vld [vmem:[%s10036_s29 + $0x48] sm:$0xff]  ;;  %v175_v10 = vld [vmem:[%s10036_s29 + $0x50] sm:$0xff] }
  0x19   : > { %172 = vst [vmem:[%s10041_s30 + $0x40] sm:$0xff] %v171_v8  ;;  %v177_v11 = vld [vmem:[%s10036_s29 + $0x58] sm:$0xff]  ;;  %174 = vst [vmem:[%s10041_s30 + $0x48] sm:$0xff] %v173_v9  ;;  %v179_v12 = vld [vmem:[%s10036_s29 + $0x60] sm:$0xff] }
  0x1a   : > { %176 = vst [vmem:[%s10041_s30 + $0x50] sm:$0xff] %v175_v10  ;;  %178 = vst [vmem:[%s10041_s30 + $0x58] sm:$0xff] %v177_v11  ;;  %v181_v13 = vld [vmem:[%s10036_s29 + $0x68] sm:$0xff]  ;;  %v183_v14 = vld [vmem:[%s10036_s29 + $0x70] sm:$0xff] }
  0x1b   : > { %180 = vst [vmem:[%s10041_s30 + $0x60] sm:$0xff] %v179_v12  ;;  %182 = vst [vmem:[%s10041_s30 + $0x68] sm:$0xff] %v181_v13  ;;  %v185_v15 = vld [vmem:[%s10036_s29 + $0x78] sm:$0xff]  ;;  %v187_v16 = vld [vmem:[%s10036_s29 + $0x500] sm:$0xff] }
  0x1c   : > { %184 = vst [vmem:[%s10041_s30 + $0x70] sm:$0xff] %v183_v14  ;;  %v189_v17 = vld [vmem:[%s10036_s29 + $0x508] sm:$0xff]  ;;  %186 = vst [vmem:[%s10041_s30 + $0x78] sm:$0xff] %v185_v15  ;;  %v191_v18 = vld [vmem:[%s10036_s29 + $0x510] sm:$0xff] }
  0x1d   : > { %188 = vst [vmem:[%s10041_s30 + $0x80] sm:$0xff] %v187_v16  ;;  %190 = vst [vmem:[%s10041_s30 + $0x88] sm:$0xff] %v189_v17  ;;  %v193_v19 = vld [vmem:[%s10036_s29 + $0x518] sm:$0xff]  ;;  %v195_v20 = vld [vmem:[%s10036_s29 + $0x520] sm:$0xff] }
  0x1e   : > { %192 = vst [vmem:[%s10041_s30 + $0x90] sm:$0xff] %v191_v18  ;;  %194 = vst [vmem:[%s10041_s30 + $0x98] sm:$0xff] %v193_v19  ;;  %v197_v21 = vld [vmem:[%s10036_s29 + $0x528] sm:$0xff]  ;;  %v199_v22 = vld [vmem:[%s10036_s29 + $0x530] sm:$0xff] }
  0x1f   : > { %196 = vst [vmem:[%s10041_s30 + $0xa0] sm:$0xff] %v195_v20  ;;  %v201_v23 = vld [vmem:[%s10036_s29 + $0x538] sm:$0xff]  ;;  %198 = vst [vmem:[%s10041_s30 + $0xa8] sm:$0xff] %v197_v21  ;;  %v203_v24 = vld [vmem:[%s10036_s29 + $0x540] sm:$0xff] }
  0x20   : > { %200 = vst [vmem:[%s10041_s30 + $0xb0] sm:$0xff] %v199_v22  ;;  %202 = vst [vmem:[%s10041_s30 + $0xb8] sm:$0xff] %v201_v23  ;;  %v205_v25 = vld [vmem:[%s10036_s29 + $0x548] sm:$0xff]  ;;  %v207_v26 = vld [vmem:[%s10036_s29 + $0x550] sm:$0xff] }
  0x21   : > { %204 = vst [vmem:[%s10041_s30 + $0xc0] sm:$0xff] %v203_v24  ;;  %206 = vst [vmem:[%s10041_s30 + $0xc8] sm:$0xff] %v205_v25  ;;  %v209_v27 = vld [vmem:[%s10036_s29 + $0x558] sm:$0xff]  ;;  %v211_v28 = vld [vmem:[%s10036_s29 + $0x560] sm:$0xff] }
  0x22   : > { %208 = vst [vmem:[%s10041_s30 + $0xd0] sm:$0xff] %v207_v26  ;;  %v213_v29 = vld [vmem:[%s10036_s29 + $0x568] sm:$0xff]  ;;  %210 = vst [vmem:[%s10041_s30 + $0xd8] sm:$0xff] %v209_v27  ;;  %v215_v30 = vld [vmem:[%s10036_s29 + $0x570] sm:$0xff] }
  0x23   : > { %212 = vst [vmem:[%s10041_s30 + $0xe0] sm:$0xff] %v211_v28  ;;  %214 = vst [vmem:[%s10041_s30 + $0xe8] sm:$0xff] %v213_v29  ;;  %v217_v31 = vld [vmem:[%s10036_s29 + $0x578] sm:$0xff]  ;;  %v219_v32 = vld [vmem:[%s10036_s29 + $0xa00] sm:$0xff] }
  0x24   : > { %216 = vst [vmem:[%s10041_s30 + $0xf0] sm:$0xff] %v215_v30  ;;  %218 = vst [vmem:[%s10041_s30 + $0xf8] sm:$0xff] %v217_v31  ;;  %v221_v33 = vld [vmem:[%s10036_s29 + $0xa08] sm:$0xff]  ;;  %v223_v34 = vld [vmem:[%s10036_s29 + $0xa10] sm:$0xff] }
  0x25   : > { %220 = vst [vmem:[%s10041_s30 + $0x100] sm:$0xff] %v219_v32  ;;  %v225_v35 = vld [vmem:[%s10036_s29 + $0xa18] sm:$0xff]  ;;  %222 = vst [vmem:[%s10041_s30 + $0x108] sm:$0xff] %v221_v33  ;;  %v227_v36 = vld [vmem:[%s10036_s29 + $0xa20] sm:$0xff] }
  0x26   : > { %224 = vst [vmem:[%s10041_s30 + $0x110] sm:$0xff] %v223_v34  ;;  %226 = vst [vmem:[%s10041_s30 + $0x118] sm:$0xff] %v225_v35  ;;  %v229_v37 = vld [vmem:[%s10036_s29 + $0xa28] sm:$0xff]  ;;  %v231_v38 = vld [vmem:[%s10036_s29 + $0xa30] sm:$0xff] }
  0x27   : > { %228 = vst [vmem:[%s10041_s30 + $0x120] sm:$0xff] %v227_v36  ;;  %230 = vst [vmem:[%s10041_s30 + $0x128] sm:$0xff] %v229_v37  ;;  %v233_v39 = vld [vmem:[%s10036_s29 + $0xa38] sm:$0xff]  ;;  %v235_v40 = vld [vmem:[%s10036_s29 + $0xa40] sm:$0xff] }
  0x28   : > { %232 = vst [vmem:[%s10041_s30 + $0x130] sm:$0xff] %v231_v38  ;;  %v237_v41 = vld [vmem:[%s10036_s29 + $0xa48] sm:$0xff]  ;;  %234 = vst [vmem:[%s10041_s30 + $0x138] sm:$0xff] %v233_v39  ;;  %v239_v42 = vld [vmem:[%s10036_s29 + $0xa50] sm:$0xff] }
  0x29   : > { %236 = vst [vmem:[%s10041_s30 + $0x140] sm:$0xff] %v235_v40  ;;  %238 = vst [vmem:[%s10041_s30 + $0x148] sm:$0xff] %v237_v41  ;;  %v241_v43 = vld [vmem:[%s10036_s29 + $0xa58] sm:$0xff]  ;;  %v243_v44 = vld [vmem:[%s10036_s29 + $0xa60] sm:$0xff] }
  0x2a   : > { %240 = vst [vmem:[%s10041_s30 + $0x150] sm:$0xff] %v239_v42  ;;  %242 = vst [vmem:[%s10041_s30 + $0x158] sm:$0xff] %v241_v43  ;;  %v245_v45 = vld [vmem:[%s10036_s29 + $0xa68] sm:$0xff]  ;;  %v247_v46 = vld [vmem:[%s10036_s29 + $0xa70] sm:$0xff] }
  0x2b   : > { %244 = vst [vmem:[%s10041_s30 + $0x160] sm:$0xff] %v243_v44  ;;  %v249_v47 = vld [vmem:[%s10036_s29 + $0xa78] sm:$0xff]  ;;  %246 = vst [vmem:[%s10041_s30 + $0x168] sm:$0xff] %v245_v45  ;;  %v251_v48 = vld [vmem:[%s10036_s29 + $0xf00] sm:$0xff] }
  0x2c   : > { %248 = vst [vmem:[%s10041_s30 + $0x170] sm:$0xff] %v247_v46  ;;  %250 = vst [vmem:[%s10041_s30 + $0x178] sm:$0xff] %v249_v47  ;;  %v253_v49 = vld [vmem:[%s10036_s29 + $0xf08] sm:$0xff]  ;;  %v255_v50 = vld [vmem:[%s10036_s29 + $0xf10] sm:$0xff] }
  0x2d   : > { %252 = vst [vmem:[%s10041_s30 + $0x180] sm:$0xff] %v251_v48  ;;  %254 = vst [vmem:[%s10041_s30 + $0x188] sm:$0xff] %v253_v49  ;;  %v257_v51 = vld [vmem:[%s10036_s29 + $0xf18] sm:$0xff]  ;;  %v259_v52 = vld [vmem:[%s10036_s29 + $0xf20] sm:$0xff] }
  0x2e   : > { %256 = vst [vmem:[%s10041_s30 + $0x190] sm:$0xff] %v255_v50  ;;  %v261_v53 = vld [vmem:[%s10036_s29 + $0xf28] sm:$0xff]  ;;  %258 = vst [vmem:[%s10041_s30 + $0x198] sm:$0xff] %v257_v51  ;;  %v263_v54 = vld [vmem:[%s10036_s29 + $0xf30] sm:$0xff] }
  0x2f   : > { %260 = vst [vmem:[%s10041_s30 + $0x1a0] sm:$0xff] %v259_v52  ;;  %262 = vst [vmem:[%s10041_s30 + $0x1a8] sm:$0xff] %v261_v53  ;;  %v265_v55 = vld [vmem:[%s10036_s29 + $0xf38] sm:$0xff]  ;;  %v267_v56 = vld [vmem:[%s10036_s29 + $0xf40] sm:$0xff] }
  0x30   : > { %264 = vst [vmem:[%s10041_s30 + $0x1b0] sm:$0xff] %v263_v54  ;;  %266 = vst [vmem:[%s10041_s30 + $0x1b8] sm:$0xff] %v265_v55  ;;  %v269_v57 = vld [vmem:[%s10036_s29 + $0xf48] sm:$0xff]  ;;  %v271_v58 = vld [vmem:[%s10036_s29 + $0xf50] sm:$0xff] }
  0x31   : > { %268 = vst [vmem:[%s10041_s30 + $0x1c0] sm:$0xff] %v267_v56  ;;  %v273_v59 = vld [vmem:[%s10036_s29 + $0xf58] sm:$0xff]  ;;  %270 = vst [vmem:[%s10041_s30 + $0x1c8] sm:$0xff] %v269_v57  ;;  %v275_v60 = vld [vmem:[%s10036_s29 + $0xf60] sm:$0xff] }
  0x32   : > { %272 = vst [vmem:[%s10041_s30 + $0x1d0] sm:$0xff] %v271_v58  ;;  %274 = vst [vmem:[%s10041_s30 + $0x1d8] sm:$0xff] %v273_v59  ;;  %v277_v61 = vld [vmem:[%s10036_s29 + $0xf68] sm:$0xff]  ;;  %v279_v62 = vld [vmem:[%s10036_s29 + $0xf70] sm:$0xff] }
  0x33   : > { %276 = vst [vmem:[%s10041_s30 + $0x1e0] sm:$0xff] %v275_v60  ;;  %278 = vst [vmem:[%s10041_s30 + $0x1e8] sm:$0xff] %v277_v61  ;;  %v281_v63 = vld [vmem:[%s10036_s29 + $0xf78] sm:$0xff]  ;;  %v283_v0 = vld [vmem:[%s10036_s29 + $0x1400] sm:$0xff] }
  0x34   : > { %280 = vst [vmem:[%s10041_s30 + $0x1f0] sm:$0xff] %v279_v62  ;;  %v285_v1 = vld [vmem:[%s10036_s29 + $0x1408] sm:$0xff]  ;;  %282 = vst [vmem:[%s10041_s30 + $0x1f8] sm:$0xff] %v281_v63  ;;  %v287_v2 = vld [vmem:[%s10036_s29 + $0x1410] sm:$0xff] }
  0x35   : > { %284 = vst [vmem:[%s10041_s30 + $0x200] sm:$0xff] %v283_v0  ;;  %286 = vst [vmem:[%s10041_s30 + $0x208] sm:$0xff] %v285_v1  ;;  %v289_v3 = vld [vmem:[%s10036_s29 + $0x1418] sm:$0xff]  ;;  %v291_v4 = vld [vmem:[%s10036_s29 + $0x1420] sm:$0xff] }
  0x36   : > { %288 = vst [vmem:[%s10041_s30 + $0x210] sm:$0xff] %v287_v2  ;;  %290 = vst [vmem:[%s10041_s30 + $0x218] sm:$0xff] %v289_v3  ;;  %v293_v5 = vld [vmem:[%s10036_s29 + $0x1428] sm:$0xff]  ;;  %v295_v6 = vld [vmem:[%s10036_s29 + $0x1430] sm:$0xff] }
  0x37   : > { %292 = vst [vmem:[%s10041_s30 + $0x220] sm:$0xff] %v291_v4  ;;  %v297_v7 = vld [vmem:[%s10036_s29 + $0x1438] sm:$0xff]  ;;  %294 = vst [vmem:[%s10041_s30 + $0x228] sm:$0xff] %v293_v5  ;;  %v299_v8 = vld [vmem:[%s10036_s29 + $0x1440] sm:$0xff] }
  0x38   : > { %296 = vst [vmem:[%s10041_s30 + $0x230] sm:$0xff] %v295_v6  ;;  %298 = vst [vmem:[%s10041_s30 + $0x238] sm:$0xff] %v297_v7  ;;  %v301_v9 = vld [vmem:[%s10036_s29 + $0x1448] sm:$0xff]  ;;  %v303_v10 = vld [vmem:[%s10036_s29 + $0x1450] sm:$0xff] }
  0x39   : > { %300 = vst [vmem:[%s10041_s30 + $0x240] sm:$0xff] %v299_v8  ;;  %302 = vst [vmem:[%s10041_s30 + $0x248] sm:$0xff] %v301_v9  ;;  %v305_v11 = vld [vmem:[%s10036_s29 + $0x1458] sm:$0xff]  ;;  %v307_v12 = vld [vmem:[%s10036_s29 + $0x1460] sm:$0xff] }
  0x3a   : > { %304 = vst [vmem:[%s10041_s30 + $0x250] sm:$0xff] %v303_v10  ;;  %v309_v13 = vld [vmem:[%s10036_s29 + $0x1468] sm:$0xff]  ;;  %306 = vst [vmem:[%s10041_s30 + $0x258] sm:$0xff] %v305_v11  ;;  %v311_v14 = vld [vmem:[%s10036_s29 + $0x1470] sm:$0xff] }
  0x3b   : > { %308 = vst [vmem:[%s10041_s30 + $0x260] sm:$0xff] %v307_v12  ;;  %310 = vst [vmem:[%s10041_s30 + $0x268] sm:$0xff] %v309_v13  ;;  %v313_v15 = vld [vmem:[%s10036_s29 + $0x1478] sm:$0xff]  ;;  %v315_v16 = vld [vmem:[%s10036_s29 + $0x1900] sm:$0xff] }
  0x3c   : > { %312 = vst [vmem:[%s10041_s30 + $0x270] sm:$0xff] %v311_v14  ;;  %314 = vst [vmem:[%s10041_s30 + $0x278] sm:$0xff] %v313_v15  ;;  %v317_v17 = vld [vmem:[%s10036_s29 + $0x1908] sm:$0xff]  ;;  %v319_v18 = vld [vmem:[%s10036_s29 + $0x1910] sm:$0xff] }
  0x3d   : > { %316 = vst [vmem:[%s10041_s30 + $0x280] sm:$0xff] %v315_v16  ;;  %v321_v19 = vld [vmem:[%s10036_s29 + $0x1918] sm:$0xff]  ;;  %318 = vst [vmem:[%s10041_s30 + $0x288] sm:$0xff] %v317_v17  ;;  %v323_v20 = vld [vmem:[%s10036_s29 + $0x1920] sm:$0xff] }
  0x3e   : > { %320 = vst [vmem:[%s10041_s30 + $0x290] sm:$0xff] %v319_v18  ;;  %322 = vst [vmem:[%s10041_s30 + $0x298] sm:$0xff] %v321_v19  ;;  %v325_v21 = vld [vmem:[%s10036_s29 + $0x1928] sm:$0xff]  ;;  %v327_v22 = vld [vmem:[%s10036_s29 + $0x1930] sm:$0xff] }
  0x3f   : > { %324 = vst [vmem:[%s10041_s30 + $0x2a0] sm:$0xff] %v323_v20  ;;  %326 = vst [vmem:[%s10041_s30 + $0x2a8] sm:$0xff] %v325_v21  ;;  %v329_v23 = vld [vmem:[%s10036_s29 + $0x1938] sm:$0xff]  ;;  %v331_v24 = vld [vmem:[%s10036_s29 + $0x1940] sm:$0xff] }
  0x40   : > { %328 = vst [vmem:[%s10041_s30 + $0x2b0] sm:$0xff] %v327_v22  ;;  %v333_v25 = vld [vmem:[%s10036_s29 + $0x1948] sm:$0xff]  ;;  %330 = vst [vmem:[%s10041_s30 + $0x2b8] sm:$0xff] %v329_v23  ;;  %v335_v26 = vld [vmem:[%s10036_s29 + $0x1950] sm:$0xff] }
  0x41   : > { %332 = vst [vmem:[%s10041_s30 + $0x2c0] sm:$0xff] %v331_v24  ;;  %334 = vst [vmem:[%s10041_s30 + $0x2c8] sm:$0xff] %v333_v25  ;;  %v337_v27 = vld [vmem:[%s10036_s29 + $0x1958] sm:$0xff]  ;;  %v339_v28 = vld [vmem:[%s10036_s29 + $0x1960] sm:$0xff] }
  0x42   : > { %336 = vst [vmem:[%s10041_s30 + $0x2d0] sm:$0xff] %v335_v26  ;;  %338 = vst [vmem:[%s10041_s30 + $0x2d8] sm:$0xff] %v337_v27  ;;  %v341_v29 = vld [vmem:[%s10036_s29 + $0x1968] sm:$0xff]  ;;  %v343_v30 = vld [vmem:[%s10036_s29 + $0x1970] sm:$0xff] }
  0x43   : > { %340 = vst [vmem:[%s10041_s30 + $0x2e0] sm:$0xff] %v339_v28  ;;  %v345_v31 = vld [vmem:[%s10036_s29 + $0x1978] sm:$0xff]  ;;  %342 = vst [vmem:[%s10041_s30 + $0x2e8] sm:$0xff] %v341_v29  ;;  %v347_v32 = vld [vmem:[%s10036_s29 + $0x1e00] sm:$0xff] }
  0x44   : > { %344 = vst [vmem:[%s10041_s30 + $0x2f0] sm:$0xff] %v343_v30  ;;  %346 = vst [vmem:[%s10041_s30 + $0x2f8] sm:$0xff] %v345_v31  ;;  %v349_v33 = vld [vmem:[%s10036_s29 + $0x1e08] sm:$0xff]  ;;  %v351_v34 = vld [vmem:[%s10036_s29 + $0x1e10] sm:$0xff] }
  0x45   : > { %348 = vst [vmem:[%s10041_s30 + $0x300] sm:$0xff] %v347_v32  ;;  %350 = vst [vmem:[%s10041_s30 + $0x308] sm:$0xff] %v349_v33  ;;  %v353_v35 = vld [vmem:[%s10036_s29 + $0x1e18] sm:$0xff]  ;;  %v355_v36 = vld [vmem:[%s10036_s29 + $0x1e20] sm:$0xff] }
  0x46   : > { %352 = vst [vmem:[%s10041_s30 + $0x310] sm:$0xff] %v351_v34  ;;  %v357_v37 = vld [vmem:[%s10036_s29 + $0x1e28] sm:$0xff]  ;;  %354 = vst [vmem:[%s10041_s30 + $0x318] sm:$0xff] %v353_v35  ;;  %v359_v38 = vld [vmem:[%s10036_s29 + $0x1e30] sm:$0xff] }
  0x47   : > { %356 = vst [vmem:[%s10041_s30 + $0x320] sm:$0xff] %v355_v36  ;;  %358 = vst [vmem:[%s10041_s30 + $0x328] sm:$0xff] %v357_v37  ;;  %v361_v39 = vld [vmem:[%s10036_s29 + $0x1e38] sm:$0xff]  ;;  %v363_v40 = vld [vmem:[%s10036_s29 + $0x1e40] sm:$0xff] }
  0x48   : > { %360 = vst [vmem:[%s10041_s30 + $0x330] sm:$0xff] %v359_v38  ;;  %362 = vst [vmem:[%s10041_s30 + $0x338] sm:$0xff] %v361_v39  ;;  %v365_v41 = vld [vmem:[%s10036_s29 + $0x1e48] sm:$0xff]  ;;  %v367_v42 = vld [vmem:[%s10036_s29 + $0x1e50] sm:$0xff] }
  0x49   : > { %364 = vst [vmem:[%s10041_s30 + $0x340] sm:$0xff] %v363_v40  ;;  %v369_v43 = vld [vmem:[%s10036_s29 + $0x1e58] sm:$0xff]  ;;  %366 = vst [vmem:[%s10041_s30 + $0x348] sm:$0xff] %v365_v41  ;;  %v371_v44 = vld [vmem:[%s10036_s29 + $0x1e60] sm:$0xff] }
  0x4a   : > { %368 = vst [vmem:[%s10041_s30 + $0x350] sm:$0xff] %v367_v42  ;;  %370 = vst [vmem:[%s10041_s30 + $0x358] sm:$0xff] %v369_v43  ;;  %v373_v45 = vld [vmem:[%s10036_s29 + $0x1e68] sm:$0xff]  ;;  %v375_v46 = vld [vmem:[%s10036_s29 + $0x1e70] sm:$0xff] }
  0x4b   : > { %372 = vst [vmem:[%s10041_s30 + $0x360] sm:$0xff] %v371_v44  ;;  %374 = vst [vmem:[%s10041_s30 + $0x368] sm:$0xff] %v373_v45  ;;  %v377_v47 = vld [vmem:[%s10036_s29 + $0x1e78] sm:$0xff]  ;;  %v379_v48 = vld [vmem:[%s10036_s29 + $0x2300] sm:$0xff] }
  0x4c   : > { %376 = vst [vmem:[%s10041_s30 + $0x370] sm:$0xff] %v375_v46  ;;  %v381_v49 = vld [vmem:[%s10036_s29 + $0x2308] sm:$0xff]  ;;  %378 = vst [vmem:[%s10041_s30 + $0x378] sm:$0xff] %v377_v47  ;;  %v383_v50 = vld [vmem:[%s10036_s29 + $0x2310] sm:$0xff] }
  0x4d   : > { %380 = vst [vmem:[%s10041_s30 + $0x380] sm:$0xff] %v379_v48  ;;  %382 = vst [vmem:[%s10041_s30 + $0x388] sm:$0xff] %v381_v49  ;;  %v385_v51 = vld [vmem:[%s10036_s29 + $0x2318] sm:$0xff]  ;;  %v387_v52 = vld [vmem:[%s10036_s29 + $0x2320] sm:$0xff] }
  0x4e   : > { %384 = vst [vmem:[%s10041_s30 + $0x390] sm:$0xff] %v383_v50  ;;  %386 = vst [vmem:[%s10041_s30 + $0x398] sm:$0xff] %v385_v51  ;;  %v389_v53 = vld [vmem:[%s10036_s29 + $0x2328] sm:$0xff]  ;;  %v391_v54 = vld [vmem:[%s10036_s29 + $0x2330] sm:$0xff] }
  0x4f   : > { %388 = vst [vmem:[%s10041_s30 + $0x3a0] sm:$0xff] %v387_v52  ;;  %v393_v55 = vld [vmem:[%s10036_s29 + $0x2338] sm:$0xff]  ;;  %390 = vst [vmem:[%s10041_s30 + $0x3a8] sm:$0xff] %v389_v53  ;;  %v395_v56 = vld [vmem:[%s10036_s29 + $0x2340] sm:$0xff] }
  0x50   : > { %392 = vst [vmem:[%s10041_s30 + $0x3b0] sm:$0xff] %v391_v54  ;;  %394 = vst [vmem:[%s10041_s30 + $0x3b8] sm:$0xff] %v393_v55  ;;  %v397_v57 = vld [vmem:[%s10036_s29 + $0x2348] sm:$0xff]  ;;  %v399_v58 = vld [vmem:[%s10036_s29 + $0x2350] sm:$0xff] }
  0x51   : > { %396 = vst [vmem:[%s10041_s30 + $0x3c0] sm:$0xff] %v395_v56  ;;  %398 = vst [vmem:[%s10041_s30 + $0x3c8] sm:$0xff] %v397_v57  ;;  %v401_v59 = vld [vmem:[%s10036_s29 + $0x2358] sm:$0xff]  ;;  %v403_v60 = vld [vmem:[%s10036_s29 + $0x2360] sm:$0xff] }
  0x52   : > { %400 = vst [vmem:[%s10041_s30 + $0x3d0] sm:$0xff] %v399_v58  ;;  %v405_v61 = vld [vmem:[%s10036_s29 + $0x2368] sm:$0xff]  ;;  %402 = vst [vmem:[%s10041_s30 + $0x3d8] sm:$0xff] %v401_v59  ;;  %v407_v62 = vld [vmem:[%s10036_s29 + $0x2370] sm:$0xff] }
  0x53   : > { %404 = vst [vmem:[%s10041_s30 + $0x3e0] sm:$0xff] %v403_v60  ;;  %406 = vst [vmem:[%s10041_s30 + $0x3e8] sm:$0xff] %v405_v61  ;;  %v409_v63 = vld [vmem:[%s10036_s29 + $0x2378] sm:$0xff] }
  0x54   : > { %408 = vst [vmem:[%s10041_s30 + $0x3f0] sm:$0xff] %v407_v62  ;;  %410 = vst [vmem:[%s10041_s30 + $0x3f8] sm:$0xff] %v409_v63 }
  0x55 PF: > { %p8994_p10 = scmp.ge.s32.totalorder %s9956_s15, 1  ;;  %p423_p11 = scmp.lt.s32.totalorder %s9956_s15, 11 }
  0x57   : > { %p424_p12 = pnand %p8994_p10, %p423_p11 }
  0x58   : > { %s10299_s4 = sand.u32 (!%p424_p12), 1, %s9948_s13   ;;  %s8996_s24 = sshll.u32 (!%p424_p12), %s10004_s16, 4 }
  0x59   : > { %427 = sbr.rel (%p424_p12) target bundleno = 1558 (0x616), region = 51  ;;  %s8995_s5 = sshll.u32 (!%p424_p12), %s10299_s4, 10 }
  0x5a   : > { %s10304_s6 = scalar_lea.vmem (!%p424_p12), [#allocation2], %s8995_s5  ;;  %p459_p13 = scmp.lt.s32.totalorder (!%p424_p12), %s8996_s24, 159 }
  0x5b   : > { %s9619_s19 = smul.u32 (!%p424_p12), 9856, %s10299_s4  ;;  %s9618_s7 = sshll.u32 (!%p424_p12), %s10004_s16, 11 }
  0x5c   : > { %s15142_s11 = scalar_lea.hbm (!%p424_p12), %s15193_s3, %s9618_s7  ;;  %s8898_s17 = scalar_lea.sflag (!%p424_p12), [#allocation4], %s10299_s4 }
  0x5d   : > { %s10763_s27 = scalar_lea.vmem (!%p424_p12), [#allocation3], %s9619_s19 }
  0x5e   : > { %v9958_v0 = vmov 0.0   ;;  %v654_v1 = vld [vmem:[%s10304_s6 + $0x388] sm:$0xff]  ;;  %v656_v2 = vld [vmem:[%s10304_s6 + $0x398] sm:$0xff]  ;;  %v653_v3 = vld [vmem:[%s10304_s6 + $0x380] sm:$0xff]  ;;  %vm753_vm0 = vcmask 523264   ;;  %s15201_s24 = smov (!%p459_p13, %s8996_s24), 159 }
  0x5f   : > { %1049 = vmatprep.mubr.f32.mxu0 %v9958_v0  ;;  %1576 = vmatprep.mubr.f32.mxu1 %v9958_v0  ;;  %v655_v4 = vld [vmem:[%s10304_s6 + $0x390] sm:$0xff]  ;;  %v638_v5 = vld [vmem:[%s10304_s6 + $0x308] sm:$0xff]  ;;  %v640_v6 = vld [vmem:[%s10304_s6 + $0x318] sm:$0xff]  ;;  %s10701_s8 = scalar_lea.vmem %s15192_s2, %s15201_s24  ;;  %s8911_s9 = sshll.u32 %s10763_s27, 4  ;;  %s15144_s9 = int_to_ptr.vmem [resolvable:$true] %s8911_s9 }
  0x60   : > { %1001 = vmatprep.subr.mxu0 %v654_v1  ;;  %1528 = vmatprep.subr.mxu1 %v656_v2  ;;  %v637_v7 = vld [vmem:[%s10304_s6 + $0x300] sm:$0xff]  ;;  %v639_v8 = vld [vmem:[%s10304_s6 + $0x310] sm:$0xff]  ;;  %v622_v9 = vld [vmem:[%s10304_s6 + $0x288] sm:$0xff]  ;;  %s9896_s19 = scalar_lea.vmem %s15144_s9, 157696 }
  0x61   : > { %1002 = vmatpush1.msra.mxu0 %v653_v3  ;;  %1529 = vmatpush1.msra.mxu1 %v655_v4  ;;  %v624_v10 = vld [vmem:[%s10304_s6 + $0x298] sm:$0xff]  ;;  %v621_v11 = vld [vmem:[%s10304_s6 + $0x280] sm:$0xff]  ;;  %v623_v12 = vld [vmem:[%s10304_s6 + $0x290] sm:$0xff]  ;;  %p9897_p0 = scmp.ne.s32.totalorder %s15144_s9, %s9896_s19 }
  0x62   : > { %1003 = vmatprep.subr.mxu0 %v638_v5  ;;  %1530 = vmatprep.subr.mxu1 %v640_v6  ;;  %v606_v13 = vld [vmem:[%s10304_s6 + $0x208] sm:$0xff]  ;;  %v608_v14 = vld [vmem:[%s10304_s6 + $0x218] sm:$0xff]  ;;  %v605_v15 = vld [vmem:[%s10304_s6 + $0x200] sm:$0xff] }
  0x63   : > { %1004 = vmatpush1.msra.mxu0 %v637_v7  ;;  %1531 = vmatpush1.msra.mxu1 %v639_v8  ;;  %v607_v16 = vld [vmem:[%s10304_s6 + $0x210] sm:$0xff]  ;;  %v590_v17 = vld [vmem:[%s10304_s6 + $0x188] sm:$0xff]  ;;  %v592_v18 = vld [vmem:[%s10304_s6 + $0x198] sm:$0xff]  ;;  %p9898_p1 = pnand %p9897_p0, %p10022_p6 }
  0x64   : > { %1005 = vmatprep.subr.mxu0 %v622_v9  ;;  %1532 = vmatprep.subr.mxu1 %v624_v10  ;;  %v589_v19 = vld [vmem:[%s10304_s6 + $0x180] sm:$0xff]  ;;  %v591_v20 = vld [vmem:[%s10304_s6 + $0x190] sm:$0xff]  ;;  %v574_v21 = vld [vmem:[%s10304_s6 + $0x108] sm:$0xff] }
  0x65   : > { %1006 = vmatpush1.msra.mxu0 %v621_v11  ;;  %1533 = vmatpush1.msra.mxu1 %v623_v12  ;;  %v576_v22 = vld [vmem:[%s10304_s6 + $0x118] sm:$0xff]  ;;  %v573_v23 = vld [vmem:[%s10304_s6 + $0x100] sm:$0xff]  ;;  %v575_v24 = vld [vmem:[%s10304_s6 + $0x110] sm:$0xff]  ;;  %p9899_p2 = pneg %p9898_p1 }
  0x66   : > { %1007 = vmatprep.subr.mxu0 %v606_v13  ;;  %1534 = vmatprep.subr.mxu1 %v608_v14  ;;  %v558_v25 = vld [vmem:[%s10304_s6 + $0x88] sm:$0xff]  ;;  %v560_v26 = vld [vmem:[%s10304_s6 + $0x98] sm:$0xff]  ;;  %v557_v27 = vld [vmem:[%s10304_s6 + $0x80] sm:$0xff] }
  0x67   : > { %1008 = vmatpush1.msra.mxu0 %v605_v15  ;;  %1535 = vmatpush1.msra.mxu1 %v607_v16  ;;  %v559_v28 = vld [vmem:[%s10304_s6 + $0x90] sm:$0xff]  ;;  %v542_v29 = vld [vmem:[%s10304_s6 + $0x8] sm:$0xff]  ;;  %v544_v30 = vld [vmem:[%s10304_s6 + $0x18] sm:$0xff] }
  0x68   : > { %1009 = vmatprep.subr.mxu0 %v590_v17  ;;  %1536 = vmatprep.subr.mxu1 %v592_v18  ;;  %v541_v31 = vld [vmem:[%s10304_s6] sm:$0xff]  ;;  %v543_v32 = vld [vmem:[%s10304_s6 + $0x10] sm:$0xff]  ;;  %v658_v34 = vld [vmem:[%s10304_s6 + $0x3a8] sm:$0xff] }
  0x69   : > { %1010 = vmatpush1.msra.mxu0 %v589_v19  ;;  %1537 = vmatpush1.msra.mxu1 %v591_v20  ;;  %v464_v33 = vld [vmem:[%s15190_s0] sm:$0xff]  ;;  %v660_v35 = vld [vmem:[%s10304_s6 + $0x3b8] sm:$0xff]  ;;  %v659_v37 = vld [vmem:[%s10304_s6 + $0x3b0] sm:$0xff] }
  0x6a   : > { %1011 = vmatprep.subr.mxu0 %v574_v21  ;;  %1538 = vmatprep.subr.mxu1 %v576_v22  ;;  %v657_v36 = vld [vmem:[%s10304_s6 + $0x3a0] sm:$0xff]  ;;  %v465_v38 = vld [vmem:[%s15190_s0 + $0x8] sm:$0xff]  ;;  %v644_v40 = vld [vmem:[%s10304_s6 + $0x338] sm:$0xff] }
  0x6b   : > { %1012 = vmatpush1.msra.mxu0 %v573_v23  ;;  %1539 = vmatpush1.msra.mxu1 %v575_v24  ;;  %v642_v39 = vld [vmem:[%s10304_s6 + $0x328] sm:$0xff]  ;;  %v641_v41 = vld [vmem:[%s10304_s6 + $0x320] sm:$0xff]  ;;  %v643_v42 = vld [vmem:[%s10304_s6 + $0x330] sm:$0xff] }
  0x6c   : > { %1013 = vmatprep.subr.mxu0 %v558_v25  ;;  %1540 = vmatprep.subr.mxu1 %v560_v26  ;;  %v466_v43 = vld [vmem:[%s15190_s0 + $0x10] sm:$0xff]  ;;  %v626_v44 = vld [vmem:[%s10304_s6 + $0x2a8] sm:$0xff]  ;;  %v628_v45 = vld [vmem:[%s10304_s6 + $0x2b8] sm:$0xff] }
  0x6d   : > { %1014 = vmatpush1.msra.mxu0 %v557_v27  ;;  %1541 = vmatpush1.msra.mxu1 %v559_v28  ;;  %v625_v46 = vld [vmem:[%s10304_s6 + $0x2a0] sm:$0xff]  ;;  %v627_v47 = vld [vmem:[%s10304_s6 + $0x2b0] sm:$0xff]  ;;  %v467_v48 = vld [vmem:[%s15190_s0 + $0x18] sm:$0xff] }
  0x6e   : > { %1015 = vmatprep.subr.mxu0 %v542_v29  ;;  %1542 = vmatprep.subr.mxu1 %v544_v30  ;;  %v610_v49 = vld [vmem:[%s10304_s6 + $0x228] sm:$0xff]  ;;  %v612_v50 = vld [vmem:[%s10304_s6 + $0x238] sm:$0xff]  ;;  %v609_v51 = vld [vmem:[%s10304_s6 + $0x220] sm:$0xff] }
  0x6f   : > { %1016 = vmatpush1.msra.mxu0 %v541_v31  ;;  %1543 = vmatpush1.msra.mxu1 %v543_v32  ;;  %v611_v52 = vld [vmem:[%s10304_s6 + $0x230] sm:$0xff]  ;;  %v468_v53 = vld [vmem:[%s15190_s0 + $0x20] sm:$0xff]  ;;  %v469_v54 = vld [vmem:[%s15190_s0 + $0x28] sm:$0xff] }
  0x70   : > { %8997 = vmatmul.mubr.msk.f32.vlgmr.msra.gmra.mxu0 %vm753_vm0, %v464_v33  ;;  %9074 = vmatmul.mubr.msk.f32.vlgmr.msra.gmra.mxu1 %vm753_vm0, %v464_v33  ;;  %v470_v55 = vld [vmem:[%s15190_s0 + $0x30] sm:$0xff]  ;;  %v594_v56 = vld [vmem:[%s10304_s6 + $0x1a8] sm:$0xff]  ;;  %v596_v57 = vld [vmem:[%s10304_s6 + $0x1b8] sm:$0xff] }
  0x71   : > { %2055 = vmatprep.subr.mxu0 %v658_v34  ;;  %2582 = vmatprep.subr.mxu1 %v660_v35  ;;  %v471_v58 = vld [vmem:[%s15190_s0 + $0x38] sm:$0xff]  ;;  %v593_v59 = vld [vmem:[%s10304_s6 + $0x1a0] sm:$0xff]  ;;  %v595_v60 = vld [vmem:[%s10304_s6 + $0x1b0] sm:$0xff] }
  0x72   : > { %2056 = vmatpush1.msra.mxu0 %v657_v36  ;;  %2583 = vmatpush1.msra.mxu1 %v659_v37  ;;  %v472_v61 = vld [vmem:[%s15190_s0 + $0x40] sm:$0xff]  ;;  %v473_v62 = vld [vmem:[%s15190_s0 + $0x48] sm:$0xff]  ;;  %v474_v63 = vld [vmem:[%s15190_s0 + $0x50] sm:$0xff] }
  0x73   : > { %1055 = vmatprep.mubr.f32.mxu0 %v9958_v0  ;;  %1582 = vmatprep.mubr.f32.mxu1 %v9958_v0  ;;  %v475_v1 = vld [vmem:[%s15190_s0 + $0x58] sm:$0xff]  ;;  %v476_v2 = vld [vmem:[%s15190_s0 + $0x60] sm:$0xff]  ;;  %v477_v3 = vld [vmem:[%s15190_s0 + $0x68] sm:$0xff] }
  0x74   : > { %8998 = vmatmul.mubr.msk.f32.gmra.mxu0 %vm753_vm0, %v465_v38  ;;  %9075 = vmatmul.mubr.msk.f32.gmra.mxu1 %vm753_vm0, %v465_v38  ;;  %v478_v4 = vld [vmem:[%s15190_s0 + $0x70] sm:$0xff]  ;;  %v479_v5 = vld [vmem:[%s15190_s0 + $0x78] sm:$0xff]  ;;  %v480_v6 = vld [vmem:[%s15190_s0 + $0x80] sm:$0xff] }
  0x75   : > { %1061 = vmatprep.mubr.f32.mxu0 %v9958_v0  ;;  %1588 = vmatprep.mubr.f32.mxu1 %v9958_v0  ;;  %v481_v7 = vld [vmem:[%s15190_s0 + $0x88] sm:$0xff]  ;;  %v482_v8 = vld [vmem:[%s15190_s0 + $0x90] sm:$0xff]  ;;  %v580_v10 = vld [vmem:[%s10304_s6 + $0x138] sm:$0xff] }
  0x76   : > { %2057 = vmatprep.subr.mxu0 %v642_v39  ;;  %2584 = vmatprep.subr.mxu1 %v644_v40  ;;  %v578_v9 = vld [vmem:[%s10304_s6 + $0x128] sm:$0xff]  ;;  %v483_v11 = vld [vmem:[%s15190_s0 + $0x98] sm:$0xff]  ;;  %v577_v12 = vld [vmem:[%s10304_s6 + $0x120] sm:$0xff] }
  0x77   : > { %2058 = vmatpush1.msra.mxu0 %v641_v41  ;;  %2585 = vmatpush1.msra.mxu1 %v643_v42  ;;  %v579_v13 = vld [vmem:[%s10304_s6 + $0x130] sm:$0xff]  ;;  %v484_v14 = vld [vmem:[%s15190_s0 + $0xa0] sm:$0xff]  ;;  %v485_v15 = vld [vmem:[%s15190_s0 + $0xa8] sm:$0xff] }
  0x78   : > { %8999 = vmatmul.mubr.msk.f32.gmra.mxu0 %vm753_vm0, %v466_v43  ;;  %9076 = vmatmul.mubr.msk.f32.gmra.mxu1 %vm753_vm0, %v466_v43  ;;  %v486_v16 = vld [vmem:[%s15190_s0 + $0xb0] sm:$0xff]  ;;  %v487_v17 = vld [vmem:[%s15190_s0 + $0xb8] sm:$0xff]  ;;  %v488_v18 = vld [vmem:[%s15190_s0 + $0xc0] sm:$0xff] }
  0x79   : > { %1067 = vmatprep.mubr.f32.mxu0 %v9958_v0  ;;  %1594 = vmatprep.mubr.f32.mxu1 %v9958_v0  ;;  %v489_v19 = vld [vmem:[%s15190_s0 + $0xc8] sm:$0xff]  ;;  %v490_v20 = vld [vmem:[%s15190_s0 + $0xd0] sm:$0xff]  ;;  %v491_v21 = vld [vmem:[%s15190_s0 + $0xd8] sm:$0xff] }
  0x7a   : > { %2059 = vmatprep.subr.mxu0 %v626_v44  ;;  %2586 = vmatprep.subr.mxu1 %v628_v45  ;;  %v492_v22 = vld [vmem:[%s15190_s0 + $0xe0] sm:$0xff]  ;;  %v562_v23 = vld [vmem:[%s10304_s6 + $0xa8] sm:$0xff]  ;;  %v564_v24 = vld [vmem:[%s10304_s6 + $0xb8] sm:$0xff] }
  0x7b   : > { %2060 = vmatpush1.msra.mxu0 %v625_v46  ;;  %2587 = vmatpush1.msra.mxu1 %v627_v47  ;;  %v561_v25 = vld [vmem:[%s10304_s6 + $0xa0] sm:$0xff]  ;;  %v563_v26 = vld [vmem:[%s10304_s6 + $0xb0] sm:$0xff]  ;;  %v493_v27 = vld [vmem:[%s15190_s0 + $0xe8] sm:$0xff] }
  0x7c   : > { %9000 = vmatmul.mubr.msk.f32.gmra.mxu0 %vm753_vm0, %v467_v48  ;;  %9077 = vmatmul.mubr.msk.f32.gmra.mxu1 %vm753_vm0, %v467_v48  ;;  %v494_v28 = vld [vmem:[%s15190_s0 + $0xf0] sm:$0xff]  ;;  %v495_v29 = vld [vmem:[%s15190_s0 + $0xf8] sm:$0xff]  ;;  %v496_v30 = vld [vmem:[%s15190_s0 + $0x100] sm:$0xff]  ;;  %v673_v48 = vlaneseq }
  0x7d   : > { %1073 = vmatprep.mubr.f32.mxu0 %v9958_v0  ;;  %1600 = vmatprep.mubr.f32.mxu1 %v9958_v0  ;;  %v497_v31 = vld [vmem:[%s15190_s0 + $0x108] sm:$0xff]  ;;  %v498_v32 = vld [vmem:[%s15190_s0 + $0x110] sm:$0xff]  ;;  %v499_v33 = vld [vmem:[%s15190_s0 + $0x118] sm:$0xff] }
  0x7e   : > { %2061 = vmatprep.subr.mxu0 %v610_v49  ;;  %2588 = vmatprep.subr.mxu1 %v612_v50  ;;  %v500_v34 = vld [vmem:[%s15190_s0 + $0x120] sm:$0xff]  ;;  %v501_v35 = vld [vmem:[%s15190_s0 + $0x128] sm:$0xff]  ;;  %v502_v36 = vld [vmem:[%s15190_s0 + $0x130] sm:$0xff]  ;;  %v10696_v50 = vshrl.u32 %v673_v48, 7 }
  0x7f   : > { %2062 = vmatpush1.msra.mxu0 %v609_v51  ;;  %2589 = vmatpush1.msra.mxu1 %v611_v52  ;;  %v546_v37 = vld [vmem:[%s10304_s6 + $0x28] sm:$0xff]  ;;  %v548_v38 = vld [vmem:[%s10304_s6 + $0x38] sm:$0xff]  ;;  %v545_v39 = vld [vmem:[%s10304_s6 + $0x20] sm:$0xff] }
  0x80   : > { %9001 = vmatmul.mubr.msk.f32.gmra.mxu0 %vm753_vm0, %v468_v53  ;;  %9078 = vmatmul.mubr.msk.f32.gmra.mxu1 %vm753_vm0, %v468_v53  ;;  %v547_v40 = vld [vmem:[%s10304_s6 + $0x30] sm:$0xff]  ;;  %v503_v41 = vld [vmem:[%s15190_s0 + $0x138] sm:$0xff]  ;;  %v504_v42 = vld [vmem:[%s15190_s0 + $0x140] sm:$0xff]  ;;  %v675_v52 = vsub.s32 0, %v10696_v50  ;;  %v683_v53 = vsub.s32 2, %v10696_v50 }
  0x81   : > { %1079 = vmatprep.mubr.f32.mxu0 %v9958_v0  ;;  %1606 = vmatprep.mubr.f32.mxu1 %v9958_v0  ;;  %v505_v43 = vld [vmem:[%s15190_s0 + $0x148] sm:$0xff]  ;;  %v506_v44 = vld [vmem:[%s15190_s0 + $0x150] sm:$0xff]  ;;  %v507_v45 = vld [vmem:[%s15190_s0 + $0x158] sm:$0xff] }
  0x82   : > { %2063 = vmatprep.subr.mxu0 %v594_v56  ;;  %2590 = vmatprep.subr.mxu1 %v596_v57  ;;  %v508_v46 = vld [vmem:[%s15190_s0 + $0x160] sm:$0xff]  ;;  %v509_v47 = vld [vmem:[%s15190_s0 + $0x168] sm:$0xff]  ;;  %v510_v49 = vld [vmem:[%s15190_s0 + $0x170] sm:$0xff]  ;;  %v687_v56 = vsub.s32 3, %v10696_v50 }
  0x83   : > { %2064 = vmatpush1.msra.mxu0 %v593_v59  ;;  %2591 = vmatpush1.msra.mxu1 %v595_v60  ;;  %v511_v51 = vld [vmem:[%s15190_s0 + $0x178] sm:$0xff]  ;;  %v662_v57 = vld [vmem:[%s10304_s6 + $0x3c8] sm:$0xff]  ;;  %v512_v60 = vld [vmem:[%s15190_s0 + $0x180] sm:$0xff] }
  0x84   : > { %9002 = vmatmul.mubr.msk.f32.gmra.mxu0 %vm753_vm0, %v469_v54  ;;  %9079 = vmatmul.mubr.msk.f32.gmra.mxu1 %vm753_vm0, %v469_v54  ;;  %v669_v54 = vld [vmem:[%s10701_s8] sm:$0xff] }
  0x85   : > { %1085 = vmatprep.mubr.f32.mxu0 %v9958_v0  ;;  %1612 = vmatprep.mubr.f32.mxu1 %v9958_v0  ;;  %v10723_v59 = vrot.slane %v669_v54, %v675_v52 }
  0x86   : > { %2065 = vmatprep.subr.mxu0 %v578_v9  ;;  %2592 = vmatprep.subr.mxu1 %v580_v10 }
  0x87   : > { %2066 = vmatpush1.msra.mxu0 %v577_v12  ;;  %2593 = vmatpush1.msra.mxu1 %v579_v13 }
  0x88   : > { %9003 = vmatmul.mubr.msk.f32.gmra.mxu0 %vm753_vm0, %v470_v55  ;;  %9080 = vmatmul.mubr.msk.f32.gmra.mxu1 %vm753_vm0, %v470_v55  ;;  %v679_v55 = vsub.s32 1, %v10696_v50 }
  0x89   : > { %1091 = vmatprep.mubr.f32.mxu0 %v9958_v0  ;;  %1618 = vmatprep.mubr.f32.mxu1 %v9958_v0 }
  0x8a   : > { %2067 = vmatprep.subr.mxu0 %v562_v23  ;;  %2594 = vmatprep.subr.mxu1 %v564_v24 }
  0x8b   : > { %2068 = vmatpush1.msra.mxu0 %v561_v25  ;;  %2595 = vmatpush1.msra.mxu1 %v563_v26 }
  0x8c   : > { %9004 = vmatmul.mubr.msk.f32.gmra.mxu0 %vm753_vm0, %v471_v58  ;;  %9081 = vmatmul.mubr.msk.f32.gmra.mxu1 %vm753_vm0, %v471_v58  ;;  %v664_v58 = vld [vmem:[%s10304_s6 + $0x3d8] sm:$0xff] }
  0x8d   : > { %1097 = vmatprep.mubr.f32.mxu0 %v9958_v0  ;;  %1624 = vmatprep.mubr.f32.mxu1 %v9958_v0 }
  0x8e   : > { %2069 = vmatprep.subr.mxu0 %v546_v37  ;;  %2596 = vmatprep.subr.mxu1 %v548_v38 }
  0x8f   : > { %2070 = vmatpush1.msra.mxu0 %v545_v39  ;;  %2597 = vmatpush1.msra.mxu1 %v547_v40 }
  0x90   : > { %9005 = vmatmul.mubr.msk.f32.gmra.mxu0 %vm753_vm0, %v472_v61  ;;  %9082 = vmatmul.mubr.msk.f32.gmra.mxu1 %vm753_vm0, %v472_v61  ;;  %v10730_v61 = vrot.slane %v669_v54, %v683_v53 }
  0x91   : > { %1103 = vmatprep.mubr.f32.mxu0 %v9958_v0  ;;  %1630 = vmatprep.mubr.f32.mxu1 %v9958_v0 }
  0x92   : > { %3109 = vmatprep.subr.mxu0 %v662_v57  ;;  %3636 = vmatprep.subr.mxu1 %v664_v58  ;;  %v516_v57 = vld [vmem:[%s15190_s0 + $0x1a0] sm:$0xff] }
  0x94   : > { %9006 = vmatmul.mubr.msk.f32.gmra.mxu0 %vm753_vm0, %v473_v62  ;;  %9083 = vmatmul.mubr.msk.f32.gmra.mxu1 %vm753_vm0, %v473_v62  ;;  %v10734_v62 = vrot.slane %v669_v54, %v679_v55 }
  0x95   : > { %1109 = vmatprep.mubr.f32.mxu0 %v9958_v0  ;;  %1636 = vmatprep.mubr.f32.mxu1 %v9958_v0 }
  0x98   : > { %9007 = vmatmul.mubr.msk.f32.gmra.mxu0 %vm753_vm0, %v474_v63  ;;  %9084 = vmatmul.mubr.msk.f32.gmra.mxu1 %vm753_vm0, %v474_v63  ;;  %v10738_v63 = vrot.slane %v669_v54, %v687_v56 }
  0x99   : > { %1115 = vmatprep.mubr.f32.mxu0 %v9958_v0  ;;  %1642 = vmatprep.mubr.f32.mxu1 %v9958_v0 }
  0x9c   : > { %9008 = vmatmul.mubr.msk.f32.gmra.mxu0 %vm753_vm0, %v475_v1  ;;  %9085 = vmatmul.mubr.msk.f32.gmra.mxu1 %vm753_vm0, %v475_v1 }
  0x9d   : > { %1121 = vmatprep.mubr.f32.mxu0 %v9958_v0  ;;  %1648 = vmatprep.mubr.f32.mxu1 %v9958_v0 }
  0xa0   : > { %9009 = vmatmul.mubr.msk.f32.gmra.mxu0 %vm753_vm0, %v476_v2  ;;  %9086 = vmatmul.mubr.msk.f32.gmra.mxu1 %vm753_vm0, %v476_v2 }
  0xa1   : > { %1127 = vmatprep.mubr.f32.mxu0 %v9958_v0  ;;  %1654 = vmatprep.mubr.f32.mxu1 %v9958_v0 }
  0xa4   : > { %9010 = vmatmul.mubr.msk.f32.gmra.mxu0 %vm753_vm0, %v477_v3  ;;  %9087 = vmatmul.mubr.msk.f32.gmra.mxu1 %vm753_vm0, %v477_v3 }
  0xa5   : > { %1133 = vmatprep.mubr.f32.mxu0 %v9958_v0  ;;  %1660 = vmatprep.mubr.f32.mxu1 %v9958_v0 }
  0xa8   : > { %9011 = vmatmul.mubr.msk.f32.gmra.mxu0 %vm753_vm0, %v478_v4  ;;  %9088 = vmatmul.mubr.msk.f32.gmra.mxu1 %vm753_vm0, %v478_v4 }
  0xa9   : > { %1139 = vmatprep.mubr.f32.mxu0 %v9958_v0  ;;  %1666 = vmatprep.mubr.f32.mxu1 %v9958_v0 }
  0xac   : > { %9012 = vmatmul.mubr.msk.f32.gmra.mxu0 %vm753_vm0, %v479_v5  ;;  %9089 = vmatmul.mubr.msk.f32.gmra.mxu1 %vm753_vm0, %v479_v5  ;;  %v513_v5 = vld [vmem:[%s15190_s0 + $0x188] sm:$0xff] }
  0xad   : > { %1145 = vmatprep.mubr.f32.mxu0 %v9958_v0  ;;  %1672 = vmatprep.mubr.f32.mxu1 %v9958_v0 }
  0xb0   : > { %9013 = vmatmul.mubr.msk.f32.gmra.mxu0 %vm753_vm0, %v480_v6  ;;  %9090 = vmatmul.mubr.msk.f32.gmra.mxu1 %vm753_vm0, %v480_v6 }
  0xb1   : > { %1151 = vmatprep.mubr.f32.mxu0 %v9958_v0  ;;  %1678 = vmatprep.mubr.f32.mxu1 %v9958_v0 }
  0xb4   : > { %9014 = vmatmul.mubr.msk.f32.gmra.mxu0 %vm753_vm0, %v481_v7  ;;  %9091 = vmatmul.mubr.msk.f32.gmra.mxu1 %vm753_vm0, %v481_v7 }
  0xb5   : > { %1157 = vmatprep.mubr.f32.mxu0 %v9958_v0  ;;  %1684 = vmatprep.mubr.f32.mxu1 %v9958_v0 }
  0xb8   : > { %9015 = vmatmul.mubr.msk.f32.gmra.mxu0 %vm753_vm0, %v482_v8  ;;  %9092 = vmatmul.mubr.msk.f32.gmra.mxu1 %vm753_vm0, %v482_v8 }
  0xb9   : > { %1163 = vmatprep.mubr.f32.mxu0 %v9958_v0  ;;  %1690 = vmatprep.mubr.f32.mxu1 %v9958_v0 }
  0xbc   : > { %9016 = vmatmul.mubr.msk.f32.gmra.mxu0 %vm753_vm0, %v483_v11  ;;  %9093 = vmatmul.mubr.msk.f32.gmra.mxu1 %vm753_vm0, %v483_v11 }
  0xbd   : > { %1169 = vmatprep.mubr.f32.mxu0 %v9958_v0  ;;  %1696 = vmatprep.mubr.f32.mxu1 %v9958_v0 }
  0xc0   : > { %9017 = vmatmul.mubr.msk.f32.gmra.mxu0 %vm753_vm0, %v484_v14  ;;  %9094 = vmatmul.mubr.msk.f32.gmra.mxu1 %vm753_vm0, %v484_v14  ;;  %v514_v14 = vld [vmem:[%s15190_s0 + $0x190] sm:$0xff] }
  0xc1   : > { %1175 = vmatprep.mubr.f32.mxu0 %v9958_v0  ;;  %1702 = vmatprep.mubr.f32.mxu1 %v9958_v0 }
  0xc4   : > { %9018 = vmatmul.mubr.msk.f32.gmra.mxu0 %vm753_vm0, %v485_v15  ;;  %9095 = vmatmul.mubr.msk.f32.gmra.mxu1 %vm753_vm0, %v485_v15 }
  0xc5   : > { %1181 = vmatprep.mubr.f32.mxu0 %v9958_v0  ;;  %1708 = vmatprep.mubr.f32.mxu1 %v9958_v0 }
  0xc8   : > { %9019 = vmatmul.mubr.msk.f32.gmra.mxu0 %vm753_vm0, %v486_v16  ;;  %9096 = vmatmul.mubr.msk.f32.gmra.mxu1 %vm753_vm0, %v486_v16 }
  0xc9   : > { %1187 = vmatprep.mubr.f32.mxu0 %v9958_v0  ;;  %1714 = vmatprep.mubr.f32.mxu1 %v9958_v0 }
  0xcc   : > { %9020 = vmatmul.mubr.msk.f32.gmra.mxu0 %vm753_vm0, %v487_v17  ;;  %9097 = vmatmul.mubr.msk.f32.gmra.mxu1 %vm753_vm0, %v487_v17 }
  0xcd   : > { %1193 = vmatprep.mubr.f32.mxu0 %v9958_v0  ;;  %1720 = vmatprep.mubr.f32.mxu1 %v9958_v0 }
  0xd0   : > { %9021 = vmatmul.mubr.msk.f32.gmra.mxu0 %vm753_vm0, %v488_v18  ;;  %9098 = vmatmul.mubr.msk.f32.gmra.mxu1 %vm753_vm0, %v488_v18 }
  0xd1   : > { %1199 = vmatprep.mubr.f32.mxu0 %v9958_v0  ;;  %1726 = vmatprep.mubr.f32.mxu1 %v9958_v0 }
  0xd4   : > { %9022 = vmatmul.mubr.msk.f32.gmra.mxu0 %vm753_vm0, %v489_v19  ;;  %9099 = vmatmul.mubr.msk.f32.gmra.mxu1 %vm753_vm0, %v489_v19 }
  0xd5   : > { %1205 = vmatprep.mubr.f32.mxu0 %v9958_v0  ;;  %1732 = vmatprep.mubr.f32.mxu1 %v9958_v0 }
  0xd8   : > { %9023 = vmatmul.mubr.msk.f32.gmra.mxu0 %vm753_vm0, %v490_v20  ;;  %9100 = vmatmul.mubr.msk.f32.gmra.mxu1 %vm753_vm0, %v490_v20 }
  0xd9   : > { %1211 = vmatprep.mubr.f32.mxu0 %v9958_v0  ;;  %1738 = vmatprep.mubr.f32.mxu1 %v9958_v0 }
  0xdc   : > { %9024 = vmatmul.mubr.msk.f32.gmra.mxu0 %vm753_vm0, %v491_v21  ;;  %9101 = vmatmul.mubr.msk.f32.gmra.mxu1 %vm753_vm0, %v491_v21 }
  0xdd   : > { %1217 = vmatprep.mubr.f32.mxu0 %v9958_v0  ;;  %1744 = vmatprep.mubr.f32.mxu1 %v9958_v0 }
  0xe0   : > { %9025 = vmatmul.mubr.msk.f32.gmra.mxu0 %vm753_vm0, %v492_v22  ;;  %9102 = vmatmul.mubr.msk.f32.gmra.mxu1 %vm753_vm0, %v492_v22 }
  0xe1   : > { %1223 = vmatprep.mubr.f32.mxu0 %v9958_v0  ;;  %1750 = vmatprep.mubr.f32.mxu1 %v9958_v0 }
  0xe4   : > { %9026 = vmatmul.mubr.msk.f32.gmra.mxu0 %vm753_vm0, %v493_v27  ;;  %9103 = vmatmul.mubr.msk.f32.gmra.mxu1 %vm753_vm0, %v493_v27 }
  0xe5   : > { %1229 = vmatprep.mubr.f32.mxu0 %v9958_v0  ;;  %1756 = vmatprep.mubr.f32.mxu1 %v9958_v0 }
  0xe8   : > { %9027 = vmatmul.mubr.msk.f32.gmra.mxu0 %vm753_vm0, %v494_v28  ;;  %9104 = vmatmul.mubr.msk.f32.gmra.mxu1 %vm753_vm0, %v494_v28 }
  0xe9   : > { %1235 = vmatprep.mubr.f32.mxu0 %v9958_v0  ;;  %1762 = vmatprep.mubr.f32.mxu1 %v9958_v0 }
  0xec   : > { %9028 = vmatmul.mubr.msk.f32.gmra.mxu0 %vm753_vm0, %v495_v29  ;;  %9105 = vmatmul.mubr.msk.f32.gmra.mxu1 %vm753_vm0, %v495_v29 }
  0xed   : > { %1241 = vmatprep.mubr.f32.mxu0 %v9958_v0  ;;  %1768 = vmatprep.mubr.f32.mxu1 %v9958_v0 }
  0xf0   : > { %9029 = vmatmul.mubr.msk.f32.gmra.mxu0 %vm753_vm0, %v496_v30  ;;  %9106 = vmatmul.mubr.msk.f32.gmra.mxu1 %vm753_vm0, %v496_v30 }
  0xf1   : > { %1247 = vmatprep.mubr.f32.mxu0 %v9958_v0  ;;  %1774 = vmatprep.mubr.f32.mxu1 %v9958_v0 }
  0xf4   : > { %9030 = vmatmul.mubr.msk.f32.gmra.mxu0 %vm753_vm0, %v497_v31  ;;  %9107 = vmatmul.mubr.msk.f32.gmra.mxu1 %vm753_vm0, %v497_v31 }
  0xf5   : > { %1253 = vmatprep.mubr.f32.mxu0 %v9958_v0  ;;  %1780 = vmatprep.mubr.f32.mxu1 %v9958_v0 }
  0xf8   : > { %9031 = vmatmul.mubr.msk.f32.gmra.mxu0 %vm753_vm0, %v498_v32  ;;  %9108 = vmatmul.mubr.msk.f32.gmra.mxu1 %vm753_vm0, %v498_v32 }
  0xf9   : > { %1259 = vmatprep.mubr.f32.mxu0 %v9958_v0  ;;  %1786 = vmatprep.mubr.f32.mxu1 %v9958_v0 }
  0xfc   : > { %9032 = vmatmul.mubr.msk.f32.gmra.mxu0 %vm753_vm0, %v499_v33  ;;  %9109 = vmatmul.mubr.msk.f32.gmra.mxu1 %vm753_vm0, %v499_v33 }
  0xfd   : > { %1265 = vmatprep.mubr.f32.mxu0 %v9958_v0  ;;  %1792 = vmatprep.mubr.f32.mxu1 %v9958_v0 }
 0x100   : > { %9033 = vmatmul.mubr.msk.f32.gmra.mxu0 %vm753_vm0, %v500_v34  ;;  %9110 = vmatmul.mubr.msk.f32.gmra.mxu1 %vm753_vm0, %v500_v34 }
 0x101   : > { %1271 = vmatprep.mubr.f32.mxu0 %v9958_v0  ;;  %1798 = vmatprep.mubr.f32.mxu1 %v9958_v0 }
 0x104   : > { %9034 = vmatmul.mubr.msk.f32.gmra.mxu0 %vm753_vm0, %v501_v35  ;;  %9111 = vmatmul.mubr.msk.f32.gmra.mxu1 %vm753_vm0, %v501_v35  ;;  %v515_v35 = vld [vmem:[%s15190_s0 + $0x198] sm:$0xff] }
 0x105   : > { %1277 = vmatprep.mubr.f32.mxu0 %v9958_v0  ;;  %1804 = vmatprep.mubr.f32.mxu1 %v9958_v0 }
 0x108   : > { %9035 = vmatmul.mubr.msk.f32.gmra.mxu0 %vm753_vm0, %v502_v36  ;;  %9112 = vmatmul.mubr.msk.f32.gmra.mxu1 %vm753_vm0, %v502_v36 }
 0x109   : > { %1283 = vmatprep.mubr.f32.mxu0 %v9958_v0  ;;  %1810 = vmatprep.mubr.f32.mxu1 %v9958_v0 }
 0x10c   : > { %9036 = vmatmul.mubr.msk.f32.gmra.mxu0 %vm753_vm0, %v503_v41  ;;  %9113 = vmatmul.mubr.msk.f32.gmra.mxu1 %vm753_vm0, %v503_v41 }
 0x10d   : > { %1289 = vmatprep.mubr.f32.mxu0 %v9958_v0  ;;  %1816 = vmatprep.mubr.f32.mxu1 %v9958_v0 }
 0x110   : > { %9037 = vmatmul.mubr.msk.f32.gmra.mxu0 %vm753_vm0, %v504_v42  ;;  %9114 = vmatmul.mubr.msk.f32.gmra.mxu1 %vm753_vm0, %v504_v42 }
 0x111   : > { %1295 = vmatprep.mubr.f32.mxu0 %v9958_v0  ;;  %1822 = vmatprep.mubr.f32.mxu1 %v9958_v0 }
 0x114   : > { %9038 = vmatmul.mubr.msk.f32.gmra.mxu0 %vm753_vm0, %v505_v43  ;;  %9115 = vmatmul.mubr.msk.f32.gmra.mxu1 %vm753_vm0, %v505_v43 }
 0x115   : > { %1301 = vmatprep.mubr.f32.mxu0 %v9958_v0  ;;  %1828 = vmatprep.mubr.f32.mxu1 %v9958_v0 }
 0x118   : > { %9039 = vmatmul.mubr.msk.f32.gmra.mxu0 %vm753_vm0, %v506_v44  ;;  %9116 = vmatmul.mubr.msk.f32.gmra.mxu1 %vm753_vm0, %v506_v44 }
 0x119   : > { %1307 = vmatprep.mubr.f32.mxu0 %v9958_v0  ;;  %1834 = vmatprep.mubr.f32.mxu1 %v9958_v0 }
 0x11c   : > { %9040 = vmatmul.mubr.msk.f32.gmra.mxu0 %vm753_vm0, %v507_v45  ;;  %9117 = vmatmul.mubr.msk.f32.gmra.mxu1 %vm753_vm0, %v507_v45 }
 0x11d   : > { %1313 = vmatprep.mubr.f32.mxu0 %v9958_v0  ;;  %1840 = vmatprep.mubr.f32.mxu1 %v9958_v0 }
 0x120   : > { %9041 = vmatmul.mubr.msk.f32.gmra.mxu0 %vm753_vm0, %v508_v46  ;;  %9118 = vmatmul.mubr.msk.f32.gmra.mxu1 %vm753_vm0, %v508_v46 }
 0x121   : > { %1319 = vmatprep.mubr.f32.mxu0 %v9958_v0  ;;  %1846 = vmatprep.mubr.f32.mxu1 %v9958_v0 }
 0x124   : > { %9042 = vmatmul.mubr.msk.f32.gmra.mxu0 %vm753_vm0, %v509_v47  ;;  %9119 = vmatmul.mubr.msk.f32.gmra.mxu1 %vm753_vm0, %v509_v47 }
 0x125   : > { %1325 = vmatprep.mubr.f32.mxu0 %v9958_v0  ;;  %1852 = vmatprep.mubr.f32.mxu1 %v9958_v0 }
 0x128   : > { %9043 = vmatmul.mubr.msk.f32.gmra.mxu0 %vm753_vm0, %v510_v49  ;;  %9120 = vmatmul.mubr.msk.f32.gmra.mxu1 %vm753_vm0, %v510_v49 }
 0x129   : > { %1331 = vmatprep.mubr.f32.mxu0 %v9958_v0  ;;  %1858 = vmatprep.mubr.f32.mxu1 %v9958_v0 }
 0x12c   : > { %9044 = vmatmul.mubr.msk.f32.gmra.mxu0 %vm753_vm0, %v511_v51  ;;  %9121 = vmatmul.mubr.msk.f32.gmra.mxu1 %vm753_vm0, %v511_v51 }
 0x12d   : > { %1337 = vmatprep.mubr.f32.mxu0 %v9958_v0  ;;  %1864 = vmatprep.mubr.f32.mxu1 %v9958_v0 }
 0x130   : > { %v1051_v1 = vpop.f32.mrf.mxu0  ;;  %9045 = vmatmul.mubr.msk.f32.gmra.mxu0 %vm753_vm0, %v512_v60  ;;  %v1578_v2 = vpop.f32.mrf.mxu1  ;;  %9122 = vmatmul.mubr.msk.f32.gmra.mxu1 %vm753_vm0, %v512_v60 }
 0x131   : > { %v1052_v3 = vadd.f32 %v1051_v1, %v10723_v59  ;;  %v1579_v4 = vadd.f32 %v1578_v2, %v10730_v61  ;;  %1343 = vmatprep.mubr.f32.mxu0 %v9958_v0  ;;  %1870 = vmatprep.mubr.f32.mxu1 %v9958_v0 }
 0x132   : > { %v1053_v6 = vpop.f32.mrf.mxu0  ;;  %v1580_v7 = vpop.f32.mrf.mxu1 }
 0x133   : > { %v5201_v8 = vmax.f32 %v1052_v3, 1.5  ;;  %v5203_v9 = vmax.f32 %v1579_v4, 1.5  ;;  %v1054_v10 = vadd.f32 %v1053_v6, %v10734_v62  ;;  %v1581_v11 = vadd.f32 %v1580_v7, %v10738_v63 }
 0x134   : > { %v1057_v12 = vpop.f32.mrf.mxu0  ;;  %9046 = vmatmul.mubr.msk.f32.gmra.mxu0 %vm753_vm0, %v513_v5  ;;  %v1584_v13 = vpop.f32.mrf.mxu1  ;;  %9123 = vmatmul.mubr.msk.f32.gmra.mxu1 %vm753_vm0, %v513_v5 }
 0x135   : > { %v6433_v15 = vmin.f32 %v5201_v8, 1.7  ;;  %v6435_v16 = vmin.f32 %v5203_v9, 1.7  ;;  %v5202_v17 = vmax.f32 %v1054_v10, 1.5  ;;  %v5204_v18 = vmax.f32 %v1581_v11, 1.5  ;;  %1349 = vmatprep.mubr.f32.mxu0 %v9958_v0  ;;  %1876 = vmatprep.mubr.f32.mxu1 %v9958_v0 }
 0x136   : > { %v1058_v19 = vadd.f32 %v1057_v12, %v10723_v59  ;;  %v1585_v20 = vadd.f32 %v1584_v13, %v10730_v61  ;;  %v1059_v21 = vpop.f32.mrf.mxu0  ;;  %v1586_v22 = vpop.f32.mrf.mxu1  ;;  %v517_v11 = vld [vmem:[%s15190_s0 + $0x1a8] sm:$0xff] }
 0x137   : > { %7665 = vst [vmem:[%s10763_s27] sm:$0xff] %v6433_v15  ;;  %7667 = vst [vmem:[%s10763_s27 + $0x10] sm:$0xff] %v6435_v16  ;;  %v6434_v23 = vmin.f32 %v5202_v17, 1.7  ;;  %v6436_v24 = vmin.f32 %v5204_v18, 1.7  ;;  %v1060_v25 = vadd.f32 %v1059_v21, %v10734_v62  ;;  %v1587_v26 = vadd.f32 %v1586_v22, %v10738_v63 }
 0x138   : > { %v5217_v27 = vmax.f32 %v1058_v19, 1.5  ;;  %v5219_v28 = vmax.f32 %v1585_v20, 1.5  ;;  %v1063_v29 = vpop.f32.mrf.mxu0  ;;  %9047 = vmatmul.mubr.msk.f32.gmra.mxu0 %vm753_vm0, %v514_v14  ;;  %v1590_v30 = vpop.f32.mrf.mxu1  ;;  %9124 = vmatmul.mubr.msk.f32.gmra.mxu1 %vm753_vm0, %v514_v14 }
 0x139   : > { %7666 = vst [vmem:[%s10763_s27 + $0x8] sm:$0xff] %v6434_v23  ;;  %7668 = vst [vmem:[%s10763_s27 + $0x18] sm:$0xff] %v6436_v24  ;;  %v5218_v31 = vmax.f32 %v1060_v25, 1.5  ;;  %v5220_v32 = vmax.f32 %v1587_v26, 1.5  ;;  %v1064_v33 = vadd.f32 %v1063_v29, %v10723_v59  ;;  %v1591_v34 = vadd.f32 %v1590_v30, %v10730_v61  ;;  %1355 = vmatprep.mubr.f32.mxu0 %v9958_v0 }
 0x13a   : > { %1882 = vmatprep.mubr.f32.mxu1 %v9958_v0  ;;  %v6449_v36 = vmin.f32 %v5217_v27, 1.7  ;;  %v6451_v37 = vmin.f32 %v5219_v28, 1.7  ;;  %v1065_v38 = vpop.f32.mrf.mxu0  ;;  %v1592_v39 = vpop.f32.mrf.mxu1 }
 0x13b   : > { %v6450_v40 = vmin.f32 %v5218_v31, 1.7  ;;  %v6452_v41 = vmin.f32 %v5220_v32, 1.7  ;;  %v5233_v42 = vmax.f32 %v1064_v33, 1.5  ;;  %v5235_v43 = vmax.f32 %v1591_v34, 1.5 }
 0x13c   : > { %7681 = vst [vmem:[%s10763_s27 + $0x80] sm:$0xff] %v6449_v36  ;;  %7683 = vst [vmem:[%s10763_s27 + $0x90] sm:$0xff] %v6451_v37  ;;  %v1066_v44 = vadd.f32 %v1065_v38, %v10734_v62  ;;  %v1593_v45 = vadd.f32 %v1592_v39, %v10738_v63  ;;  %v1069_v46 = vpop.f32.mrf.mxu0  ;;  %9048 = vmatmul.mubr.msk.f32.gmra.mxu0 %vm753_vm0, %v515_v35  ;;  %v1596_v47 = vpop.f32.mrf.mxu1  ;;  %9125 = vmatmul.mubr.msk.f32.gmra.mxu1 %vm753_vm0, %v515_v35  ;;  %v518_v32 = vld [vmem:[%s15190_s0 + $0x1b0] sm:$0xff] }
 0x13d   : > { %7682 = vst [vmem:[%s10763_s27 + $0x88] sm:$0xff] %v6450_v40  ;;  %7684 = vst [vmem:[%s10763_s27 + $0x98] sm:$0xff] %v6452_v41  ;;  %v6465_v48 = vmin.f32 %v5233_v42, 1.7  ;;  %v6467_v49 = vmin.f32 %v5235_v43, 1.7  ;;  %v1070_v51 = vadd.f32 %v1069_v46, %v10723_v59  ;;  %v1597_v54 = vadd.f32 %v1596_v47, %v10730_v61  ;;  %1361 = vmatprep.mubr.f32.mxu0 %v9958_v0 }
 0x13e   : > { %1888 = vmatprep.mubr.f32.mxu1 %v9958_v0  ;;  %v5234_v58 = vmax.f32 %v1066_v44, 1.5  ;;  %v5236_v60 = vmax.f32 %v1593_v45, 1.5  ;;  %v1071_v1 = vpop.f32.mrf.mxu0  ;;  %v1598_v2 = vpop.f32.mrf.mxu1 }
 0x13f   : > { %7697 = vst [vmem:[%s10763_s27 + $0x100] sm:$0xff] %v6465_v48  ;;  %7699 = vst [vmem:[%s10763_s27 + $0x110] sm:$0xff] %v6467_v49  ;;  %v5249_v3 = vmax.f32 %v1070_v51, 1.5  ;;  %v5251_v4 = vmax.f32 %v1597_v54, 1.5  ;;  %v1072_v5 = vadd.f32 %v1071_v1, %v10734_v62  ;;  %v1599_v6 = vadd.f32 %v1598_v2, %v10738_v63  ;;  %v519_v49 = vld [vmem:[%s15190_s0 + $0x1b8] sm:$0xff] }
 0x140   : > { %v6466_v7 = vmin.f32 %v5234_v58, 1.7  ;;  %v6468_v8 = vmin.f32 %v5236_v60, 1.7  ;;  %v1075_v9 = vpop.f32.mrf.mxu0  ;;  %9049 = vmatmul.mubr.msk.f32.gmra.mxu0 %vm753_vm0, %v516_v57  ;;  %v1602_v10 = vpop.f32.mrf.mxu1  ;;  %9126 = vmatmul.mubr.msk.f32.gmra.mxu1 %vm753_vm0, %v516_v57 }
 0x141   : > { %v6481_v12 = vmin.f32 %v5249_v3, 1.7  ;;  %v6483_v13 = vmin.f32 %v5251_v4, 1.7  ;;  %v5250_v14 = vmax.f32 %v1072_v5, 1.5  ;;  %v5252_v15 = vmax.f32 %v1599_v6, 1.5  ;;  %1367 = vmatprep.mubr.f32.mxu0 %v9958_v0  ;;  %1894 = vmatprep.mubr.f32.mxu1 %v9958_v0 }
 0x142   : > { %7698 = vst [vmem:[%s10763_s27 + $0x108] sm:$0xff] %v6466_v7  ;;  %7700 = vst [vmem:[%s10763_s27 + $0x118] sm:$0xff] %v6468_v8  ;;  %v1076_v16 = vadd.f32 %v1075_v9, %v10723_v59  ;;  %v1603_v17 = vadd.f32 %v1602_v10, %v10730_v61  ;;  %v1077_v18 = vpop.f32.mrf.mxu0  ;;  %v1604_v19 = vpop.f32.mrf.mxu1  ;;  %v520_v8 = vld [vmem:[%s15190_s0 + $0x1c0] sm:$0xff] }
 0x143   : > { %7713 = vst [vmem:[%s10763_s27 + $0x180] sm:$0xff] %v6481_v12  ;;  %7715 = vst [vmem:[%s10763_s27 + $0x190] sm:$0xff] %v6483_v13  ;;  %v6482_v20 = vmin.f32 %v5250_v14, 1.7  ;;  %v6484_v21 = vmin.f32 %v5252_v15, 1.7  ;;  %v1078_v22 = vadd.f32 %v1077_v18, %v10734_v62  ;;  %v1605_v23 = vadd.f32 %v1604_v19, %v10738_v63 }
 0x144   : > { %v5265_v24 = vmax.f32 %v1076_v16, 1.5  ;;  %v5267_v25 = vmax.f32 %v1603_v17, 1.5  ;;  %v1081_v26 = vpop.f32.mrf.mxu0  ;;  %9050 = vmatmul.mubr.msk.f32.gmra.mxu0 %vm753_vm0, %v517_v11  ;;  %v1608_v27 = vpop.f32.mrf.mxu1  ;;  %9127 = vmatmul.mubr.msk.f32.gmra.mxu1 %vm753_vm0, %v517_v11 }
 0x145   : > { %7714 = vst [vmem:[%s10763_s27 + $0x188] sm:$0xff] %v6482_v20  ;;  %7716 = vst [vmem:[%s10763_s27 + $0x198] sm:$0xff] %v6484_v21  ;;  %v5266_v28 = vmax.f32 %v1078_v22, 1.5  ;;  %v5268_v29 = vmax.f32 %v1605_v23, 1.5  ;;  %v1082_v30 = vadd.f32 %v1081_v26, %v10723_v59  ;;  %v1609_v31 = vadd.f32 %v1608_v27, %v10730_v61  ;;  %1373 = vmatprep.mubr.f32.mxu0 %v9958_v0 }
 0x146   : > { %1900 = vmatprep.mubr.f32.mxu1 %v9958_v0  ;;  %v6497_v33 = vmin.f32 %v5265_v24, 1.7  ;;  %v6499_v34 = vmin.f32 %v5267_v25, 1.7  ;;  %v1083_v35 = vpop.f32.mrf.mxu0  ;;  %v1610_v36 = vpop.f32.mrf.mxu1 }
 0x147   : > { %v6498_v37 = vmin.f32 %v5266_v28, 1.7  ;;  %v6500_v38 = vmin.f32 %v5268_v29, 1.7  ;;  %v5281_v39 = vmax.f32 %v1082_v30, 1.5  ;;  %v5283_v40 = vmax.f32 %v1609_v31, 1.5 }
 0x148   : > { %7729 = vst [vmem:[%s10763_s27 + $0x200] sm:$0xff] %v6497_v33  ;;  %7731 = vst [vmem:[%s10763_s27 + $0x210] sm:$0xff] %v6499_v34  ;;  %v1084_v41 = vadd.f32 %v1083_v35, %v10734_v62  ;;  %v1611_v42 = vadd.f32 %v1610_v36, %v10738_v63  ;;  %v1087_v43 = vpop.f32.mrf.mxu0  ;;  %9051 = vmatmul.mubr.msk.f32.gmra.mxu0 %vm753_vm0, %v518_v32  ;;  %v1614_v44 = vpop.f32.mrf.mxu1  ;;  %9128 = vmatmul.mubr.msk.f32.gmra.mxu1 %vm753_vm0, %v518_v32  ;;  %v521_v29 = vld [vmem:[%s15190_s0 + $0x1c8] sm:$0xff] }
 0x149   : > { %7730 = vst [vmem:[%s10763_s27 + $0x208] sm:$0xff] %v6498_v37  ;;  %7732 = vst [vmem:[%s10763_s27 + $0x218] sm:$0xff] %v6500_v38  ;;  %v6513_v45 = vmin.f32 %v5281_v39, 1.7  ;;  %v6515_v46 = vmin.f32 %v5283_v40, 1.7  ;;  %v1088_v47 = vadd.f32 %v1087_v43, %v10723_v59  ;;  %v1615_v48 = vadd.f32 %v1614_v44, %v10730_v61  ;;  %1379 = vmatprep.mubr.f32.mxu0 %v9958_v0 }
 0x14a   : > { %1906 = vmatprep.mubr.f32.mxu1 %v9958_v0  ;;  %v5282_v51 = vmax.f32 %v1084_v41, 1.5  ;;  %v5284_v54 = vmax.f32 %v1611_v42, 1.5  ;;  %v1089_v57 = vpop.f32.mrf.mxu0  ;;  %v1616_v58 = vpop.f32.mrf.mxu1 }
 0x14b   : > { %7745 = vst [vmem:[%s10763_s27 + $0x280] sm:$0xff] %v6513_v45  ;;  %7747 = vst [vmem:[%s10763_s27 + $0x290] sm:$0xff] %v6515_v46  ;;  %v5297_v60 = vmax.f32 %v1088_v47, 1.5  ;;  %v5299_v1 = vmax.f32 %v1615_v48, 1.5  ;;  %v1090_v2 = vadd.f32 %v1089_v57, %v10734_v62  ;;  %v1617_v3 = vadd.f32 %v1616_v58, %v10738_v63  ;;  %v522_v46 = vld [vmem:[%s15190_s0 + $0x1d0] sm:$0xff] }
 0x14c   : > { %v6514_v4 = vmin.f32 %v5282_v51, 1.7  ;;  %v6516_v5 = vmin.f32 %v5284_v54, 1.7  ;;  %v1093_v6 = vpop.f32.mrf.mxu0  ;;  %9052 = vmatmul.mubr.msk.f32.gmra.mxu0 %vm753_vm0, %v519_v49  ;;  %v1620_v7 = vpop.f32.mrf.mxu1  ;;  %9129 = vmatmul.mubr.msk.f32.gmra.mxu1 %vm753_vm0, %v519_v49 }
 0x14d   : > { %v6529_v9 = vmin.f32 %v5297_v60, 1.7  ;;  %v6531_v10 = vmin.f32 %v5299_v1, 1.7  ;;  %v5298_v11 = vmax.f32 %v1090_v2, 1.5  ;;  %v5300_v12 = vmax.f32 %v1617_v3, 1.5  ;;  %1385 = vmatprep.mubr.f32.mxu0 %v9958_v0  ;;  %1912 = vmatprep.mubr.f32.mxu1 %v9958_v0 }
 0x14e   : > { %7746 = vst [vmem:[%s10763_s27 + $0x288] sm:$0xff] %v6514_v4  ;;  %7748 = vst [vmem:[%s10763_s27 + $0x298] sm:$0xff] %v6516_v5  ;;  %v1094_v13 = vadd.f32 %v1093_v6, %v10723_v59  ;;  %v1621_v14 = vadd.f32 %v1620_v7, %v10730_v61  ;;  %v1095_v15 = vpop.f32.mrf.mxu0  ;;  %v1622_v16 = vpop.f32.mrf.mxu1  ;;  %v523_v5 = vld [vmem:[%s15190_s0 + $0x1d8] sm:$0xff] }
 0x14f   : > { %7761 = vst [vmem:[%s10763_s27 + $0x300] sm:$0xff] %v6529_v9  ;;  %7763 = vst [vmem:[%s10763_s27 + $0x310] sm:$0xff] %v6531_v10  ;;  %v6530_v17 = vmin.f32 %v5298_v11, 1.7  ;;  %v6532_v18 = vmin.f32 %v5300_v12, 1.7  ;;  %v1096_v19 = vadd.f32 %v1095_v15, %v10734_v62  ;;  %v1623_v20 = vadd.f32 %v1622_v16, %v10738_v63 }
 0x150   : > { %v5313_v21 = vmax.f32 %v1094_v13, 1.5  ;;  %v5315_v22 = vmax.f32 %v1621_v14, 1.5  ;;  %v1099_v23 = vpop.f32.mrf.mxu0  ;;  %9053 = vmatmul.mubr.msk.f32.gmra.mxu0 %vm753_vm0, %v520_v8  ;;  %v1626_v24 = vpop.f32.mrf.mxu1  ;;  %9130 = vmatmul.mubr.msk.f32.gmra.mxu1 %vm753_vm0, %v520_v8 }
 0x151   : > { %7762 = vst [vmem:[%s10763_s27 + $0x308] sm:$0xff] %v6530_v17  ;;  %7764 = vst [vmem:[%s10763_s27 + $0x318] sm:$0xff] %v6532_v18  ;;  %v5314_v25 = vmax.f32 %v1096_v19, 1.5  ;;  %v5316_v26 = vmax.f32 %v1623_v20, 1.5  ;;  %v1100_v27 = vadd.f32 %v1099_v23, %v10723_v59  ;;  %v1627_v28 = vadd.f32 %v1626_v24, %v10730_v61  ;;  %1391 = vmatprep.mubr.f32.mxu0 %v9958_v0 }
 0x152   : > { %1918 = vmatprep.mubr.f32.mxu1 %v9958_v0  ;;  %v6545_v30 = vmin.f32 %v5313_v21, 1.7  ;;  %v6547_v31 = vmin.f32 %v5315_v22, 1.7  ;;  %v1101_v32 = vpop.f32.mrf.mxu0  ;;  %v1628_v33 = vpop.f32.mrf.mxu1 }
 0x153   : > { %v6546_v34 = vmin.f32 %v5314_v25, 1.7  ;;  %v6548_v35 = vmin.f32 %v5316_v26, 1.7  ;;  %v5329_v36 = vmax.f32 %v1100_v27, 1.5  ;;  %v5331_v37 = vmax.f32 %v1627_v28, 1.5 }
 0x154   : > { %7777 = vst [vmem:[%s10763_s27 + $0x380] sm:$0xff] %v6545_v30  ;;  %7779 = vst [vmem:[%s10763_s27 + $0x390] sm:$0xff] %v6547_v31  ;;  %v1102_v38 = vadd.f32 %v1101_v32, %v10734_v62  ;;  %v1629_v39 = vadd.f32 %v1628_v33, %v10738_v63  ;;  %v1105_v40 = vpop.f32.mrf.mxu0  ;;  %9054 = vmatmul.mubr.msk.f32.gmra.mxu0 %vm753_vm0, %v521_v29  ;;  %v1632_v41 = vpop.f32.mrf.mxu1  ;;  %9131 = vmatmul.mubr.msk.f32.gmra.mxu1 %vm753_vm0, %v521_v29  ;;  %v524_v26 = vld [vmem:[%s15190_s0 + $0x1e0] sm:$0xff] }
 0x155   : > { %7778 = vst [vmem:[%s10763_s27 + $0x388] sm:$0xff] %v6546_v34  ;;  %7780 = vst [vmem:[%s10763_s27 + $0x398] sm:$0xff] %v6548_v35  ;;  %v6561_v42 = vmin.f32 %v5329_v36, 1.7  ;;  %v6563_v43 = vmin.f32 %v5331_v37, 1.7  ;;  %v1106_v44 = vadd.f32 %v1105_v40, %v10723_v59  ;;  %v1633_v45 = vadd.f32 %v1632_v41, %v10730_v61  ;;  %1397 = vmatprep.mubr.f32.mxu0 %v9958_v0 }
 0x156   : > { %1924 = vmatprep.mubr.f32.mxu1 %v9958_v0  ;;  %v5330_v47 = vmax.f32 %v1102_v38, 1.5  ;;  %v5332_v48 = vmax.f32 %v1629_v39, 1.5  ;;  %v1107_v49 = vpop.f32.mrf.mxu0  ;;  %v1634_v51 = vpop.f32.mrf.mxu1 }
 0x157   : > { %7793 = vst [vmem:[%s10763_s27 + $0x400] sm:$0xff] %v6561_v42  ;;  %7795 = vst [vmem:[%s10763_s27 + $0x410] sm:$0xff] %v6563_v43  ;;  %v5345_v54 = vmax.f32 %v1106_v44, 1.5  ;;  %v5347_v57 = vmax.f32 %v1633_v45, 1.5  ;;  %v1108_v58 = vadd.f32 %v1107_v49, %v10734_v62  ;;  %v1635_v60 = vadd.f32 %v1634_v51, %v10738_v63  ;;  %v525_v43 = vld [vmem:[%s15190_s0 + $0x1e8] sm:$0xff] }
 0x158   : > { %v6562_v1 = vmin.f32 %v5330_v47, 1.7  ;;  %v6564_v2 = vmin.f32 %v5332_v48, 1.7  ;;  %v1111_v3 = vpop.f32.mrf.mxu0  ;;  %9055 = vmatmul.mubr.msk.f32.gmra.mxu0 %vm753_vm0, %v522_v46  ;;  %v1638_v4 = vpop.f32.mrf.mxu1  ;;  %9132 = vmatmul.mubr.msk.f32.gmra.mxu1 %vm753_vm0, %v522_v46 }
 0x159   : > { %v6577_v6 = vmin.f32 %v5345_v54, 1.7  ;;  %v6579_v7 = vmin.f32 %v5347_v57, 1.7  ;;  %v5346_v8 = vmax.f32 %v1108_v58, 1.5  ;;  %v5348_v9 = vmax.f32 %v1635_v60, 1.5  ;;  %1403 = vmatprep.mubr.f32.mxu0 %v9958_v0  ;;  %1930 = vmatprep.mubr.f32.mxu1 %v9958_v0 }
 0x15a   : > { %7794 = vst [vmem:[%s10763_s27 + $0x408] sm:$0xff] %v6562_v1  ;;  %7796 = vst [vmem:[%s10763_s27 + $0x418] sm:$0xff] %v6564_v2  ;;  %v1112_v10 = vadd.f32 %v1111_v3, %v10723_v59  ;;  %v1639_v11 = vadd.f32 %v1638_v4, %v10730_v61  ;;  %v1113_v12 = vpop.f32.mrf.mxu0  ;;  %v1640_v13 = vpop.f32.mrf.mxu1  ;;  %v526_v2 = vld [vmem:[%s15190_s0 + $0x1f0] sm:$0xff] }
 0x15b   : > { %7809 = vst [vmem:[%s10763_s27 + $0x480] sm:$0xff] %v6577_v6  ;;  %7811 = vst [vmem:[%s10763_s27 + $0x490] sm:$0xff] %v6579_v7  ;;  %v6578_v14 = vmin.f32 %v5346_v8, 1.7  ;;  %v6580_v15 = vmin.f32 %v5348_v9, 1.7  ;;  %v1114_v16 = vadd.f32 %v1113_v12, %v10734_v62  ;;  %v1641_v17 = vadd.f32 %v1640_v13, %v10738_v63 }
 0x15c   : > { %v5361_v18 = vmax.f32 %v1112_v10, 1.5  ;;  %v5363_v19 = vmax.f32 %v1639_v11, 1.5  ;;  %v1117_v20 = vpop.f32.mrf.mxu0  ;;  %9056 = vmatmul.mubr.msk.f32.gmra.mxu0 %vm753_vm0, %v523_v5  ;;  %v1644_v21 = vpop.f32.mrf.mxu1  ;;  %9133 = vmatmul.mubr.msk.f32.gmra.mxu1 %vm753_vm0, %v523_v5 }
 0x15d   : > { %7810 = vst [vmem:[%s10763_s27 + $0x488] sm:$0xff] %v6578_v14  ;;  %7812 = vst [vmem:[%s10763_s27 + $0x498] sm:$0xff] %v6580_v15  ;;  %v5362_v22 = vmax.f32 %v1114_v16, 1.5  ;;  %v5364_v23 = vmax.f32 %v1641_v17, 1.5  ;;  %v1118_v24 = vadd.f32 %v1117_v20, %v10723_v59  ;;  %v1645_v25 = vadd.f32 %v1644_v21, %v10730_v61  ;;  %1409 = vmatprep.mubr.f32.mxu0 %v9958_v0 }
 0x15e   : > { %1936 = vmatprep.mubr.f32.mxu1 %v9958_v0  ;;  %v6593_v27 = vmin.f32 %v5361_v18, 1.7  ;;  %v6595_v28 = vmin.f32 %v5363_v19, 1.7  ;;  %v1119_v29 = vpop.f32.mrf.mxu0  ;;  %v1646_v30 = vpop.f32.mrf.mxu1 }
 0x15f   : > { %v6594_v31 = vmin.f32 %v5362_v22, 1.7  ;;  %v6596_v32 = vmin.f32 %v5364_v23, 1.7  ;;  %v5377_v33 = vmax.f32 %v1118_v24, 1.5  ;;  %v5379_v34 = vmax.f32 %v1645_v25, 1.5 }
 0x160   : > { %7825 = vst [vmem:[%s10763_s27 + $0x500] sm:$0xff] %v6593_v27  ;;  %7827 = vst [vmem:[%s10763_s27 + $0x510] sm:$0xff] %v6595_v28  ;;  %v1120_v35 = vadd.f32 %v1119_v29, %v10734_v62  ;;  %v1647_v36 = vadd.f32 %v1646_v30, %v10738_v63  ;;  %v1123_v37 = vpop.f32.mrf.mxu0  ;;  %9057 = vmatmul.mubr.msk.f32.gmra.mxu0 %vm753_vm0, %v524_v26  ;;  %v1650_v38 = vpop.f32.mrf.mxu1  ;;  %9134 = vmatmul.mubr.msk.f32.gmra.mxu1 %vm753_vm0, %v524_v26  ;;  %v527_v23 = vld [vmem:[%s15190_s0 + $0x1f8] sm:$0xff] }
 0x161   : > { %7826 = vst [vmem:[%s10763_s27 + $0x508] sm:$0xff] %v6594_v31  ;;  %7828 = vst [vmem:[%s10763_s27 + $0x518] sm:$0xff] %v6596_v32  ;;  %v6609_v39 = vmin.f32 %v5377_v33, 1.7  ;;  %v6611_v40 = vmin.f32 %v5379_v34, 1.7  ;;  %v1124_v41 = vadd.f32 %v1123_v37, %v10723_v59  ;;  %v1651_v42 = vadd.f32 %v1650_v38, %v10730_v61  ;;  %1415 = vmatprep.mubr.f32.mxu0 %v9958_v0 }
 0x162   : > { %1942 = vmatprep.mubr.f32.mxu1 %v9958_v0  ;;  %v5378_v44 = vmax.f32 %v1120_v35, 1.5  ;;  %v5380_v45 = vmax.f32 %v1647_v36, 1.5  ;;  %v1125_v46 = vpop.f32.mrf.mxu0  ;;  %v1652_v47 = vpop.f32.mrf.mxu1 }
 0x163   : > { %7841 = vst [vmem:[%s10763_s27 + $0x580] sm:$0xff] %v6609_v39  ;;  %7843 = vst [vmem:[%s10763_s27 + $0x590] sm:$0xff] %v6611_v40  ;;  %v5393_v48 = vmax.f32 %v1124_v41, 1.5  ;;  %v5395_v49 = vmax.f32 %v1651_v42, 1.5  ;;  %v1126_v51 = vadd.f32 %v1125_v46, %v10734_v62  ;;  %v1653_v54 = vadd.f32 %v1652_v47, %v10738_v63  ;;  %v528_v40 = vld [vmem:[%s15190_s0 + $0x200] sm:$0xff] }
 0x164   : > { %v6610_v57 = vmin.f32 %v5378_v44, 1.7  ;;  %v6612_v58 = vmin.f32 %v5380_v45, 1.7  ;;  %v1129_v60 = vpop.f32.mrf.mxu0  ;;  %9058 = vmatmul.mubr.msk.f32.gmra.mxu0 %vm753_vm0, %v525_v43  ;;  %v1656_v1 = vpop.f32.mrf.mxu1  ;;  %9135 = vmatmul.mubr.msk.f32.gmra.mxu1 %vm753_vm0, %v525_v43 }
 0x165   : > { %v6625_v3 = vmin.f32 %v5393_v48, 1.7  ;;  %v6627_v4 = vmin.f32 %v5395_v49, 1.7  ;;  %v5394_v5 = vmax.f32 %v1126_v51, 1.5  ;;  %v5396_v6 = vmax.f32 %v1653_v54, 1.5  ;;  %1421 = vmatprep.mubr.f32.mxu0 %v9958_v0  ;;  %1948 = vmatprep.mubr.f32.mxu1 %v9958_v0 }
 0x166   : > { %7842 = vst [vmem:[%s10763_s27 + $0x588] sm:$0xff] %v6610_v57  ;;  %7844 = vst [vmem:[%s10763_s27 + $0x598] sm:$0xff] %v6612_v58  ;;  %v1130_v7 = vadd.f32 %v1129_v60, %v10723_v59  ;;  %v1657_v8 = vadd.f32 %v1656_v1, %v10730_v61  ;;  %v1131_v9 = vpop.f32.mrf.mxu0  ;;  %v1658_v10 = vpop.f32.mrf.mxu1  ;;  %v529_v58 = vld [vmem:[%s15190_s0 + $0x208] sm:$0xff] }
 0x167   : > { %7857 = vst [vmem:[%s10763_s27 + $0x600] sm:$0xff] %v6625_v3  ;;  %7859 = vst [vmem:[%s10763_s27 + $0x610] sm:$0xff] %v6627_v4  ;;  %v6626_v11 = vmin.f32 %v5394_v5, 1.7  ;;  %v6628_v12 = vmin.f32 %v5396_v6, 1.7  ;;  %v1132_v13 = vadd.f32 %v1131_v9, %v10734_v62  ;;  %v1659_v14 = vadd.f32 %v1658_v10, %v10738_v63 }
 0x168   : > { %v5409_v15 = vmax.f32 %v1130_v7, 1.5  ;;  %v5411_v16 = vmax.f32 %v1657_v8, 1.5  ;;  %v1135_v17 = vpop.f32.mrf.mxu0  ;;  %9059 = vmatmul.mubr.msk.f32.gmra.mxu0 %vm753_vm0, %v526_v2  ;;  %v1662_v18 = vpop.f32.mrf.mxu1  ;;  %9136 = vmatmul.mubr.msk.f32.gmra.mxu1 %vm753_vm0, %v526_v2 }
 0x169   : > { %7858 = vst [vmem:[%s10763_s27 + $0x608] sm:$0xff] %v6626_v11  ;;  %7860 = vst [vmem:[%s10763_s27 + $0x618] sm:$0xff] %v6628_v12  ;;  %v5410_v19 = vmax.f32 %v1132_v13, 1.5  ;;  %v5412_v20 = vmax.f32 %v1659_v14, 1.5  ;;  %v1136_v21 = vadd.f32 %v1135_v17, %v10723_v59  ;;  %v1663_v22 = vadd.f32 %v1662_v18, %v10730_v61  ;;  %1427 = vmatprep.mubr.f32.mxu0 %v9958_v0 }
 0x16a   : > { %1954 = vmatprep.mubr.f32.mxu1 %v9958_v0  ;;  %v6641_v24 = vmin.f32 %v5409_v15, 1.7  ;;  %v6643_v25 = vmin.f32 %v5411_v16, 1.7  ;;  %v1137_v26 = vpop.f32.mrf.mxu0  ;;  %v1664_v27 = vpop.f32.mrf.mxu1 }
 0x16b   : > { %v6642_v28 = vmin.f32 %v5410_v19, 1.7  ;;  %v6644_v29 = vmin.f32 %v5412_v20, 1.7  ;;  %v5425_v30 = vmax.f32 %v1136_v21, 1.5  ;;  %v5427_v31 = vmax.f32 %v1663_v22, 1.5 }
 0x16c   : > { %7873 = vst [vmem:[%s10763_s27 + $0x680] sm:$0xff] %v6641_v24  ;;  %7875 = vst [vmem:[%s10763_s27 + $0x690] sm:$0xff] %v6643_v25  ;;  %v1138_v32 = vadd.f32 %v1137_v26, %v10734_v62  ;;  %v1665_v33 = vadd.f32 %v1664_v27, %v10738_v63  ;;  %v1141_v34 = vpop.f32.mrf.mxu0  ;;  %9060 = vmatmul.mubr.msk.f32.gmra.mxu0 %vm753_vm0, %v527_v23  ;;  %v1668_v35 = vpop.f32.mrf.mxu1  ;;  %9137 = vmatmul.mubr.msk.f32.gmra.mxu1 %vm753_vm0, %v527_v23  ;;  %v530_v20 = vld [vmem:[%s15190_s0 + $0x210] sm:$0xff] }
 0x16d   : > { %7874 = vst [vmem:[%s10763_s27 + $0x688] sm:$0xff] %v6642_v28  ;;  %7876 = vst [vmem:[%s10763_s27 + $0x698] sm:$0xff] %v6644_v29  ;;  %v6657_v36 = vmin.f32 %v5425_v30, 1.7  ;;  %v6659_v37 = vmin.f32 %v5427_v31, 1.7  ;;  %v1142_v38 = vadd.f32 %v1141_v34, %v10723_v59  ;;  %v1669_v39 = vadd.f32 %v1668_v35, %v10730_v61  ;;  %1433 = vmatprep.mubr.f32.mxu0 %v9958_v0 }
 0x16e   : > { %1960 = vmatprep.mubr.f32.mxu1 %v9958_v0  ;;  %v5426_v41 = vmax.f32 %v1138_v32, 1.5  ;;  %v5428_v42 = vmax.f32 %v1665_v33, 1.5  ;;  %v1143_v43 = vpop.f32.mrf.mxu0  ;;  %v1670_v44 = vpop.f32.mrf.mxu1 }
 0x16f   : > { %7889 = vst [vmem:[%s10763_s27 + $0x700] sm:$0xff] %v6657_v36  ;;  %7891 = vst [vmem:[%s10763_s27 + $0x710] sm:$0xff] %v6659_v37  ;;  %v5441_v45 = vmax.f32 %v1142_v38, 1.5  ;;  %v5443_v46 = vmax.f32 %v1669_v39, 1.5  ;;  %v1144_v47 = vadd.f32 %v1143_v43, %v10734_v62  ;;  %v1671_v48 = vadd.f32 %v1670_v44, %v10738_v63  ;;  %v531_v37 = vld [vmem:[%s15190_s0 + $0x218] sm:$0xff] }
 0x170   : > { %v6658_v49 = vmin.f32 %v5426_v41, 1.7  ;;  %v6660_v51 = vmin.f32 %v5428_v42, 1.7  ;;  %v1147_v54 = vpop.f32.mrf.mxu0  ;;  %9061 = vmatmul.mubr.msk.f32.gmra.mxu0 %vm753_vm0, %v528_v40  ;;  %v1674_v57 = vpop.f32.mrf.mxu1  ;;  %9138 = vmatmul.mubr.msk.f32.gmra.mxu1 %vm753_vm0, %v528_v40 }
 0x171   : > { %v6673_v60 = vmin.f32 %v5441_v45, 1.7  ;;  %v6675_v1 = vmin.f32 %v5443_v46, 1.7  ;;  %v5442_v2 = vmax.f32 %v1144_v47, 1.5  ;;  %v5444_v3 = vmax.f32 %v1671_v48, 1.5  ;;  %1439 = vmatprep.mubr.f32.mxu0 %v9958_v0  ;;  %1966 = vmatprep.mubr.f32.mxu1 %v9958_v0 }
 0x172   : > { %7890 = vst [vmem:[%s10763_s27 + $0x708] sm:$0xff] %v6658_v49  ;;  %7892 = vst [vmem:[%s10763_s27 + $0x718] sm:$0xff] %v6660_v51  ;;  %v1148_v4 = vadd.f32 %v1147_v54, %v10723_v59  ;;  %v1675_v5 = vadd.f32 %v1674_v57, %v10730_v61  ;;  %v1149_v6 = vpop.f32.mrf.mxu0  ;;  %v1676_v7 = vpop.f32.mrf.mxu1  ;;  %v532_v51 = vld [vmem:[%s15190_s0 + $0x220] sm:$0xff] }
 0x173   : > { %7905 = vst [vmem:[%s10763_s27 + $0x780] sm:$0xff] %v6673_v60  ;;  %7907 = vst [vmem:[%s10763_s27 + $0x790] sm:$0xff] %v6675_v1  ;;  %v6674_v8 = vmin.f32 %v5442_v2, 1.7  ;;  %v6676_v9 = vmin.f32 %v5444_v3, 1.7  ;;  %v1150_v10 = vadd.f32 %v1149_v6, %v10734_v62  ;;  %v1677_v11 = vadd.f32 %v1676_v7, %v10738_v63 }
 0x174   : > { %v5457_v12 = vmax.f32 %v1148_v4, 1.5  ;;  %v5459_v13 = vmax.f32 %v1675_v5, 1.5  ;;  %v1153_v14 = vpop.f32.mrf.mxu0  ;;  %9062 = vmatmul.mubr.msk.f32.gmra.mxu0 %vm753_vm0, %v529_v58  ;;  %v1680_v15 = vpop.f32.mrf.mxu1  ;;  %9139 = vmatmul.mubr.msk.f32.gmra.mxu1 %vm753_vm0, %v529_v58 }
 0x175   : > { %7906 = vst [vmem:[%s10763_s27 + $0x788] sm:$0xff] %v6674_v8  ;;  %7908 = vst [vmem:[%s10763_s27 + $0x798] sm:$0xff] %v6676_v9  ;;  %v5458_v16 = vmax.f32 %v1150_v10, 1.5  ;;  %v5460_v17 = vmax.f32 %v1677_v11, 1.5  ;;  %v1154_v18 = vadd.f32 %v1153_v14, %v10723_v59  ;;  %v1681_v19 = vadd.f32 %v1680_v15, %v10730_v61  ;;  %1445 = vmatprep.mubr.f32.mxu0 %v9958_v0 }
 0x176   : > { %1972 = vmatprep.mubr.f32.mxu1 %v9958_v0  ;;  %v6689_v21 = vmin.f32 %v5457_v12, 1.7  ;;  %v6691_v22 = vmin.f32 %v5459_v13, 1.7  ;;  %v1155_v23 = vpop.f32.mrf.mxu0  ;;  %v1682_v24 = vpop.f32.mrf.mxu1 }
 0x177   : > { %v6690_v25 = vmin.f32 %v5458_v16, 1.7  ;;  %v6692_v26 = vmin.f32 %v5460_v17, 1.7  ;;  %v5473_v27 = vmax.f32 %v1154_v18, 1.5  ;;  %v5475_v28 = vmax.f32 %v1681_v19, 1.5 }
 0x178   : > { %7921 = vst [vmem:[%s10763_s27 + $0x800] sm:$0xff] %v6689_v21  ;;  %7923 = vst [vmem:[%s10763_s27 + $0x810] sm:$0xff] %v6691_v22  ;;  %v1156_v29 = vadd.f32 %v1155_v23, %v10734_v62  ;;  %v1683_v30 = vadd.f32 %v1682_v24, %v10738_v63  ;;  %v1159_v31 = vpop.f32.mrf.mxu0  ;;  %9063 = vmatmul.mubr.msk.f32.gmra.mxu0 %vm753_vm0, %v530_v20  ;;  %v1686_v32 = vpop.f32.mrf.mxu1  ;;  %9140 = vmatmul.mubr.msk.f32.gmra.mxu1 %vm753_vm0, %v530_v20  ;;  %v533_v17 = vld [vmem:[%s15190_s0 + $0x228] sm:$0xff] }
 0x179   : > { %7922 = vst [vmem:[%s10763_s27 + $0x808] sm:$0xff] %v6690_v25  ;;  %7924 = vst [vmem:[%s10763_s27 + $0x818] sm:$0xff] %v6692_v26  ;;  %v6705_v33 = vmin.f32 %v5473_v27, 1.7  ;;  %v6707_v34 = vmin.f32 %v5475_v28, 1.7  ;;  %v1160_v35 = vadd.f32 %v1159_v31, %v10723_v59  ;;  %v1687_v36 = vadd.f32 %v1686_v32, %v10730_v61  ;;  %1451 = vmatprep.mubr.f32.mxu0 %v9958_v0 }
 0x17a   : > { %1978 = vmatprep.mubr.f32.mxu1 %v9958_v0  ;;  %v5474_v38 = vmax.f32 %v1156_v29, 1.5  ;;  %v5476_v39 = vmax.f32 %v1683_v30, 1.5  ;;  %v1161_v40 = vpop.f32.mrf.mxu0  ;;  %v1688_v41 = vpop.f32.mrf.mxu1 }
 0x17b   : > { %7937 = vst [vmem:[%s10763_s27 + $0x880] sm:$0xff] %v6705_v33  ;;  %7939 = vst [vmem:[%s10763_s27 + $0x890] sm:$0xff] %v6707_v34  ;;  %v5489_v42 = vmax.f32 %v1160_v35, 1.5  ;;  %v5491_v43 = vmax.f32 %v1687_v36, 1.5  ;;  %v1162_v44 = vadd.f32 %v1161_v40, %v10734_v62  ;;  %v1689_v45 = vadd.f32 %v1688_v41, %v10738_v63  ;;  %v534_v34 = vld [vmem:[%s15190_s0 + $0x230] sm:$0xff] }
 0x17c   : > { %v6706_v46 = vmin.f32 %v5474_v38, 1.7  ;;  %v6708_v47 = vmin.f32 %v5476_v39, 1.7  ;;  %v1165_v48 = vpop.f32.mrf.mxu0  ;;  %9064 = vmatmul.mubr.msk.f32.gmra.mxu0 %vm753_vm0, %v531_v37  ;;  %v1692_v49 = vpop.f32.mrf.mxu1  ;;  %9141 = vmatmul.mubr.msk.f32.gmra.mxu1 %vm753_vm0, %v531_v37 }
 0x17d   : > { %v6721_v54 = vmin.f32 %v5489_v42, 1.7  ;;  %v6723_v57 = vmin.f32 %v5491_v43, 1.7  ;;  %v5490_v58 = vmax.f32 %v1162_v44, 1.5  ;;  %v5492_v60 = vmax.f32 %v1689_v45, 1.5  ;;  %1457 = vmatprep.mubr.f32.mxu0 %v9958_v0  ;;  %1984 = vmatprep.mubr.f32.mxu1 %v9958_v0 }
 0x17e   : > { %7938 = vst [vmem:[%s10763_s27 + $0x888] sm:$0xff] %v6706_v46  ;;  %7940 = vst [vmem:[%s10763_s27 + $0x898] sm:$0xff] %v6708_v47  ;;  %v1166_v1 = vadd.f32 %v1165_v48, %v10723_v59  ;;  %v1693_v2 = vadd.f32 %v1692_v49, %v10730_v61  ;;  %v1167_v3 = vpop.f32.mrf.mxu0  ;;  %v1694_v4 = vpop.f32.mrf.mxu1  ;;  %v535_v47 = vld [vmem:[%s15190_s0 + $0x238] sm:$0xff] }
 0x17f   : > { %7953 = vst [vmem:[%s10763_s27 + $0x900] sm:$0xff] %v6721_v54  ;;  %7955 = vst [vmem:[%s10763_s27 + $0x910] sm:$0xff] %v6723_v57  ;;  %v6722_v5 = vmin.f32 %v5490_v58, 1.7  ;;  %v6724_v6 = vmin.f32 %v5492_v60, 1.7  ;;  %v1168_v7 = vadd.f32 %v1167_v3, %v10734_v62  ;;  %v1695_v8 = vadd.f32 %v1694_v4, %v10738_v63 }
 0x180   : > { %v5505_v9 = vmax.f32 %v1166_v1, 1.5  ;;  %v5507_v10 = vmax.f32 %v1693_v2, 1.5  ;;  %v1171_v11 = vpop.f32.mrf.mxu0  ;;  %9065 = vmatmul.mubr.msk.f32.gmra.mxu0 %vm753_vm0, %v532_v51  ;;  %v1698_v12 = vpop.f32.mrf.mxu1  ;;  %9142 = vmatmul.mubr.msk.f32.gmra.mxu1 %vm753_vm0, %v532_v51 }
 0x181   : > { %7954 = vst [vmem:[%s10763_s27 + $0x908] sm:$0xff] %v6722_v5  ;;  %7956 = vst [vmem:[%s10763_s27 + $0x918] sm:$0xff] %v6724_v6  ;;  %v5506_v13 = vmax.f32 %v1168_v7, 1.5  ;;  %v5508_v14 = vmax.f32 %v1695_v8, 1.5  ;;  %v1172_v15 = vadd.f32 %v1171_v11, %v10723_v59  ;;  %v1699_v16 = vadd.f32 %v1698_v12, %v10730_v61  ;;  %1463 = vmatprep.mubr.f32.mxu0 %v9958_v0 }
 0x182   : > { %1990 = vmatprep.mubr.f32.mxu1 %v9958_v0  ;;  %v6737_v18 = vmin.f32 %v5505_v9, 1.7  ;;  %v6739_v19 = vmin.f32 %v5507_v10, 1.7  ;;  %v1173_v20 = vpop.f32.mrf.mxu0  ;;  %v1700_v21 = vpop.f32.mrf.mxu1 }
 0x183   : > { %v6738_v22 = vmin.f32 %v5506_v13, 1.7  ;;  %v6740_v23 = vmin.f32 %v5508_v14, 1.7  ;;  %v5521_v24 = vmax.f32 %v1172_v15, 1.5  ;;  %v5523_v25 = vmax.f32 %v1699_v16, 1.5 }
 0x184   : > { %7969 = vst [vmem:[%s10763_s27 + $0x980] sm:$0xff] %v6737_v18  ;;  %7971 = vst [vmem:[%s10763_s27 + $0x990] sm:$0xff] %v6739_v19  ;;  %v1174_v26 = vadd.f32 %v1173_v20, %v10734_v62  ;;  %v1701_v27 = vadd.f32 %v1700_v21, %v10738_v63  ;;  %v1177_v28 = vpop.f32.mrf.mxu0  ;;  %9066 = vmatmul.mubr.msk.f32.gmra.mxu0 %vm753_vm0, %v533_v17  ;;  %v1704_v29 = vpop.f32.mrf.mxu1  ;;  %9143 = vmatmul.mubr.msk.f32.gmra.mxu1 %vm753_vm0, %v533_v17  ;;  %v536_v14 = vld [vmem:[%s15190_s0 + $0x240] sm:$0xff] }
 0x185   : > { %7970 = vst [vmem:[%s10763_s27 + $0x988] sm:$0xff] %v6738_v22  ;;  %7972 = vst [vmem:[%s10763_s27 + $0x998] sm:$0xff] %v6740_v23  ;;  %v6753_v30 = vmin.f32 %v5521_v24, 1.7  ;;  %v6755_v31 = vmin.f32 %v5523_v25, 1.7  ;;  %v1178_v32 = vadd.f32 %v1177_v28, %v10723_v59  ;;  %v1705_v33 = vadd.f32 %v1704_v29, %v10730_v61  ;;  %1469 = vmatprep.mubr.f32.mxu0 %v9958_v0 }
 0x186   : > { %1996 = vmatprep.mubr.f32.mxu1 %v9958_v0  ;;  %v5522_v35 = vmax.f32 %v1174_v26, 1.5  ;;  %v5524_v36 = vmax.f32 %v1701_v27, 1.5  ;;  %v1179_v37 = vpop.f32.mrf.mxu0  ;;  %v1706_v38 = vpop.f32.mrf.mxu1 }
 0x187   : > { %7985 = vst [vmem:[%s10763_s27 + $0xa00] sm:$0xff] %v6753_v30  ;;  %7987 = vst [vmem:[%s10763_s27 + $0xa10] sm:$0xff] %v6755_v31  ;;  %v5537_v39 = vmax.f32 %v1178_v32, 1.5  ;;  %v5539_v40 = vmax.f32 %v1705_v33, 1.5  ;;  %v1180_v41 = vadd.f32 %v1179_v37, %v10734_v62  ;;  %v1707_v42 = vadd.f32 %v1706_v38, %v10738_v63  ;;  %v537_v31 = vld [vmem:[%s15190_s0 + $0x248] sm:$0xff] }
 0x188   : > { %v6754_v43 = vmin.f32 %v5522_v35, 1.7  ;;  %v6756_v44 = vmin.f32 %v5524_v36, 1.7  ;;  %v1183_v45 = vpop.f32.mrf.mxu0  ;;  %9067 = vmatmul.mubr.msk.f32.gmra.mxu0 %vm753_vm0, %v534_v34  ;;  %v1710_v46 = vpop.f32.mrf.mxu1  ;;  %9144 = vmatmul.mubr.msk.f32.gmra.mxu1 %vm753_vm0, %v534_v34 }
 0x189   : > { %v6769_v48 = vmin.f32 %v5537_v39, 1.7  ;;  %v6771_v49 = vmin.f32 %v5539_v40, 1.7  ;;  %v5538_v51 = vmax.f32 %v1180_v41, 1.5  ;;  %v5540_v54 = vmax.f32 %v1707_v42, 1.5  ;;  %1475 = vmatprep.mubr.f32.mxu0 %v9958_v0  ;;  %2002 = vmatprep.mubr.f32.mxu1 %v9958_v0 }
 0x18a   : > { %7986 = vst [vmem:[%s10763_s27 + $0xa08] sm:$0xff] %v6754_v43  ;;  %7988 = vst [vmem:[%s10763_s27 + $0xa18] sm:$0xff] %v6756_v44  ;;  %v1184_v57 = vadd.f32 %v1183_v45, %v10723_v59  ;;  %v1711_v58 = vadd.f32 %v1710_v46, %v10730_v61  ;;  %v1185_v60 = vpop.f32.mrf.mxu0  ;;  %v1712_v1 = vpop.f32.mrf.mxu1  ;;  %v538_v44 = vld [vmem:[%s15190_s0 + $0x250] sm:$0xff] }
 0x18b   : > { %8001 = vst [vmem:[%s10763_s27 + $0xa80] sm:$0xff] %v6769_v48  ;;  %8003 = vst [vmem:[%s10763_s27 + $0xa90] sm:$0xff] %v6771_v49  ;;  %v6770_v2 = vmin.f32 %v5538_v51, 1.7  ;;  %v6772_v3 = vmin.f32 %v5540_v54, 1.7  ;;  %v1186_v4 = vadd.f32 %v1185_v60, %v10734_v62  ;;  %v1713_v5 = vadd.f32 %v1712_v1, %v10738_v63 }
 0x18c   : > { %v5553_v6 = vmax.f32 %v1184_v57, 1.5  ;;  %v5555_v7 = vmax.f32 %v1711_v58, 1.5  ;;  %v1189_v8 = vpop.f32.mrf.mxu0  ;;  %9068 = vmatmul.mubr.msk.f32.gmra.mxu0 %vm753_vm0, %v535_v47  ;;  %v1716_v9 = vpop.f32.mrf.mxu1  ;;  %9145 = vmatmul.mubr.msk.f32.gmra.mxu1 %vm753_vm0, %v535_v47 }
 0x18d   : > { %8002 = vst [vmem:[%s10763_s27 + $0xa88] sm:$0xff] %v6770_v2  ;;  %8004 = vst [vmem:[%s10763_s27 + $0xa98] sm:$0xff] %v6772_v3  ;;  %v5554_v10 = vmax.f32 %v1186_v4, 1.5  ;;  %v5556_v11 = vmax.f32 %v1713_v5, 1.5  ;;  %v1190_v12 = vadd.f32 %v1189_v8, %v10723_v59  ;;  %v1717_v13 = vadd.f32 %v1716_v9, %v10730_v61  ;;  %1481 = vmatprep.mubr.f32.mxu0 %v9958_v0 }
 0x18e   : > { %2008 = vmatprep.mubr.f32.mxu1 %v9958_v0  ;;  %v6785_v15 = vmin.f32 %v5553_v6, 1.7  ;;  %v6787_v16 = vmin.f32 %v5555_v7, 1.7  ;;  %v1191_v17 = vpop.f32.mrf.mxu0  ;;  %v1718_v18 = vpop.f32.mrf.mxu1 }
 0x18f   : > { %v6786_v19 = vmin.f32 %v5554_v10, 1.7  ;;  %v6788_v20 = vmin.f32 %v5556_v11, 1.7  ;;  %v5569_v21 = vmax.f32 %v1190_v12, 1.5  ;;  %v5571_v22 = vmax.f32 %v1717_v13, 1.5 }
 0x190   : > { %8017 = vst [vmem:[%s10763_s27 + $0xb00] sm:$0xff] %v6785_v15  ;;  %8019 = vst [vmem:[%s10763_s27 + $0xb10] sm:$0xff] %v6787_v16  ;;  %v1192_v23 = vadd.f32 %v1191_v17, %v10734_v62  ;;  %v1719_v24 = vadd.f32 %v1718_v18, %v10738_v63  ;;  %v1195_v25 = vpop.f32.mrf.mxu0  ;;  %9069 = vmatmul.mubr.msk.f32.gmra.mxu0 %vm753_vm0, %v536_v14  ;;  %v1722_v26 = vpop.f32.mrf.mxu1  ;;  %9146 = vmatmul.mubr.msk.f32.gmra.mxu1 %vm753_vm0, %v536_v14  ;;  %v539_v11 = vld [vmem:[%s15190_s0 + $0x258] sm:$0xff] }
 0x191   : > { %8018 = vst [vmem:[%s10763_s27 + $0xb08] sm:$0xff] %v6786_v19  ;;  %8020 = vst [vmem:[%s10763_s27 + $0xb18] sm:$0xff] %v6788_v20  ;;  %v6801_v27 = vmin.f32 %v5569_v21, 1.7  ;;  %v6803_v28 = vmin.f32 %v5571_v22, 1.7  ;;  %v1196_v29 = vadd.f32 %v1195_v25, %v10723_v59  ;;  %v1723_v30 = vadd.f32 %v1722_v26, %v10730_v61  ;;  %1487 = vmatprep.mubr.f32.mxu0 %v9958_v0 }
 0x192   : > { %2014 = vmatprep.mubr.f32.mxu1 %v9958_v0  ;;  %v5570_v32 = vmax.f32 %v1192_v23, 1.5  ;;  %v5572_v33 = vmax.f32 %v1719_v24, 1.5  ;;  %v1197_v34 = vpop.f32.mrf.mxu0  ;;  %v1724_v35 = vpop.f32.mrf.mxu1 }
 0x193   : > { %8033 = vst [vmem:[%s10763_s27 + $0xb80] sm:$0xff] %v6801_v27  ;;  %8035 = vst [vmem:[%s10763_s27 + $0xb90] sm:$0xff] %v6803_v28  ;;  %v5585_v36 = vmax.f32 %v1196_v29, 1.5  ;;  %v5587_v37 = vmax.f32 %v1723_v30, 1.5  ;;  %v1198_v38 = vadd.f32 %v1197_v34, %v10734_v62  ;;  %v1725_v39 = vadd.f32 %v1724_v35, %v10738_v63  ;;  %v540_v28 = vld [vmem:[%s15190_s0 + $0x260] sm:$0x1] }
 0x194   : > { %v6802_v40 = vmin.f32 %v5570_v32, 1.7  ;;  %v6804_v41 = vmin.f32 %v5572_v33, 1.7  ;;  %v1201_v42 = vpop.f32.mrf.mxu0  ;;  %9070 = vmatmul.mubr.msk.f32.gmra.mxu0 %vm753_vm0, %v537_v31  ;;  %v1728_v43 = vpop.f32.mrf.mxu1  ;;  %9147 = vmatmul.mubr.msk.f32.gmra.mxu1 %vm753_vm0, %v537_v31 }
 0x195   : > { %v6817_v45 = vmin.f32 %v5585_v36, 1.7  ;;  %v6819_v46 = vmin.f32 %v5587_v37, 1.7  ;;  %v5586_v47 = vmax.f32 %v1198_v38, 1.5  ;;  %v5588_v48 = vmax.f32 %v1725_v39, 1.5  ;;  %1493 = vmatprep.mubr.f32.mxu0 %v9958_v0  ;;  %2020 = vmatprep.mubr.f32.mxu1 %v9958_v0 }
 0x196   : > { %8034 = vst [vmem:[%s10763_s27 + $0xb88] sm:$0xff] %v6802_v40  ;;  %8036 = vst [vmem:[%s10763_s27 + $0xb98] sm:$0xff] %v6804_v41  ;;  %v1202_v49 = vadd.f32 %v1201_v42, %v10723_v59  ;;  %v1729_v51 = vadd.f32 %v1728_v43, %v10730_v61  ;;  %v1203_v54 = vpop.f32.mrf.mxu0  ;;  %v1730_v57 = vpop.f32.mrf.mxu1 }
 0x197   : > { %8049 = vst [vmem:[%s10763_s27 + $0xc00] sm:$0xff] %v6817_v45  ;;  %8051 = vst [vmem:[%s10763_s27 + $0xc10] sm:$0xff] %v6819_v46  ;;  %v6818_v58 = vmin.f32 %v5586_v47, 1.7  ;;  %v6820_v60 = vmin.f32 %v5588_v48, 1.7  ;;  %v1204_v1 = vadd.f32 %v1203_v54, %v10734_v62  ;;  %v1731_v2 = vadd.f32 %v1730_v57, %v10738_v63 }
 0x198   : > { %v5601_v3 = vmax.f32 %v1202_v49, 1.5  ;;  %v5603_v4 = vmax.f32 %v1729_v51, 1.5  ;;  %v1207_v5 = vpop.f32.mrf.mxu0  ;;  %9071 = vmatmul.mubr.msk.f32.gmra.mxu0 %vm753_vm0, %v538_v44  ;;  %v1734_v6 = vpop.f32.mrf.mxu1  ;;  %9148 = vmatmul.mubr.msk.f32.gmra.mxu1 %vm753_vm0, %v538_v44  ;;  %v661_v49 = vld [vmem:[%s10304_s6 + $0x3c0] sm:$0xff]  ;;  %v663_v51 = vld [vmem:[%s10304_s6 + $0x3d0] sm:$0xff] }
 0x199   : > { %8050 = vst [vmem:[%s10763_s27 + $0xc08] sm:$0xff] %v6818_v58  ;;  %8052 = vst [vmem:[%s10763_s27 + $0xc18] sm:$0xff] %v6820_v60  ;;  %v5602_v7 = vmax.f32 %v1204_v1, 1.5  ;;  %v5604_v8 = vmax.f32 %v1731_v2, 1.5  ;;  %v1208_v9 = vadd.f32 %v1207_v5, %v10723_v59  ;;  %v1735_v10 = vadd.f32 %v1734_v6, %v10730_v61  ;;  %1499 = vmatprep.mubr.f32.mxu0 %v9958_v0  ;;  %v9663_v5 = vld [vmem:[%s15190_s0] sm:$0xff]  ;;  %v646_v6 = vld [vmem:[%s10304_s6 + $0x348] sm:$0xff] }
 0x19a   : > { %2026 = vmatprep.mubr.f32.mxu1 %v9958_v0  ;;  %v6833_v12 = vmin.f32 %v5601_v3, 1.7  ;;  %v6835_v13 = vmin.f32 %v5603_v4, 1.7  ;;  %v1209_v14 = vpop.f32.mrf.mxu0  ;;  %v1736_v15 = vpop.f32.mrf.mxu1 }
 0x19b   : > { %v6834_v16 = vmin.f32 %v5602_v7, 1.7  ;;  %v6836_v17 = vmin.f32 %v5604_v8, 1.7  ;;  %v5617_v18 = vmax.f32 %v1208_v9, 1.5  ;;  %v5619_v19 = vmax.f32 %v1735_v10, 1.5 }
 0x19c   : > { %8065 = vst [vmem:[%s10763_s27 + $0xc80] sm:$0xff] %v6833_v12  ;;  %8067 = vst [vmem:[%s10763_s27 + $0xc90] sm:$0xff] %v6835_v13  ;;  %v1210_v20 = vadd.f32 %v1209_v14, %v10734_v62  ;;  %v1737_v21 = vadd.f32 %v1736_v15, %v10738_v63  ;;  %v1213_v22 = vpop.f32.mrf.mxu0  ;;  %9072 = vmatmul.mubr.msk.f32.gmra.mxu0 %vm753_vm0, %v539_v11  ;;  %v1740_v23 = vpop.f32.mrf.mxu1  ;;  %9149 = vmatmul.mubr.msk.f32.gmra.mxu1 %vm753_vm0, %v539_v11  ;;  %v648_v7 = vld [vmem:[%s10304_s6 + $0x358] sm:$0xff] }
 0x19d   : > { %8066 = vst [vmem:[%s10763_s27 + $0xc88] sm:$0xff] %v6834_v16  ;;  %8068 = vst [vmem:[%s10763_s27 + $0xc98] sm:$0xff] %v6836_v17  ;;  %v6849_v24 = vmin.f32 %v5617_v18, 1.7  ;;  %v6851_v25 = vmin.f32 %v5619_v19, 1.7  ;;  %v1214_v26 = vadd.f32 %v1213_v22, %v10723_v59  ;;  %v1741_v27 = vadd.f32 %v1740_v23, %v10730_v61  ;;  %1505 = vmatprep.mubr.f32.mxu0 %v9958_v0 }
 0x19e   : > { %2032 = vmatprep.mubr.f32.mxu1 %v9958_v0  ;;  %v5618_v29 = vmax.f32 %v1210_v20, 1.5  ;;  %v5620_v30 = vmax.f32 %v1737_v21, 1.5  ;;  %v1215_v31 = vpop.f32.mrf.mxu0  ;;  %v1742_v32 = vpop.f32.mrf.mxu1  ;;  %v645_v16 = vld [vmem:[%s10304_s6 + $0x340] sm:$0xff]  ;;  %v647_v17 = vld [vmem:[%s10304_s6 + $0x350] sm:$0xff] }
 0x19f   : > { %8081 = vst [vmem:[%s10763_s27 + $0xd00] sm:$0xff] %v6849_v24  ;;  %8083 = vst [vmem:[%s10763_s27 + $0xd10] sm:$0xff] %v6851_v25  ;;  %v5633_v33 = vmax.f32 %v1214_v26, 1.5  ;;  %v5635_v34 = vmax.f32 %v1741_v27, 1.5  ;;  %v1216_v35 = vadd.f32 %v1215_v31, %v10734_v62  ;;  %v1743_v36 = vadd.f32 %v1742_v32, %v10738_v63  ;;  %v9664_v26 = vld [vmem:[%s15190_s0 + $0x8] sm:$0xff] }
 0x1a0   : > { %v6850_v37 = vmin.f32 %v5618_v29, 1.7  ;;  %v6852_v38 = vmin.f32 %v5620_v30, 1.7  ;;  %v1219_v39 = vpop.f32.mrf.mxu0  ;;  %9073 = vmatmul.mubr.msk.f32.gmra.mxu0 %vm753_vm0, %v540_v28  ;;  %v1746_v40 = vpop.f32.mrf.mxu1  ;;  %9150 = vmatmul.mubr.msk.f32.gmra.mxu1 %vm753_vm0, %v540_v28  ;;  %v630_v27 = vld [vmem:[%s10304_s6 + $0x2c8] sm:$0xff]  ;;  %v632_v28 = vld [vmem:[%s10304_s6 + $0x2d8] sm:$0xff] }
 0x1a1   : > { %v6865_v41 = vmin.f32 %v5633_v33, 1.7  ;;  %v6867_v42 = vmin.f32 %v5635_v34, 1.7  ;;  %v5634_v43 = vmax.f32 %v1216_v35, 1.5  ;;  %v5636_v44 = vmax.f32 %v1743_v36, 1.5  ;;  %2103 = vmatprep.mubr.f32.mxu0 %v9958_v0  ;;  %2630 = vmatprep.mubr.f32.mxu1 %v9958_v0 }
 0x1a2   : > { %8082 = vst [vmem:[%s10763_s27 + $0xd08] sm:$0xff] %v6850_v37  ;;  %8084 = vst [vmem:[%s10763_s27 + $0xd18] sm:$0xff] %v6852_v38  ;;  %v1220_v45 = vadd.f32 %v1219_v39, %v10723_v59  ;;  %v1747_v46 = vadd.f32 %v1746_v40, %v10730_v61  ;;  %v1221_v47 = vpop.f32.mrf.mxu0  ;;  %v1748_v48 = vpop.f32.mrf.mxu1 }
 0x1a3   : > { %8097 = vst [vmem:[%s10763_s27 + $0xd80] sm:$0xff] %v6865_v41  ;;  %8099 = vst [vmem:[%s10763_s27 + $0xd90] sm:$0xff] %v6867_v42  ;;  %v6866_v54 = vmin.f32 %v5634_v43, 1.7  ;;  %v6868_v57 = vmin.f32 %v5636_v44, 1.7  ;;  %v1222_v58 = vadd.f32 %v1221_v47, %v10734_v62  ;;  %v1749_v60 = vadd.f32 %v1748_v48, %v10738_v63 }
 0x1a4   : > { %v5649_v1 = vmax.f32 %v1220_v45, 1.5  ;;  %v5651_v2 = vmax.f32 %v1747_v46, 1.5  ;;  %v1225_v3 = vpop.f32.mrf.mxu0  ;;  %v1752_v4 = vpop.f32.mrf.mxu1  ;;  %9151 = vmatmul.mubr.msk.f32.vlgmr.msra.gmra.mxu0 %vm753_vm0, %v9663_v5  ;;  %9228 = vmatmul.mubr.msk.f32.vlgmr.msra.gmra.mxu1 %vm753_vm0, %v9663_v5  ;;  %v629_v41 = vld [vmem:[%s10304_s6 + $0x2c0] sm:$0xff]  ;;  %v631_v42 = vld [vmem:[%s10304_s6 + $0x2d0] sm:$0xff]  ;;  %v614_v48 = vld [vmem:[%s10304_s6 + $0x248] sm:$0xff] }
 0x1a5   : > { %8098 = vst [vmem:[%s10763_s27 + $0xd88] sm:$0xff] %v6866_v54  ;;  %8100 = vst [vmem:[%s10763_s27 + $0xd98] sm:$0xff] %v6868_v57  ;;  %v5650_v8 = vmax.f32 %v1222_v58, 1.5  ;;  %v5652_v9 = vmax.f32 %v1749_v60, 1.5  ;;  %v1226_v10 = vadd.f32 %v1225_v3, %v10723_v59  ;;  %v1753_v11 = vadd.f32 %v1752_v4, %v10730_v61  ;;  %3110 = vmatpush1.msra.mxu0 %v661_v49  ;;  %v9665_v47 = vld [vmem:[%s15190_s0 + $0x10] sm:$0xff]  ;;  %v616_v49 = vld [vmem:[%s10304_s6 + $0x258] sm:$0xff] }
 0x1a6   : > { %3637 = vmatpush1.msra.mxu1 %v663_v51  ;;  %v6881_v12 = vmin.f32 %v5649_v1, 1.7  ;;  %v6883_v13 = vmin.f32 %v5651_v2, 1.7  ;;  %v1227_v14 = vpop.f32.mrf.mxu0  ;;  %v1754_v15 = vpop.f32.mrf.mxu1  ;;  %2109 = vmatprep.mubr.f32.mxu0 %v9958_v0 }
 0x1a7   : > { %2636 = vmatprep.mubr.f32.mxu1 %v9958_v0  ;;  %v6882_v18 = vmin.f32 %v5650_v8, 1.7  ;;  %v6884_v19 = vmin.f32 %v5652_v9, 1.7  ;;  %v5665_v20 = vmax.f32 %v1226_v10, 1.5  ;;  %v5667_v21 = vmax.f32 %v1753_v11, 1.5  ;;  %3111 = vmatprep.subr.mxu0 %v646_v6 }
 0x1a8   : > { %3638 = vmatprep.subr.mxu1 %v648_v7  ;;  %8113 = vst [vmem:[%s10763_s27 + $0xe00] sm:$0xff] %v6881_v12  ;;  %8115 = vst [vmem:[%s10763_s27 + $0xe10] sm:$0xff] %v6883_v13  ;;  %v1228_v22 = vadd.f32 %v1227_v14, %v10734_v62  ;;  %v1755_v23 = vadd.f32 %v1754_v15, %v10738_v63  ;;  %v1231_v24 = vpop.f32.mrf.mxu0  ;;  %v1758_v25 = vpop.f32.mrf.mxu1  ;;  %9152 = vmatmul.mubr.msk.f32.gmra.mxu0 %vm753_vm0, %v9664_v26  ;;  %v613_v8 = vld [vmem:[%s10304_s6 + $0x240] sm:$0xff]  ;;  %v615_v9 = vld [vmem:[%s10304_s6 + $0x250] sm:$0xff] }
 0x1a9   : > { %9229 = vmatmul.mubr.msk.f32.gmra.mxu1 %vm753_vm0, %v9664_v26  ;;  %8114 = vst [vmem:[%s10763_s27 + $0xe08] sm:$0xff] %v6882_v18  ;;  %8116 = vst [vmem:[%s10763_s27 + $0xe18] sm:$0xff] %v6884_v19  ;;  %v6897_v29 = vmin.f32 %v5665_v20, 1.7  ;;  %v6899_v30 = vmin.f32 %v5667_v21, 1.7  ;;  %v1232_v31 = vadd.f32 %v1231_v24, %v10723_v59  ;;  %v1759_v32 = vadd.f32 %v1758_v25, %v10730_v61 }
 0x1aa   : > { %2115 = vmatprep.mubr.f32.mxu0 %v9958_v0  ;;  %2642 = vmatprep.mubr.f32.mxu1 %v9958_v0  ;;  %v5666_v33 = vmax.f32 %v1228_v22, 1.5  ;;  %v5668_v34 = vmax.f32 %v1755_v23, 1.5  ;;  %v1233_v35 = vpop.f32.mrf.mxu0  ;;  %v1760_v36 = vpop.f32.mrf.mxu1  ;;  %v9666_v14 = vld [vmem:[%s15190_s0 + $0x18] sm:$0xff] }
 0x1ab   : > { %3112 = vmatpush1.msra.mxu0 %v645_v16  ;;  %3639 = vmatpush1.msra.mxu1 %v647_v17  ;;  %8129 = vst [vmem:[%s10763_s27 + $0xe80] sm:$0xff] %v6897_v29  ;;  %8131 = vst [vmem:[%s10763_s27 + $0xe90] sm:$0xff] %v6899_v30  ;;  %v5681_v37 = vmax.f32 %v1232_v31, 1.5  ;;  %v5683_v38 = vmax.f32 %v1759_v32, 1.5  ;;  %v1234_v39 = vadd.f32 %v1233_v35, %v10734_v62  ;;  %v9667_v31 = vld [vmem:[%s15190_s0 + $0x20] sm:$0xff] }
 0x1ac   : > { %v1761_v40 = vadd.f32 %v1760_v36, %v10738_v63  ;;  %3113 = vmatprep.subr.mxu0 %v630_v27  ;;  %3640 = vmatprep.subr.mxu1 %v632_v28  ;;  %v6898_v43 = vmin.f32 %v5666_v33, 1.7  ;;  %v6900_v44 = vmin.f32 %v5668_v34, 1.7  ;;  %v1237_v45 = vpop.f32.mrf.mxu0  ;;  %v1764_v46 = vpop.f32.mrf.mxu1 }
 0x1ad   : > { %9153 = vmatmul.mubr.msk.f32.gmra.mxu0 %vm753_vm0, %v9665_v47  ;;  %9230 = vmatmul.mubr.msk.f32.gmra.mxu1 %vm753_vm0, %v9665_v47  ;;  %v6913_v51 = vmin.f32 %v5681_v37, 1.7  ;;  %v6915_v54 = vmin.f32 %v5683_v38, 1.7  ;;  %v5682_v57 = vmax.f32 %v1234_v39, 1.5  ;;  %v1238_v60 = vadd.f32 %v1237_v45, %v10723_v59 }
 0x1ae   : > { %v5684_v58 = vmax.f32 %v1761_v40, 1.5  ;;  %2121 = vmatprep.mubr.f32.mxu0 %v9958_v0  ;;  %2648 = vmatprep.mubr.f32.mxu1 %v9958_v0  ;;  %8130 = vst [vmem:[%s10763_s27 + $0xe88] sm:$0xff] %v6898_v43  ;;  %8132 = vst [vmem:[%s10763_s27 + $0xe98] sm:$0xff] %v6900_v44  ;;  %v1765_v1 = vadd.f32 %v1764_v46, %v10730_v61  ;;  %v1239_v2 = vpop.f32.mrf.mxu0  ;;  %v1766_v3 = vpop.f32.mrf.mxu1 }
 0x1af   : > { %3114 = vmatpush1.msra.mxu0 %v629_v41  ;;  %3641 = vmatpush1.msra.mxu1 %v631_v42  ;;  %8145 = vst [vmem:[%s10763_s27 + $0xf00] sm:$0xff] %v6913_v51  ;;  %8147 = vst [vmem:[%s10763_s27 + $0xf10] sm:$0xff] %v6915_v54  ;;  %v6914_v4 = vmin.f32 %v5682_v57, 1.7  ;;  %v1240_v6 = vadd.f32 %v1239_v2, %v10734_v62  ;;  %v1767_v7 = vadd.f32 %v1766_v3, %v10738_v63 }
 0x1b0   : > { %v6916_v5 = vmin.f32 %v5684_v58, 1.7  ;;  %3115 = vmatprep.subr.mxu0 %v614_v48  ;;  %3642 = vmatprep.subr.mxu1 %v616_v49  ;;  %v5697_v10 = vmax.f32 %v1238_v60, 1.5  ;;  %v5699_v11 = vmax.f32 %v1765_v1, 1.5  ;;  %v1243_v12 = vpop.f32.mrf.mxu0  ;;  %v1770_v13 = vpop.f32.mrf.mxu1  ;;  %v9668_v48 = vld [vmem:[%s15190_s0 + $0x28] sm:$0xff] }
 0x1b1   : > { %9154 = vmatmul.mubr.msk.f32.gmra.mxu0 %vm753_vm0, %v9666_v14  ;;  %9231 = vmatmul.mubr.msk.f32.gmra.mxu1 %vm753_vm0, %v9666_v14  ;;  %8146 = vst [vmem:[%s10763_s27 + $0xf08] sm:$0xff] %v6914_v4  ;;  %v5698_v15 = vmax.f32 %v1240_v6, 1.5  ;;  %v5700_v16 = vmax.f32 %v1767_v7, 1.5  ;;  %v1244_v17 = vadd.f32 %v1243_v12, %v10723_v59  ;;  %v1771_v18 = vadd.f32 %v1770_v13, %v10730_v61 }
 0x1b2   : > { %8148 = vst [vmem:[%s10763_s27 + $0xf18] sm:$0xff] %v6916_v5  ;;  %2127 = vmatprep.mubr.f32.mxu0 %v9958_v0  ;;  %2654 = vmatprep.mubr.f32.mxu1 %v9958_v0  ;;  %v6929_v19 = vmin.f32 %v5697_v10, 1.7  ;;  %v6931_v20 = vmin.f32 %v5699_v11, 1.7  ;;  %v1245_v21 = vpop.f32.mrf.mxu0  ;;  %v1772_v22 = vpop.f32.mrf.mxu1  ;;  %v9669_v11 = vld [vmem:[%s15190_s0 + $0x30] sm:$0xff] }
 0x1b3   : > { %3116 = vmatpush1.msra.mxu0 %v613_v8  ;;  %3643 = vmatpush1.msra.mxu1 %v615_v9  ;;  %v6930_v23 = vmin.f32 %v5698_v15, 1.7  ;;  %v6932_v24 = vmin.f32 %v5700_v16, 1.7  ;;  %v5713_v25 = vmax.f32 %v1244_v17, 1.5  ;;  %v5715_v26 = vmax.f32 %v1771_v18, 1.5 }
 0x1b4   : > { %8161 = vst [vmem:[%s10763_s27 + $0xf80] sm:$0xff] %v6929_v19  ;;  %8163 = vst [vmem:[%s10763_s27 + $0xf90] sm:$0xff] %v6931_v20  ;;  %v1246_v27 = vadd.f32 %v1245_v21, %v10734_v62  ;;  %v1773_v28 = vadd.f32 %v1772_v22, %v10738_v63  ;;  %v1249_v29 = vpop.f32.mrf.mxu0  ;;  %v1776_v30 = vpop.f32.mrf.mxu1 }
 0x1b5   : > { %9155 = vmatmul.mubr.msk.f32.gmra.mxu0 %vm753_vm0, %v9667_v31  ;;  %9232 = vmatmul.mubr.msk.f32.gmra.mxu1 %vm753_vm0, %v9667_v31  ;;  %8162 = vst [vmem:[%s10763_s27 + $0xf88] sm:$0xff] %v6930_v23  ;;  %8164 = vst [vmem:[%s10763_s27 + $0xf98] sm:$0xff] %v6932_v24  ;;  %v6945_v32 = vmin.f32 %v5713_v25, 1.7  ;;  %v6947_v33 = vmin.f32 %v5715_v26, 1.7  ;;  %v1250_v34 = vadd.f32 %v1249_v29, %v10723_v59 }
 0x1b6   : > { %v1777_v35 = vadd.f32 %v1776_v30, %v10730_v61  ;;  %2133 = vmatprep.mubr.f32.mxu0 %v9958_v0  ;;  %2660 = vmatprep.mubr.f32.mxu1 %v9958_v0  ;;  %v5714_v36 = vmax.f32 %v1246_v27, 1.5  ;;  %v5716_v37 = vmax.f32 %v1773_v28, 1.5  ;;  %v1251_v38 = vpop.f32.mrf.mxu0  ;;  %v1778_v39 = vpop.f32.mrf.mxu1  ;;  %v9670_v28 = vld [vmem:[%s15190_s0 + $0x38] sm:$0xff] }
 0x1b7   : > { %8177 = vst [vmem:[%s10763_s27 + $0x1000] sm:$0xff] %v6945_v32  ;;  %8179 = vst [vmem:[%s10763_s27 + $0x1010] sm:$0xff] %v6947_v33  ;;  %v5729_v40 = vmax.f32 %v1250_v34, 1.5  ;;  %v1252_v42 = vadd.f32 %v1251_v38, %v10734_v62  ;;  %v1779_v43 = vadd.f32 %v1778_v39, %v10738_v63 }
 0x1b8   : > { %v5731_v41 = vmax.f32 %v1777_v35, 1.5  ;;  %v6946_v44 = vmin.f32 %v5714_v36, 1.7  ;;  %v6948_v45 = vmin.f32 %v5716_v37, 1.7  ;;  %v1255_v46 = vpop.f32.mrf.mxu0  ;;  %v1782_v47 = vpop.f32.mrf.mxu1 }
 0x1b9   : > { %9156 = vmatmul.mubr.msk.f32.gmra.mxu0 %vm753_vm0, %v9668_v48  ;;  %9233 = vmatmul.mubr.msk.f32.gmra.mxu1 %vm753_vm0, %v9668_v48  ;;  %v6961_v49 = vmin.f32 %v5729_v40, 1.7  ;;  %v5730_v54 = vmax.f32 %v1252_v42, 1.5  ;;  %v5732_v57 = vmax.f32 %v1779_v43, 1.5  ;;  %v1256_v58 = vadd.f32 %v1255_v46, %v10723_v59 }
 0x1ba   : > { %v6963_v51 = vmin.f32 %v5731_v41, 1.7  ;;  %2139 = vmatprep.mubr.f32.mxu0 %v9958_v0  ;;  %2666 = vmatprep.mubr.f32.mxu1 %v9958_v0  ;;  %8178 = vst [vmem:[%s10763_s27 + $0x1008] sm:$0xff] %v6946_v44  ;;  %8180 = vst [vmem:[%s10763_s27 + $0x1018] sm:$0xff] %v6948_v45  ;;  %v1783_v60 = vadd.f32 %v1782_v47, %v10730_v61  ;;  %v1257_v1 = vpop.f32.mrf.mxu0  ;;  %v1784_v2 = vpop.f32.mrf.mxu1  ;;  %v9671_v45 = vld [vmem:[%s15190_s0 + $0x40] sm:$0xff] }
 0x1bb   : > { %8193 = vst [vmem:[%s10763_s27 + $0x1080] sm:$0xff] %v6961_v49  ;;  %v6962_v3 = vmin.f32 %v5730_v54, 1.7  ;;  %v6964_v4 = vmin.f32 %v5732_v57, 1.7  ;;  %v1258_v5 = vadd.f32 %v1257_v1, %v10734_v62  ;;  %v1785_v6 = vadd.f32 %v1784_v2, %v10738_v63  ;;  %v600_v1 = vld [vmem:[%s10304_s6 + $0x1d8] sm:$0xff] }
 0x1bc   : > { %8195 = vst [vmem:[%s10763_s27 + $0x1090] sm:$0xff] %v6963_v51  ;;  %v5745_v7 = vmax.f32 %v1256_v58, 1.5  ;;  %v5747_v8 = vmax.f32 %v1783_v60, 1.5  ;;  %v1261_v9 = vpop.f32.mrf.mxu0  ;;  %v1788_v10 = vpop.f32.mrf.mxu1  ;;  %v598_v60 = vld [vmem:[%s10304_s6 + $0x1c8] sm:$0xff]  ;;  %3644 = vmatprep.subr.mxu1 %v600_v1 }
 0x1bd   : > { %9157 = vmatmul.mubr.msk.f32.gmra.mxu0 %vm753_vm0, %v9669_v11  ;;  %9234 = vmatmul.mubr.msk.f32.gmra.mxu1 %vm753_vm0, %v9669_v11  ;;  %8194 = vst [vmem:[%s10763_s27 + $0x1088] sm:$0xff] %v6962_v3  ;;  %8196 = vst [vmem:[%s10763_s27 + $0x1098] sm:$0xff] %v6964_v4  ;;  %v5746_v12 = vmax.f32 %v1258_v5, 1.5  ;;  %v5748_v13 = vmax.f32 %v1785_v6, 1.5  ;;  %v1262_v14 = vadd.f32 %v1261_v9, %v10723_v59  ;;  %v597_v6 = vld [vmem:[%s10304_s6 + $0x1c0] sm:$0xff] }
 0x1be   : > { %v1789_v15 = vadd.f32 %v1788_v10, %v10730_v61  ;;  %2145 = vmatprep.mubr.f32.mxu0 %v9958_v0  ;;  %2672 = vmatprep.mubr.f32.mxu1 %v9958_v0  ;;  %v6977_v16 = vmin.f32 %v5745_v7, 1.7  ;;  %v6979_v17 = vmin.f32 %v5747_v8, 1.7  ;;  %v1263_v18 = vpop.f32.mrf.mxu0  ;;  %v1790_v19 = vpop.f32.mrf.mxu1  ;;  %v599_v7 = vld [vmem:[%s10304_s6 + $0x1d0] sm:$0xff] }
 0x1bf   : > { %v6978_v20 = vmin.f32 %v5746_v12, 1.7  ;;  %v6980_v21 = vmin.f32 %v5748_v13, 1.7  ;;  %v5761_v22 = vmax.f32 %v1262_v14, 1.5  ;;  %v1264_v24 = vadd.f32 %v1263_v18, %v10734_v62  ;;  %3117 = vmatprep.subr.mxu0 %v598_v60  ;;  %v9672_v12 = vld [vmem:[%s15190_s0 + $0x48] sm:$0xff]  ;;  %3645 = vmatpush1.msra.mxu1 %v599_v7 }
 0x1c0   : > { %v5763_v23 = vmax.f32 %v1789_v15, 1.5  ;;  %8209 = vst [vmem:[%s10763_s27 + $0x1100] sm:$0xff] %v6977_v16  ;;  %8211 = vst [vmem:[%s10763_s27 + $0x1110] sm:$0xff] %v6979_v17  ;;  %v1791_v25 = vadd.f32 %v1790_v19, %v10738_v63  ;;  %v1267_v26 = vpop.f32.mrf.mxu0  ;;  %v1794_v27 = vpop.f32.mrf.mxu1  ;;  %3118 = vmatpush1.msra.mxu0 %v597_v6 }
 0x1c1   : > { %9158 = vmatmul.mubr.msk.f32.gmra.mxu0 %vm753_vm0, %v9670_v28  ;;  %9235 = vmatmul.mubr.msk.f32.gmra.mxu1 %vm753_vm0, %v9670_v28  ;;  %8210 = vst [vmem:[%s10763_s27 + $0x1108] sm:$0xff] %v6978_v20  ;;  %8212 = vst [vmem:[%s10763_s27 + $0x1118] sm:$0xff] %v6980_v21  ;;  %v6993_v29 = vmin.f32 %v5761_v22, 1.7  ;;  %v1268_v31 = vadd.f32 %v1267_v26, %v10723_v59  ;;  %v1795_v32 = vadd.f32 %v1794_v27, %v10730_v61 }
 0x1c2   : > { %v6995_v30 = vmin.f32 %v5763_v23, 1.7  ;;  %2151 = vmatprep.mubr.f32.mxu0 %v9958_v0  ;;  %2678 = vmatprep.mubr.f32.mxu1 %v9958_v0  ;;  %v5762_v33 = vmax.f32 %v1264_v24, 1.5  ;;  %v5764_v34 = vmax.f32 %v1791_v25, 1.5  ;;  %v1269_v35 = vpop.f32.mrf.mxu0  ;;  %v1796_v36 = vpop.f32.mrf.mxu1 }
 0x1c3   : > { %8225 = vst [vmem:[%s10763_s27 + $0x1180] sm:$0xff] %v6993_v29  ;;  %v5777_v37 = vmax.f32 %v1268_v31, 1.5  ;;  %v5779_v38 = vmax.f32 %v1795_v32, 1.5  ;;  %v1270_v39 = vadd.f32 %v1269_v35, %v10734_v62  ;;  %v1797_v40 = vadd.f32 %v1796_v36, %v10738_v63  ;;  %v9673_v29 = vld [vmem:[%s15190_s0 + $0x50] sm:$0xff] }
 0x1c4   : > { %8227 = vst [vmem:[%s10763_s27 + $0x1190] sm:$0xff] %v6995_v30  ;;  %v6994_v41 = vmin.f32 %v5762_v33, 1.7  ;;  %v6996_v42 = vmin.f32 %v5764_v34, 1.7  ;;  %v1273_v43 = vpop.f32.mrf.mxu0  ;;  %v1800_v44 = vpop.f32.mrf.mxu1 }
 0x1c5   : > { %9159 = vmatmul.mubr.msk.f32.gmra.mxu0 %vm753_vm0, %v9671_v45  ;;  %9236 = vmatmul.mubr.msk.f32.gmra.mxu1 %vm753_vm0, %v9671_v45  ;;  %v7009_v46 = vmin.f32 %v5777_v37, 1.7  ;;  %v7011_v47 = vmin.f32 %v5779_v38, 1.7  ;;  %v5778_v48 = vmax.f32 %v1270_v39, 1.5  ;;  %v5780_v49 = vmax.f32 %v1797_v40, 1.5 }
 0x1c6   : > { %2157 = vmatprep.mubr.f32.mxu0 %v9958_v0  ;;  %2684 = vmatprep.mubr.f32.mxu1 %v9958_v0  ;;  %8226 = vst [vmem:[%s10763_s27 + $0x1188] sm:$0xff] %v6994_v41  ;;  %8228 = vst [vmem:[%s10763_s27 + $0x1198] sm:$0xff] %v6996_v42  ;;  %v1274_v51 = vadd.f32 %v1273_v43, %v10723_v59  ;;  %v1801_v54 = vadd.f32 %v1800_v44, %v10730_v61  ;;  %v1275_v57 = vpop.f32.mrf.mxu0  ;;  %v1802_v58 = vpop.f32.mrf.mxu1 }
 0x1c7   : > { %8241 = vst [vmem:[%s10763_s27 + $0x1200] sm:$0xff] %v7009_v46  ;;  %8243 = vst [vmem:[%s10763_s27 + $0x1210] sm:$0xff] %v7011_v47  ;;  %v7010_v2 = vmin.f32 %v5778_v48, 1.7  ;;  %v7012_v3 = vmin.f32 %v5780_v49, 1.7  ;;  %v1276_v4 = vadd.f32 %v1275_v57, %v10734_v62  ;;  %v1803_v5 = vadd.f32 %v1802_v58, %v10738_v63 }
 0x1c8   : > { %v5793_v8 = vmax.f32 %v1274_v51, 1.5  ;;  %v5795_v9 = vmax.f32 %v1801_v54, 1.5  ;;  %v1279_v10 = vpop.f32.mrf.mxu0  ;;  %v1806_v11 = vpop.f32.mrf.mxu1  ;;  %v9674_v46 = vld [vmem:[%s15190_s0 + $0x58] sm:$0xff] }
 0x1c9   : > { %9160 = vmatmul.mubr.msk.f32.gmra.mxu0 %vm753_vm0, %v9672_v12  ;;  %9237 = vmatmul.mubr.msk.f32.gmra.mxu1 %vm753_vm0, %v9672_v12  ;;  %8242 = vst [vmem:[%s10763_s27 + $0x1208] sm:$0xff] %v7010_v2  ;;  %8244 = vst [vmem:[%s10763_s27 + $0x1218] sm:$0xff] %v7012_v3  ;;  %v5794_v13 = vmax.f32 %v1276_v4, 1.5  ;;  %v5796_v14 = vmax.f32 %v1803_v5, 1.5  ;;  %v1280_v15 = vadd.f32 %v1279_v10, %v10723_v59 }
 0x1ca   : > { %v1807_v16 = vadd.f32 %v1806_v11, %v10730_v61  ;;  %2163 = vmatprep.mubr.f32.mxu0 %v9958_v0  ;;  %2690 = vmatprep.mubr.f32.mxu1 %v9958_v0  ;;  %v7025_v17 = vmin.f32 %v5793_v8, 1.7  ;;  %v7027_v18 = vmin.f32 %v5795_v9, 1.7  ;;  %v1281_v19 = vpop.f32.mrf.mxu0  ;;  %v1808_v20 = vpop.f32.mrf.mxu1  ;;  %v9675_v9 = vld [vmem:[%s15190_s0 + $0x60] sm:$0xff] }
 0x1cb   : > { %v7026_v21 = vmin.f32 %v5794_v13, 1.7  ;;  %v7028_v22 = vmin.f32 %v5796_v14, 1.7  ;;  %v5809_v23 = vmax.f32 %v1280_v15, 1.5  ;;  %v1282_v25 = vadd.f32 %v1281_v19, %v10734_v62 }
 0x1cc   : > { %v5811_v24 = vmax.f32 %v1807_v16, 1.5  ;;  %8257 = vst [vmem:[%s10763_s27 + $0x1280] sm:$0xff] %v7025_v17  ;;  %8259 = vst [vmem:[%s10763_s27 + $0x1290] sm:$0xff] %v7027_v18  ;;  %v1809_v26 = vadd.f32 %v1808_v20, %v10738_v63  ;;  %v1285_v27 = vpop.f32.mrf.mxu0  ;;  %v1812_v28 = vpop.f32.mrf.mxu1 }
 0x1cd   : > { %9161 = vmatmul.mubr.msk.f32.gmra.mxu0 %vm753_vm0, %v9673_v29  ;;  %9238 = vmatmul.mubr.msk.f32.gmra.mxu1 %vm753_vm0, %v9673_v29  ;;  %8258 = vst [vmem:[%s10763_s27 + $0x1288] sm:$0xff] %v7026_v21  ;;  %8260 = vst [vmem:[%s10763_s27 + $0x1298] sm:$0xff] %v7028_v22  ;;  %v7041_v30 = vmin.f32 %v5809_v23, 1.7  ;;  %v1286_v32 = vadd.f32 %v1285_v27, %v10723_v59  ;;  %v1813_v33 = vadd.f32 %v1812_v28, %v10730_v61 }
 0x1ce   : > { %v7043_v31 = vmin.f32 %v5811_v24, 1.7  ;;  %2169 = vmatprep.mubr.f32.mxu0 %v9958_v0  ;;  %2696 = vmatprep.mubr.f32.mxu1 %v9958_v0  ;;  %v5810_v34 = vmax.f32 %v1282_v25, 1.5  ;;  %v5812_v35 = vmax.f32 %v1809_v26, 1.5  ;;  %v1287_v36 = vpop.f32.mrf.mxu0  ;;  %v1814_v37 = vpop.f32.mrf.mxu1  ;;  %v9676_v26 = vld [vmem:[%s15190_s0 + $0x68] sm:$0xff] }
 0x1cf   : > { %8273 = vst [vmem:[%s10763_s27 + $0x1300] sm:$0xff] %v7041_v30  ;;  %v5825_v38 = vmax.f32 %v1286_v32, 1.5  ;;  %v5827_v39 = vmax.f32 %v1813_v33, 1.5  ;;  %v1288_v40 = vadd.f32 %v1287_v36, %v10734_v62  ;;  %v1815_v41 = vadd.f32 %v1814_v37, %v10738_v63 }
 0x1d0   : > { %8275 = vst [vmem:[%s10763_s27 + $0x1310] sm:$0xff] %v7043_v31  ;;  %v7042_v42 = vmin.f32 %v5810_v34, 1.7  ;;  %v7044_v43 = vmin.f32 %v5812_v35, 1.7  ;;  %v1291_v44 = vpop.f32.mrf.mxu0  ;;  %v1818_v45 = vpop.f32.mrf.mxu1 }
 0x1d1   : > { %9162 = vmatmul.mubr.msk.f32.gmra.mxu0 %vm753_vm0, %v9674_v46  ;;  %9239 = vmatmul.mubr.msk.f32.gmra.mxu1 %vm753_vm0, %v9674_v46  ;;  %v7057_v47 = vmin.f32 %v5825_v38, 1.7  ;;  %v7059_v48 = vmin.f32 %v5827_v39, 1.7  ;;  %v5826_v49 = vmax.f32 %v1288_v40, 1.5  ;;  %v5828_v51 = vmax.f32 %v1815_v41, 1.5 }
 0x1d2   : > { %2175 = vmatprep.mubr.f32.mxu0 %v9958_v0  ;;  %2702 = vmatprep.mubr.f32.mxu1 %v9958_v0  ;;  %8274 = vst [vmem:[%s10763_s27 + $0x1308] sm:$0xff] %v7042_v42  ;;  %8276 = vst [vmem:[%s10763_s27 + $0x1318] sm:$0xff] %v7044_v43  ;;  %v1292_v54 = vadd.f32 %v1291_v44, %v10723_v59  ;;  %v1819_v57 = vadd.f32 %v1818_v45, %v10730_v61  ;;  %v1293_v58 = vpop.f32.mrf.mxu0  ;;  %v1820_v60 = vpop.f32.mrf.mxu1  ;;  %v9677_v43 = vld [vmem:[%s15190_s0 + $0x70] sm:$0xff] }
 0x1d3   : > { %8289 = vst [vmem:[%s10763_s27 + $0x1380] sm:$0xff] %v7057_v47  ;;  %8291 = vst [vmem:[%s10763_s27 + $0x1390] sm:$0xff] %v7059_v48  ;;  %v7058_v1 = vmin.f32 %v5826_v49, 1.7  ;;  %v7060_v2 = vmin.f32 %v5828_v51, 1.7  ;;  %v1294_v3 = vadd.f32 %v1293_v58, %v10734_v62  ;;  %v1821_v4 = vadd.f32 %v1820_v60, %v10738_v63 }
 0x1d4   : > { %v5841_v5 = vmax.f32 %v1292_v54, 1.5  ;;  %v5843_v6 = vmax.f32 %v1819_v57, 1.5  ;;  %v1297_v7 = vpop.f32.mrf.mxu0  ;;  %v1824_v8 = vpop.f32.mrf.mxu1 }
 0x1d5   : > { %9163 = vmatmul.mubr.msk.f32.gmra.mxu0 %vm753_vm0, %v9675_v9  ;;  %9240 = vmatmul.mubr.msk.f32.gmra.mxu1 %vm753_vm0, %v9675_v9  ;;  %8290 = vst [vmem:[%s10763_s27 + $0x1388] sm:$0xff] %v7058_v1  ;;  %8292 = vst [vmem:[%s10763_s27 + $0x1398] sm:$0xff] %v7060_v2  ;;  %v5842_v10 = vmax.f32 %v1294_v3, 1.5  ;;  %v5844_v11 = vmax.f32 %v1821_v4, 1.5  ;;  %v1298_v12 = vadd.f32 %v1297_v7, %v10723_v59 }
 0x1d6   : > { %v1825_v13 = vadd.f32 %v1824_v8, %v10730_v61  ;;  %2181 = vmatprep.mubr.f32.mxu0 %v9958_v0  ;;  %2708 = vmatprep.mubr.f32.mxu1 %v9958_v0  ;;  %v7073_v14 = vmin.f32 %v5841_v5, 1.7  ;;  %v7075_v15 = vmin.f32 %v5843_v6, 1.7  ;;  %v1299_v16 = vpop.f32.mrf.mxu0  ;;  %v1826_v17 = vpop.f32.mrf.mxu1  ;;  %v9678_v6 = vld [vmem:[%s15190_s0 + $0x78] sm:$0xff] }
 0x1d7   : > { %v7074_v18 = vmin.f32 %v5842_v10, 1.7  ;;  %v7076_v19 = vmin.f32 %v5844_v11, 1.7  ;;  %v5857_v20 = vmax.f32 %v1298_v12, 1.5  ;;  %v1300_v22 = vadd.f32 %v1299_v16, %v10734_v62 }
 0x1d8   : > { %v5859_v21 = vmax.f32 %v1825_v13, 1.5  ;;  %8305 = vst [vmem:[%s10763_s27 + $0x1400] sm:$0xff] %v7073_v14  ;;  %8307 = vst [vmem:[%s10763_s27 + $0x1410] sm:$0xff] %v7075_v15  ;;  %v1827_v23 = vadd.f32 %v1826_v17, %v10738_v63  ;;  %v1303_v24 = vpop.f32.mrf.mxu0  ;;  %v1830_v25 = vpop.f32.mrf.mxu1 }
 0x1d9   : > { %9164 = vmatmul.mubr.msk.f32.gmra.mxu0 %vm753_vm0, %v9676_v26  ;;  %9241 = vmatmul.mubr.msk.f32.gmra.mxu1 %vm753_vm0, %v9676_v26  ;;  %8306 = vst [vmem:[%s10763_s27 + $0x1408] sm:$0xff] %v7074_v18  ;;  %8308 = vst [vmem:[%s10763_s27 + $0x1418] sm:$0xff] %v7076_v19  ;;  %v7089_v27 = vmin.f32 %v5857_v20, 1.7  ;;  %v1304_v29 = vadd.f32 %v1303_v24, %v10723_v59  ;;  %v1831_v30 = vadd.f32 %v1830_v25, %v10730_v61 }
 0x1da   : > { %v7091_v28 = vmin.f32 %v5859_v21, 1.7  ;;  %2187 = vmatprep.mubr.f32.mxu0 %v9958_v0  ;;  %2714 = vmatprep.mubr.f32.mxu1 %v9958_v0  ;;  %v5858_v31 = vmax.f32 %v1300_v22, 1.5  ;;  %v5860_v32 = vmax.f32 %v1827_v23, 1.5  ;;  %v1305_v33 = vpop.f32.mrf.mxu0  ;;  %v1832_v34 = vpop.f32.mrf.mxu1  ;;  %v9679_v23 = vld [vmem:[%s15190_s0 + $0x80] sm:$0xff] }
 0x1db   : > { %8321 = vst [vmem:[%s10763_s27 + $0x1480] sm:$0xff] %v7089_v27  ;;  %v5873_v35 = vmax.f32 %v1304_v29, 1.5  ;;  %v5875_v36 = vmax.f32 %v1831_v30, 1.5  ;;  %v1306_v37 = vadd.f32 %v1305_v33, %v10734_v62  ;;  %v1833_v38 = vadd.f32 %v1832_v34, %v10738_v63 }
 0x1dc   : > { %8323 = vst [vmem:[%s10763_s27 + $0x1490] sm:$0xff] %v7091_v28  ;;  %v7090_v39 = vmin.f32 %v5858_v31, 1.7  ;;  %v7092_v40 = vmin.f32 %v5860_v32, 1.7  ;;  %v1309_v41 = vpop.f32.mrf.mxu0  ;;  %v1836_v42 = vpop.f32.mrf.mxu1 }
 0x1dd   : > { %9165 = vmatmul.mubr.msk.f32.gmra.mxu0 %vm753_vm0, %v9677_v43  ;;  %9242 = vmatmul.mubr.msk.f32.gmra.mxu1 %vm753_vm0, %v9677_v43  ;;  %v7105_v44 = vmin.f32 %v5873_v35, 1.7  ;;  %v7107_v45 = vmin.f32 %v5875_v36, 1.7  ;;  %v5874_v46 = vmax.f32 %v1306_v37, 1.5  ;;  %v5876_v47 = vmax.f32 %v1833_v38, 1.5 }
 0x1de   : > { %2193 = vmatprep.mubr.f32.mxu0 %v9958_v0  ;;  %2720 = vmatprep.mubr.f32.mxu1 %v9958_v0  ;;  %8322 = vst [vmem:[%s10763_s27 + $0x1488] sm:$0xff] %v7090_v39  ;;  %8324 = vst [vmem:[%s10763_s27 + $0x1498] sm:$0xff] %v7092_v40  ;;  %v1310_v48 = vadd.f32 %v1309_v41, %v10723_v59  ;;  %v1837_v49 = vadd.f32 %v1836_v42, %v10730_v61  ;;  %v1311_v51 = vpop.f32.mrf.mxu0  ;;  %v1838_v54 = vpop.f32.mrf.mxu1  ;;  %v9680_v40 = vld [vmem:[%s15190_s0 + $0x88] sm:$0xff] }
 0x1df   : > { %8337 = vst [vmem:[%s10763_s27 + $0x1500] sm:$0xff] %v7105_v44  ;;  %8339 = vst [vmem:[%s10763_s27 + $0x1510] sm:$0xff] %v7107_v45  ;;  %v7106_v57 = vmin.f32 %v5874_v46, 1.7  ;;  %v7108_v58 = vmin.f32 %v5876_v47, 1.7  ;;  %v1312_v60 = vadd.f32 %v1311_v51, %v10734_v62  ;;  %v1839_v1 = vadd.f32 %v1838_v54, %v10738_v63 }
 0x1e0   : > { %v5889_v2 = vmax.f32 %v1310_v48, 1.5  ;;  %v5891_v3 = vmax.f32 %v1837_v49, 1.5  ;;  %v1315_v4 = vpop.f32.mrf.mxu0  ;;  %v1842_v5 = vpop.f32.mrf.mxu1 }
 0x1e1   : > { %9166 = vmatmul.mubr.msk.f32.gmra.mxu0 %vm753_vm0, %v9678_v6  ;;  %9243 = vmatmul.mubr.msk.f32.gmra.mxu1 %vm753_vm0, %v9678_v6  ;;  %8338 = vst [vmem:[%s10763_s27 + $0x1508] sm:$0xff] %v7106_v57  ;;  %8340 = vst [vmem:[%s10763_s27 + $0x1518] sm:$0xff] %v7108_v58  ;;  %v5890_v7 = vmax.f32 %v1312_v60, 1.5  ;;  %v5892_v8 = vmax.f32 %v1839_v1, 1.5  ;;  %v1316_v9 = vadd.f32 %v1315_v4, %v10723_v59  ;;  %v582_v58 = vld [vmem:[%s10304_s6 + $0x148] sm:$0xff]  ;;  %v584_v60 = vld [vmem:[%s10304_s6 + $0x158] sm:$0xff] }
 0x1e2   : > { %v1843_v10 = vadd.f32 %v1842_v5, %v10730_v61  ;;  %2199 = vmatprep.mubr.f32.mxu0 %v9958_v0  ;;  %2726 = vmatprep.mubr.f32.mxu1 %v9958_v0  ;;  %v7121_v11 = vmin.f32 %v5889_v2, 1.7  ;;  %v7123_v12 = vmin.f32 %v5891_v3, 1.7  ;;  %v1317_v13 = vpop.f32.mrf.mxu0  ;;  %v1844_v14 = vpop.f32.mrf.mxu1  ;;  %v9681_v5 = vld [vmem:[%s15190_s0 + $0x90] sm:$0xff] }
 0x1e3   : > { %v7122_v15 = vmin.f32 %v5890_v7, 1.7  ;;  %v7124_v16 = vmin.f32 %v5892_v8, 1.7  ;;  %v5905_v17 = vmax.f32 %v1316_v9, 1.5  ;;  %v1318_v19 = vadd.f32 %v1317_v13, %v10734_v62  ;;  %3119 = vmatprep.subr.mxu0 %v582_v58  ;;  %3646 = vmatprep.subr.mxu1 %v584_v60 }
 0x1e4   : > { %v5907_v18 = vmax.f32 %v1843_v10, 1.5  ;;  %8353 = vst [vmem:[%s10763_s27 + $0x1580] sm:$0xff] %v7121_v11  ;;  %8355 = vst [vmem:[%s10763_s27 + $0x1590] sm:$0xff] %v7123_v12  ;;  %v1845_v20 = vadd.f32 %v1844_v14, %v10738_v63  ;;  %v1321_v21 = vpop.f32.mrf.mxu0  ;;  %v1848_v22 = vpop.f32.mrf.mxu1  ;;  %v581_v14 = vld [vmem:[%s10304_s6 + $0x140] sm:$0xff] }
 0x1e5   : > { %9167 = vmatmul.mubr.msk.f32.gmra.mxu0 %vm753_vm0, %v9679_v23  ;;  %9244 = vmatmul.mubr.msk.f32.gmra.mxu1 %vm753_vm0, %v9679_v23  ;;  %8354 = vst [vmem:[%s10763_s27 + $0x1588] sm:$0xff] %v7122_v15  ;;  %8356 = vst [vmem:[%s10763_s27 + $0x1598] sm:$0xff] %v7124_v16  ;;  %v7137_v24 = vmin.f32 %v5905_v17, 1.7  ;;  %v1322_v26 = vadd.f32 %v1321_v21, %v10723_v59  ;;  %v1849_v27 = vadd.f32 %v1848_v22, %v10730_v61  ;;  %v583_v15 = vld [vmem:[%s10304_s6 + $0x150] sm:$0xff] }
 0x1e6   : > { %v7139_v25 = vmin.f32 %v5907_v18, 1.7  ;;  %2205 = vmatprep.mubr.f32.mxu0 %v9958_v0  ;;  %2732 = vmatprep.mubr.f32.mxu1 %v9958_v0  ;;  %v5906_v28 = vmax.f32 %v1318_v19, 1.5  ;;  %v5908_v29 = vmax.f32 %v1845_v20, 1.5  ;;  %v1323_v30 = vpop.f32.mrf.mxu0  ;;  %v1850_v31 = vpop.f32.mrf.mxu1 }
 0x1e7   : > { %8369 = vst [vmem:[%s10763_s27 + $0x1600] sm:$0xff] %v7137_v24  ;;  %v5921_v32 = vmax.f32 %v1322_v26, 1.5  ;;  %v5923_v33 = vmax.f32 %v1849_v27, 1.5  ;;  %v1324_v34 = vadd.f32 %v1323_v30, %v10734_v62  ;;  %v1851_v35 = vadd.f32 %v1850_v31, %v10738_v63  ;;  %3120 = vmatpush1.msra.mxu0 %v581_v14  ;;  %3647 = vmatpush1.msra.mxu1 %v583_v15  ;;  %v9682_v24 = vld [vmem:[%s15190_s0 + $0x98] sm:$0xff] }
 0x1e8   : > { %8371 = vst [vmem:[%s10763_s27 + $0x1610] sm:$0xff] %v7139_v25  ;;  %v7138_v36 = vmin.f32 %v5906_v28, 1.7  ;;  %v7140_v37 = vmin.f32 %v5908_v29, 1.7  ;;  %v1327_v38 = vpop.f32.mrf.mxu0  ;;  %v1854_v39 = vpop.f32.mrf.mxu1 }
 0x1e9   : > { %9168 = vmatmul.mubr.msk.f32.gmra.mxu0 %vm753_vm0, %v9680_v40  ;;  %9245 = vmatmul.mubr.msk.f32.gmra.mxu1 %vm753_vm0, %v9680_v40  ;;  %v7153_v41 = vmin.f32 %v5921_v32, 1.7  ;;  %v7155_v42 = vmin.f32 %v5923_v33, 1.7  ;;  %v5922_v43 = vmax.f32 %v1324_v34, 1.5  ;;  %v5924_v44 = vmax.f32 %v1851_v35, 1.5 }
 0x1ea   : > { %2211 = vmatprep.mubr.f32.mxu0 %v9958_v0  ;;  %2738 = vmatprep.mubr.f32.mxu1 %v9958_v0  ;;  %8370 = vst [vmem:[%s10763_s27 + $0x1608] sm:$0xff] %v7138_v36  ;;  %8372 = vst [vmem:[%s10763_s27 + $0x1618] sm:$0xff] %v7140_v37  ;;  %v1328_v45 = vadd.f32 %v1327_v38, %v10723_v59  ;;  %v1855_v46 = vadd.f32 %v1854_v39, %v10730_v61  ;;  %v1329_v47 = vpop.f32.mrf.mxu0  ;;  %v1856_v48 = vpop.f32.mrf.mxu1 }
 0x1eb   : > { %8385 = vst [vmem:[%s10763_s27 + $0x1680] sm:$0xff] %v7153_v41  ;;  %8387 = vst [vmem:[%s10763_s27 + $0x1690] sm:$0xff] %v7155_v42  ;;  %v7154_v49 = vmin.f32 %v5922_v43, 1.7  ;;  %v7156_v51 = vmin.f32 %v5924_v44, 1.7  ;;  %v1330_v54 = vadd.f32 %v1329_v47, %v10734_v62  ;;  %v1857_v57 = vadd.f32 %v1856_v48, %v10738_v63 }
 0x1ec   : > { %v5937_v1 = vmax.f32 %v1328_v45, 1.5  ;;  %v5939_v2 = vmax.f32 %v1855_v46, 1.5  ;;  %v1333_v3 = vpop.f32.mrf.mxu0  ;;  %v1860_v4 = vpop.f32.mrf.mxu1  ;;  %v9683_v41 = vld [vmem:[%s15190_s0 + $0xa0] sm:$0xff] }
 0x1ed   : > { %9169 = vmatmul.mubr.msk.f32.gmra.mxu0 %vm753_vm0, %v9681_v5  ;;  %9246 = vmatmul.mubr.msk.f32.gmra.mxu1 %vm753_vm0, %v9681_v5  ;;  %8386 = vst [vmem:[%s10763_s27 + $0x1688] sm:$0xff] %v7154_v49  ;;  %8388 = vst [vmem:[%s10763_s27 + $0x1698] sm:$0xff] %v7156_v51  ;;  %v5938_v6 = vmax.f32 %v1330_v54, 1.5  ;;  %v5940_v7 = vmax.f32 %v1857_v57, 1.5  ;;  %v1334_v8 = vadd.f32 %v1333_v3, %v10723_v59 }
 0x1ee   : > { %v1861_v9 = vadd.f32 %v1860_v4, %v10730_v61  ;;  %2217 = vmatprep.mubr.f32.mxu0 %v9958_v0  ;;  %2744 = vmatprep.mubr.f32.mxu1 %v9958_v0  ;;  %v7169_v10 = vmin.f32 %v5937_v1, 1.7  ;;  %v7171_v11 = vmin.f32 %v5939_v2, 1.7  ;;  %v1335_v12 = vpop.f32.mrf.mxu0  ;;  %v1862_v13 = vpop.f32.mrf.mxu1  ;;  %v9684_v4 = vld [vmem:[%s15190_s0 + $0xa8] sm:$0xff] }
 0x1ef   : > { %v7170_v16 = vmin.f32 %v5938_v6, 1.7  ;;  %v7172_v17 = vmin.f32 %v5940_v7, 1.7  ;;  %v5953_v18 = vmax.f32 %v1334_v8, 1.5  ;;  %v1336_v20 = vadd.f32 %v1335_v12, %v10734_v62 }
 0x1f0   : > { %v5955_v19 = vmax.f32 %v1861_v9, 1.5  ;;  %8401 = vst [vmem:[%s10763_s27 + $0x1700] sm:$0xff] %v7169_v10  ;;  %8403 = vst [vmem:[%s10763_s27 + $0x1710] sm:$0xff] %v7171_v11  ;;  %v1863_v21 = vadd.f32 %v1862_v13, %v10738_v63  ;;  %v1339_v22 = vpop.f32.mrf.mxu0  ;;  %v1866_v23 = vpop.f32.mrf.mxu1 }
 0x1f1   : > { %9170 = vmatmul.mubr.msk.f32.gmra.mxu0 %vm753_vm0, %v9682_v24  ;;  %9247 = vmatmul.mubr.msk.f32.gmra.mxu1 %vm753_vm0, %v9682_v24  ;;  %8402 = vst [vmem:[%s10763_s27 + $0x1708] sm:$0xff] %v7170_v16  ;;  %8404 = vst [vmem:[%s10763_s27 + $0x1718] sm:$0xff] %v7172_v17  ;;  %v7185_v25 = vmin.f32 %v5953_v18, 1.7  ;;  %v1340_v27 = vadd.f32 %v1339_v22, %v10723_v59  ;;  %v1867_v28 = vadd.f32 %v1866_v23, %v10730_v61 }
 0x1f2   : > { %v7187_v26 = vmin.f32 %v5955_v19, 1.7  ;;  %2223 = vmatprep.mubr.f32.mxu0 %v9958_v0  ;;  %2750 = vmatprep.mubr.f32.mxu1 %v9958_v0  ;;  %v5954_v29 = vmax.f32 %v1336_v20, 1.5  ;;  %v5956_v30 = vmax.f32 %v1863_v21, 1.5  ;;  %v1341_v31 = vpop.f32.mrf.mxu0  ;;  %v1868_v32 = vpop.f32.mrf.mxu1  ;;  %v9685_v21 = vld [vmem:[%s15190_s0 + $0xb0] sm:$0xff] }
 0x1f3   : > { %8417 = vst [vmem:[%s10763_s27 + $0x1780] sm:$0xff] %v7185_v25  ;;  %v5969_v33 = vmax.f32 %v1340_v27, 1.5  ;;  %v5971_v34 = vmax.f32 %v1867_v28, 1.5  ;;  %v1342_v35 = vadd.f32 %v1341_v31, %v10734_v62  ;;  %v1869_v36 = vadd.f32 %v1868_v32, %v10738_v63 }
 0x1f4   : > { %8419 = vst [vmem:[%s10763_s27 + $0x1790] sm:$0xff] %v7187_v26  ;;  %v7186_v37 = vmin.f32 %v5954_v29, 1.7  ;;  %v7188_v38 = vmin.f32 %v5956_v30, 1.7  ;;  %v1345_v39 = vpop.f32.mrf.mxu0  ;;  %v1872_v40 = vpop.f32.mrf.mxu1 }
 0x1f5   : > { %9171 = vmatmul.mubr.msk.f32.gmra.mxu0 %vm753_vm0, %v9683_v41  ;;  %9248 = vmatmul.mubr.msk.f32.gmra.mxu1 %vm753_vm0, %v9683_v41  ;;  %v7201_v42 = vmin.f32 %v5969_v33, 1.7  ;;  %v7203_v43 = vmin.f32 %v5971_v34, 1.7  ;;  %v5970_v44 = vmax.f32 %v1342_v35, 1.5  ;;  %v5972_v45 = vmax.f32 %v1869_v36, 1.5 }
 0x1f6   : > { %2229 = vmatprep.mubr.f32.mxu0 %v9958_v0  ;;  %2756 = vmatprep.mubr.f32.mxu1 %v9958_v0  ;;  %8418 = vst [vmem:[%s10763_s27 + $0x1788] sm:$0xff] %v7186_v37  ;;  %8420 = vst [vmem:[%s10763_s27 + $0x1798] sm:$0xff] %v7188_v38  ;;  %v1346_v46 = vadd.f32 %v1345_v39, %v10723_v59  ;;  %v1873_v47 = vadd.f32 %v1872_v40, %v10730_v61  ;;  %v1347_v48 = vpop.f32.mrf.mxu0  ;;  %v1874_v49 = vpop.f32.mrf.mxu1  ;;  %v9686_v38 = vld [vmem:[%s15190_s0 + $0xb8] sm:$0xff] }
 0x1f7   : > { %8433 = vst [vmem:[%s10763_s27 + $0x1800] sm:$0xff] %v7201_v42  ;;  %8435 = vst [vmem:[%s10763_s27 + $0x1810] sm:$0xff] %v7203_v43  ;;  %v7202_v51 = vmin.f32 %v5970_v44, 1.7  ;;  %v7204_v54 = vmin.f32 %v5972_v45, 1.7  ;;  %v1348_v57 = vadd.f32 %v1347_v48, %v10734_v62  ;;  %v1875_v58 = vadd.f32 %v1874_v49, %v10738_v63 }
 0x1f8   : > { %v5985_v60 = vmax.f32 %v1346_v46, 1.5  ;;  %v5987_v1 = vmax.f32 %v1873_v47, 1.5  ;;  %v1351_v2 = vpop.f32.mrf.mxu0  ;;  %v1878_v3 = vpop.f32.mrf.mxu1 }
 0x1f9   : > { %9172 = vmatmul.mubr.msk.f32.gmra.mxu0 %vm753_vm0, %v9684_v4  ;;  %9249 = vmatmul.mubr.msk.f32.gmra.mxu1 %vm753_vm0, %v9684_v4  ;;  %8434 = vst [vmem:[%s10763_s27 + $0x1808] sm:$0xff] %v7202_v51  ;;  %8436 = vst [vmem:[%s10763_s27 + $0x1818] sm:$0xff] %v7204_v54  ;;  %v5986_v5 = vmax.f32 %v1348_v57, 1.5  ;;  %v5988_v6 = vmax.f32 %v1875_v58, 1.5  ;;  %v1352_v7 = vadd.f32 %v1351_v2, %v10723_v59 }
 0x1fa   : > { %v1879_v8 = vadd.f32 %v1878_v3, %v10730_v61  ;;  %2235 = vmatprep.mubr.f32.mxu0 %v9958_v0  ;;  %2762 = vmatprep.mubr.f32.mxu1 %v9958_v0  ;;  %v7217_v9 = vmin.f32 %v5985_v60, 1.7  ;;  %v7219_v10 = vmin.f32 %v5987_v1, 1.7  ;;  %v1353_v11 = vpop.f32.mrf.mxu0  ;;  %v1880_v12 = vpop.f32.mrf.mxu1  ;;  %v9687_v1 = vld [vmem:[%s15190_s0 + $0xc0] sm:$0xff] }
 0x1fb   : > { %v7218_v13 = vmin.f32 %v5986_v5, 1.7  ;;  %v7220_v14 = vmin.f32 %v5988_v6, 1.7  ;;  %v6001_v15 = vmax.f32 %v1352_v7, 1.5  ;;  %v1354_v17 = vadd.f32 %v1353_v11, %v10734_v62 }
 0x1fc   : > { %v6003_v16 = vmax.f32 %v1879_v8, 1.5  ;;  %8449 = vst [vmem:[%s10763_s27 + $0x1880] sm:$0xff] %v7217_v9  ;;  %8451 = vst [vmem:[%s10763_s27 + $0x1890] sm:$0xff] %v7219_v10  ;;  %v1881_v18 = vadd.f32 %v1880_v12, %v10738_v63  ;;  %v1357_v19 = vpop.f32.mrf.mxu0  ;;  %v1884_v20 = vpop.f32.mrf.mxu1 }
 0x1fd   : > { %9173 = vmatmul.mubr.msk.f32.gmra.mxu0 %vm753_vm0, %v9685_v21  ;;  %9250 = vmatmul.mubr.msk.f32.gmra.mxu1 %vm753_vm0, %v9685_v21  ;;  %8450 = vst [vmem:[%s10763_s27 + $0x1888] sm:$0xff] %v7218_v13  ;;  %8452 = vst [vmem:[%s10763_s27 + $0x1898] sm:$0xff] %v7220_v14  ;;  %v7233_v22 = vmin.f32 %v6001_v15, 1.7  ;;  %v1358_v24 = vadd.f32 %v1357_v19, %v10723_v59  ;;  %v1885_v25 = vadd.f32 %v1884_v20, %v10730_v61 }
 0x1fe   : > { %v7235_v23 = vmin.f32 %v6003_v16, 1.7  ;;  %2241 = vmatprep.mubr.f32.mxu0 %v9958_v0  ;;  %2768 = vmatprep.mubr.f32.mxu1 %v9958_v0  ;;  %v6002_v26 = vmax.f32 %v1354_v17, 1.5  ;;  %v6004_v27 = vmax.f32 %v1881_v18, 1.5  ;;  %v1359_v28 = vpop.f32.mrf.mxu0  ;;  %v1886_v29 = vpop.f32.mrf.mxu1  ;;  %v9688_v18 = vld [vmem:[%s15190_s0 + $0xc8] sm:$0xff] }
 0x1ff   : > { %8465 = vst [vmem:[%s10763_s27 + $0x1900] sm:$0xff] %v7233_v22  ;;  %v6017_v30 = vmax.f32 %v1358_v24, 1.5  ;;  %v6019_v31 = vmax.f32 %v1885_v25, 1.5  ;;  %v1360_v32 = vadd.f32 %v1359_v28, %v10734_v62  ;;  %v1887_v33 = vadd.f32 %v1886_v29, %v10738_v63 }
 0x200   : > { %8467 = vst [vmem:[%s10763_s27 + $0x1910] sm:$0xff] %v7235_v23  ;;  %v7234_v34 = vmin.f32 %v6002_v26, 1.7  ;;  %v7236_v35 = vmin.f32 %v6004_v27, 1.7  ;;  %v1363_v36 = vpop.f32.mrf.mxu0  ;;  %v1890_v37 = vpop.f32.mrf.mxu1 }
 0x201   : > { %9174 = vmatmul.mubr.msk.f32.gmra.mxu0 %vm753_vm0, %v9686_v38  ;;  %9251 = vmatmul.mubr.msk.f32.gmra.mxu1 %vm753_vm0, %v9686_v38  ;;  %v7249_v39 = vmin.f32 %v6017_v30, 1.7  ;;  %v7251_v40 = vmin.f32 %v6019_v31, 1.7  ;;  %v6018_v41 = vmax.f32 %v1360_v32, 1.5  ;;  %v6020_v42 = vmax.f32 %v1887_v33, 1.5 }
 0x202   : > { %2247 = vmatprep.mubr.f32.mxu0 %v9958_v0  ;;  %2774 = vmatprep.mubr.f32.mxu1 %v9958_v0  ;;  %8466 = vst [vmem:[%s10763_s27 + $0x1908] sm:$0xff] %v7234_v34  ;;  %8468 = vst [vmem:[%s10763_s27 + $0x1918] sm:$0xff] %v7236_v35  ;;  %v1364_v43 = vadd.f32 %v1363_v36, %v10723_v59  ;;  %v1891_v44 = vadd.f32 %v1890_v37, %v10730_v61  ;;  %v1365_v45 = vpop.f32.mrf.mxu0  ;;  %v1892_v46 = vpop.f32.mrf.mxu1  ;;  %v9689_v35 = vld [vmem:[%s15190_s0 + $0xd0] sm:$0xff] }
 0x203   : > { %8481 = vst [vmem:[%s10763_s27 + $0x1980] sm:$0xff] %v7249_v39  ;;  %8483 = vst [vmem:[%s10763_s27 + $0x1990] sm:$0xff] %v7251_v40  ;;  %v7250_v47 = vmin.f32 %v6018_v41, 1.7  ;;  %v7252_v48 = vmin.f32 %v6020_v42, 1.7  ;;  %v1366_v49 = vadd.f32 %v1365_v45, %v10734_v62  ;;  %v1893_v51 = vadd.f32 %v1892_v46, %v10738_v63 }
 0x204   : > { %v6033_v54 = vmax.f32 %v1364_v43, 1.5  ;;  %v6035_v57 = vmax.f32 %v1891_v44, 1.5  ;;  %v1369_v58 = vpop.f32.mrf.mxu0  ;;  %v1896_v60 = vpop.f32.mrf.mxu1 }
 0x205   : > { %9175 = vmatmul.mubr.msk.f32.gmra.mxu0 %vm753_vm0, %v9687_v1  ;;  %9252 = vmatmul.mubr.msk.f32.gmra.mxu1 %vm753_vm0, %v9687_v1  ;;  %8482 = vst [vmem:[%s10763_s27 + $0x1988] sm:$0xff] %v7250_v47  ;;  %8484 = vst [vmem:[%s10763_s27 + $0x1998] sm:$0xff] %v7252_v48  ;;  %v6034_v2 = vmax.f32 %v1366_v49, 1.5  ;;  %v6036_v3 = vmax.f32 %v1893_v51, 1.5  ;;  %v1370_v4 = vadd.f32 %v1369_v58, %v10723_v59 }
 0x206   : > { %v1897_v5 = vadd.f32 %v1896_v60, %v10730_v61  ;;  %2253 = vmatprep.mubr.f32.mxu0 %v9958_v0  ;;  %2780 = vmatprep.mubr.f32.mxu1 %v9958_v0  ;;  %v7265_v6 = vmin.f32 %v6033_v54, 1.7  ;;  %v7267_v7 = vmin.f32 %v6035_v57, 1.7  ;;  %v1371_v8 = vpop.f32.mrf.mxu0  ;;  %v1898_v9 = vpop.f32.mrf.mxu1  ;;  %v9690_v57 = vld [vmem:[%s15190_s0 + $0xd8] sm:$0xff] }
 0x207   : > { %v7266_v10 = vmin.f32 %v6034_v2, 1.7  ;;  %v7268_v11 = vmin.f32 %v6036_v3, 1.7  ;;  %v6049_v12 = vmax.f32 %v1370_v4, 1.5  ;;  %v1372_v14 = vadd.f32 %v1371_v8, %v10734_v62  ;;  %v568_v8 = vld [vmem:[%s10304_s6 + $0xd8] sm:$0xff] }
 0x208   : > { %v6051_v13 = vmax.f32 %v1897_v5, 1.5  ;;  %8497 = vst [vmem:[%s10763_s27 + $0x1a00] sm:$0xff] %v7265_v6  ;;  %8499 = vst [vmem:[%s10763_s27 + $0x1a10] sm:$0xff] %v7267_v7  ;;  %v1899_v15 = vadd.f32 %v1898_v9, %v10738_v63  ;;  %v1375_v16 = vpop.f32.mrf.mxu0  ;;  %v1902_v17 = vpop.f32.mrf.mxu1  ;;  %v566_v7 = vld [vmem:[%s10304_s6 + $0xc8] sm:$0xff]  ;;  %3648 = vmatprep.subr.mxu1 %v568_v8 }
 0x209   : > { %9176 = vmatmul.mubr.msk.f32.gmra.mxu0 %vm753_vm0, %v9688_v18  ;;  %9253 = vmatmul.mubr.msk.f32.gmra.mxu1 %vm753_vm0, %v9688_v18  ;;  %8498 = vst [vmem:[%s10763_s27 + $0x1a08] sm:$0xff] %v7266_v10  ;;  %8500 = vst [vmem:[%s10763_s27 + $0x1a18] sm:$0xff] %v7268_v11  ;;  %v7281_v19 = vmin.f32 %v6049_v12, 1.7  ;;  %v1376_v21 = vadd.f32 %v1375_v16, %v10723_v59  ;;  %v1903_v22 = vadd.f32 %v1902_v17, %v10730_v61  ;;  %v9691_v17 = vld [vmem:[%s15190_s0 + $0xe0] sm:$0xff] }
 0x20a   : > { %v7283_v20 = vmin.f32 %v6051_v13, 1.7  ;;  %2259 = vmatprep.mubr.f32.mxu0 %v9958_v0  ;;  %2786 = vmatprep.mubr.f32.mxu1 %v9958_v0  ;;  %v6050_v23 = vmax.f32 %v1372_v14, 1.5  ;;  %v6052_v24 = vmax.f32 %v1899_v15, 1.5  ;;  %v1377_v25 = vpop.f32.mrf.mxu0  ;;  %v1904_v26 = vpop.f32.mrf.mxu1  ;;  %v565_v18 = vld [vmem:[%s10304_s6 + $0xc0] sm:$0xff] }
 0x20b   : > { %8513 = vst [vmem:[%s10763_s27 + $0x1a80] sm:$0xff] %v7281_v19  ;;  %v6065_v27 = vmax.f32 %v1376_v21, 1.5  ;;  %v6067_v28 = vmax.f32 %v1903_v22, 1.5  ;;  %v1378_v29 = vadd.f32 %v1377_v25, %v10734_v62  ;;  %v1905_v30 = vadd.f32 %v1904_v26, %v10738_v63  ;;  %3121 = vmatprep.subr.mxu0 %v566_v7  ;;  %v567_v19 = vld [vmem:[%s10304_s6 + $0xd0] sm:$0xff] }
 0x20c   : > { %8515 = vst [vmem:[%s10763_s27 + $0x1a90] sm:$0xff] %v7283_v20  ;;  %v7282_v31 = vmin.f32 %v6050_v23, 1.7  ;;  %v7284_v32 = vmin.f32 %v6052_v24, 1.7  ;;  %v1381_v33 = vpop.f32.mrf.mxu0  ;;  %v1908_v34 = vpop.f32.mrf.mxu1  ;;  %3122 = vmatpush1.msra.mxu0 %v565_v18  ;;  %3649 = vmatpush1.msra.mxu1 %v567_v19 }
 0x20d   : > { %9177 = vmatmul.mubr.msk.f32.gmra.mxu0 %vm753_vm0, %v9689_v35  ;;  %9254 = vmatmul.mubr.msk.f32.gmra.mxu1 %vm753_vm0, %v9689_v35  ;;  %v7297_v36 = vmin.f32 %v6065_v27, 1.7  ;;  %v7299_v37 = vmin.f32 %v6067_v28, 1.7  ;;  %v6066_v38 = vmax.f32 %v1378_v29, 1.5  ;;  %v6068_v39 = vmax.f32 %v1905_v30, 1.5 }
 0x20e   : > { %2265 = vmatprep.mubr.f32.mxu0 %v9958_v0  ;;  %2792 = vmatprep.mubr.f32.mxu1 %v9958_v0  ;;  %8514 = vst [vmem:[%s10763_s27 + $0x1a88] sm:$0xff] %v7282_v31  ;;  %8516 = vst [vmem:[%s10763_s27 + $0x1a98] sm:$0xff] %v7284_v32  ;;  %v1382_v40 = vadd.f32 %v1381_v33, %v10723_v59  ;;  %v1909_v41 = vadd.f32 %v1908_v34, %v10730_v61  ;;  %v1383_v42 = vpop.f32.mrf.mxu0  ;;  %v1910_v43 = vpop.f32.mrf.mxu1 }
 0x20f   : > { %8529 = vst [vmem:[%s10763_s27 + $0x1b00] sm:$0xff] %v7297_v36  ;;  %8531 = vst [vmem:[%s10763_s27 + $0x1b10] sm:$0xff] %v7299_v37  ;;  %v7298_v44 = vmin.f32 %v6066_v38, 1.7  ;;  %v7300_v45 = vmin.f32 %v6068_v39, 1.7  ;;  %v1384_v46 = vadd.f32 %v1383_v42, %v10734_v62  ;;  %v1911_v47 = vadd.f32 %v1910_v43, %v10738_v63 }
 0x210   : > { %v6081_v48 = vmax.f32 %v1382_v40, 1.5  ;;  %v6083_v49 = vmax.f32 %v1909_v41, 1.5  ;;  %v1387_v51 = vpop.f32.mrf.mxu0  ;;  %v1914_v54 = vpop.f32.mrf.mxu1  ;;  %v9692_v36 = vld [vmem:[%s15190_s0 + $0xe8] sm:$0xff] }
 0x211   : > { %9178 = vmatmul.mubr.msk.f32.gmra.mxu0 %vm753_vm0, %v9690_v57  ;;  %9255 = vmatmul.mubr.msk.f32.gmra.mxu1 %vm753_vm0, %v9690_v57  ;;  %8530 = vst [vmem:[%s10763_s27 + $0x1b08] sm:$0xff] %v7298_v44  ;;  %8532 = vst [vmem:[%s10763_s27 + $0x1b18] sm:$0xff] %v7300_v45  ;;  %v6082_v58 = vmax.f32 %v1384_v46, 1.5  ;;  %v6084_v60 = vmax.f32 %v1911_v47, 1.5  ;;  %v1388_v1 = vadd.f32 %v1387_v51, %v10723_v59 }
 0x212   : > { %v1915_v2 = vadd.f32 %v1914_v54, %v10730_v61  ;;  %2271 = vmatprep.mubr.f32.mxu0 %v9958_v0  ;;  %2798 = vmatprep.mubr.f32.mxu1 %v9958_v0  ;;  %v7313_v3 = vmin.f32 %v6081_v48, 1.7  ;;  %v7315_v4 = vmin.f32 %v6083_v49, 1.7  ;;  %v1389_v5 = vpop.f32.mrf.mxu0  ;;  %v1916_v6 = vpop.f32.mrf.mxu1 }
 0x213   : > { %v7314_v9 = vmin.f32 %v6082_v58, 1.7  ;;  %v7316_v10 = vmin.f32 %v6084_v60, 1.7  ;;  %v6097_v11 = vmax.f32 %v1388_v1, 1.5  ;;  %v1390_v13 = vadd.f32 %v1389_v5, %v10734_v62  ;;  %v9693_v58 = vld [vmem:[%s15190_s0 + $0xf0] sm:$0xff] }
 0x214   : > { %v6099_v12 = vmax.f32 %v1915_v2, 1.5  ;;  %8545 = vst [vmem:[%s10763_s27 + $0x1b80] sm:$0xff] %v7313_v3  ;;  %8547 = vst [vmem:[%s10763_s27 + $0x1b90] sm:$0xff] %v7315_v4  ;;  %v1917_v14 = vadd.f32 %v1916_v6, %v10738_v63  ;;  %v1393_v15 = vpop.f32.mrf.mxu0  ;;  %v1920_v16 = vpop.f32.mrf.mxu1 }
 0x215   : > { %9179 = vmatmul.mubr.msk.f32.gmra.mxu0 %vm753_vm0, %v9691_v17  ;;  %9256 = vmatmul.mubr.msk.f32.gmra.mxu1 %vm753_vm0, %v9691_v17  ;;  %8546 = vst [vmem:[%s10763_s27 + $0x1b88] sm:$0xff] %v7314_v9  ;;  %8548 = vst [vmem:[%s10763_s27 + $0x1b98] sm:$0xff] %v7316_v10  ;;  %v7329_v20 = vmin.f32 %v6097_v11, 1.7  ;;  %v1394_v22 = vadd.f32 %v1393_v15, %v10723_v59  ;;  %v1921_v23 = vadd.f32 %v1920_v16, %v10730_v61  ;;  %v9694_v16 = vld [vmem:[%s15190_s0 + $0xf8] sm:$0xff] }
 0x216   : > { %v7331_v21 = vmin.f32 %v6099_v12, 1.7  ;;  %2277 = vmatprep.mubr.f32.mxu0 %v9958_v0  ;;  %2804 = vmatprep.mubr.f32.mxu1 %v9958_v0  ;;  %v6098_v24 = vmax.f32 %v1390_v13, 1.5  ;;  %v6100_v25 = vmax.f32 %v1917_v14, 1.5  ;;  %v1395_v26 = vpop.f32.mrf.mxu0  ;;  %v1922_v27 = vpop.f32.mrf.mxu1 }
 0x217   : > { %8561 = vst [vmem:[%s10763_s27 + $0x1c00] sm:$0xff] %v7329_v20  ;;  %v6113_v28 = vmax.f32 %v1394_v22, 1.5  ;;  %v6115_v29 = vmax.f32 %v1921_v23, 1.5  ;;  %v1396_v30 = vadd.f32 %v1395_v26, %v10734_v62  ;;  %v1923_v31 = vadd.f32 %v1922_v27, %v10738_v63 }
 0x218   : > { %8563 = vst [vmem:[%s10763_s27 + $0x1c10] sm:$0xff] %v7331_v21  ;;  %v7330_v32 = vmin.f32 %v6098_v24, 1.7  ;;  %v7332_v33 = vmin.f32 %v6100_v25, 1.7  ;;  %v1399_v34 = vpop.f32.mrf.mxu0  ;;  %v1926_v35 = vpop.f32.mrf.mxu1 }
 0x219   : > { %9180 = vmatmul.mubr.msk.f32.gmra.mxu0 %vm753_vm0, %v9692_v36  ;;  %9257 = vmatmul.mubr.msk.f32.gmra.mxu1 %vm753_vm0, %v9692_v36  ;;  %v7345_v37 = vmin.f32 %v6113_v28, 1.7  ;;  %v7347_v38 = vmin.f32 %v6115_v29, 1.7  ;;  %v6114_v39 = vmax.f32 %v1396_v30, 1.5  ;;  %v6116_v40 = vmax.f32 %v1923_v31, 1.5 }
 0x21a   : > { %2283 = vmatprep.mubr.f32.mxu0 %v9958_v0  ;;  %2810 = vmatprep.mubr.f32.mxu1 %v9958_v0  ;;  %8562 = vst [vmem:[%s10763_s27 + $0x1c08] sm:$0xff] %v7330_v32  ;;  %8564 = vst [vmem:[%s10763_s27 + $0x1c18] sm:$0xff] %v7332_v33  ;;  %v1400_v41 = vadd.f32 %v1399_v34, %v10723_v59  ;;  %v1927_v42 = vadd.f32 %v1926_v35, %v10730_v61  ;;  %v1401_v43 = vpop.f32.mrf.mxu0  ;;  %v1928_v44 = vpop.f32.mrf.mxu1  ;;  %v9695_v33 = vld [vmem:[%s15190_s0 + $0x100] sm:$0xff] }
 0x21b   : > { %8577 = vst [vmem:[%s10763_s27 + $0x1c80] sm:$0xff] %v7345_v37  ;;  %8579 = vst [vmem:[%s10763_s27 + $0x1c90] sm:$0xff] %v7347_v38  ;;  %v7346_v45 = vmin.f32 %v6114_v39, 1.7  ;;  %v7348_v46 = vmin.f32 %v6116_v40, 1.7  ;;  %v1402_v47 = vadd.f32 %v1401_v43, %v10734_v62  ;;  %v1929_v48 = vadd.f32 %v1928_v44, %v10738_v63 }
 0x21c   : > { %v6129_v49 = vmax.f32 %v1400_v41, 1.5  ;;  %v6131_v51 = vmax.f32 %v1927_v42, 1.5  ;;  %v1405_v54 = vpop.f32.mrf.mxu0  ;;  %v1932_v57 = vpop.f32.mrf.mxu1 }
 0x21d   : > { %9181 = vmatmul.mubr.msk.f32.gmra.mxu0 %vm753_vm0, %v9693_v58  ;;  %9258 = vmatmul.mubr.msk.f32.gmra.mxu1 %vm753_vm0, %v9693_v58  ;;  %8578 = vst [vmem:[%s10763_s27 + $0x1c88] sm:$0xff] %v7346_v45  ;;  %8580 = vst [vmem:[%s10763_s27 + $0x1c98] sm:$0xff] %v7348_v46  ;;  %v6130_v60 = vmax.f32 %v1402_v47, 1.5  ;;  %v6132_v1 = vmax.f32 %v1929_v48, 1.5  ;;  %v1406_v2 = vadd.f32 %v1405_v54, %v10723_v59 }
 0x21e   : > { %v1933_v3 = vadd.f32 %v1932_v57, %v10730_v61  ;;  %2289 = vmatprep.mubr.f32.mxu0 %v9958_v0  ;;  %2816 = vmatprep.mubr.f32.mxu1 %v9958_v0  ;;  %v7361_v4 = vmin.f32 %v6129_v49, 1.7  ;;  %v7363_v5 = vmin.f32 %v6131_v51, 1.7  ;;  %v1407_v6 = vpop.f32.mrf.mxu0  ;;  %v1934_v7 = vpop.f32.mrf.mxu1  ;;  %v9696_v51 = vld [vmem:[%s15190_s0 + $0x108] sm:$0xff] }
 0x21f   : > { %v7362_v8 = vmin.f32 %v6130_v60, 1.7  ;;  %v7364_v9 = vmin.f32 %v6132_v1, 1.7  ;;  %v6145_v10 = vmax.f32 %v1406_v2, 1.5  ;;  %v1408_v12 = vadd.f32 %v1407_v6, %v10734_v62 }
 0x220   : > { %v6147_v11 = vmax.f32 %v1933_v3, 1.5  ;;  %8593 = vst [vmem:[%s10763_s27 + $0x1d00] sm:$0xff] %v7361_v4  ;;  %8595 = vst [vmem:[%s10763_s27 + $0x1d10] sm:$0xff] %v7363_v5  ;;  %v1935_v13 = vadd.f32 %v1934_v7, %v10738_v63  ;;  %v1411_v14 = vpop.f32.mrf.mxu0  ;;  %v1938_v15 = vpop.f32.mrf.mxu1 }
 0x221   : > { %9182 = vmatmul.mubr.msk.f32.gmra.mxu0 %vm753_vm0, %v9694_v16  ;;  %9259 = vmatmul.mubr.msk.f32.gmra.mxu1 %vm753_vm0, %v9694_v16  ;;  %8594 = vst [vmem:[%s10763_s27 + $0x1d08] sm:$0xff] %v7362_v8  ;;  %8596 = vst [vmem:[%s10763_s27 + $0x1d18] sm:$0xff] %v7364_v9  ;;  %v7377_v17 = vmin.f32 %v6145_v10, 1.7  ;;  %v1412_v19 = vadd.f32 %v1411_v14, %v10723_v59  ;;  %v1939_v20 = vadd.f32 %v1938_v15, %v10730_v61 }
 0x222   : > { %v7379_v18 = vmin.f32 %v6147_v11, 1.7  ;;  %2295 = vmatprep.mubr.f32.mxu0 %v9958_v0  ;;  %2822 = vmatprep.mubr.f32.mxu1 %v9958_v0  ;;  %v6146_v21 = vmax.f32 %v1408_v12, 1.5  ;;  %v6148_v22 = vmax.f32 %v1935_v13, 1.5  ;;  %v1413_v23 = vpop.f32.mrf.mxu0  ;;  %v1940_v24 = vpop.f32.mrf.mxu1  ;;  %v9697_v13 = vld [vmem:[%s15190_s0 + $0x110] sm:$0xff] }
 0x223   : > { %8609 = vst [vmem:[%s10763_s27 + $0x1d80] sm:$0xff] %v7377_v17  ;;  %v6161_v25 = vmax.f32 %v1412_v19, 1.5  ;;  %v6163_v26 = vmax.f32 %v1939_v20, 1.5  ;;  %v1414_v27 = vadd.f32 %v1413_v23, %v10734_v62  ;;  %v1941_v28 = vadd.f32 %v1940_v24, %v10738_v63 }
 0x224   : > { %8611 = vst [vmem:[%s10763_s27 + $0x1d90] sm:$0xff] %v7379_v18  ;;  %v7378_v29 = vmin.f32 %v6146_v21, 1.7  ;;  %v7380_v30 = vmin.f32 %v6148_v22, 1.7  ;;  %v1417_v31 = vpop.f32.mrf.mxu0  ;;  %v1944_v32 = vpop.f32.mrf.mxu1 }
 0x225   : > { %9183 = vmatmul.mubr.msk.f32.gmra.mxu0 %vm753_vm0, %v9695_v33  ;;  %9260 = vmatmul.mubr.msk.f32.gmra.mxu1 %vm753_vm0, %v9695_v33  ;;  %v7393_v34 = vmin.f32 %v6161_v25, 1.7  ;;  %v7395_v35 = vmin.f32 %v6163_v26, 1.7  ;;  %v6162_v36 = vmax.f32 %v1414_v27, 1.5  ;;  %v6164_v37 = vmax.f32 %v1941_v28, 1.5 }
 0x226   : > { %2301 = vmatprep.mubr.f32.mxu0 %v9958_v0  ;;  %2828 = vmatprep.mubr.f32.mxu1 %v9958_v0  ;;  %8610 = vst [vmem:[%s10763_s27 + $0x1d88] sm:$0xff] %v7378_v29  ;;  %8612 = vst [vmem:[%s10763_s27 + $0x1d98] sm:$0xff] %v7380_v30  ;;  %v1418_v38 = vadd.f32 %v1417_v31, %v10723_v59  ;;  %v1945_v39 = vadd.f32 %v1944_v32, %v10730_v61  ;;  %v1419_v40 = vpop.f32.mrf.mxu0  ;;  %v1946_v41 = vpop.f32.mrf.mxu1  ;;  %v9698_v30 = vld [vmem:[%s15190_s0 + $0x118] sm:$0xff] }
 0x227   : > { %8625 = vst [vmem:[%s10763_s27 + $0x1e00] sm:$0xff] %v7393_v34  ;;  %8627 = vst [vmem:[%s10763_s27 + $0x1e10] sm:$0xff] %v7395_v35  ;;  %v7394_v42 = vmin.f32 %v6162_v36, 1.7  ;;  %v7396_v43 = vmin.f32 %v6164_v37, 1.7  ;;  %v1420_v44 = vadd.f32 %v1419_v40, %v10734_v62  ;;  %v1947_v45 = vadd.f32 %v1946_v41, %v10738_v63 }
 0x228   : > { %v6177_v46 = vmax.f32 %v1418_v38, 1.5  ;;  %v6179_v47 = vmax.f32 %v1945_v39, 1.5  ;;  %v1423_v48 = vpop.f32.mrf.mxu0  ;;  %v1950_v49 = vpop.f32.mrf.mxu1 }
 0x229   : > { %9184 = vmatmul.mubr.msk.f32.gmra.mxu0 %vm753_vm0, %v9696_v51  ;;  %9261 = vmatmul.mubr.msk.f32.gmra.mxu1 %vm753_vm0, %v9696_v51  ;;  %8626 = vst [vmem:[%s10763_s27 + $0x1e08] sm:$0xff] %v7394_v42  ;;  %8628 = vst [vmem:[%s10763_s27 + $0x1e18] sm:$0xff] %v7396_v43  ;;  %v6178_v54 = vmax.f32 %v1420_v44, 1.5  ;;  %v6180_v57 = vmax.f32 %v1947_v45, 1.5  ;;  %v1424_v58 = vadd.f32 %v1423_v48, %v10723_v59 }
 0x22a   : > { %v1951_v60 = vadd.f32 %v1950_v49, %v10730_v61  ;;  %2307 = vmatprep.mubr.f32.mxu0 %v9958_v0  ;;  %2834 = vmatprep.mubr.f32.mxu1 %v9958_v0  ;;  %v7409_v1 = vmin.f32 %v6177_v46, 1.7  ;;  %v7411_v2 = vmin.f32 %v6179_v47, 1.7  ;;  %v1425_v3 = vpop.f32.mrf.mxu0  ;;  %v1952_v4 = vpop.f32.mrf.mxu1  ;;  %v9699_v47 = vld [vmem:[%s15190_s0 + $0x120] sm:$0xff] }
 0x22b   : > { %v7410_v5 = vmin.f32 %v6178_v54, 1.7  ;;  %v7412_v6 = vmin.f32 %v6180_v57, 1.7  ;;  %v6193_v7 = vmax.f32 %v1424_v58, 1.5  ;;  %v1426_v9 = vadd.f32 %v1425_v3, %v10734_v62 }
 0x22c   : > { %v6195_v8 = vmax.f32 %v1951_v60, 1.5  ;;  %8641 = vst [vmem:[%s10763_s27 + $0x1e80] sm:$0xff] %v7409_v1  ;;  %8643 = vst [vmem:[%s10763_s27 + $0x1e90] sm:$0xff] %v7411_v2  ;;  %v1953_v10 = vadd.f32 %v1952_v4, %v10738_v63  ;;  %v1429_v11 = vpop.f32.mrf.mxu0  ;;  %v1956_v12 = vpop.f32.mrf.mxu1 }
 0x22d   : > { %9185 = vmatmul.mubr.msk.f32.gmra.mxu0 %vm753_vm0, %v9697_v13  ;;  %9262 = vmatmul.mubr.msk.f32.gmra.mxu1 %vm753_vm0, %v9697_v13  ;;  %8642 = vst [vmem:[%s10763_s27 + $0x1e88] sm:$0xff] %v7410_v5  ;;  %8644 = vst [vmem:[%s10763_s27 + $0x1e98] sm:$0xff] %v7412_v6  ;;  %v7425_v14 = vmin.f32 %v6193_v7, 1.7  ;;  %v1430_v16 = vadd.f32 %v1429_v11, %v10723_v59  ;;  %v1957_v17 = vadd.f32 %v1956_v12, %v10730_v61 }
 0x22e   : > { %v7427_v15 = vmin.f32 %v6195_v8, 1.7  ;;  %2313 = vmatprep.mubr.f32.mxu0 %v9958_v0  ;;  %2840 = vmatprep.mubr.f32.mxu1 %v9958_v0  ;;  %v6194_v18 = vmax.f32 %v1426_v9, 1.5  ;;  %v6196_v19 = vmax.f32 %v1953_v10, 1.5  ;;  %v1431_v20 = vpop.f32.mrf.mxu0  ;;  %v1958_v21 = vpop.f32.mrf.mxu1  ;;  %v9700_v10 = vld [vmem:[%s15190_s0 + $0x128] sm:$0xff] }
 0x22f   : > { %8657 = vst [vmem:[%s10763_s27 + $0x1f00] sm:$0xff] %v7425_v14  ;;  %v6209_v22 = vmax.f32 %v1430_v16, 1.5  ;;  %v6211_v23 = vmax.f32 %v1957_v17, 1.5  ;;  %v1432_v24 = vadd.f32 %v1431_v20, %v10734_v62  ;;  %v1959_v25 = vadd.f32 %v1958_v21, %v10738_v63  ;;  %v552_v16 = vld [vmem:[%s10304_s6 + $0x58] sm:$0xff]  ;;  %v549_v21 = vld [vmem:[%s10304_s6 + $0x40] sm:$0xff] }
 0x230   : > { %8659 = vst [vmem:[%s10763_s27 + $0x1f10] sm:$0xff] %v7427_v15  ;;  %v7426_v26 = vmin.f32 %v6194_v18, 1.7  ;;  %v7428_v27 = vmin.f32 %v6196_v19, 1.7  ;;  %v1435_v28 = vpop.f32.mrf.mxu0  ;;  %v1962_v29 = vpop.f32.mrf.mxu1  ;;  %v550_v15 = vld [vmem:[%s10304_s6 + $0x48] sm:$0xff]  ;;  %3650 = vmatprep.subr.mxu1 %v552_v16 }
 0x231   : > { %9186 = vmatmul.mubr.msk.f32.gmra.mxu0 %vm753_vm0, %v9698_v30  ;;  %9263 = vmatmul.mubr.msk.f32.gmra.mxu1 %vm753_vm0, %v9698_v30  ;;  %v7441_v31 = vmin.f32 %v6209_v22, 1.7  ;;  %v7443_v32 = vmin.f32 %v6211_v23, 1.7  ;;  %v6210_v33 = vmax.f32 %v1432_v24, 1.5  ;;  %v6212_v34 = vmax.f32 %v1959_v25, 1.5 }
 0x232   : > { %2319 = vmatprep.mubr.f32.mxu0 %v9958_v0  ;;  %2846 = vmatprep.mubr.f32.mxu1 %v9958_v0  ;;  %8658 = vst [vmem:[%s10763_s27 + $0x1f08] sm:$0xff] %v7426_v26  ;;  %8660 = vst [vmem:[%s10763_s27 + $0x1f18] sm:$0xff] %v7428_v27  ;;  %v1436_v35 = vadd.f32 %v1435_v28, %v10723_v59  ;;  %v1963_v36 = vadd.f32 %v1962_v29, %v10730_v61  ;;  %v1437_v37 = vpop.f32.mrf.mxu0  ;;  %v1964_v38 = vpop.f32.mrf.mxu1  ;;  %v551_v22 = vld [vmem:[%s10304_s6 + $0x50] sm:$0xff] }
 0x233   : > { %8673 = vst [vmem:[%s10763_s27 + $0x1f80] sm:$0xff] %v7441_v31  ;;  %8675 = vst [vmem:[%s10763_s27 + $0x1f90] sm:$0xff] %v7443_v32  ;;  %v7442_v39 = vmin.f32 %v6210_v33, 1.7  ;;  %v7444_v40 = vmin.f32 %v6212_v34, 1.7  ;;  %v1438_v41 = vadd.f32 %v1437_v37, %v10734_v62  ;;  %v1965_v42 = vadd.f32 %v1964_v38, %v10738_v63  ;;  %3123 = vmatprep.subr.mxu0 %v550_v15 }
 0x234   : > { %v6225_v43 = vmax.f32 %v1436_v35, 1.5  ;;  %v6227_v44 = vmax.f32 %v1963_v36, 1.5  ;;  %v1441_v45 = vpop.f32.mrf.mxu0  ;;  %v1968_v46 = vpop.f32.mrf.mxu1  ;;  %3124 = vmatpush1.msra.mxu0 %v549_v21  ;;  %3651 = vmatpush1.msra.mxu1 %v551_v22  ;;  %v9701_v31 = vld [vmem:[%s15190_s0 + $0x130] sm:$0xff] }
 0x235   : > { %9187 = vmatmul.mubr.msk.f32.gmra.mxu0 %vm753_vm0, %v9699_v47  ;;  %9264 = vmatmul.mubr.msk.f32.gmra.mxu1 %vm753_vm0, %v9699_v47  ;;  %8674 = vst [vmem:[%s10763_s27 + $0x1f88] sm:$0xff] %v7442_v39  ;;  %8676 = vst [vmem:[%s10763_s27 + $0x1f98] sm:$0xff] %v7444_v40  ;;  %v6226_v48 = vmax.f32 %v1438_v41, 1.5  ;;  %v6228_v49 = vmax.f32 %v1965_v42, 1.5  ;;  %v1442_v51 = vadd.f32 %v1441_v45, %v10723_v59 }
 0x236   : > { %v1969_v54 = vadd.f32 %v1968_v46, %v10730_v61  ;;  %2325 = vmatprep.mubr.f32.mxu0 %v9958_v0  ;;  %2852 = vmatprep.mubr.f32.mxu1 %v9958_v0  ;;  %v7457_v57 = vmin.f32 %v6225_v43, 1.7  ;;  %v7459_v58 = vmin.f32 %v6227_v44, 1.7  ;;  %v1443_v60 = vpop.f32.mrf.mxu0  ;;  %v1970_v1 = vpop.f32.mrf.mxu1 }
 0x237   : > { %v7458_v2 = vmin.f32 %v6226_v48, 1.7  ;;  %v7460_v3 = vmin.f32 %v6228_v49, 1.7  ;;  %v6241_v4 = vmax.f32 %v1442_v51, 1.5  ;;  %v1444_v6 = vadd.f32 %v1443_v60, %v10734_v62  ;;  %v9702_v48 = vld [vmem:[%s15190_s0 + $0x138] sm:$0xff] }
 0x238   : > { %v6243_v5 = vmax.f32 %v1969_v54, 1.5  ;;  %8689 = vst [vmem:[%s10763_s27 + $0x2000] sm:$0xff] %v7457_v57  ;;  %8691 = vst [vmem:[%s10763_s27 + $0x2010] sm:$0xff] %v7459_v58  ;;  %v1971_v7 = vadd.f32 %v1970_v1, %v10738_v63  ;;  %v1447_v8 = vpop.f32.mrf.mxu0  ;;  %v1974_v9 = vpop.f32.mrf.mxu1 }
 0x239   : > { %9188 = vmatmul.mubr.msk.f32.gmra.mxu0 %vm753_vm0, %v9700_v10  ;;  %9265 = vmatmul.mubr.msk.f32.gmra.mxu1 %vm753_vm0, %v9700_v10  ;;  %8690 = vst [vmem:[%s10763_s27 + $0x2008] sm:$0xff] %v7458_v2  ;;  %8692 = vst [vmem:[%s10763_s27 + $0x2018] sm:$0xff] %v7460_v3  ;;  %v7473_v11 = vmin.f32 %v6241_v4, 1.7  ;;  %v1448_v13 = vadd.f32 %v1447_v8, %v10723_v59  ;;  %v1975_v14 = vadd.f32 %v1974_v9, %v10730_v61 }
 0x23a   : > { %v7475_v12 = vmin.f32 %v6243_v5, 1.7  ;;  %2331 = vmatprep.mubr.f32.mxu0 %v9958_v0  ;;  %2858 = vmatprep.mubr.f32.mxu1 %v9958_v0  ;;  %v6242_v17 = vmax.f32 %v1444_v6, 1.5  ;;  %v6244_v18 = vmax.f32 %v1971_v7, 1.5  ;;  %v1449_v19 = vpop.f32.mrf.mxu0  ;;  %v1976_v20 = vpop.f32.mrf.mxu1 }
 0x23b   : > { %8705 = vst [vmem:[%s10763_s27 + $0x2080] sm:$0xff] %v7473_v11  ;;  %v6257_v23 = vmax.f32 %v1448_v13, 1.5  ;;  %v6259_v24 = vmax.f32 %v1975_v14, 1.5  ;;  %v1450_v25 = vadd.f32 %v1449_v19, %v10734_v62  ;;  %v1977_v26 = vadd.f32 %v1976_v20, %v10738_v63  ;;  %v9703_v11 = vld [vmem:[%s15190_s0 + $0x140] sm:$0xff] }
 0x23c   : > { %8707 = vst [vmem:[%s10763_s27 + $0x2090] sm:$0xff] %v7475_v12  ;;  %v7474_v27 = vmin.f32 %v6242_v17, 1.7  ;;  %v7476_v28 = vmin.f32 %v6244_v18, 1.7  ;;  %v1453_v29 = vpop.f32.mrf.mxu0  ;;  %v1980_v30 = vpop.f32.mrf.mxu1 }
 0x23d   : > { %9189 = vmatmul.mubr.msk.f32.gmra.mxu0 %vm753_vm0, %v9701_v31  ;;  %9266 = vmatmul.mubr.msk.f32.gmra.mxu1 %vm753_vm0, %v9701_v31  ;;  %v7489_v32 = vmin.f32 %v6257_v23, 1.7  ;;  %v7491_v33 = vmin.f32 %v6259_v24, 1.7  ;;  %v6258_v34 = vmax.f32 %v1450_v25, 1.5  ;;  %v6260_v35 = vmax.f32 %v1977_v26, 1.5 }
 0x23e   : > { %2337 = vmatprep.mubr.f32.mxu0 %v9958_v0  ;;  %2864 = vmatprep.mubr.f32.mxu1 %v9958_v0  ;;  %8706 = vst [vmem:[%s10763_s27 + $0x2088] sm:$0xff] %v7474_v27  ;;  %8708 = vst [vmem:[%s10763_s27 + $0x2098] sm:$0xff] %v7476_v28  ;;  %v1454_v36 = vadd.f32 %v1453_v29, %v10723_v59  ;;  %v1981_v37 = vadd.f32 %v1980_v30, %v10730_v61  ;;  %v1455_v38 = vpop.f32.mrf.mxu0  ;;  %v1982_v39 = vpop.f32.mrf.mxu1  ;;  %v9704_v28 = vld [vmem:[%s15190_s0 + $0x148] sm:$0xff] }
 0x23f   : > { %8721 = vst [vmem:[%s10763_s27 + $0x2100] sm:$0xff] %v7489_v32  ;;  %8723 = vst [vmem:[%s10763_s27 + $0x2110] sm:$0xff] %v7491_v33  ;;  %v7490_v40 = vmin.f32 %v6258_v34, 1.7  ;;  %v7492_v41 = vmin.f32 %v6260_v35, 1.7  ;;  %v1456_v42 = vadd.f32 %v1455_v38, %v10734_v62  ;;  %v1983_v43 = vadd.f32 %v1982_v39, %v10738_v63 }
 0x240   : > { %v6273_v44 = vmax.f32 %v1454_v36, 1.5  ;;  %v6275_v45 = vmax.f32 %v1981_v37, 1.5  ;;  %v1459_v46 = vpop.f32.mrf.mxu0  ;;  %v1986_v47 = vpop.f32.mrf.mxu1 }
 0x241   : > { %9190 = vmatmul.mubr.msk.f32.gmra.mxu0 %vm753_vm0, %v9702_v48  ;;  %9267 = vmatmul.mubr.msk.f32.gmra.mxu1 %vm753_vm0, %v9702_v48  ;;  %8722 = vst [vmem:[%s10763_s27 + $0x2108] sm:$0xff] %v7490_v40  ;;  %8724 = vst [vmem:[%s10763_s27 + $0x2118] sm:$0xff] %v7492_v41  ;;  %v6274_v49 = vmax.f32 %v1456_v42, 1.5  ;;  %v6276_v51 = vmax.f32 %v1983_v43, 1.5  ;;  %v1460_v54 = vadd.f32 %v1459_v46, %v10723_v59 }
 0x242   : > { %v1987_v57 = vadd.f32 %v1986_v47, %v10730_v61  ;;  %2343 = vmatprep.mubr.f32.mxu0 %v9958_v0  ;;  %2870 = vmatprep.mubr.f32.mxu1 %v9958_v0  ;;  %v7505_v58 = vmin.f32 %v6273_v44, 1.7  ;;  %v7507_v60 = vmin.f32 %v6275_v45, 1.7  ;;  %v1461_v1 = vpop.f32.mrf.mxu0  ;;  %v1988_v2 = vpop.f32.mrf.mxu1  ;;  %v9705_v45 = vld [vmem:[%s15190_s0 + $0x150] sm:$0xff] }
 0x243   : > { %v7506_v3 = vmin.f32 %v6274_v49, 1.7  ;;  %v7508_v4 = vmin.f32 %v6276_v51, 1.7  ;;  %v6289_v5 = vmax.f32 %v1460_v54, 1.5  ;;  %v1462_v7 = vadd.f32 %v1461_v1, %v10734_v62 }
 0x244   : > { %v6291_v6 = vmax.f32 %v1987_v57, 1.5  ;;  %8737 = vst [vmem:[%s10763_s27 + $0x2180] sm:$0xff] %v7505_v58  ;;  %8739 = vst [vmem:[%s10763_s27 + $0x2190] sm:$0xff] %v7507_v60  ;;  %v1989_v8 = vadd.f32 %v1988_v2, %v10738_v63  ;;  %v1465_v9 = vpop.f32.mrf.mxu0  ;;  %v1992_v10 = vpop.f32.mrf.mxu1 }
 0x245   : > { %9191 = vmatmul.mubr.msk.f32.gmra.mxu0 %vm753_vm0, %v9703_v11  ;;  %9268 = vmatmul.mubr.msk.f32.gmra.mxu1 %vm753_vm0, %v9703_v11  ;;  %8738 = vst [vmem:[%s10763_s27 + $0x2188] sm:$0xff] %v7506_v3  ;;  %8740 = vst [vmem:[%s10763_s27 + $0x2198] sm:$0xff] %v7508_v4  ;;  %v7521_v12 = vmin.f32 %v6289_v5, 1.7  ;;  %v1466_v14 = vadd.f32 %v1465_v9, %v10723_v59  ;;  %v1993_v15 = vadd.f32 %v1992_v10, %v10730_v61 }
 0x246   : > { %v7523_v13 = vmin.f32 %v6291_v6, 1.7  ;;  %2349 = vmatprep.mubr.f32.mxu0 %v9958_v0  ;;  %2876 = vmatprep.mubr.f32.mxu1 %v9958_v0  ;;  %v6290_v16 = vmax.f32 %v1462_v7, 1.5  ;;  %v6292_v17 = vmax.f32 %v1989_v8, 1.5  ;;  %v1467_v18 = vpop.f32.mrf.mxu0  ;;  %v1994_v19 = vpop.f32.mrf.mxu1  ;;  %v9706_v8 = vld [vmem:[%s15190_s0 + $0x158] sm:$0xff] }
 0x247   : > { %8753 = vst [vmem:[%s10763_s27 + $0x2200] sm:$0xff] %v7521_v12  ;;  %v6305_v20 = vmax.f32 %v1466_v14, 1.5  ;;  %v6307_v21 = vmax.f32 %v1993_v15, 1.5  ;;  %v1468_v22 = vadd.f32 %v1467_v18, %v10734_v62  ;;  %v1995_v23 = vadd.f32 %v1994_v19, %v10738_v63 }
 0x248   : > { %8755 = vst [vmem:[%s10763_s27 + $0x2210] sm:$0xff] %v7523_v13  ;;  %v7522_v24 = vmin.f32 %v6290_v16, 1.7  ;;  %v7524_v25 = vmin.f32 %v6292_v17, 1.7  ;;  %v1471_v26 = vpop.f32.mrf.mxu0  ;;  %v1998_v27 = vpop.f32.mrf.mxu1 }
 0x249   : > { %9192 = vmatmul.mubr.msk.f32.gmra.mxu0 %vm753_vm0, %v9704_v28  ;;  %9269 = vmatmul.mubr.msk.f32.gmra.mxu1 %vm753_vm0, %v9704_v28  ;;  %v7537_v29 = vmin.f32 %v6305_v20, 1.7  ;;  %v7539_v30 = vmin.f32 %v6307_v21, 1.7  ;;  %v6306_v31 = vmax.f32 %v1468_v22, 1.5  ;;  %v6308_v32 = vmax.f32 %v1995_v23, 1.5 }
 0x24a   : > { %2355 = vmatprep.mubr.f32.mxu0 %v9958_v0  ;;  %2882 = vmatprep.mubr.f32.mxu1 %v9958_v0  ;;  %8754 = vst [vmem:[%s10763_s27 + $0x2208] sm:$0xff] %v7522_v24  ;;  %8756 = vst [vmem:[%s10763_s27 + $0x2218] sm:$0xff] %v7524_v25  ;;  %v1472_v33 = vadd.f32 %v1471_v26, %v10723_v59  ;;  %v1999_v34 = vadd.f32 %v1998_v27, %v10730_v61  ;;  %v1473_v35 = vpop.f32.mrf.mxu0  ;;  %v2000_v36 = vpop.f32.mrf.mxu1  ;;  %v9707_v25 = vld [vmem:[%s15190_s0 + $0x160] sm:$0xff] }
 0x24b   : > { %8769 = vst [vmem:[%s10763_s27 + $0x2280] sm:$0xff] %v7537_v29  ;;  %8771 = vst [vmem:[%s10763_s27 + $0x2290] sm:$0xff] %v7539_v30  ;;  %v7538_v37 = vmin.f32 %v6306_v31, 1.7  ;;  %v7540_v38 = vmin.f32 %v6308_v32, 1.7  ;;  %v1474_v39 = vadd.f32 %v1473_v35, %v10734_v62  ;;  %v2001_v40 = vadd.f32 %v2000_v36, %v10738_v63 }
 0x24c   : > { %v6321_v41 = vmax.f32 %v1472_v33, 1.5  ;;  %v6323_v42 = vmax.f32 %v1999_v34, 1.5  ;;  %v1477_v43 = vpop.f32.mrf.mxu0  ;;  %v2004_v44 = vpop.f32.mrf.mxu1 }
 0x24d   : > { %9193 = vmatmul.mubr.msk.f32.gmra.mxu0 %vm753_vm0, %v9705_v45  ;;  %9270 = vmatmul.mubr.msk.f32.gmra.mxu1 %vm753_vm0, %v9705_v45  ;;  %8770 = vst [vmem:[%s10763_s27 + $0x2288] sm:$0xff] %v7538_v37  ;;  %8772 = vst [vmem:[%s10763_s27 + $0x2298] sm:$0xff] %v7540_v38  ;;  %v6322_v46 = vmax.f32 %v1474_v39, 1.5  ;;  %v6324_v47 = vmax.f32 %v2001_v40, 1.5  ;;  %v1478_v48 = vadd.f32 %v1477_v43, %v10723_v59 }
 0x24e   : > { %v2005_v49 = vadd.f32 %v2004_v44, %v10730_v61  ;;  %2361 = vmatprep.mubr.f32.mxu0 %v9958_v0  ;;  %2888 = vmatprep.mubr.f32.mxu1 %v9958_v0  ;;  %v7553_v51 = vmin.f32 %v6321_v41, 1.7  ;;  %v7555_v54 = vmin.f32 %v6323_v42, 1.7  ;;  %v1479_v57 = vpop.f32.mrf.mxu0  ;;  %v2006_v58 = vpop.f32.mrf.mxu1  ;;  %v9708_v42 = vld [vmem:[%s15190_s0 + $0x168] sm:$0xff] }
 0x24f   : > { %v7554_v60 = vmin.f32 %v6322_v46, 1.7  ;;  %v7556_v1 = vmin.f32 %v6324_v47, 1.7  ;;  %v6337_v2 = vmax.f32 %v1478_v48, 1.5  ;;  %v1480_v4 = vadd.f32 %v1479_v57, %v10734_v62 }
 0x250   : > { %v6339_v3 = vmax.f32 %v2005_v49, 1.5  ;;  %8785 = vst [vmem:[%s10763_s27 + $0x2300] sm:$0xff] %v7553_v51  ;;  %8787 = vst [vmem:[%s10763_s27 + $0x2310] sm:$0xff] %v7555_v54  ;;  %v2007_v5 = vadd.f32 %v2006_v58, %v10738_v63  ;;  %v1483_v6 = vpop.f32.mrf.mxu0  ;;  %v2010_v7 = vpop.f32.mrf.mxu1 }
 0x251   : > { %9194 = vmatmul.mubr.msk.f32.gmra.mxu0 %vm753_vm0, %v9706_v8  ;;  %9271 = vmatmul.mubr.msk.f32.gmra.mxu1 %vm753_vm0, %v9706_v8  ;;  %8786 = vst [vmem:[%s10763_s27 + $0x2308] sm:$0xff] %v7554_v60  ;;  %8788 = vst [vmem:[%s10763_s27 + $0x2318] sm:$0xff] %v7556_v1  ;;  %v7569_v9 = vmin.f32 %v6337_v2, 1.7  ;;  %v1484_v11 = vadd.f32 %v1483_v6, %v10723_v59  ;;  %v2011_v12 = vadd.f32 %v2010_v7, %v10730_v61 }
 0x252   : > { %v7571_v10 = vmin.f32 %v6339_v3, 1.7  ;;  %2367 = vmatprep.mubr.f32.mxu0 %v9958_v0  ;;  %2894 = vmatprep.mubr.f32.mxu1 %v9958_v0  ;;  %v6338_v13 = vmax.f32 %v1480_v4, 1.5  ;;  %v6340_v14 = vmax.f32 %v2007_v5, 1.5  ;;  %v1485_v15 = vpop.f32.mrf.mxu0  ;;  %v2012_v16 = vpop.f32.mrf.mxu1  ;;  %v9709_v5 = vld [vmem:[%s15190_s0 + $0x170] sm:$0xff]  ;;  %v691_v6 = vsub.s32 4, %v10696_v50 }
 0x253   : > { %8801 = vst [vmem:[%s10763_s27 + $0x2380] sm:$0xff] %v7569_v9  ;;  %v6353_v17 = vmax.f32 %v1484_v11, 1.5  ;;  %v6355_v18 = vmax.f32 %v2011_v12, 1.5  ;;  %v1486_v19 = vadd.f32 %v1485_v15, %v10734_v62  ;;  %v2013_v20 = vadd.f32 %v2012_v16, %v10738_v63 }
 0x254   : > { %8803 = vst [vmem:[%s10763_s27 + $0x2390] sm:$0xff] %v7571_v10  ;;  %v7570_v21 = vmin.f32 %v6338_v13, 1.7  ;;  %v7572_v22 = vmin.f32 %v6340_v14, 1.7  ;;  %v1489_v23 = vpop.f32.mrf.mxu0  ;;  %v2016_v24 = vpop.f32.mrf.mxu1  ;;  %v699_v7 = vsub.s32 6, %v10696_v50 }
 0x255   : > { %9195 = vmatmul.mubr.msk.f32.gmra.mxu0 %vm753_vm0, %v9707_v25  ;;  %9272 = vmatmul.mubr.msk.f32.gmra.mxu1 %vm753_vm0, %v9707_v25  ;;  %v7585_v26 = vmin.f32 %v6353_v17, 1.7  ;;  %v7587_v27 = vmin.f32 %v6355_v18, 1.7  ;;  %v6354_v28 = vmax.f32 %v1486_v19, 1.5  ;;  %v6356_v29 = vmax.f32 %v2013_v20, 1.5 }
 0x256   : > { %2373 = vmatprep.mubr.f32.mxu0 %v9958_v0  ;;  %2900 = vmatprep.mubr.f32.mxu1 %v9958_v0  ;;  %8802 = vst [vmem:[%s10763_s27 + $0x2388] sm:$0xff] %v7570_v21  ;;  %8804 = vst [vmem:[%s10763_s27 + $0x2398] sm:$0xff] %v7572_v22  ;;  %v1490_v30 = vadd.f32 %v1489_v23, %v10723_v59  ;;  %v2017_v31 = vadd.f32 %v2016_v24, %v10730_v61  ;;  %v1491_v32 = vpop.f32.mrf.mxu0  ;;  %v2018_v33 = vpop.f32.mrf.mxu1  ;;  %v695_v16 = vsub.s32 5, %v10696_v50 }
 0x257   : > { %8817 = vst [vmem:[%s10763_s27 + $0x2400] sm:$0xff] %v7585_v26  ;;  %8819 = vst [vmem:[%s10763_s27 + $0x2410] sm:$0xff] %v7587_v27  ;;  %v7586_v34 = vmin.f32 %v6354_v28, 1.7  ;;  %v7588_v35 = vmin.f32 %v6356_v29, 1.7  ;;  %v1492_v36 = vadd.f32 %v1491_v32, %v10734_v62  ;;  %v2019_v37 = vadd.f32 %v2018_v33, %v10738_v63 }
 0x258   : > { %v6369_v38 = vmax.f32 %v1490_v30, 1.5  ;;  %v6371_v39 = vmax.f32 %v2017_v31, 1.5  ;;  %v1495_v40 = vpop.f32.mrf.mxu0  ;;  %v2022_v41 = vpop.f32.mrf.mxu1  ;;  %v703_v17 = vsub.s32 7, %v10696_v50  ;;  %v9710_v26 = vld [vmem:[%s15190_s0 + $0x178] sm:$0xff]  ;;  %v9711_v27 = vld [vmem:[%s10701_s8] sm:$0xff]  ;;  %v666_v30 = vld [vmem:[%s10304_s6 + $0x3e8] sm:$0xff] }
 0x259   : > { %9196 = vmatmul.mubr.msk.f32.gmra.mxu0 %vm753_vm0, %v9708_v42  ;;  %9273 = vmatmul.mubr.msk.f32.gmra.mxu1 %vm753_vm0, %v9708_v42  ;;  %8818 = vst [vmem:[%s10763_s27 + $0x2408] sm:$0xff] %v7586_v34  ;;  %8820 = vst [vmem:[%s10763_s27 + $0x2418] sm:$0xff] %v7588_v35  ;;  %v6370_v43 = vmax.f32 %v1492_v36, 1.5  ;;  %v6372_v44 = vmax.f32 %v2019_v37, 1.5  ;;  %v1496_v45 = vadd.f32 %v1495_v40, %v10723_v59  ;;  %v668_v31 = vld [vmem:[%s10304_s6 + $0x3f8] sm:$0xff] }
 0x25a   : > { %v2023_v46 = vadd.f32 %v2022_v41, %v10730_v61  ;;  %2379 = vmatprep.mubr.f32.mxu0 %v9958_v0  ;;  %2906 = vmatprep.mubr.f32.mxu1 %v9958_v0  ;;  %v7601_v47 = vmin.f32 %v6369_v38, 1.7  ;;  %v7603_v48 = vmin.f32 %v6371_v39, 1.7  ;;  %v1497_v49 = vpop.f32.mrf.mxu0  ;;  %v2024_v51 = vpop.f32.mrf.mxu1  ;;  %v11918_v28 = vrot.slane %v9711_v27, %v691_v6 }
 0x25b   : > { %v7602_v54 = vmin.f32 %v6370_v43, 1.7  ;;  %v7604_v57 = vmin.f32 %v6372_v44, 1.7  ;;  %v6385_v58 = vmax.f32 %v1496_v45, 1.5  ;;  %v1498_v1 = vadd.f32 %v1497_v49, %v10734_v62  ;;  %4163 = vmatprep.subr.mxu0 %v666_v30  ;;  %4690 = vmatprep.subr.mxu1 %v668_v31  ;;  %v9714_v31 = vld [vmem:[%s15190_s0 + $0x190] sm:$0xff] }
 0x25c   : > { %v6387_v60 = vmax.f32 %v2023_v46, 1.5  ;;  %8833 = vst [vmem:[%s10763_s27 + $0x2480] sm:$0xff] %v7601_v47  ;;  %8835 = vst [vmem:[%s10763_s27 + $0x2490] sm:$0xff] %v7603_v48  ;;  %v2025_v2 = vadd.f32 %v2024_v51, %v10738_v63  ;;  %v1501_v3 = vpop.f32.mrf.mxu0  ;;  %v2028_v4 = vpop.f32.mrf.mxu1  ;;  %v11922_v29 = vrot.slane %v9711_v27, %v699_v7  ;;  %v11943_v47 = vrot.slane %v9711_v27, %v695_v16 }
 0x25d   : > { %9197 = vmatmul.mubr.msk.f32.gmra.mxu0 %vm753_vm0, %v9709_v5  ;;  %9274 = vmatmul.mubr.msk.f32.gmra.mxu1 %vm753_vm0, %v9709_v5  ;;  %8834 = vst [vmem:[%s10763_s27 + $0x2488] sm:$0xff] %v7602_v54  ;;  %8836 = vst [vmem:[%s10763_s27 + $0x2498] sm:$0xff] %v7604_v57  ;;  %v7617_v8 = vmin.f32 %v6385_v58, 1.7  ;;  %v1502_v10 = vadd.f32 %v1501_v3, %v10723_v59  ;;  %v2029_v11 = vadd.f32 %v2028_v4, %v10730_v61 }
 0x25e   : > { %v7619_v9 = vmin.f32 %v6387_v60, 1.7  ;;  %2385 = vmatprep.mubr.f32.mxu0 %v9958_v0  ;;  %2912 = vmatprep.mubr.f32.mxu1 %v9958_v0  ;;  %v6386_v12 = vmax.f32 %v1498_v1, 1.5  ;;  %v6388_v13 = vmax.f32 %v2025_v2, 1.5  ;;  %v1503_v14 = vpop.f32.mrf.mxu0  ;;  %v2030_v15 = vpop.f32.mrf.mxu1 }
 0x25f   : > { %8849 = vst [vmem:[%s10763_s27 + $0x2500] sm:$0xff] %v7617_v8  ;;  %v6401_v18 = vmax.f32 %v1502_v10, 1.5  ;;  %v6403_v19 = vmax.f32 %v2029_v11, 1.5  ;;  %v1504_v20 = vadd.f32 %v1503_v14, %v10734_v62  ;;  %v2031_v21 = vadd.f32 %v2030_v15, %v10738_v63  ;;  %v9713_v10 = vld [vmem:[%s15190_s0 + $0x188] sm:$0xff] }
 0x260   : > { %8851 = vst [vmem:[%s10763_s27 + $0x2510] sm:$0xff] %v7619_v9  ;;  %v7618_v22 = vmin.f32 %v6386_v12, 1.7  ;;  %v7620_v23 = vmin.f32 %v6388_v13, 1.7  ;;  %v1507_v24 = vpop.f32.mrf.mxu0  ;;  %v2034_v25 = vpop.f32.mrf.mxu1 }
 0x261   : > { %9198 = vmatmul.mubr.msk.f32.gmra.mxu0 %vm753_vm0, %v9710_v26  ;;  %9275 = vmatmul.mubr.msk.f32.gmra.mxu1 %vm753_vm0, %v9710_v26  ;;  %v7633_v32 = vmin.f32 %v6401_v18, 1.7  ;;  %v7635_v33 = vmin.f32 %v6403_v19, 1.7  ;;  %v6402_v34 = vmax.f32 %v1504_v20, 1.5  ;;  %v6404_v35 = vmax.f32 %v2031_v21, 1.5 }
 0x262   : > { %2391 = vmatprep.mubr.f32.mxu0 %v9958_v0  ;;  %2918 = vmatprep.mubr.f32.mxu1 %v9958_v0  ;;  %8850 = vst [vmem:[%s10763_s27 + $0x2508] sm:$0xff] %v7618_v22  ;;  %8852 = vst [vmem:[%s10763_s27 + $0x2518] sm:$0xff] %v7620_v23  ;;  %v1508_v36 = vadd.f32 %v1507_v24, %v10723_v59  ;;  %v2035_v37 = vadd.f32 %v2034_v25, %v10730_v61  ;;  %v1509_v38 = vpop.f32.mrf.mxu0  ;;  %v2036_v39 = vpop.f32.mrf.mxu1  ;;  %v9712_v59 = vld [vmem:[%s15190_s0 + $0x180] sm:$0xff] }
 0x263   : > { %8865 = vst [vmem:[%s10763_s27 + $0x2580] sm:$0xff] %v7633_v32  ;;  %8867 = vst [vmem:[%s10763_s27 + $0x2590] sm:$0xff] %v7635_v33  ;;  %v7634_v40 = vmin.f32 %v6402_v34, 1.7  ;;  %v7636_v41 = vmin.f32 %v6404_v35, 1.7  ;;  %v1510_v42 = vadd.f32 %v1509_v38, %v10734_v62  ;;  %v2037_v43 = vadd.f32 %v2036_v39, %v10738_v63 }
 0x264   : > { %v6417_v44 = vmax.f32 %v1508_v36, 1.5  ;;  %v6419_v45 = vmax.f32 %v2035_v37, 1.5  ;;  %v2105_v46 = vpop.f32.mrf.mxu0  ;;  %v2632_v61 = vpop.f32.mrf.mxu1  ;;  %v11947_v62 = vrot.slane %v9711_v27, %v703_v17 }
 0x265   : > { %9199 = vmatmul.mubr.msk.f32.gmra.mxu0 %vm753_vm0, %v9712_v59  ;;  %9276 = vmatmul.mubr.msk.f32.gmra.mxu1 %vm753_vm0, %v9712_v59  ;;  %8866 = vst [vmem:[%s10763_s27 + $0x2588] sm:$0xff] %v7634_v40  ;;  %8868 = vst [vmem:[%s10763_s27 + $0x2598] sm:$0xff] %v7636_v41  ;;  %v6418_v63 = vmax.f32 %v1510_v42, 1.5  ;;  %v6420_v48 = vmax.f32 %v2037_v43, 1.5  ;;  %v2106_v49 = vadd.f32 %v2105_v46, %v11918_v28 }
 0x266   : > { %v2633_v51 = vadd.f32 %v2632_v61, %v11922_v29  ;;  %2397 = vmatprep.mubr.f32.mxu0 %v9958_v0  ;;  %2924 = vmatprep.mubr.f32.mxu1 %v9958_v0  ;;  %v7649_v54 = vmin.f32 %v6417_v44, 1.7  ;;  %v7651_v57 = vmin.f32 %v6419_v45, 1.7  ;;  %v2107_v58 = vpop.f32.mrf.mxu0  ;;  %v2634_v60 = vpop.f32.mrf.mxu1  ;;  %v9715_v61 = vld [vmem:[%s15190_s0 + $0x198] sm:$0xff] }
 0x267   : > { %v7650_v1 = vmin.f32 %v6418_v63, 1.7  ;;  %v7652_v2 = vmin.f32 %v6420_v48, 1.7  ;;  %v5205_v3 = vmax.f32 %v2106_v49, 1.5  ;;  %v2108_v5 = vadd.f32 %v2107_v58, %v11943_v47 }
 0x268   : > { %v5207_v4 = vmax.f32 %v2633_v51, 1.5  ;;  %8881 = vst [vmem:[%s10763_s27 + $0x2600] sm:$0x1] %v7649_v54  ;;  %8883 = vst [vmem:[%s10763_s27 + $0x2610] sm:$0x1] %v7651_v57  ;;  %v2635_v8 = vadd.f32 %v2634_v60, %v11947_v62  ;;  %v2111_v9 = vpop.f32.mrf.mxu0 }
 0x269   : > { %9200 = vmatmul.mubr.msk.f32.gmra.mxu0 %vm753_vm0, %v9713_v10  ;;  %v2638_v11 = vpop.f32.mrf.mxu1  ;;  %9277 = vmatmul.mubr.msk.f32.gmra.mxu1 %vm753_vm0, %v9713_v10  ;;  %8882 = vst [vmem:[%s10763_s27 + $0x2608] sm:$0x1] %v7650_v1  ;;  %8884 = vst [vmem:[%s10763_s27 + $0x2618] sm:$0x1] %v7652_v2  ;;  %v6437_v12 = vmin.f32 %v5205_v3, 1.7  ;;  %v2112_v14 = vadd.f32 %v2111_v9, %v11918_v28 }
 0x26a   : > { %v6439_v13 = vmin.f32 %v5207_v4, 1.7  ;;  %v2639_v15 = vadd.f32 %v2638_v11, %v11922_v29  ;;  %2403 = vmatprep.mubr.f32.mxu0 %v9958_v0  ;;  %2930 = vmatprep.mubr.f32.mxu1 %v9958_v0  ;;  %v5206_v18 = vmax.f32 %v2108_v5, 1.5  ;;  %v5208_v19 = vmax.f32 %v2635_v8, 1.5  ;;  %v2113_v20 = vpop.f32.mrf.mxu0  ;;  %v9716_v11 = vld [vmem:[%s15190_s0 + $0x1a0] sm:$0xff] }
 0x26b   : > { %v2640_v21 = vpop.f32.mrf.mxu1  ;;  %7669 = vst [vmem:[%s10763_s27 + $0x20] sm:$0xff] %v6437_v12  ;;  %v5221_v22 = vmax.f32 %v2112_v14, 1.5  ;;  %v2114_v24 = vadd.f32 %v2113_v20, %v11943_v47 }
 0x26c   : > { %7671 = vst [vmem:[%s10763_s27 + $0x30] sm:$0xff] %v6439_v13  ;;  %v5223_v23 = vmax.f32 %v2639_v15, 1.5  ;;  %v2641_v25 = vadd.f32 %v2640_v21, %v11947_v62  ;;  %v6438_v26 = vmin.f32 %v5206_v18, 1.7  ;;  %v6440_v27 = vmin.f32 %v5208_v19, 1.7 }
 0x26d   : > { %v2117_v30 = vpop.f32.mrf.mxu0  ;;  %9201 = vmatmul.mubr.msk.f32.gmra.mxu0 %vm753_vm0, %v9714_v31  ;;  %v2644_v32 = vpop.f32.mrf.mxu1  ;;  %9278 = vmatmul.mubr.msk.f32.gmra.mxu1 %vm753_vm0, %v9714_v31  ;;  %v6453_v33 = vmin.f32 %v5221_v22, 1.7  ;;  %v5222_v35 = vmax.f32 %v2114_v24, 1.5 }
 0x26e   : > { %v6455_v34 = vmin.f32 %v5223_v23, 1.7  ;;  %v5224_v36 = vmax.f32 %v2641_v25, 1.5  ;;  %2409 = vmatprep.mubr.f32.mxu0 %v9958_v0  ;;  %2936 = vmatprep.mubr.f32.mxu1 %v9958_v0  ;;  %7670 = vst [vmem:[%s10763_s27 + $0x28] sm:$0xff] %v6438_v26  ;;  %7672 = vst [vmem:[%s10763_s27 + $0x38] sm:$0xff] %v6440_v27  ;;  %v2118_v37 = vadd.f32 %v2117_v30, %v11918_v28 }
 0x26f   : > { %v2645_v38 = vadd.f32 %v2644_v32, %v11922_v29  ;;  %v2119_v39 = vpop.f32.mrf.mxu0  ;;  %v2646_v40 = vpop.f32.mrf.mxu1  ;;  %7685 = vst [vmem:[%s10763_s27 + $0xa0] sm:$0xff] %v6453_v33  ;;  %v6454_v41 = vmin.f32 %v5222_v35, 1.7  ;;  %v9717_v32 = vld [vmem:[%s15190_s0 + $0x1a8] sm:$0xff] }
 0x270   : > { %7687 = vst [vmem:[%s10763_s27 + $0xb0] sm:$0xff] %v6455_v34  ;;  %v6456_v42 = vmin.f32 %v5224_v36, 1.7  ;;  %v2120_v43 = vadd.f32 %v2119_v39, %v11943_v47  ;;  %v2647_v44 = vadd.f32 %v2646_v40, %v11947_v62  ;;  %v5237_v45 = vmax.f32 %v2118_v37, 1.5 }
 0x271   : > { %v5239_v46 = vmax.f32 %v2645_v38, 1.5  ;;  %v2123_v59 = vpop.f32.mrf.mxu0  ;;  %9202 = vmatmul.mubr.msk.f32.gmra.mxu0 %vm753_vm0, %v9715_v61  ;;  %v2650_v63 = vpop.f32.mrf.mxu1  ;;  %9279 = vmatmul.mubr.msk.f32.gmra.mxu1 %vm753_vm0, %v9715_v61  ;;  %7686 = vst [vmem:[%s10763_s27 + $0xa8] sm:$0xff] %v6454_v41 }
 0x272   : > { %7688 = vst [vmem:[%s10763_s27 + $0xb8] sm:$0xff] %v6456_v42  ;;  %v5238_v48 = vmax.f32 %v2120_v43, 1.5  ;;  %v5240_v49 = vmax.f32 %v2647_v44, 1.5  ;;  %v2124_v51 = vadd.f32 %v2123_v59, %v11918_v28  ;;  %v2651_v54 = vadd.f32 %v2650_v63, %v11922_v29  ;;  %2415 = vmatprep.mubr.f32.mxu0 %v9958_v0  ;;  %2942 = vmatprep.mubr.f32.mxu1 %v9958_v0  ;;  %v9718_v63 = vld [vmem:[%s15190_s0 + $0x1b0] sm:$0xff] }
 0x273   : > { %v6469_v57 = vmin.f32 %v5237_v45, 1.7  ;;  %v6471_v58 = vmin.f32 %v5239_v46, 1.7  ;;  %v2125_v60 = vpop.f32.mrf.mxu0  ;;  %v2652_v1 = vpop.f32.mrf.mxu1 }
 0x274   : > { %v6470_v2 = vmin.f32 %v5238_v48, 1.7  ;;  %v6472_v3 = vmin.f32 %v5240_v49, 1.7  ;;  %v5253_v4 = vmax.f32 %v2124_v51, 1.5  ;;  %v5255_v5 = vmax.f32 %v2651_v54, 1.5 }
 0x275   : > { %7701 = vst [vmem:[%s10763_s27 + $0x120] sm:$0xff] %v6469_v57  ;;  %7703 = vst [vmem:[%s10763_s27 + $0x130] sm:$0xff] %v6471_v58  ;;  %v2126_v8 = vadd.f32 %v2125_v60, %v11943_v47  ;;  %v2653_v9 = vadd.f32 %v2652_v1, %v11947_v62  ;;  %v2129_v10 = vpop.f32.mrf.mxu0  ;;  %9203 = vmatmul.mubr.msk.f32.gmra.mxu0 %vm753_vm0, %v9716_v11  ;;  %v2656_v12 = vpop.f32.mrf.mxu1  ;;  %9280 = vmatmul.mubr.msk.f32.gmra.mxu1 %vm753_vm0, %v9716_v11 }
 0x276   : > { %7702 = vst [vmem:[%s10763_s27 + $0x128] sm:$0xff] %v6470_v2  ;;  %7704 = vst [vmem:[%s10763_s27 + $0x138] sm:$0xff] %v6472_v3  ;;  %v6485_v13 = vmin.f32 %v5253_v4, 1.7  ;;  %v6487_v14 = vmin.f32 %v5255_v5, 1.7  ;;  %v2130_v15 = vadd.f32 %v2129_v10, %v11918_v28  ;;  %v2657_v18 = vadd.f32 %v2656_v12, %v11922_v29  ;;  %2421 = vmatprep.mubr.f32.mxu0 %v9958_v0 }
 0x277   : > { %2948 = vmatprep.mubr.f32.mxu1 %v9958_v0  ;;  %v5254_v19 = vmax.f32 %v2126_v8, 1.5  ;;  %v5256_v20 = vmax.f32 %v2653_v9, 1.5  ;;  %v2131_v21 = vpop.f32.mrf.mxu0  ;;  %v2658_v22 = vpop.f32.mrf.mxu1  ;;  %v9719_v12 = vld [vmem:[%s15190_s0 + $0x1b8] sm:$0xff] }
 0x278   : > { %7717 = vst [vmem:[%s10763_s27 + $0x1a0] sm:$0xff] %v6485_v13  ;;  %7719 = vst [vmem:[%s10763_s27 + $0x1b0] sm:$0xff] %v6487_v14  ;;  %v5269_v23 = vmax.f32 %v2130_v15, 1.5  ;;  %v5271_v24 = vmax.f32 %v2657_v18, 1.5  ;;  %v2132_v25 = vadd.f32 %v2131_v21, %v11943_v47  ;;  %v2659_v26 = vadd.f32 %v2658_v22, %v11947_v62 }
 0x279   : > { %v6486_v27 = vmin.f32 %v5254_v19, 1.7  ;;  %v6488_v30 = vmin.f32 %v5256_v20, 1.7  ;;  %v2135_v31 = vpop.f32.mrf.mxu0  ;;  %9204 = vmatmul.mubr.msk.f32.gmra.mxu0 %vm753_vm0, %v9717_v32  ;;  %v2662_v33 = vpop.f32.mrf.mxu1  ;;  %9281 = vmatmul.mubr.msk.f32.gmra.mxu1 %vm753_vm0, %v9717_v32 }
 0x27a   : > { %v6501_v34 = vmin.f32 %v5269_v23, 1.7  ;;  %v6503_v35 = vmin.f32 %v5271_v24, 1.7  ;;  %v5270_v36 = vmax.f32 %v2132_v25, 1.5  ;;  %v5272_v37 = vmax.f32 %v2659_v26, 1.5  ;;  %2427 = vmatprep.mubr.f32.mxu0 %v9958_v0  ;;  %2954 = vmatprep.mubr.f32.mxu1 %v9958_v0 }
 0x27b   : > { %7718 = vst [vmem:[%s10763_s27 + $0x1a8] sm:$0xff] %v6486_v27  ;;  %7720 = vst [vmem:[%s10763_s27 + $0x1b8] sm:$0xff] %v6488_v30  ;;  %v2136_v38 = vadd.f32 %v2135_v31, %v11918_v28  ;;  %v2663_v39 = vadd.f32 %v2662_v33, %v11922_v29  ;;  %v2137_v40 = vpop.f32.mrf.mxu0  ;;  %v2664_v41 = vpop.f32.mrf.mxu1  ;;  %v9720_v33 = vld [vmem:[%s15190_s0 + $0x1c0] sm:$0xff] }
 0x27c   : > { %7733 = vst [vmem:[%s10763_s27 + $0x220] sm:$0xff] %v6501_v34  ;;  %7735 = vst [vmem:[%s10763_s27 + $0x230] sm:$0xff] %v6503_v35  ;;  %v6502_v42 = vmin.f32 %v5270_v36, 1.7  ;;  %v6504_v43 = vmin.f32 %v5272_v37, 1.7  ;;  %v2138_v44 = vadd.f32 %v2137_v40, %v11943_v47  ;;  %v2665_v45 = vadd.f32 %v2664_v41, %v11947_v62 }
 0x27d   : > { %v5285_v46 = vmax.f32 %v2136_v38, 1.5  ;;  %v5287_v59 = vmax.f32 %v2663_v39, 1.5  ;;  %v2141_v61 = vpop.f32.mrf.mxu0  ;;  %9205 = vmatmul.mubr.msk.f32.gmra.mxu0 %vm753_vm0, %v9718_v63  ;;  %v2668_v48 = vpop.f32.mrf.mxu1  ;;  %9282 = vmatmul.mubr.msk.f32.gmra.mxu1 %vm753_vm0, %v9718_v63 }
 0x27e   : > { %7734 = vst [vmem:[%s10763_s27 + $0x228] sm:$0xff] %v6502_v42  ;;  %7736 = vst [vmem:[%s10763_s27 + $0x238] sm:$0xff] %v6504_v43  ;;  %v5286_v49 = vmax.f32 %v2138_v44, 1.5  ;;  %v5288_v51 = vmax.f32 %v2665_v45, 1.5  ;;  %v2142_v54 = vadd.f32 %v2141_v61, %v11918_v28  ;;  %v2669_v57 = vadd.f32 %v2668_v48, %v11922_v29  ;;  %2433 = vmatprep.mubr.f32.mxu0 %v9958_v0  ;;  %v9721_v48 = vld [vmem:[%s15190_s0 + $0x1c8] sm:$0xff] }
 0x27f   : > { %2960 = vmatprep.mubr.f32.mxu1 %v9958_v0  ;;  %v6517_v58 = vmin.f32 %v5285_v46, 1.7  ;;  %v6519_v60 = vmin.f32 %v5287_v59, 1.7  ;;  %v2143_v1 = vpop.f32.mrf.mxu0  ;;  %v2670_v2 = vpop.f32.mrf.mxu1 }
 0x280   : > { %v6518_v3 = vmin.f32 %v5286_v49, 1.7  ;;  %v6520_v4 = vmin.f32 %v5288_v51, 1.7  ;;  %v5301_v5 = vmax.f32 %v2142_v54, 1.5  ;;  %v5303_v8 = vmax.f32 %v2669_v57, 1.5 }
 0x281   : > { %7749 = vst [vmem:[%s10763_s27 + $0x2a0] sm:$0xff] %v6517_v58  ;;  %7751 = vst [vmem:[%s10763_s27 + $0x2b0] sm:$0xff] %v6519_v60  ;;  %v2144_v9 = vadd.f32 %v2143_v1, %v11943_v47  ;;  %v2671_v10 = vadd.f32 %v2670_v2, %v11947_v62  ;;  %v2147_v11 = vpop.f32.mrf.mxu0  ;;  %9206 = vmatmul.mubr.msk.f32.gmra.mxu0 %vm753_vm0, %v9719_v12  ;;  %v2674_v13 = vpop.f32.mrf.mxu1  ;;  %9283 = vmatmul.mubr.msk.f32.gmra.mxu1 %vm753_vm0, %v9719_v12 }
 0x282   : > { %7750 = vst [vmem:[%s10763_s27 + $0x2a8] sm:$0xff] %v6518_v3  ;;  %7752 = vst [vmem:[%s10763_s27 + $0x2b8] sm:$0xff] %v6520_v4  ;;  %v6533_v14 = vmin.f32 %v5301_v5, 1.7  ;;  %v6535_v15 = vmin.f32 %v5303_v8, 1.7  ;;  %v2148_v18 = vadd.f32 %v2147_v11, %v11918_v28  ;;  %v2675_v19 = vadd.f32 %v2674_v13, %v11922_v29  ;;  %2439 = vmatprep.mubr.f32.mxu0 %v9958_v0 }
 0x283   : > { %2966 = vmatprep.mubr.f32.mxu1 %v9958_v0  ;;  %v5302_v20 = vmax.f32 %v2144_v9, 1.5  ;;  %v5304_v21 = vmax.f32 %v2671_v10, 1.5  ;;  %v2149_v22 = vpop.f32.mrf.mxu0  ;;  %v2676_v23 = vpop.f32.mrf.mxu1  ;;  %v9722_v13 = vld [vmem:[%s15190_s0 + $0x1d0] sm:$0xff] }
 0x284   : > { %7765 = vst [vmem:[%s10763_s27 + $0x320] sm:$0xff] %v6533_v14  ;;  %7767 = vst [vmem:[%s10763_s27 + $0x330] sm:$0xff] %v6535_v15  ;;  %v5317_v24 = vmax.f32 %v2148_v18, 1.5  ;;  %v5319_v25 = vmax.f32 %v2675_v19, 1.5  ;;  %v2150_v26 = vadd.f32 %v2149_v22, %v11943_v47  ;;  %v2677_v27 = vadd.f32 %v2676_v23, %v11947_v62 }
 0x285   : > { %v6534_v30 = vmin.f32 %v5302_v20, 1.7  ;;  %v6536_v31 = vmin.f32 %v5304_v21, 1.7  ;;  %v2153_v32 = vpop.f32.mrf.mxu0  ;;  %9207 = vmatmul.mubr.msk.f32.gmra.mxu0 %vm753_vm0, %v9720_v33  ;;  %v2680_v34 = vpop.f32.mrf.mxu1  ;;  %9284 = vmatmul.mubr.msk.f32.gmra.mxu1 %vm753_vm0, %v9720_v33 }
 0x286   : > { %v6549_v35 = vmin.f32 %v5317_v24, 1.7  ;;  %v6551_v36 = vmin.f32 %v5319_v25, 1.7  ;;  %v5318_v37 = vmax.f32 %v2150_v26, 1.5  ;;  %v5320_v38 = vmax.f32 %v2677_v27, 1.5  ;;  %2445 = vmatprep.mubr.f32.mxu0 %v9958_v0  ;;  %2972 = vmatprep.mubr.f32.mxu1 %v9958_v0 }
 0x287   : > { %7766 = vst [vmem:[%s10763_s27 + $0x328] sm:$0xff] %v6534_v30  ;;  %7768 = vst [vmem:[%s10763_s27 + $0x338] sm:$0xff] %v6536_v31  ;;  %v2154_v39 = vadd.f32 %v2153_v32, %v11918_v28  ;;  %v2681_v40 = vadd.f32 %v2680_v34, %v11922_v29  ;;  %v2155_v41 = vpop.f32.mrf.mxu0  ;;  %v2682_v42 = vpop.f32.mrf.mxu1  ;;  %v9723_v34 = vld [vmem:[%s15190_s0 + $0x1d8] sm:$0xff] }
 0x288   : > { %7781 = vst [vmem:[%s10763_s27 + $0x3a0] sm:$0xff] %v6549_v35  ;;  %7783 = vst [vmem:[%s10763_s27 + $0x3b0] sm:$0xff] %v6551_v36  ;;  %v6550_v43 = vmin.f32 %v5318_v37, 1.7  ;;  %v6552_v44 = vmin.f32 %v5320_v38, 1.7  ;;  %v2156_v45 = vadd.f32 %v2155_v41, %v11943_v47  ;;  %v2683_v46 = vadd.f32 %v2682_v42, %v11947_v62 }
 0x289   : > { %v5333_v59 = vmax.f32 %v2154_v39, 1.5  ;;  %v5335_v61 = vmax.f32 %v2681_v40, 1.5  ;;  %v2159_v63 = vpop.f32.mrf.mxu0  ;;  %9208 = vmatmul.mubr.msk.f32.gmra.mxu0 %vm753_vm0, %v9721_v48  ;;  %v2686_v49 = vpop.f32.mrf.mxu1  ;;  %9285 = vmatmul.mubr.msk.f32.gmra.mxu1 %vm753_vm0, %v9721_v48 }
 0x28a   : > { %7782 = vst [vmem:[%s10763_s27 + $0x3a8] sm:$0xff] %v6550_v43  ;;  %7784 = vst [vmem:[%s10763_s27 + $0x3b8] sm:$0xff] %v6552_v44  ;;  %v5334_v51 = vmax.f32 %v2156_v45, 1.5  ;;  %v5336_v54 = vmax.f32 %v2683_v46, 1.5  ;;  %v2160_v57 = vadd.f32 %v2159_v63, %v11918_v28  ;;  %v2687_v58 = vadd.f32 %v2686_v49, %v11922_v29  ;;  %2451 = vmatprep.mubr.f32.mxu0 %v9958_v0  ;;  %v9724_v49 = vld [vmem:[%s15190_s0 + $0x1e0] sm:$0xff] }
 0x28b   : > { %2978 = vmatprep.mubr.f32.mxu1 %v9958_v0  ;;  %v6565_v60 = vmin.f32 %v5333_v59, 1.7  ;;  %v6567_v1 = vmin.f32 %v5335_v61, 1.7  ;;  %v2161_v2 = vpop.f32.mrf.mxu0  ;;  %v2688_v3 = vpop.f32.mrf.mxu1 }
 0x28c   : > { %v6566_v4 = vmin.f32 %v5334_v51, 1.7  ;;  %v6568_v5 = vmin.f32 %v5336_v54, 1.7  ;;  %v5349_v8 = vmax.f32 %v2160_v57, 1.5  ;;  %v5351_v9 = vmax.f32 %v2687_v58, 1.5 }
 0x28d   : > { %7797 = vst [vmem:[%s10763_s27 + $0x420] sm:$0xff] %v6565_v60  ;;  %7799 = vst [vmem:[%s10763_s27 + $0x430] sm:$0xff] %v6567_v1  ;;  %v2162_v10 = vadd.f32 %v2161_v2, %v11943_v47  ;;  %v2689_v11 = vadd.f32 %v2688_v3, %v11947_v62  ;;  %v2165_v12 = vpop.f32.mrf.mxu0  ;;  %9209 = vmatmul.mubr.msk.f32.gmra.mxu0 %vm753_vm0, %v9722_v13  ;;  %v2692_v14 = vpop.f32.mrf.mxu1  ;;  %9286 = vmatmul.mubr.msk.f32.gmra.mxu1 %vm753_vm0, %v9722_v13 }
 0x28e   : > { %7798 = vst [vmem:[%s10763_s27 + $0x428] sm:$0xff] %v6566_v4  ;;  %7800 = vst [vmem:[%s10763_s27 + $0x438] sm:$0xff] %v6568_v5  ;;  %v6581_v15 = vmin.f32 %v5349_v8, 1.7  ;;  %v6583_v18 = vmin.f32 %v5351_v9, 1.7  ;;  %v2166_v19 = vadd.f32 %v2165_v12, %v11918_v28  ;;  %v2693_v20 = vadd.f32 %v2692_v14, %v11922_v29  ;;  %2457 = vmatprep.mubr.f32.mxu0 %v9958_v0 }
 0x28f   : > { %2984 = vmatprep.mubr.f32.mxu1 %v9958_v0  ;;  %v5350_v21 = vmax.f32 %v2162_v10, 1.5  ;;  %v5352_v22 = vmax.f32 %v2689_v11, 1.5  ;;  %v2167_v23 = vpop.f32.mrf.mxu0  ;;  %v2694_v24 = vpop.f32.mrf.mxu1  ;;  %v9725_v14 = vld [vmem:[%s15190_s0 + $0x1e8] sm:$0xff] }
 0x290   : > { %7813 = vst [vmem:[%s10763_s27 + $0x4a0] sm:$0xff] %v6581_v15  ;;  %7815 = vst [vmem:[%s10763_s27 + $0x4b0] sm:$0xff] %v6583_v18  ;;  %v5365_v25 = vmax.f32 %v2166_v19, 1.5  ;;  %v5367_v26 = vmax.f32 %v2693_v20, 1.5  ;;  %v2168_v27 = vadd.f32 %v2167_v23, %v11943_v47  ;;  %v2695_v30 = vadd.f32 %v2694_v24, %v11947_v62 }
 0x291   : > { %v6582_v31 = vmin.f32 %v5350_v21, 1.7  ;;  %v6584_v32 = vmin.f32 %v5352_v22, 1.7  ;;  %v2171_v33 = vpop.f32.mrf.mxu0  ;;  %9210 = vmatmul.mubr.msk.f32.gmra.mxu0 %vm753_vm0, %v9723_v34  ;;  %v2698_v35 = vpop.f32.mrf.mxu1  ;;  %9287 = vmatmul.mubr.msk.f32.gmra.mxu1 %vm753_vm0, %v9723_v34 }
 0x292   : > { %v6597_v36 = vmin.f32 %v5365_v25, 1.7  ;;  %v6599_v37 = vmin.f32 %v5367_v26, 1.7  ;;  %v5366_v38 = vmax.f32 %v2168_v27, 1.5  ;;  %v5368_v39 = vmax.f32 %v2695_v30, 1.5  ;;  %2463 = vmatprep.mubr.f32.mxu0 %v9958_v0  ;;  %2990 = vmatprep.mubr.f32.mxu1 %v9958_v0 }
 0x293   : > { %7814 = vst [vmem:[%s10763_s27 + $0x4a8] sm:$0xff] %v6582_v31  ;;  %7816 = vst [vmem:[%s10763_s27 + $0x4b8] sm:$0xff] %v6584_v32  ;;  %v2172_v40 = vadd.f32 %v2171_v33, %v11918_v28  ;;  %v2699_v41 = vadd.f32 %v2698_v35, %v11922_v29  ;;  %v2173_v42 = vpop.f32.mrf.mxu0  ;;  %v2700_v43 = vpop.f32.mrf.mxu1  ;;  %v9726_v35 = vld [vmem:[%s15190_s0 + $0x1f0] sm:$0xff] }
 0x294   : > { %7829 = vst [vmem:[%s10763_s27 + $0x520] sm:$0xff] %v6597_v36  ;;  %7831 = vst [vmem:[%s10763_s27 + $0x530] sm:$0xff] %v6599_v37  ;;  %v6598_v44 = vmin.f32 %v5366_v38, 1.7  ;;  %v6600_v45 = vmin.f32 %v5368_v39, 1.7  ;;  %v2174_v46 = vadd.f32 %v2173_v42, %v11943_v47  ;;  %v2701_v59 = vadd.f32 %v2700_v43, %v11947_v62 }
 0x295   : > { %v5381_v61 = vmax.f32 %v2172_v40, 1.5  ;;  %v5383_v63 = vmax.f32 %v2699_v41, 1.5  ;;  %v2177_v48 = vpop.f32.mrf.mxu0  ;;  %9211 = vmatmul.mubr.msk.f32.gmra.mxu0 %vm753_vm0, %v9724_v49  ;;  %v2704_v51 = vpop.f32.mrf.mxu1  ;;  %9288 = vmatmul.mubr.msk.f32.gmra.mxu1 %vm753_vm0, %v9724_v49 }
 0x296   : > { %7830 = vst [vmem:[%s10763_s27 + $0x528] sm:$0xff] %v6598_v44  ;;  %7832 = vst [vmem:[%s10763_s27 + $0x538] sm:$0xff] %v6600_v45  ;;  %v5382_v54 = vmax.f32 %v2174_v46, 1.5  ;;  %v5384_v57 = vmax.f32 %v2701_v59, 1.5  ;;  %v2178_v58 = vadd.f32 %v2177_v48, %v11918_v28  ;;  %v2705_v60 = vadd.f32 %v2704_v51, %v11922_v29  ;;  %2469 = vmatprep.mubr.f32.mxu0 %v9958_v0  ;;  %v9727_v51 = vld [vmem:[%s15190_s0 + $0x1f8] sm:$0xff] }
 0x297   : > { %2996 = vmatprep.mubr.f32.mxu1 %v9958_v0  ;;  %v6613_v1 = vmin.f32 %v5381_v61, 1.7  ;;  %v6615_v2 = vmin.f32 %v5383_v63, 1.7  ;;  %v2179_v3 = vpop.f32.mrf.mxu0  ;;  %v2706_v4 = vpop.f32.mrf.mxu1 }
 0x298   : > { %v6614_v5 = vmin.f32 %v5382_v54, 1.7  ;;  %v6616_v8 = vmin.f32 %v5384_v57, 1.7  ;;  %v5397_v9 = vmax.f32 %v2178_v58, 1.5  ;;  %v5399_v10 = vmax.f32 %v2705_v60, 1.5 }
 0x299   : > { %7845 = vst [vmem:[%s10763_s27 + $0x5a0] sm:$0xff] %v6613_v1  ;;  %7847 = vst [vmem:[%s10763_s27 + $0x5b0] sm:$0xff] %v6615_v2  ;;  %v2180_v11 = vadd.f32 %v2179_v3, %v11943_v47  ;;  %v2707_v12 = vadd.f32 %v2706_v4, %v11947_v62  ;;  %v2183_v13 = vpop.f32.mrf.mxu0  ;;  %9212 = vmatmul.mubr.msk.f32.gmra.mxu0 %vm753_vm0, %v9725_v14  ;;  %v2710_v15 = vpop.f32.mrf.mxu1  ;;  %9289 = vmatmul.mubr.msk.f32.gmra.mxu1 %vm753_vm0, %v9725_v14 }
 0x29a   : > { %7846 = vst [vmem:[%s10763_s27 + $0x5a8] sm:$0xff] %v6614_v5  ;;  %7848 = vst [vmem:[%s10763_s27 + $0x5b8] sm:$0xff] %v6616_v8  ;;  %v6629_v18 = vmin.f32 %v5397_v9, 1.7  ;;  %v6631_v19 = vmin.f32 %v5399_v10, 1.7  ;;  %v2184_v20 = vadd.f32 %v2183_v13, %v11918_v28  ;;  %v2711_v21 = vadd.f32 %v2710_v15, %v11922_v29  ;;  %2475 = vmatprep.mubr.f32.mxu0 %v9958_v0 }
 0x29b   : > { %3002 = vmatprep.mubr.f32.mxu1 %v9958_v0  ;;  %v5398_v22 = vmax.f32 %v2180_v11, 1.5  ;;  %v5400_v23 = vmax.f32 %v2707_v12, 1.5  ;;  %v2185_v24 = vpop.f32.mrf.mxu0  ;;  %v2712_v25 = vpop.f32.mrf.mxu1  ;;  %v9728_v15 = vld [vmem:[%s15190_s0 + $0x200] sm:$0xff] }
 0x29c   : > { %7861 = vst [vmem:[%s10763_s27 + $0x620] sm:$0xff] %v6629_v18  ;;  %7863 = vst [vmem:[%s10763_s27 + $0x630] sm:$0xff] %v6631_v19  ;;  %v5413_v26 = vmax.f32 %v2184_v20, 1.5  ;;  %v5415_v27 = vmax.f32 %v2711_v21, 1.5  ;;  %v2186_v30 = vadd.f32 %v2185_v24, %v11943_v47  ;;  %v2713_v31 = vadd.f32 %v2712_v25, %v11947_v62 }
 0x29d   : > { %v6630_v32 = vmin.f32 %v5398_v22, 1.7  ;;  %v6632_v33 = vmin.f32 %v5400_v23, 1.7  ;;  %v2189_v34 = vpop.f32.mrf.mxu0  ;;  %9213 = vmatmul.mubr.msk.f32.gmra.mxu0 %vm753_vm0, %v9726_v35  ;;  %v2716_v36 = vpop.f32.mrf.mxu1  ;;  %9290 = vmatmul.mubr.msk.f32.gmra.mxu1 %vm753_vm0, %v9726_v35 }
 0x29e   : > { %v6645_v37 = vmin.f32 %v5413_v26, 1.7  ;;  %v6647_v38 = vmin.f32 %v5415_v27, 1.7  ;;  %v5414_v39 = vmax.f32 %v2186_v30, 1.5  ;;  %v5416_v40 = vmax.f32 %v2713_v31, 1.5  ;;  %2481 = vmatprep.mubr.f32.mxu0 %v9958_v0  ;;  %3008 = vmatprep.mubr.f32.mxu1 %v9958_v0 }
 0x29f   : > { %7862 = vst [vmem:[%s10763_s27 + $0x628] sm:$0xff] %v6630_v32  ;;  %7864 = vst [vmem:[%s10763_s27 + $0x638] sm:$0xff] %v6632_v33  ;;  %v2190_v41 = vadd.f32 %v2189_v34, %v11918_v28  ;;  %v2717_v42 = vadd.f32 %v2716_v36, %v11922_v29  ;;  %v2191_v43 = vpop.f32.mrf.mxu0  ;;  %v2718_v44 = vpop.f32.mrf.mxu1  ;;  %v9729_v36 = vld [vmem:[%s15190_s0 + $0x208] sm:$0xff] }
 0x2a0   : > { %7877 = vst [vmem:[%s10763_s27 + $0x6a0] sm:$0xff] %v6645_v37  ;;  %7879 = vst [vmem:[%s10763_s27 + $0x6b0] sm:$0xff] %v6647_v38  ;;  %v6646_v45 = vmin.f32 %v5414_v39, 1.7  ;;  %v6648_v46 = vmin.f32 %v5416_v40, 1.7  ;;  %v2192_v59 = vadd.f32 %v2191_v43, %v11943_v47  ;;  %v2719_v61 = vadd.f32 %v2718_v44, %v11947_v62 }
 0x2a1   : > { %v5429_v63 = vmax.f32 %v2190_v41, 1.5  ;;  %v5431_v48 = vmax.f32 %v2717_v42, 1.5  ;;  %v2195_v49 = vpop.f32.mrf.mxu0  ;;  %9214 = vmatmul.mubr.msk.f32.gmra.mxu0 %vm753_vm0, %v9727_v51  ;;  %v2722_v54 = vpop.f32.mrf.mxu1  ;;  %9291 = vmatmul.mubr.msk.f32.gmra.mxu1 %vm753_vm0, %v9727_v51 }
 0x2a2   : > { %7878 = vst [vmem:[%s10763_s27 + $0x6a8] sm:$0xff] %v6646_v45  ;;  %7880 = vst [vmem:[%s10763_s27 + $0x6b8] sm:$0xff] %v6648_v46  ;;  %v5430_v57 = vmax.f32 %v2192_v59, 1.5  ;;  %v5432_v58 = vmax.f32 %v2719_v61, 1.5  ;;  %v2196_v60 = vadd.f32 %v2195_v49, %v11918_v28  ;;  %v2723_v1 = vadd.f32 %v2722_v54, %v11922_v29  ;;  %2487 = vmatprep.mubr.f32.mxu0 %v9958_v0  ;;  %v9730_v54 = vld [vmem:[%s15190_s0 + $0x210] sm:$0xff] }
 0x2a3   : > { %3014 = vmatprep.mubr.f32.mxu1 %v9958_v0  ;;  %v6661_v2 = vmin.f32 %v5429_v63, 1.7  ;;  %v6663_v3 = vmin.f32 %v5431_v48, 1.7  ;;  %v2197_v4 = vpop.f32.mrf.mxu0  ;;  %v2724_v5 = vpop.f32.mrf.mxu1 }
 0x2a4   : > { %v6662_v8 = vmin.f32 %v5430_v57, 1.7  ;;  %v6664_v9 = vmin.f32 %v5432_v58, 1.7  ;;  %v5445_v10 = vmax.f32 %v2196_v60, 1.5  ;;  %v5447_v11 = vmax.f32 %v2723_v1, 1.5 }
 0x2a5   : > { %7893 = vst [vmem:[%s10763_s27 + $0x720] sm:$0xff] %v6661_v2  ;;  %7895 = vst [vmem:[%s10763_s27 + $0x730] sm:$0xff] %v6663_v3  ;;  %v2198_v12 = vadd.f32 %v2197_v4, %v11943_v47  ;;  %v2725_v13 = vadd.f32 %v2724_v5, %v11947_v62  ;;  %v2201_v14 = vpop.f32.mrf.mxu0  ;;  %9215 = vmatmul.mubr.msk.f32.gmra.mxu0 %vm753_vm0, %v9728_v15  ;;  %v2728_v18 = vpop.f32.mrf.mxu1  ;;  %9292 = vmatmul.mubr.msk.f32.gmra.mxu1 %vm753_vm0, %v9728_v15 }
 0x2a6   : > { %7894 = vst [vmem:[%s10763_s27 + $0x728] sm:$0xff] %v6662_v8  ;;  %7896 = vst [vmem:[%s10763_s27 + $0x738] sm:$0xff] %v6664_v9  ;;  %v6677_v19 = vmin.f32 %v5445_v10, 1.7  ;;  %v6679_v20 = vmin.f32 %v5447_v11, 1.7  ;;  %v2202_v21 = vadd.f32 %v2201_v14, %v11918_v28  ;;  %v2729_v22 = vadd.f32 %v2728_v18, %v11922_v29  ;;  %2493 = vmatprep.mubr.f32.mxu0 %v9958_v0 }
 0x2a7   : > { %3020 = vmatprep.mubr.f32.mxu1 %v9958_v0  ;;  %v5446_v23 = vmax.f32 %v2198_v12, 1.5  ;;  %v5448_v24 = vmax.f32 %v2725_v13, 1.5  ;;  %v2203_v25 = vpop.f32.mrf.mxu0  ;;  %v2730_v26 = vpop.f32.mrf.mxu1  ;;  %v9731_v18 = vld [vmem:[%s15190_s0 + $0x218] sm:$0xff] }
 0x2a8   : > { %7909 = vst [vmem:[%s10763_s27 + $0x7a0] sm:$0xff] %v6677_v19  ;;  %7911 = vst [vmem:[%s10763_s27 + $0x7b0] sm:$0xff] %v6679_v20  ;;  %v5461_v27 = vmax.f32 %v2202_v21, 1.5  ;;  %v5463_v30 = vmax.f32 %v2729_v22, 1.5  ;;  %v2204_v31 = vadd.f32 %v2203_v25, %v11943_v47  ;;  %v2731_v32 = vadd.f32 %v2730_v26, %v11947_v62 }
 0x2a9   : > { %v6678_v33 = vmin.f32 %v5446_v23, 1.7  ;;  %v6680_v34 = vmin.f32 %v5448_v24, 1.7  ;;  %v2207_v35 = vpop.f32.mrf.mxu0  ;;  %9216 = vmatmul.mubr.msk.f32.gmra.mxu0 %vm753_vm0, %v9729_v36  ;;  %v2734_v37 = vpop.f32.mrf.mxu1  ;;  %9293 = vmatmul.mubr.msk.f32.gmra.mxu1 %vm753_vm0, %v9729_v36 }
 0x2aa   : > { %v6693_v38 = vmin.f32 %v5461_v27, 1.7  ;;  %v6695_v39 = vmin.f32 %v5463_v30, 1.7  ;;  %v5462_v40 = vmax.f32 %v2204_v31, 1.5  ;;  %v5464_v41 = vmax.f32 %v2731_v32, 1.5  ;;  %2499 = vmatprep.mubr.f32.mxu0 %v9958_v0  ;;  %3026 = vmatprep.mubr.f32.mxu1 %v9958_v0 }
 0x2ab   : > { %7910 = vst [vmem:[%s10763_s27 + $0x7a8] sm:$0xff] %v6678_v33  ;;  %7912 = vst [vmem:[%s10763_s27 + $0x7b8] sm:$0xff] %v6680_v34  ;;  %v2208_v42 = vadd.f32 %v2207_v35, %v11918_v28  ;;  %v2735_v43 = vadd.f32 %v2734_v37, %v11922_v29  ;;  %v2209_v44 = vpop.f32.mrf.mxu0  ;;  %v2736_v45 = vpop.f32.mrf.mxu1  ;;  %v9732_v37 = vld [vmem:[%s15190_s0 + $0x220] sm:$0xff] }
 0x2ac   : > { %7925 = vst [vmem:[%s10763_s27 + $0x820] sm:$0xff] %v6693_v38  ;;  %7927 = vst [vmem:[%s10763_s27 + $0x830] sm:$0xff] %v6695_v39  ;;  %v6694_v46 = vmin.f32 %v5462_v40, 1.7  ;;  %v6696_v59 = vmin.f32 %v5464_v41, 1.7  ;;  %v2210_v61 = vadd.f32 %v2209_v44, %v11943_v47  ;;  %v2737_v63 = vadd.f32 %v2736_v45, %v11947_v62 }
 0x2ad   : > { %v5477_v48 = vmax.f32 %v2208_v42, 1.5  ;;  %v5479_v49 = vmax.f32 %v2735_v43, 1.5  ;;  %v2213_v51 = vpop.f32.mrf.mxu0  ;;  %9217 = vmatmul.mubr.msk.f32.gmra.mxu0 %vm753_vm0, %v9730_v54  ;;  %v2740_v57 = vpop.f32.mrf.mxu1  ;;  %9294 = vmatmul.mubr.msk.f32.gmra.mxu1 %vm753_vm0, %v9730_v54 }
 0x2ae   : > { %7926 = vst [vmem:[%s10763_s27 + $0x828] sm:$0xff] %v6694_v46  ;;  %7928 = vst [vmem:[%s10763_s27 + $0x838] sm:$0xff] %v6696_v59  ;;  %v5478_v58 = vmax.f32 %v2210_v61, 1.5  ;;  %v5480_v60 = vmax.f32 %v2737_v63, 1.5  ;;  %v2214_v1 = vadd.f32 %v2213_v51, %v11918_v28  ;;  %v2741_v2 = vadd.f32 %v2740_v57, %v11922_v29  ;;  %2505 = vmatprep.mubr.f32.mxu0 %v9958_v0  ;;  %v9733_v57 = vld [vmem:[%s15190_s0 + $0x228] sm:$0xff] }
 0x2af   : > { %3032 = vmatprep.mubr.f32.mxu1 %v9958_v0  ;;  %v6709_v3 = vmin.f32 %v5477_v48, 1.7  ;;  %v6711_v4 = vmin.f32 %v5479_v49, 1.7  ;;  %v2215_v5 = vpop.f32.mrf.mxu0  ;;  %v2742_v8 = vpop.f32.mrf.mxu1 }
 0x2b0   : > { %v6710_v9 = vmin.f32 %v5478_v58, 1.7  ;;  %v6712_v10 = vmin.f32 %v5480_v60, 1.7  ;;  %v5493_v11 = vmax.f32 %v2214_v1, 1.5  ;;  %v5495_v12 = vmax.f32 %v2741_v2, 1.5 }
 0x2b1   : > { %7941 = vst [vmem:[%s10763_s27 + $0x8a0] sm:$0xff] %v6709_v3  ;;  %7943 = vst [vmem:[%s10763_s27 + $0x8b0] sm:$0xff] %v6711_v4  ;;  %v2216_v13 = vadd.f32 %v2215_v5, %v11943_v47  ;;  %v2743_v14 = vadd.f32 %v2742_v8, %v11947_v62  ;;  %v2219_v15 = vpop.f32.mrf.mxu0  ;;  %9218 = vmatmul.mubr.msk.f32.gmra.mxu0 %vm753_vm0, %v9731_v18  ;;  %v2746_v19 = vpop.f32.mrf.mxu1  ;;  %9295 = vmatmul.mubr.msk.f32.gmra.mxu1 %vm753_vm0, %v9731_v18 }
 0x2b2   : > { %7942 = vst [vmem:[%s10763_s27 + $0x8a8] sm:$0xff] %v6710_v9  ;;  %7944 = vst [vmem:[%s10763_s27 + $0x8b8] sm:$0xff] %v6712_v10  ;;  %v6725_v20 = vmin.f32 %v5493_v11, 1.7  ;;  %v6727_v21 = vmin.f32 %v5495_v12, 1.7  ;;  %v2220_v22 = vadd.f32 %v2219_v15, %v11918_v28  ;;  %v2747_v23 = vadd.f32 %v2746_v19, %v11922_v29  ;;  %2511 = vmatprep.mubr.f32.mxu0 %v9958_v0 }
 0x2b3   : > { %3038 = vmatprep.mubr.f32.mxu1 %v9958_v0  ;;  %v5494_v24 = vmax.f32 %v2216_v13, 1.5  ;;  %v5496_v25 = vmax.f32 %v2743_v14, 1.5  ;;  %v2221_v26 = vpop.f32.mrf.mxu0  ;;  %v2748_v27 = vpop.f32.mrf.mxu1  ;;  %v9734_v19 = vld [vmem:[%s15190_s0 + $0x230] sm:$0xff] }
 0x2b4   : > { %7957 = vst [vmem:[%s10763_s27 + $0x920] sm:$0xff] %v6725_v20  ;;  %7959 = vst [vmem:[%s10763_s27 + $0x930] sm:$0xff] %v6727_v21  ;;  %v5509_v30 = vmax.f32 %v2220_v22, 1.5  ;;  %v5511_v31 = vmax.f32 %v2747_v23, 1.5  ;;  %v2222_v32 = vadd.f32 %v2221_v26, %v11943_v47  ;;  %v2749_v33 = vadd.f32 %v2748_v27, %v11947_v62 }
 0x2b5   : > { %v6726_v34 = vmin.f32 %v5494_v24, 1.7  ;;  %v6728_v35 = vmin.f32 %v5496_v25, 1.7  ;;  %v2225_v36 = vpop.f32.mrf.mxu0  ;;  %9219 = vmatmul.mubr.msk.f32.gmra.mxu0 %vm753_vm0, %v9732_v37  ;;  %v2752_v38 = vpop.f32.mrf.mxu1  ;;  %9296 = vmatmul.mubr.msk.f32.gmra.mxu1 %vm753_vm0, %v9732_v37 }
 0x2b6   : > { %v6741_v39 = vmin.f32 %v5509_v30, 1.7  ;;  %v6743_v40 = vmin.f32 %v5511_v31, 1.7  ;;  %v5510_v41 = vmax.f32 %v2222_v32, 1.5  ;;  %v5512_v42 = vmax.f32 %v2749_v33, 1.5  ;;  %2517 = vmatprep.mubr.f32.mxu0 %v9958_v0  ;;  %3044 = vmatprep.mubr.f32.mxu1 %v9958_v0 }
 0x2b7   : > { %7958 = vst [vmem:[%s10763_s27 + $0x928] sm:$0xff] %v6726_v34  ;;  %7960 = vst [vmem:[%s10763_s27 + $0x938] sm:$0xff] %v6728_v35  ;;  %v2226_v43 = vadd.f32 %v2225_v36, %v11918_v28  ;;  %v2753_v44 = vadd.f32 %v2752_v38, %v11922_v29  ;;  %v2227_v45 = vpop.f32.mrf.mxu0  ;;  %v2754_v46 = vpop.f32.mrf.mxu1  ;;  %v9735_v38 = vld [vmem:[%s15190_s0 + $0x238] sm:$0xff] }
 0x2b8   : > { %7973 = vst [vmem:[%s10763_s27 + $0x9a0] sm:$0xff] %v6741_v39  ;;  %7975 = vst [vmem:[%s10763_s27 + $0x9b0] sm:$0xff] %v6743_v40  ;;  %v6742_v59 = vmin.f32 %v5510_v41, 1.7  ;;  %v6744_v61 = vmin.f32 %v5512_v42, 1.7  ;;  %v2228_v63 = vadd.f32 %v2227_v45, %v11943_v47  ;;  %v2755_v48 = vadd.f32 %v2754_v46, %v11947_v62 }
 0x2b9   : > { %v5525_v49 = vmax.f32 %v2226_v43, 1.5  ;;  %v5527_v51 = vmax.f32 %v2753_v44, 1.5  ;;  %v2231_v54 = vpop.f32.mrf.mxu0  ;;  %9220 = vmatmul.mubr.msk.f32.gmra.mxu0 %vm753_vm0, %v9733_v57  ;;  %v2758_v58 = vpop.f32.mrf.mxu1  ;;  %9297 = vmatmul.mubr.msk.f32.gmra.mxu1 %vm753_vm0, %v9733_v57 }
 0x2ba   : > { %7974 = vst [vmem:[%s10763_s27 + $0x9a8] sm:$0xff] %v6742_v59  ;;  %7976 = vst [vmem:[%s10763_s27 + $0x9b8] sm:$0xff] %v6744_v61  ;;  %v5526_v60 = vmax.f32 %v2228_v63, 1.5  ;;  %v5528_v1 = vmax.f32 %v2755_v48, 1.5  ;;  %v2232_v2 = vadd.f32 %v2231_v54, %v11918_v28  ;;  %v2759_v3 = vadd.f32 %v2758_v58, %v11922_v29  ;;  %2523 = vmatprep.mubr.f32.mxu0 %v9958_v0  ;;  %v9736_v58 = vld [vmem:[%s15190_s0 + $0x240] sm:$0xff] }
 0x2bb   : > { %3050 = vmatprep.mubr.f32.mxu1 %v9958_v0  ;;  %v6757_v4 = vmin.f32 %v5525_v49, 1.7  ;;  %v6759_v5 = vmin.f32 %v5527_v51, 1.7  ;;  %v2233_v8 = vpop.f32.mrf.mxu0  ;;  %v2760_v9 = vpop.f32.mrf.mxu1 }
 0x2bc   : > { %v6758_v10 = vmin.f32 %v5526_v60, 1.7  ;;  %v6760_v11 = vmin.f32 %v5528_v1, 1.7  ;;  %v5541_v12 = vmax.f32 %v2232_v2, 1.5  ;;  %v5543_v13 = vmax.f32 %v2759_v3, 1.5 }
 0x2bd   : > { %7989 = vst [vmem:[%s10763_s27 + $0xa20] sm:$0xff] %v6757_v4  ;;  %7991 = vst [vmem:[%s10763_s27 + $0xa30] sm:$0xff] %v6759_v5  ;;  %v2234_v14 = vadd.f32 %v2233_v8, %v11943_v47  ;;  %v2761_v15 = vadd.f32 %v2760_v9, %v11947_v62  ;;  %v2237_v18 = vpop.f32.mrf.mxu0  ;;  %9221 = vmatmul.mubr.msk.f32.gmra.mxu0 %vm753_vm0, %v9734_v19  ;;  %v2764_v20 = vpop.f32.mrf.mxu1  ;;  %9298 = vmatmul.mubr.msk.f32.gmra.mxu1 %vm753_vm0, %v9734_v19 }
 0x2be   : > { %7990 = vst [vmem:[%s10763_s27 + $0xa28] sm:$0xff] %v6758_v10  ;;  %7992 = vst [vmem:[%s10763_s27 + $0xa38] sm:$0xff] %v6760_v11  ;;  %v6773_v21 = vmin.f32 %v5541_v12, 1.7  ;;  %v6775_v22 = vmin.f32 %v5543_v13, 1.7  ;;  %v2238_v23 = vadd.f32 %v2237_v18, %v11918_v28  ;;  %v2765_v24 = vadd.f32 %v2764_v20, %v11922_v29  ;;  %2529 = vmatprep.mubr.f32.mxu0 %v9958_v0 }
 0x2bf   : > { %3056 = vmatprep.mubr.f32.mxu1 %v9958_v0  ;;  %v5542_v25 = vmax.f32 %v2234_v14, 1.5  ;;  %v5544_v26 = vmax.f32 %v2761_v15, 1.5  ;;  %v2239_v27 = vpop.f32.mrf.mxu0  ;;  %v2766_v30 = vpop.f32.mrf.mxu1  ;;  %v9737_v20 = vld [vmem:[%s15190_s0 + $0x248] sm:$0xff] }
 0x2c0   : > { %8005 = vst [vmem:[%s10763_s27 + $0xaa0] sm:$0xff] %v6773_v21  ;;  %8007 = vst [vmem:[%s10763_s27 + $0xab0] sm:$0xff] %v6775_v22  ;;  %v5557_v31 = vmax.f32 %v2238_v23, 1.5  ;;  %v5559_v32 = vmax.f32 %v2765_v24, 1.5  ;;  %v2240_v33 = vadd.f32 %v2239_v27, %v11943_v47  ;;  %v2767_v34 = vadd.f32 %v2766_v30, %v11947_v62 }
 0x2c1   : > { %v6774_v35 = vmin.f32 %v5542_v25, 1.7  ;;  %v6776_v36 = vmin.f32 %v5544_v26, 1.7  ;;  %v2243_v37 = vpop.f32.mrf.mxu0  ;;  %9222 = vmatmul.mubr.msk.f32.gmra.mxu0 %vm753_vm0, %v9735_v38  ;;  %v2770_v39 = vpop.f32.mrf.mxu1  ;;  %9299 = vmatmul.mubr.msk.f32.gmra.mxu1 %vm753_vm0, %v9735_v38 }
 0x2c2   : > { %v6789_v40 = vmin.f32 %v5557_v31, 1.7  ;;  %v6791_v41 = vmin.f32 %v5559_v32, 1.7  ;;  %v5558_v42 = vmax.f32 %v2240_v33, 1.5  ;;  %v5560_v43 = vmax.f32 %v2767_v34, 1.5  ;;  %2535 = vmatprep.mubr.f32.mxu0 %v9958_v0  ;;  %3062 = vmatprep.mubr.f32.mxu1 %v9958_v0 }
 0x2c3   : > { %8006 = vst [vmem:[%s10763_s27 + $0xaa8] sm:$0xff] %v6774_v35  ;;  %8008 = vst [vmem:[%s10763_s27 + $0xab8] sm:$0xff] %v6776_v36  ;;  %v2244_v44 = vadd.f32 %v2243_v37, %v11918_v28  ;;  %v2771_v45 = vadd.f32 %v2770_v39, %v11922_v29  ;;  %v2245_v46 = vpop.f32.mrf.mxu0  ;;  %v2772_v59 = vpop.f32.mrf.mxu1  ;;  %v9738_v39 = vld [vmem:[%s15190_s0 + $0x250] sm:$0xff] }
 0x2c4   : > { %8021 = vst [vmem:[%s10763_s27 + $0xb20] sm:$0xff] %v6789_v40  ;;  %8023 = vst [vmem:[%s10763_s27 + $0xb30] sm:$0xff] %v6791_v41  ;;  %v6790_v61 = vmin.f32 %v5558_v42, 1.7  ;;  %v6792_v63 = vmin.f32 %v5560_v43, 1.7  ;;  %v2246_v48 = vadd.f32 %v2245_v46, %v11943_v47  ;;  %v2773_v49 = vadd.f32 %v2772_v59, %v11947_v62 }
 0x2c5   : > { %v5573_v51 = vmax.f32 %v2244_v44, 1.5  ;;  %v5575_v54 = vmax.f32 %v2771_v45, 1.5  ;;  %v2249_v57 = vpop.f32.mrf.mxu0  ;;  %9223 = vmatmul.mubr.msk.f32.gmra.mxu0 %vm753_vm0, %v9736_v58  ;;  %v2776_v60 = vpop.f32.mrf.mxu1  ;;  %9300 = vmatmul.mubr.msk.f32.gmra.mxu1 %vm753_vm0, %v9736_v58 }
 0x2c6   : > { %8022 = vst [vmem:[%s10763_s27 + $0xb28] sm:$0xff] %v6790_v61  ;;  %8024 = vst [vmem:[%s10763_s27 + $0xb38] sm:$0xff] %v6792_v63  ;;  %v5574_v1 = vmax.f32 %v2246_v48, 1.5  ;;  %v5576_v2 = vmax.f32 %v2773_v49, 1.5  ;;  %v2250_v3 = vadd.f32 %v2249_v57, %v11918_v28  ;;  %v2777_v4 = vadd.f32 %v2776_v60, %v11922_v29  ;;  %2541 = vmatprep.mubr.f32.mxu0 %v9958_v0  ;;  %v9739_v60 = vld [vmem:[%s15190_s0 + $0x258] sm:$0xff] }
 0x2c7   : > { %3068 = vmatprep.mubr.f32.mxu1 %v9958_v0  ;;  %v6805_v5 = vmin.f32 %v5573_v51, 1.7  ;;  %v6807_v8 = vmin.f32 %v5575_v54, 1.7  ;;  %v2251_v9 = vpop.f32.mrf.mxu0  ;;  %v2778_v10 = vpop.f32.mrf.mxu1 }
 0x2c8   : > { %v6806_v11 = vmin.f32 %v5574_v1, 1.7  ;;  %v6808_v12 = vmin.f32 %v5576_v2, 1.7  ;;  %v5589_v13 = vmax.f32 %v2250_v3, 1.5  ;;  %v5591_v14 = vmax.f32 %v2777_v4, 1.5 }
 0x2c9   : > { %8037 = vst [vmem:[%s10763_s27 + $0xba0] sm:$0xff] %v6805_v5  ;;  %8039 = vst [vmem:[%s10763_s27 + $0xbb0] sm:$0xff] %v6807_v8  ;;  %v2252_v15 = vadd.f32 %v2251_v9, %v11943_v47  ;;  %v2779_v18 = vadd.f32 %v2778_v10, %v11947_v62  ;;  %v2255_v19 = vpop.f32.mrf.mxu0  ;;  %9224 = vmatmul.mubr.msk.f32.gmra.mxu0 %vm753_vm0, %v9737_v20  ;;  %v2782_v21 = vpop.f32.mrf.mxu1  ;;  %9301 = vmatmul.mubr.msk.f32.gmra.mxu1 %vm753_vm0, %v9737_v20 }
 0x2ca   : > { %8038 = vst [vmem:[%s10763_s27 + $0xba8] sm:$0xff] %v6806_v11  ;;  %8040 = vst [vmem:[%s10763_s27 + $0xbb8] sm:$0xff] %v6808_v12  ;;  %v6821_v22 = vmin.f32 %v5589_v13, 1.7  ;;  %v6823_v23 = vmin.f32 %v5591_v14, 1.7  ;;  %v2256_v24 = vadd.f32 %v2255_v19, %v11918_v28  ;;  %v2783_v25 = vadd.f32 %v2782_v21, %v11922_v29  ;;  %2547 = vmatprep.mubr.f32.mxu0 %v9958_v0 }
 0x2cb   : > { %3074 = vmatprep.mubr.f32.mxu1 %v9958_v0  ;;  %v5590_v26 = vmax.f32 %v2252_v15, 1.5  ;;  %v5592_v27 = vmax.f32 %v2779_v18, 1.5  ;;  %v2257_v30 = vpop.f32.mrf.mxu0  ;;  %v2784_v31 = vpop.f32.mrf.mxu1  ;;  %v9740_v21 = vld [vmem:[%s15190_s0 + $0x260] sm:$0x1] }
 0x2cc   : > { %8053 = vst [vmem:[%s10763_s27 + $0xc20] sm:$0xff] %v6821_v22  ;;  %8055 = vst [vmem:[%s10763_s27 + $0xc30] sm:$0xff] %v6823_v23  ;;  %v5605_v32 = vmax.f32 %v2256_v24, 1.5  ;;  %v5607_v33 = vmax.f32 %v2783_v25, 1.5  ;;  %v2258_v34 = vadd.f32 %v2257_v30, %v11943_v47  ;;  %v2785_v35 = vadd.f32 %v2784_v31, %v11947_v62 }
 0x2cd   : > { %v6822_v36 = vmin.f32 %v5590_v26, 1.7  ;;  %v6824_v37 = vmin.f32 %v5592_v27, 1.7  ;;  %v2261_v38 = vpop.f32.mrf.mxu0  ;;  %9225 = vmatmul.mubr.msk.f32.gmra.mxu0 %vm753_vm0, %v9738_v39  ;;  %v2788_v40 = vpop.f32.mrf.mxu1  ;;  %9302 = vmatmul.mubr.msk.f32.gmra.mxu1 %vm753_vm0, %v9738_v39 }
 0x2ce   : > { %v6837_v41 = vmin.f32 %v5605_v32, 1.7  ;;  %v6839_v42 = vmin.f32 %v5607_v33, 1.7  ;;  %v5606_v43 = vmax.f32 %v2258_v34, 1.5  ;;  %v5608_v44 = vmax.f32 %v2785_v35, 1.5  ;;  %2553 = vmatprep.mubr.f32.mxu0 %v9958_v0  ;;  %3080 = vmatprep.mubr.f32.mxu1 %v9958_v0 }
 0x2cf   : > { %8054 = vst [vmem:[%s10763_s27 + $0xc28] sm:$0xff] %v6822_v36  ;;  %8056 = vst [vmem:[%s10763_s27 + $0xc38] sm:$0xff] %v6824_v37  ;;  %v2262_v45 = vadd.f32 %v2261_v38, %v11918_v28  ;;  %v2789_v46 = vadd.f32 %v2788_v40, %v11922_v29  ;;  %v2263_v59 = vpop.f32.mrf.mxu0  ;;  %v2790_v61 = vpop.f32.mrf.mxu1  ;;  %v665_v33 = vld [vmem:[%s10304_s6 + $0x3e0] sm:$0xff]  ;;  %v667_v34 = vld [vmem:[%s10304_s6 + $0x3f0] sm:$0xff] }
 0x2d0   : > { %8069 = vst [vmem:[%s10763_s27 + $0xca0] sm:$0xff] %v6837_v41  ;;  %8071 = vst [vmem:[%s10763_s27 + $0xcb0] sm:$0xff] %v6839_v42  ;;  %v6838_v63 = vmin.f32 %v5606_v43, 1.7  ;;  %v6840_v48 = vmin.f32 %v5608_v44, 1.7  ;;  %v2264_v49 = vadd.f32 %v2263_v59, %v11943_v47  ;;  %v2791_v51 = vadd.f32 %v2790_v61, %v11947_v62 }
 0x2d1   : > { %v5621_v54 = vmax.f32 %v2262_v45, 1.5  ;;  %v5623_v57 = vmax.f32 %v2789_v46, 1.5  ;;  %v2267_v58 = vpop.f32.mrf.mxu0  ;;  %9226 = vmatmul.mubr.msk.f32.gmra.mxu0 %vm753_vm0, %v9739_v60  ;;  %v2794_v1 = vpop.f32.mrf.mxu1  ;;  %9303 = vmatmul.mubr.msk.f32.gmra.mxu1 %vm753_vm0, %v9739_v60  ;;  %v9741_v43 = vld [vmem:[%s15190_s0] sm:$0xff]  ;;  %v650_v44 = vld [vmem:[%s10304_s6 + $0x368] sm:$0xff]  ;;  %v652_v45 = vld [vmem:[%s10304_s6 + $0x378] sm:$0xff] }
 0x2d2   : > { %8070 = vst [vmem:[%s10763_s27 + $0xca8] sm:$0xff] %v6838_v63  ;;  %8072 = vst [vmem:[%s10763_s27 + $0xcb8] sm:$0xff] %v6840_v48  ;;  %v5622_v2 = vmax.f32 %v2264_v49, 1.5  ;;  %v5624_v3 = vmax.f32 %v2791_v51, 1.5  ;;  %v2268_v4 = vadd.f32 %v2267_v58, %v11918_v28  ;;  %v2795_v5 = vadd.f32 %v2794_v1, %v11922_v29  ;;  %2559 = vmatprep.mubr.f32.mxu0 %v9958_v0 }
 0x2d3   : > { %3086 = vmatprep.mubr.f32.mxu1 %v9958_v0  ;;  %v6853_v8 = vmin.f32 %v5621_v54, 1.7  ;;  %v6855_v9 = vmin.f32 %v5623_v57, 1.7  ;;  %v2269_v10 = vpop.f32.mrf.mxu0  ;;  %v2796_v11 = vpop.f32.mrf.mxu1 }
 0x2d4   : > { %v6854_v12 = vmin.f32 %v5622_v2, 1.7  ;;  %v6856_v13 = vmin.f32 %v5624_v3, 1.7  ;;  %v5637_v14 = vmax.f32 %v2268_v4, 1.5  ;;  %v5639_v15 = vmax.f32 %v2795_v5, 1.5 }
 0x2d5   : > { %8085 = vst [vmem:[%s10763_s27 + $0xd20] sm:$0xff] %v6853_v8  ;;  %8087 = vst [vmem:[%s10763_s27 + $0xd30] sm:$0xff] %v6855_v9  ;;  %v2270_v18 = vadd.f32 %v2269_v10, %v11943_v47  ;;  %v2797_v19 = vadd.f32 %v2796_v11, %v11947_v62  ;;  %v2273_v20 = vpop.f32.mrf.mxu0  ;;  %9227 = vmatmul.mubr.msk.f32.gmra.mxu0 %vm753_vm0, %v9740_v21  ;;  %v2800_v22 = vpop.f32.mrf.mxu1  ;;  %9304 = vmatmul.mubr.msk.f32.gmra.mxu1 %vm753_vm0, %v9740_v21  ;;  %v649_v2 = vld [vmem:[%s10304_s6 + $0x360] sm:$0xff]  ;;  %v651_v3 = vld [vmem:[%s10304_s6 + $0x370] sm:$0xff] }
 0x2d6   : > { %8086 = vst [vmem:[%s10763_s27 + $0xd28] sm:$0xff] %v6854_v12  ;;  %8088 = vst [vmem:[%s10763_s27 + $0xd38] sm:$0xff] %v6856_v13  ;;  %v6869_v23 = vmin.f32 %v5637_v14, 1.7  ;;  %v6871_v24 = vmin.f32 %v5639_v15, 1.7  ;;  %v2274_v25 = vadd.f32 %v2273_v20, %v11918_v28  ;;  %v2801_v26 = vadd.f32 %v2800_v22, %v11922_v29  ;;  %3157 = vmatprep.mubr.f32.mxu0 %v9958_v0 }
 0x2d7   : > { %3684 = vmatprep.mubr.f32.mxu1 %v9958_v0  ;;  %v5638_v27 = vmax.f32 %v2270_v18, 1.5  ;;  %v5640_v30 = vmax.f32 %v2797_v19, 1.5  ;;  %v2275_v31 = vpop.f32.mrf.mxu0  ;;  %v2802_v32 = vpop.f32.mrf.mxu1  ;;  %v9742_v10 = vld [vmem:[%s15190_s0 + $0x8] sm:$0xff]  ;;  %v636_v12 = vld [vmem:[%s10304_s6 + $0x2f8] sm:$0xff] }
 0x2d8   : > { %8101 = vst [vmem:[%s10763_s27 + $0xda0] sm:$0xff] %v6869_v23  ;;  %8103 = vst [vmem:[%s10763_s27 + $0xdb0] sm:$0xff] %v6871_v24  ;;  %v5653_v35 = vmax.f32 %v2274_v25, 1.5  ;;  %v5655_v36 = vmax.f32 %v2801_v26, 1.5  ;;  %v2276_v37 = vadd.f32 %v2275_v31, %v11943_v47  ;;  %v2803_v38 = vadd.f32 %v2802_v32, %v11947_v62  ;;  %v634_v11 = vld [vmem:[%s10304_s6 + $0x2e8] sm:$0xff]  ;;  %v633_v23 = vld [vmem:[%s10304_s6 + $0x2e0] sm:$0xff] }
 0x2d9   : > { %v6870_v39 = vmin.f32 %v5638_v27, 1.7  ;;  %v6872_v40 = vmin.f32 %v5640_v30, 1.7  ;;  %v2279_v41 = vpop.f32.mrf.mxu0  ;;  %v2806_v42 = vpop.f32.mrf.mxu1  ;;  %9305 = vmatmul.mubr.msk.f32.vlgmr.msra.gmra.mxu0 %vm753_vm0, %v9741_v43  ;;  %9382 = vmatmul.mubr.msk.f32.vlgmr.msra.gmra.mxu1 %vm753_vm0, %v9741_v43  ;;  %v635_v24 = vld [vmem:[%s10304_s6 + $0x2f0] sm:$0xff] }
 0x2da   : > { %v6885_v46 = vmin.f32 %v5653_v35, 1.7  ;;  %v6887_v59 = vmin.f32 %v5655_v36, 1.7  ;;  %v5654_v61 = vmax.f32 %v2276_v37, 1.5  ;;  %v5656_v63 = vmax.f32 %v2803_v38, 1.5  ;;  %4164 = vmatpush1.msra.mxu0 %v665_v33  ;;  %4691 = vmatpush1.msra.mxu1 %v667_v34 }
 0x2db   : > { %8102 = vst [vmem:[%s10763_s27 + $0xda8] sm:$0xff] %v6870_v39  ;;  %8104 = vst [vmem:[%s10763_s27 + $0xdb8] sm:$0xff] %v6872_v40  ;;  %v2280_v48 = vadd.f32 %v2279_v41, %v11918_v28  ;;  %v2807_v49 = vadd.f32 %v2806_v42, %v11922_v29  ;;  %v2281_v51 = vpop.f32.mrf.mxu0  ;;  %v2808_v54 = vpop.f32.mrf.mxu1  ;;  %3163 = vmatprep.mubr.f32.mxu0 %v9958_v0  ;;  %3690 = vmatprep.mubr.f32.mxu1 %v9958_v0  ;;  %v9743_v35 = vld [vmem:[%s15190_s0 + $0x10] sm:$0xff]  ;;  %v618_v36 = vld [vmem:[%s10304_s6 + $0x268] sm:$0xff] }
 0x2dc   : > { %8117 = vst [vmem:[%s10763_s27 + $0xe20] sm:$0xff] %v6885_v46  ;;  %8119 = vst [vmem:[%s10763_s27 + $0xe30] sm:$0xff] %v6887_v59  ;;  %v6886_v57 = vmin.f32 %v5654_v61, 1.7  ;;  %v6888_v58 = vmin.f32 %v5656_v63, 1.7  ;;  %v2282_v60 = vadd.f32 %v2281_v51, %v11943_v47  ;;  %v2809_v1 = vadd.f32 %v2808_v54, %v11947_v62  ;;  %4165 = vmatprep.subr.mxu0 %v650_v44 }
 0x2dd   : > { %4692 = vmatprep.subr.mxu1 %v652_v45  ;;  %v5669_v4 = vmax.f32 %v2280_v48, 1.5  ;;  %v5671_v5 = vmax.f32 %v2807_v49, 1.5  ;;  %v2285_v8 = vpop.f32.mrf.mxu0  ;;  %v2812_v9 = vpop.f32.mrf.mxu1  ;;  %9306 = vmatmul.mubr.msk.f32.gmra.mxu0 %vm753_vm0, %v9742_v10  ;;  %v620_v37 = vld [vmem:[%s10304_s6 + $0x278] sm:$0xff]  ;;  %v617_v48 = vld [vmem:[%s10304_s6 + $0x260] sm:$0xff]  ;;  %v619_v49 = vld [vmem:[%s10304_s6 + $0x270] sm:$0xff] }
 0x2de   : > { %9383 = vmatmul.mubr.msk.f32.gmra.mxu1 %vm753_vm0, %v9742_v10  ;;  %8118 = vst [vmem:[%s10763_s27 + $0xe28] sm:$0xff] %v6886_v57  ;;  %8120 = vst [vmem:[%s10763_s27 + $0xe38] sm:$0xff] %v6888_v58  ;;  %v5670_v13 = vmax.f32 %v2282_v60, 1.5  ;;  %v5672_v14 = vmax.f32 %v2809_v1, 1.5  ;;  %v2286_v15 = vadd.f32 %v2285_v8, %v11918_v28  ;;  %v2813_v18 = vadd.f32 %v2812_v9, %v11922_v29  ;;  %v9744_v60 = vld [vmem:[%s15190_s0 + $0x18] sm:$0xff] }
 0x2df   : > { %3169 = vmatprep.mubr.f32.mxu0 %v9958_v0  ;;  %3696 = vmatprep.mubr.f32.mxu1 %v9958_v0  ;;  %v6901_v19 = vmin.f32 %v5669_v4, 1.7  ;;  %v6903_v20 = vmin.f32 %v5671_v5, 1.7  ;;  %v2287_v21 = vpop.f32.mrf.mxu0  ;;  %v2814_v22 = vpop.f32.mrf.mxu1 }
 0x2e0   : > { %4166 = vmatpush1.msra.mxu0 %v649_v2  ;;  %4693 = vmatpush1.msra.mxu1 %v651_v3  ;;  %v6902_v25 = vmin.f32 %v5670_v13, 1.7  ;;  %v6904_v26 = vmin.f32 %v5672_v14, 1.7  ;;  %v5685_v27 = vmax.f32 %v2286_v15, 1.5  ;;  %v5687_v30 = vmax.f32 %v2813_v18, 1.5 }
 0x2e1   : > { %4167 = vmatprep.subr.mxu0 %v634_v11  ;;  %4694 = vmatprep.subr.mxu1 %v636_v12  ;;  %8133 = vst [vmem:[%s10763_s27 + $0xea0] sm:$0xff] %v6901_v19  ;;  %8135 = vst [vmem:[%s10763_s27 + $0xeb0] sm:$0xff] %v6903_v20  ;;  %v2288_v31 = vadd.f32 %v2287_v21, %v11943_v47  ;;  %v2815_v32 = vadd.f32 %v2814_v22, %v11947_v62  ;;  %v2291_v33 = vpop.f32.mrf.mxu0  ;;  %v2818_v34 = vpop.f32.mrf.mxu1  ;;  %v9745_v21 = vld [vmem:[%s15190_s0 + $0x20] sm:$0xff] }
 0x2e2   : > { %9307 = vmatmul.mubr.msk.f32.gmra.mxu0 %vm753_vm0, %v9743_v35  ;;  %9384 = vmatmul.mubr.msk.f32.gmra.mxu1 %vm753_vm0, %v9743_v35  ;;  %8134 = vst [vmem:[%s10763_s27 + $0xea8] sm:$0xff] %v6902_v25  ;;  %8136 = vst [vmem:[%s10763_s27 + $0xeb8] sm:$0xff] %v6904_v26  ;;  %v6917_v38 = vmin.f32 %v5685_v27, 1.7  ;;  %v6919_v39 = vmin.f32 %v5687_v30, 1.7  ;;  %v2292_v40 = vadd.f32 %v2291_v33, %v11918_v28 }
 0x2e3   : > { %v2819_v41 = vadd.f32 %v2818_v34, %v11922_v29  ;;  %3175 = vmatprep.mubr.f32.mxu0 %v9958_v0  ;;  %3702 = vmatprep.mubr.f32.mxu1 %v9958_v0  ;;  %v5686_v42 = vmax.f32 %v2288_v31, 1.5  ;;  %v5688_v43 = vmax.f32 %v2815_v32, 1.5  ;;  %v2293_v44 = vpop.f32.mrf.mxu0  ;;  %v2820_v45 = vpop.f32.mrf.mxu1 }
 0x2e4   : > { %4168 = vmatpush1.msra.mxu0 %v633_v23  ;;  %4695 = vmatpush1.msra.mxu1 %v635_v24  ;;  %8149 = vst [vmem:[%s10763_s27 + $0xf20] sm:$0xff] %v6917_v38  ;;  %8151 = vst [vmem:[%s10763_s27 + $0xf30] sm:$0xff] %v6919_v39  ;;  %v5701_v46 = vmax.f32 %v2292_v40, 1.5  ;;  %v2294_v61 = vadd.f32 %v2293_v44, %v11943_v47  ;;  %v2821_v63 = vadd.f32 %v2820_v45, %v11947_v62  ;;  %v9746_v40 = vld [vmem:[%s15190_s0 + $0x28] sm:$0xff] }
 0x2e5   : > { %v5703_v59 = vmax.f32 %v2819_v41, 1.5  ;;  %4169 = vmatprep.subr.mxu0 %v618_v36  ;;  %4696 = vmatprep.subr.mxu1 %v620_v37  ;;  %v6918_v51 = vmin.f32 %v5686_v42, 1.7  ;;  %v6920_v54 = vmin.f32 %v5688_v43, 1.7  ;;  %v2297_v57 = vpop.f32.mrf.mxu0  ;;  %v2824_v58 = vpop.f32.mrf.mxu1 }
 0x2e6   : > { %9308 = vmatmul.mubr.msk.f32.gmra.mxu0 %vm753_vm0, %v9744_v60  ;;  %9385 = vmatmul.mubr.msk.f32.gmra.mxu1 %vm753_vm0, %v9744_v60  ;;  %v6933_v1 = vmin.f32 %v5701_v46, 1.7  ;;  %v5702_v3 = vmax.f32 %v2294_v61, 1.5  ;;  %v5704_v4 = vmax.f32 %v2821_v63, 1.5  ;;  %v2298_v5 = vadd.f32 %v2297_v57, %v11918_v28 }
 0x2e7   : > { %v6935_v2 = vmin.f32 %v5703_v59, 1.7  ;;  %3181 = vmatprep.mubr.f32.mxu0 %v9958_v0  ;;  %3708 = vmatprep.mubr.f32.mxu1 %v9958_v0  ;;  %8150 = vst [vmem:[%s10763_s27 + $0xf28] sm:$0xff] %v6918_v51  ;;  %8152 = vst [vmem:[%s10763_s27 + $0xf38] sm:$0xff] %v6920_v54  ;;  %v2825_v8 = vadd.f32 %v2824_v58, %v11922_v29  ;;  %v2299_v9 = vpop.f32.mrf.mxu0  ;;  %v2826_v10 = vpop.f32.mrf.mxu1 }
 0x2e8   : > { %4170 = vmatpush1.msra.mxu0 %v617_v48  ;;  %4697 = vmatpush1.msra.mxu1 %v619_v49  ;;  %8165 = vst [vmem:[%s10763_s27 + $0xfa0] sm:$0xff] %v6933_v1  ;;  %v6934_v11 = vmin.f32 %v5702_v3, 1.7  ;;  %v6936_v12 = vmin.f32 %v5704_v4, 1.7  ;;  %v2300_v13 = vadd.f32 %v2299_v9, %v11943_v47  ;;  %v2827_v14 = vadd.f32 %v2826_v10, %v11947_v62  ;;  %v9747_v1 = vld [vmem:[%s15190_s0 + $0x30] sm:$0xff] }
 0x2e9   : > { %8167 = vst [vmem:[%s10763_s27 + $0xfb0] sm:$0xff] %v6935_v2  ;;  %v5717_v15 = vmax.f32 %v2298_v5, 1.5  ;;  %v5719_v18 = vmax.f32 %v2825_v8, 1.5  ;;  %v2303_v19 = vpop.f32.mrf.mxu0  ;;  %v2830_v20 = vpop.f32.mrf.mxu1 }
 0x2ea   : > { %9309 = vmatmul.mubr.msk.f32.gmra.mxu0 %vm753_vm0, %v9745_v21  ;;  %9386 = vmatmul.mubr.msk.f32.gmra.mxu1 %vm753_vm0, %v9745_v21  ;;  %8166 = vst [vmem:[%s10763_s27 + $0xfa8] sm:$0xff] %v6934_v11  ;;  %8168 = vst [vmem:[%s10763_s27 + $0xfb8] sm:$0xff] %v6936_v12  ;;  %v5718_v22 = vmax.f32 %v2300_v13, 1.5  ;;  %v5720_v23 = vmax.f32 %v2827_v14, 1.5  ;;  %v2304_v24 = vadd.f32 %v2303_v19, %v11918_v28 }
 0x2eb   : > { %v2831_v25 = vadd.f32 %v2830_v20, %v11922_v29  ;;  %3187 = vmatprep.mubr.f32.mxu0 %v9958_v0  ;;  %3714 = vmatprep.mubr.f32.mxu1 %v9958_v0  ;;  %v6949_v26 = vmin.f32 %v5717_v15, 1.7  ;;  %v6951_v27 = vmin.f32 %v5719_v18, 1.7  ;;  %v2305_v30 = vpop.f32.mrf.mxu0  ;;  %v2832_v31 = vpop.f32.mrf.mxu1 }
 0x2ec   : > { %v6950_v32 = vmin.f32 %v5718_v22, 1.7  ;;  %v6952_v33 = vmin.f32 %v5720_v23, 1.7  ;;  %v5733_v34 = vmax.f32 %v2304_v24, 1.5  ;;  %v2306_v36 = vadd.f32 %v2305_v30, %v11943_v47  ;;  %v9748_v22 = vld [vmem:[%s15190_s0 + $0x38] sm:$0xff] }
 0x2ed   : > { %v5735_v35 = vmax.f32 %v2831_v25, 1.5  ;;  %8181 = vst [vmem:[%s10763_s27 + $0x1020] sm:$0xff] %v6949_v26  ;;  %8183 = vst [vmem:[%s10763_s27 + $0x1030] sm:$0xff] %v6951_v27  ;;  %v2833_v37 = vadd.f32 %v2832_v31, %v11947_v62  ;;  %v2309_v38 = vpop.f32.mrf.mxu0  ;;  %v2836_v39 = vpop.f32.mrf.mxu1 }
 0x2ee   : > { %9310 = vmatmul.mubr.msk.f32.gmra.mxu0 %vm753_vm0, %v9746_v40  ;;  %9387 = vmatmul.mubr.msk.f32.gmra.mxu1 %vm753_vm0, %v9746_v40  ;;  %8182 = vst [vmem:[%s10763_s27 + $0x1028] sm:$0xff] %v6950_v32  ;;  %8184 = vst [vmem:[%s10763_s27 + $0x1038] sm:$0xff] %v6952_v33  ;;  %v6965_v41 = vmin.f32 %v5733_v34, 1.7  ;;  %v2310_v43 = vadd.f32 %v2309_v38, %v11918_v28  ;;  %v2837_v44 = vadd.f32 %v2836_v39, %v11922_v29 }
 0x2ef   : > { %v6967_v42 = vmin.f32 %v5735_v35, 1.7  ;;  %3193 = vmatprep.mubr.f32.mxu0 %v9958_v0  ;;  %3720 = vmatprep.mubr.f32.mxu1 %v9958_v0  ;;  %v5734_v45 = vmax.f32 %v2306_v36, 1.5  ;;  %v5736_v46 = vmax.f32 %v2833_v37, 1.5  ;;  %v2311_v59 = vpop.f32.mrf.mxu0  ;;  %v2838_v61 = vpop.f32.mrf.mxu1 }
 0x2f0   : > { %8197 = vst [vmem:[%s10763_s27 + $0x10a0] sm:$0xff] %v6965_v41  ;;  %v5749_v63 = vmax.f32 %v2310_v43, 1.5  ;;  %v5751_v48 = vmax.f32 %v2837_v44, 1.5  ;;  %v2312_v49 = vadd.f32 %v2311_v59, %v11943_v47  ;;  %v2839_v51 = vadd.f32 %v2838_v61, %v11947_v62  ;;  %v9749_v41 = vld [vmem:[%s15190_s0 + $0x40] sm:$0xff]  ;;  %v604_v59 = vld [vmem:[%s10304_s6 + $0x1f8] sm:$0xff] }
 0x2f1   : > { %8199 = vst [vmem:[%s10763_s27 + $0x10b0] sm:$0xff] %v6967_v42  ;;  %v6966_v54 = vmin.f32 %v5734_v45, 1.7  ;;  %v6968_v57 = vmin.f32 %v5736_v46, 1.7  ;;  %v2315_v58 = vpop.f32.mrf.mxu0  ;;  %v2842_v60 = vpop.f32.mrf.mxu1  ;;  %v602_v46 = vld [vmem:[%s10304_s6 + $0x1e8] sm:$0xff]  ;;  %4698 = vmatprep.subr.mxu1 %v604_v59 }
 0x2f2   : > { %9311 = vmatmul.mubr.msk.f32.gmra.mxu0 %vm753_vm0, %v9747_v1  ;;  %9388 = vmatmul.mubr.msk.f32.gmra.mxu1 %vm753_vm0, %v9747_v1  ;;  %v6981_v2 = vmin.f32 %v5749_v63, 1.7  ;;  %v6983_v3 = vmin.f32 %v5751_v48, 1.7  ;;  %v5750_v4 = vmax.f32 %v2312_v49, 1.5  ;;  %v5752_v5 = vmax.f32 %v2839_v51, 1.5 }
 0x2f3   : > { %3199 = vmatprep.mubr.f32.mxu0 %v9958_v0  ;;  %3726 = vmatprep.mubr.f32.mxu1 %v9958_v0  ;;  %8198 = vst [vmem:[%s10763_s27 + $0x10a8] sm:$0xff] %v6966_v54  ;;  %8200 = vst [vmem:[%s10763_s27 + $0x10b8] sm:$0xff] %v6968_v57  ;;  %v2316_v8 = vadd.f32 %v2315_v58, %v11918_v28  ;;  %v2843_v9 = vadd.f32 %v2842_v60, %v11922_v29  ;;  %v2317_v10 = vpop.f32.mrf.mxu0  ;;  %v2844_v11 = vpop.f32.mrf.mxu1  ;;  %v601_v51 = vld [vmem:[%s10304_s6 + $0x1e0] sm:$0xff]  ;;  %v603_v54 = vld [vmem:[%s10304_s6 + $0x1f0] sm:$0xff] }
 0x2f4   : > { %8213 = vst [vmem:[%s10763_s27 + $0x1120] sm:$0xff] %v6981_v2  ;;  %8215 = vst [vmem:[%s10763_s27 + $0x1130] sm:$0xff] %v6983_v3  ;;  %v6982_v12 = vmin.f32 %v5750_v4, 1.7  ;;  %v6984_v13 = vmin.f32 %v5752_v5, 1.7  ;;  %v2318_v14 = vadd.f32 %v2317_v10, %v11943_v47  ;;  %v2845_v15 = vadd.f32 %v2844_v11, %v11947_v62  ;;  %4171 = vmatprep.subr.mxu0 %v602_v46 }
 0x2f5   : > { %v5765_v18 = vmax.f32 %v2316_v8, 1.5  ;;  %v5767_v19 = vmax.f32 %v2843_v9, 1.5  ;;  %v2321_v20 = vpop.f32.mrf.mxu0  ;;  %v2848_v21 = vpop.f32.mrf.mxu1  ;;  %4172 = vmatpush1.msra.mxu0 %v601_v51  ;;  %4699 = vmatpush1.msra.mxu1 %v603_v54  ;;  %v9750_v8 = vld [vmem:[%s15190_s0 + $0x48] sm:$0xff]  ;;  %v9752_v46 = vld [vmem:[%s15190_s0 + $0x58] sm:$0xff] }
 0x2f6   : > { %9312 = vmatmul.mubr.msk.f32.gmra.mxu0 %vm753_vm0, %v9748_v22  ;;  %9389 = vmatmul.mubr.msk.f32.gmra.mxu1 %vm753_vm0, %v9748_v22  ;;  %8214 = vst [vmem:[%s10763_s27 + $0x1128] sm:$0xff] %v6982_v12  ;;  %8216 = vst [vmem:[%s10763_s27 + $0x1138] sm:$0xff] %v6984_v13  ;;  %v5766_v23 = vmax.f32 %v2318_v14, 1.5  ;;  %v5768_v24 = vmax.f32 %v2845_v15, 1.5  ;;  %v2322_v25 = vadd.f32 %v2321_v20, %v11918_v28 }
 0x2f7   : > { %v2849_v26 = vadd.f32 %v2848_v21, %v11922_v29  ;;  %3205 = vmatprep.mubr.f32.mxu0 %v9958_v0  ;;  %3732 = vmatprep.mubr.f32.mxu1 %v9958_v0  ;;  %v6997_v27 = vmin.f32 %v5765_v18, 1.7  ;;  %v6999_v30 = vmin.f32 %v5767_v19, 1.7  ;;  %v2323_v31 = vpop.f32.mrf.mxu0  ;;  %v2850_v32 = vpop.f32.mrf.mxu1 }
 0x2f8   : > { %v6998_v33 = vmin.f32 %v5766_v23, 1.7  ;;  %v7000_v34 = vmin.f32 %v5768_v24, 1.7  ;;  %v5781_v35 = vmax.f32 %v2322_v25, 1.5  ;;  %v2324_v37 = vadd.f32 %v2323_v31, %v11943_v47 }
 0x2f9   : > { %v5783_v36 = vmax.f32 %v2849_v26, 1.5  ;;  %8229 = vst [vmem:[%s10763_s27 + $0x11a0] sm:$0xff] %v6997_v27  ;;  %8231 = vst [vmem:[%s10763_s27 + $0x11b0] sm:$0xff] %v6999_v30  ;;  %v2851_v38 = vadd.f32 %v2850_v32, %v11947_v62  ;;  %v2327_v39 = vpop.f32.mrf.mxu0  ;;  %v2854_v40 = vpop.f32.mrf.mxu1  ;;  %v9751_v27 = vld [vmem:[%s15190_s0 + $0x50] sm:$0xff] }
 0x2fa   : > { %9313 = vmatmul.mubr.msk.f32.gmra.mxu0 %vm753_vm0, %v9749_v41  ;;  %9390 = vmatmul.mubr.msk.f32.gmra.mxu1 %vm753_vm0, %v9749_v41  ;;  %8230 = vst [vmem:[%s10763_s27 + $0x11a8] sm:$0xff] %v6998_v33  ;;  %8232 = vst [vmem:[%s10763_s27 + $0x11b8] sm:$0xff] %v7000_v34  ;;  %v7013_v42 = vmin.f32 %v5781_v35, 1.7  ;;  %v2328_v44 = vadd.f32 %v2327_v39, %v11918_v28  ;;  %v2855_v45 = vadd.f32 %v2854_v40, %v11922_v29 }
 0x2fb   : > { %v7015_v43 = vmin.f32 %v5783_v36, 1.7  ;;  %3211 = vmatprep.mubr.f32.mxu0 %v9958_v0  ;;  %3738 = vmatprep.mubr.f32.mxu1 %v9958_v0  ;;  %v5782_v61 = vmax.f32 %v2324_v37, 1.5  ;;  %v5784_v63 = vmax.f32 %v2851_v38, 1.5  ;;  %v2329_v48 = vpop.f32.mrf.mxu0  ;;  %v2856_v49 = vpop.f32.mrf.mxu1 }
 0x2fc   : > { %8245 = vst [vmem:[%s10763_s27 + $0x1220] sm:$0xff] %v7013_v42  ;;  %v5797_v57 = vmax.f32 %v2328_v44, 1.5  ;;  %v5799_v58 = vmax.f32 %v2855_v45, 1.5  ;;  %v2330_v60 = vadd.f32 %v2329_v48, %v11943_v47  ;;  %v2857_v1 = vadd.f32 %v2856_v49, %v11947_v62 }
 0x2fd   : > { %8247 = vst [vmem:[%s10763_s27 + $0x1230] sm:$0xff] %v7015_v43  ;;  %v7014_v2 = vmin.f32 %v5782_v61, 1.7  ;;  %v7016_v3 = vmin.f32 %v5784_v63, 1.7  ;;  %v2333_v4 = vpop.f32.mrf.mxu0  ;;  %v2860_v5 = vpop.f32.mrf.mxu1 }
 0x2fe   : > { %9314 = vmatmul.mubr.msk.f32.gmra.mxu0 %vm753_vm0, %v9750_v8  ;;  %9391 = vmatmul.mubr.msk.f32.gmra.mxu1 %vm753_vm0, %v9750_v8  ;;  %v7029_v9 = vmin.f32 %v5797_v57, 1.7  ;;  %v7031_v10 = vmin.f32 %v5799_v58, 1.7  ;;  %v5798_v11 = vmax.f32 %v2330_v60, 1.5  ;;  %v5800_v12 = vmax.f32 %v2857_v1, 1.5 }
 0x2ff   : > { %3217 = vmatprep.mubr.f32.mxu0 %v9958_v0  ;;  %3744 = vmatprep.mubr.f32.mxu1 %v9958_v0  ;;  %8246 = vst [vmem:[%s10763_s27 + $0x1228] sm:$0xff] %v7014_v2  ;;  %8248 = vst [vmem:[%s10763_s27 + $0x1238] sm:$0xff] %v7016_v3  ;;  %v2334_v13 = vadd.f32 %v2333_v4, %v11918_v28  ;;  %v2861_v14 = vadd.f32 %v2860_v5, %v11922_v29  ;;  %v2335_v15 = vpop.f32.mrf.mxu0  ;;  %v2862_v18 = vpop.f32.mrf.mxu1 }
 0x300   : > { %8261 = vst [vmem:[%s10763_s27 + $0x12a0] sm:$0xff] %v7029_v9  ;;  %8263 = vst [vmem:[%s10763_s27 + $0x12b0] sm:$0xff] %v7031_v10  ;;  %v7030_v19 = vmin.f32 %v5798_v11, 1.7  ;;  %v7032_v20 = vmin.f32 %v5800_v12, 1.7  ;;  %v2336_v21 = vadd.f32 %v2335_v15, %v11943_v47  ;;  %v2863_v22 = vadd.f32 %v2862_v18, %v11947_v62 }
 0x301   : > { %v5813_v23 = vmax.f32 %v2334_v13, 1.5  ;;  %v5815_v24 = vmax.f32 %v2861_v14, 1.5  ;;  %v2339_v25 = vpop.f32.mrf.mxu0  ;;  %v2866_v26 = vpop.f32.mrf.mxu1  ;;  %v9753_v9 = vld [vmem:[%s15190_s0 + $0x60] sm:$0xff] }
 0x302   : > { %9315 = vmatmul.mubr.msk.f32.gmra.mxu0 %vm753_vm0, %v9751_v27  ;;  %9392 = vmatmul.mubr.msk.f32.gmra.mxu1 %vm753_vm0, %v9751_v27  ;;  %8262 = vst [vmem:[%s10763_s27 + $0x12a8] sm:$0xff] %v7030_v19  ;;  %8264 = vst [vmem:[%s10763_s27 + $0x12b8] sm:$0xff] %v7032_v20  ;;  %v5814_v30 = vmax.f32 %v2336_v21, 1.5  ;;  %v5816_v31 = vmax.f32 %v2863_v22, 1.5  ;;  %v2340_v32 = vadd.f32 %v2339_v25, %v11918_v28 }
 0x303   : > { %v2867_v33 = vadd.f32 %v2866_v26, %v11922_v29  ;;  %3223 = vmatprep.mubr.f32.mxu0 %v9958_v0  ;;  %3750 = vmatprep.mubr.f32.mxu1 %v9958_v0  ;;  %v7045_v34 = vmin.f32 %v5813_v23, 1.7  ;;  %v7047_v35 = vmin.f32 %v5815_v24, 1.7  ;;  %v2341_v36 = vpop.f32.mrf.mxu0  ;;  %v2868_v37 = vpop.f32.mrf.mxu1 }
 0x304   : > { %v7046_v38 = vmin.f32 %v5814_v30, 1.7  ;;  %v7048_v39 = vmin.f32 %v5816_v31, 1.7  ;;  %v5829_v40 = vmax.f32 %v2340_v32, 1.5  ;;  %v2342_v42 = vadd.f32 %v2341_v36, %v11943_v47  ;;  %v9754_v30 = vld [vmem:[%s15190_s0 + $0x68] sm:$0xff] }
 0x305   : > { %v5831_v41 = vmax.f32 %v2867_v33, 1.5  ;;  %8277 = vst [vmem:[%s10763_s27 + $0x1320] sm:$0xff] %v7045_v34  ;;  %8279 = vst [vmem:[%s10763_s27 + $0x1330] sm:$0xff] %v7047_v35  ;;  %v2869_v43 = vadd.f32 %v2868_v37, %v11947_v62  ;;  %v2345_v44 = vpop.f32.mrf.mxu0  ;;  %v2872_v45 = vpop.f32.mrf.mxu1 }
 0x306   : > { %9316 = vmatmul.mubr.msk.f32.gmra.mxu0 %vm753_vm0, %v9752_v46  ;;  %9393 = vmatmul.mubr.msk.f32.gmra.mxu1 %vm753_vm0, %v9752_v46  ;;  %8278 = vst [vmem:[%s10763_s27 + $0x1328] sm:$0xff] %v7046_v38  ;;  %8280 = vst [vmem:[%s10763_s27 + $0x1338] sm:$0xff] %v7048_v39  ;;  %v7061_v59 = vmin.f32 %v5829_v40, 1.7  ;;  %v2346_v63 = vadd.f32 %v2345_v44, %v11918_v28  ;;  %v2873_v48 = vadd.f32 %v2872_v45, %v11922_v29 }
 0x307   : > { %v7063_v61 = vmin.f32 %v5831_v41, 1.7  ;;  %3229 = vmatprep.mubr.f32.mxu0 %v9958_v0  ;;  %3756 = vmatprep.mubr.f32.mxu1 %v9958_v0  ;;  %v5830_v49 = vmax.f32 %v2342_v42, 1.5  ;;  %v5832_v51 = vmax.f32 %v2869_v43, 1.5  ;;  %v2347_v54 = vpop.f32.mrf.mxu0  ;;  %v2874_v57 = vpop.f32.mrf.mxu1 }
 0x308   : > { %8293 = vst [vmem:[%s10763_s27 + $0x13a0] sm:$0xff] %v7061_v59  ;;  %v5845_v58 = vmax.f32 %v2346_v63, 1.5  ;;  %v5847_v60 = vmax.f32 %v2873_v48, 1.5  ;;  %v2348_v1 = vadd.f32 %v2347_v54, %v11943_v47  ;;  %v2875_v2 = vadd.f32 %v2874_v57, %v11947_v62  ;;  %v9755_v59 = vld [vmem:[%s15190_s0 + $0x70] sm:$0xff] }
 0x309   : > { %8295 = vst [vmem:[%s10763_s27 + $0x13b0] sm:$0xff] %v7063_v61  ;;  %v7062_v3 = vmin.f32 %v5830_v49, 1.7  ;;  %v7064_v4 = vmin.f32 %v5832_v51, 1.7  ;;  %v2351_v5 = vpop.f32.mrf.mxu0  ;;  %v2878_v8 = vpop.f32.mrf.mxu1 }
 0x30a   : > { %9317 = vmatmul.mubr.msk.f32.gmra.mxu0 %vm753_vm0, %v9753_v9  ;;  %9394 = vmatmul.mubr.msk.f32.gmra.mxu1 %vm753_vm0, %v9753_v9  ;;  %v7077_v10 = vmin.f32 %v5845_v58, 1.7  ;;  %v7079_v11 = vmin.f32 %v5847_v60, 1.7  ;;  %v5846_v12 = vmax.f32 %v2348_v1, 1.5  ;;  %v5848_v13 = vmax.f32 %v2875_v2, 1.5 }
 0x30b   : > { %3235 = vmatprep.mubr.f32.mxu0 %v9958_v0  ;;  %3762 = vmatprep.mubr.f32.mxu1 %v9958_v0  ;;  %8294 = vst [vmem:[%s10763_s27 + $0x13a8] sm:$0xff] %v7062_v3  ;;  %8296 = vst [vmem:[%s10763_s27 + $0x13b8] sm:$0xff] %v7064_v4  ;;  %v2352_v14 = vadd.f32 %v2351_v5, %v11918_v28  ;;  %v2879_v15 = vadd.f32 %v2878_v8, %v11922_v29  ;;  %v2353_v18 = vpop.f32.mrf.mxu0  ;;  %v2880_v19 = vpop.f32.mrf.mxu1 }
 0x30c   : > { %8309 = vst [vmem:[%s10763_s27 + $0x1420] sm:$0xff] %v7077_v10  ;;  %8311 = vst [vmem:[%s10763_s27 + $0x1430] sm:$0xff] %v7079_v11  ;;  %v7078_v20 = vmin.f32 %v5846_v12, 1.7  ;;  %v7080_v21 = vmin.f32 %v5848_v13, 1.7  ;;  %v2354_v22 = vadd.f32 %v2353_v18, %v11943_v47  ;;  %v2881_v23 = vadd.f32 %v2880_v19, %v11947_v62 }
 0x30d   : > { %v5861_v24 = vmax.f32 %v2352_v14, 1.5  ;;  %v5863_v25 = vmax.f32 %v2879_v15, 1.5  ;;  %v2357_v26 = vpop.f32.mrf.mxu0  ;;  %v2884_v27 = vpop.f32.mrf.mxu1  ;;  %v9756_v10 = vld [vmem:[%s15190_s0 + $0x78] sm:$0xff] }
 0x30e   : > { %9318 = vmatmul.mubr.msk.f32.gmra.mxu0 %vm753_vm0, %v9754_v30  ;;  %9395 = vmatmul.mubr.msk.f32.gmra.mxu1 %vm753_vm0, %v9754_v30  ;;  %8310 = vst [vmem:[%s10763_s27 + $0x1428] sm:$0xff] %v7078_v20  ;;  %8312 = vst [vmem:[%s10763_s27 + $0x1438] sm:$0xff] %v7080_v21  ;;  %v5862_v31 = vmax.f32 %v2354_v22, 1.5  ;;  %v5864_v32 = vmax.f32 %v2881_v23, 1.5  ;;  %v2358_v33 = vadd.f32 %v2357_v26, %v11918_v28 }
 0x30f   : > { %v2885_v34 = vadd.f32 %v2884_v27, %v11922_v29  ;;  %3241 = vmatprep.mubr.f32.mxu0 %v9958_v0  ;;  %3768 = vmatprep.mubr.f32.mxu1 %v9958_v0  ;;  %v7093_v35 = vmin.f32 %v5861_v24, 1.7  ;;  %v7095_v36 = vmin.f32 %v5863_v25, 1.7  ;;  %v2359_v37 = vpop.f32.mrf.mxu0  ;;  %v2886_v38 = vpop.f32.mrf.mxu1 }
 0x310   : > { %v7094_v39 = vmin.f32 %v5862_v31, 1.7  ;;  %v7096_v40 = vmin.f32 %v5864_v32, 1.7  ;;  %v5877_v41 = vmax.f32 %v2358_v33, 1.5  ;;  %v2360_v43 = vadd.f32 %v2359_v37, %v11943_v47  ;;  %v9757_v31 = vld [vmem:[%s15190_s0 + $0x80] sm:$0xff] }
 0x311   : > { %v5879_v42 = vmax.f32 %v2885_v34, 1.5  ;;  %8325 = vst [vmem:[%s10763_s27 + $0x14a0] sm:$0xff] %v7093_v35  ;;  %8327 = vst [vmem:[%s10763_s27 + $0x14b0] sm:$0xff] %v7095_v36  ;;  %v2887_v44 = vadd.f32 %v2886_v38, %v11947_v62  ;;  %v2363_v45 = vpop.f32.mrf.mxu0  ;;  %v2890_v46 = vpop.f32.mrf.mxu1 }
 0x312   : > { %9319 = vmatmul.mubr.msk.f32.gmra.mxu0 %vm753_vm0, %v9755_v59  ;;  %9396 = vmatmul.mubr.msk.f32.gmra.mxu1 %vm753_vm0, %v9755_v59  ;;  %8326 = vst [vmem:[%s10763_s27 + $0x14a8] sm:$0xff] %v7094_v39  ;;  %8328 = vst [vmem:[%s10763_s27 + $0x14b8] sm:$0xff] %v7096_v40  ;;  %v7109_v61 = vmin.f32 %v5877_v41, 1.7  ;;  %v2364_v48 = vadd.f32 %v2363_v45, %v11918_v28  ;;  %v2891_v49 = vadd.f32 %v2890_v46, %v11922_v29 }
 0x313   : > { %v7111_v63 = vmin.f32 %v5879_v42, 1.7  ;;  %3247 = vmatprep.mubr.f32.mxu0 %v9958_v0  ;;  %3774 = vmatprep.mubr.f32.mxu1 %v9958_v0  ;;  %v5878_v51 = vmax.f32 %v2360_v43, 1.5  ;;  %v5880_v54 = vmax.f32 %v2887_v44, 1.5  ;;  %v2365_v57 = vpop.f32.mrf.mxu0  ;;  %v2892_v58 = vpop.f32.mrf.mxu1 }
 0x314   : > { %8341 = vst [vmem:[%s10763_s27 + $0x1520] sm:$0xff] %v7109_v61  ;;  %v5893_v60 = vmax.f32 %v2364_v48, 1.5  ;;  %v5895_v1 = vmax.f32 %v2891_v49, 1.5  ;;  %v2366_v2 = vadd.f32 %v2365_v57, %v11943_v47  ;;  %v2893_v3 = vadd.f32 %v2892_v58, %v11947_v62  ;;  %v9758_v61 = vld [vmem:[%s15190_s0 + $0x88] sm:$0xff] }
 0x315   : > { %8343 = vst [vmem:[%s10763_s27 + $0x1530] sm:$0xff] %v7111_v63  ;;  %v7110_v4 = vmin.f32 %v5878_v51, 1.7  ;;  %v7112_v5 = vmin.f32 %v5880_v54, 1.7  ;;  %v2369_v8 = vpop.f32.mrf.mxu0  ;;  %v2896_v9 = vpop.f32.mrf.mxu1 }
 0x316   : > { %9320 = vmatmul.mubr.msk.f32.gmra.mxu0 %vm753_vm0, %v9756_v10  ;;  %9397 = vmatmul.mubr.msk.f32.gmra.mxu1 %vm753_vm0, %v9756_v10  ;;  %v7125_v11 = vmin.f32 %v5893_v60, 1.7  ;;  %v7127_v12 = vmin.f32 %v5895_v1, 1.7  ;;  %v5894_v13 = vmax.f32 %v2366_v2, 1.5  ;;  %v5896_v14 = vmax.f32 %v2893_v3, 1.5 }
 0x317   : > { %3253 = vmatprep.mubr.f32.mxu0 %v9958_v0  ;;  %3780 = vmatprep.mubr.f32.mxu1 %v9958_v0  ;;  %8342 = vst [vmem:[%s10763_s27 + $0x1528] sm:$0xff] %v7110_v4  ;;  %8344 = vst [vmem:[%s10763_s27 + $0x1538] sm:$0xff] %v7112_v5  ;;  %v2370_v15 = vadd.f32 %v2369_v8, %v11918_v28  ;;  %v2897_v18 = vadd.f32 %v2896_v9, %v11922_v29  ;;  %v2371_v19 = vpop.f32.mrf.mxu0  ;;  %v2898_v20 = vpop.f32.mrf.mxu1 }
 0x318   : > { %8357 = vst [vmem:[%s10763_s27 + $0x15a0] sm:$0xff] %v7125_v11  ;;  %8359 = vst [vmem:[%s10763_s27 + $0x15b0] sm:$0xff] %v7127_v12  ;;  %v7126_v21 = vmin.f32 %v5894_v13, 1.7  ;;  %v7128_v22 = vmin.f32 %v5896_v14, 1.7  ;;  %v2372_v23 = vadd.f32 %v2371_v19, %v11943_v47  ;;  %v2899_v24 = vadd.f32 %v2898_v20, %v11947_v62 }
 0x319   : > { %v5909_v25 = vmax.f32 %v2370_v15, 1.5  ;;  %v5911_v26 = vmax.f32 %v2897_v18, 1.5  ;;  %v2375_v27 = vpop.f32.mrf.mxu0  ;;  %v2902_v30 = vpop.f32.mrf.mxu1  ;;  %v9759_v11 = vld [vmem:[%s15190_s0 + $0x90] sm:$0xff]  ;;  %v586_v12 = vld [vmem:[%s10304_s6 + $0x168] sm:$0xff]  ;;  %v588_v13 = vld [vmem:[%s10304_s6 + $0x178] sm:$0xff] }
 0x31a   : > { %9321 = vmatmul.mubr.msk.f32.gmra.mxu0 %vm753_vm0, %v9757_v31  ;;  %9398 = vmatmul.mubr.msk.f32.gmra.mxu1 %vm753_vm0, %v9757_v31  ;;  %8358 = vst [vmem:[%s10763_s27 + $0x15a8] sm:$0xff] %v7126_v21  ;;  %8360 = vst [vmem:[%s10763_s27 + $0x15b8] sm:$0xff] %v7128_v22  ;;  %v5910_v32 = vmax.f32 %v2372_v23, 1.5  ;;  %v5912_v33 = vmax.f32 %v2899_v24, 1.5  ;;  %v2376_v34 = vadd.f32 %v2375_v27, %v11918_v28  ;;  %v585_v24 = vld [vmem:[%s10304_s6 + $0x160] sm:$0xff] }
 0x31b   : > { %v2903_v35 = vadd.f32 %v2902_v30, %v11922_v29  ;;  %3259 = vmatprep.mubr.f32.mxu0 %v9958_v0  ;;  %3786 = vmatprep.mubr.f32.mxu1 %v9958_v0  ;;  %v7141_v36 = vmin.f32 %v5909_v25, 1.7  ;;  %v7143_v37 = vmin.f32 %v5911_v26, 1.7  ;;  %v2377_v38 = vpop.f32.mrf.mxu0  ;;  %v2904_v39 = vpop.f32.mrf.mxu1  ;;  %v587_v25 = vld [vmem:[%s10304_s6 + $0x170] sm:$0xff] }
 0x31c   : > { %v7142_v40 = vmin.f32 %v5910_v32, 1.7  ;;  %v7144_v41 = vmin.f32 %v5912_v33, 1.7  ;;  %v5925_v42 = vmax.f32 %v2376_v34, 1.5  ;;  %v2378_v44 = vadd.f32 %v2377_v38, %v11943_v47  ;;  %4173 = vmatprep.subr.mxu0 %v586_v12  ;;  %4700 = vmatprep.subr.mxu1 %v588_v13 }
 0x31d   : > { %v5927_v43 = vmax.f32 %v2903_v35, 1.5  ;;  %8373 = vst [vmem:[%s10763_s27 + $0x1620] sm:$0xff] %v7141_v36  ;;  %8375 = vst [vmem:[%s10763_s27 + $0x1630] sm:$0xff] %v7143_v37  ;;  %v2905_v45 = vadd.f32 %v2904_v39, %v11947_v62  ;;  %v2381_v46 = vpop.f32.mrf.mxu0  ;;  %v2908_v59 = vpop.f32.mrf.mxu1  ;;  %4174 = vmatpush1.msra.mxu0 %v585_v24  ;;  %4701 = vmatpush1.msra.mxu1 %v587_v25  ;;  %v9760_v36 = vld [vmem:[%s15190_s0 + $0x98] sm:$0xff] }
 0x31e   : > { %9322 = vmatmul.mubr.msk.f32.gmra.mxu0 %vm753_vm0, %v9758_v61  ;;  %9399 = vmatmul.mubr.msk.f32.gmra.mxu1 %vm753_vm0, %v9758_v61  ;;  %8374 = vst [vmem:[%s10763_s27 + $0x1628] sm:$0xff] %v7142_v40  ;;  %8376 = vst [vmem:[%s10763_s27 + $0x1638] sm:$0xff] %v7144_v41  ;;  %v7157_v63 = vmin.f32 %v5925_v42, 1.7  ;;  %v2382_v49 = vadd.f32 %v2381_v46, %v11918_v28  ;;  %v2909_v51 = vadd.f32 %v2908_v59, %v11922_v29 }
 0x31f   : > { %v7159_v48 = vmin.f32 %v5927_v43, 1.7  ;;  %3265 = vmatprep.mubr.f32.mxu0 %v9958_v0  ;;  %3792 = vmatprep.mubr.f32.mxu1 %v9958_v0  ;;  %v5926_v54 = vmax.f32 %v2378_v44, 1.5  ;;  %v5928_v57 = vmax.f32 %v2905_v45, 1.5  ;;  %v2383_v58 = vpop.f32.mrf.mxu0  ;;  %v2910_v60 = vpop.f32.mrf.mxu1 }
 0x320   : > { %8389 = vst [vmem:[%s10763_s27 + $0x16a0] sm:$0xff] %v7157_v63  ;;  %v5941_v1 = vmax.f32 %v2382_v49, 1.5  ;;  %v5943_v2 = vmax.f32 %v2909_v51, 1.5  ;;  %v2384_v3 = vadd.f32 %v2383_v58, %v11943_v47  ;;  %v2911_v4 = vadd.f32 %v2910_v60, %v11947_v62 }
 0x321   : > { %8391 = vst [vmem:[%s10763_s27 + $0x16b0] sm:$0xff] %v7159_v48  ;;  %v7158_v5 = vmin.f32 %v5926_v54, 1.7  ;;  %v7160_v8 = vmin.f32 %v5928_v57, 1.7  ;;  %v2387_v9 = vpop.f32.mrf.mxu0  ;;  %v2914_v10 = vpop.f32.mrf.mxu1  ;;  %v9761_v54 = vld [vmem:[%s15190_s0 + $0xa0] sm:$0xff] }
 0x322   : > { %9323 = vmatmul.mubr.msk.f32.gmra.mxu0 %vm753_vm0, %v9759_v11  ;;  %9400 = vmatmul.mubr.msk.f32.gmra.mxu1 %vm753_vm0, %v9759_v11  ;;  %v7173_v14 = vmin.f32 %v5941_v1, 1.7  ;;  %v7175_v15 = vmin.f32 %v5943_v2, 1.7  ;;  %v5942_v18 = vmax.f32 %v2384_v3, 1.5  ;;  %v5944_v19 = vmax.f32 %v2911_v4, 1.5 }
 0x323   : > { %3271 = vmatprep.mubr.f32.mxu0 %v9958_v0  ;;  %3798 = vmatprep.mubr.f32.mxu1 %v9958_v0  ;;  %8390 = vst [vmem:[%s10763_s27 + $0x16a8] sm:$0xff] %v7158_v5  ;;  %8392 = vst [vmem:[%s10763_s27 + $0x16b8] sm:$0xff] %v7160_v8  ;;  %v2388_v20 = vadd.f32 %v2387_v9, %v11918_v28  ;;  %v2915_v21 = vadd.f32 %v2914_v10, %v11922_v29  ;;  %v2389_v22 = vpop.f32.mrf.mxu0  ;;  %v2916_v23 = vpop.f32.mrf.mxu1 }
 0x324   : > { %8405 = vst [vmem:[%s10763_s27 + $0x1720] sm:$0xff] %v7173_v14  ;;  %8407 = vst [vmem:[%s10763_s27 + $0x1730] sm:$0xff] %v7175_v15  ;;  %v7174_v26 = vmin.f32 %v5942_v18, 1.7  ;;  %v7176_v27 = vmin.f32 %v5944_v19, 1.7  ;;  %v2390_v30 = vadd.f32 %v2389_v22, %v11943_v47  ;;  %v2917_v31 = vadd.f32 %v2916_v23, %v11947_v62 }
 0x325   : > { %v5957_v32 = vmax.f32 %v2388_v20, 1.5  ;;  %v5959_v33 = vmax.f32 %v2915_v21, 1.5  ;;  %v2393_v34 = vpop.f32.mrf.mxu0  ;;  %v2920_v35 = vpop.f32.mrf.mxu1  ;;  %v9762_v18 = vld [vmem:[%s15190_s0 + $0xa8] sm:$0xff] }
 0x326   : > { %9324 = vmatmul.mubr.msk.f32.gmra.mxu0 %vm753_vm0, %v9760_v36  ;;  %9401 = vmatmul.mubr.msk.f32.gmra.mxu1 %vm753_vm0, %v9760_v36  ;;  %8406 = vst [vmem:[%s10763_s27 + $0x1728] sm:$0xff] %v7174_v26  ;;  %8408 = vst [vmem:[%s10763_s27 + $0x1738] sm:$0xff] %v7176_v27  ;;  %v5958_v37 = vmax.f32 %v2390_v30, 1.5  ;;  %v5960_v38 = vmax.f32 %v2917_v31, 1.5  ;;  %v2394_v39 = vadd.f32 %v2393_v34, %v11918_v28 }
 0x327   : > { %v2921_v40 = vadd.f32 %v2920_v35, %v11922_v29  ;;  %3277 = vmatprep.mubr.f32.mxu0 %v9958_v0  ;;  %3804 = vmatprep.mubr.f32.mxu1 %v9958_v0  ;;  %v7189_v41 = vmin.f32 %v5957_v32, 1.7  ;;  %v7191_v42 = vmin.f32 %v5959_v33, 1.7  ;;  %v2395_v43 = vpop.f32.mrf.mxu0  ;;  %v2922_v44 = vpop.f32.mrf.mxu1 }
 0x328   : > { %v7190_v45 = vmin.f32 %v5958_v37, 1.7  ;;  %v7192_v46 = vmin.f32 %v5960_v38, 1.7  ;;  %v5973_v59 = vmax.f32 %v2394_v39, 1.5  ;;  %v2396_v63 = vadd.f32 %v2395_v43, %v11943_v47  ;;  %v9763_v37 = vld [vmem:[%s15190_s0 + $0xb0] sm:$0xff] }
 0x329   : > { %v5975_v61 = vmax.f32 %v2921_v40, 1.5  ;;  %8421 = vst [vmem:[%s10763_s27 + $0x17a0] sm:$0xff] %v7189_v41  ;;  %8423 = vst [vmem:[%s10763_s27 + $0x17b0] sm:$0xff] %v7191_v42  ;;  %v2923_v48 = vadd.f32 %v2922_v44, %v11947_v62  ;;  %v2399_v49 = vpop.f32.mrf.mxu0  ;;  %v2926_v51 = vpop.f32.mrf.mxu1 }
 0x32a   : > { %9325 = vmatmul.mubr.msk.f32.gmra.mxu0 %vm753_vm0, %v9761_v54  ;;  %9402 = vmatmul.mubr.msk.f32.gmra.mxu1 %vm753_vm0, %v9761_v54  ;;  %8422 = vst [vmem:[%s10763_s27 + $0x17a8] sm:$0xff] %v7190_v45  ;;  %8424 = vst [vmem:[%s10763_s27 + $0x17b8] sm:$0xff] %v7192_v46  ;;  %v7205_v57 = vmin.f32 %v5973_v59, 1.7  ;;  %v2400_v60 = vadd.f32 %v2399_v49, %v11918_v28  ;;  %v2927_v1 = vadd.f32 %v2926_v51, %v11922_v29 }
 0x32b   : > { %v7207_v58 = vmin.f32 %v5975_v61, 1.7  ;;  %3283 = vmatprep.mubr.f32.mxu0 %v9958_v0  ;;  %3810 = vmatprep.mubr.f32.mxu1 %v9958_v0  ;;  %v5974_v2 = vmax.f32 %v2396_v63, 1.5  ;;  %v5976_v3 = vmax.f32 %v2923_v48, 1.5  ;;  %v2401_v4 = vpop.f32.mrf.mxu0  ;;  %v2928_v5 = vpop.f32.mrf.mxu1 }
 0x32c   : > { %8437 = vst [vmem:[%s10763_s27 + $0x1820] sm:$0xff] %v7205_v57  ;;  %v5989_v8 = vmax.f32 %v2400_v60, 1.5  ;;  %v5991_v9 = vmax.f32 %v2927_v1, 1.5  ;;  %v2402_v10 = vadd.f32 %v2401_v4, %v11943_v47  ;;  %v2929_v11 = vadd.f32 %v2928_v5, %v11947_v62  ;;  %v9764_v57 = vld [vmem:[%s15190_s0 + $0xb8] sm:$0xff] }
 0x32d   : > { %8439 = vst [vmem:[%s10763_s27 + $0x1830] sm:$0xff] %v7207_v58  ;;  %v7206_v12 = vmin.f32 %v5974_v2, 1.7  ;;  %v7208_v13 = vmin.f32 %v5976_v3, 1.7  ;;  %v2405_v14 = vpop.f32.mrf.mxu0  ;;  %v2932_v15 = vpop.f32.mrf.mxu1 }
 0x32e   : > { %9326 = vmatmul.mubr.msk.f32.gmra.mxu0 %vm753_vm0, %v9762_v18  ;;  %9403 = vmatmul.mubr.msk.f32.gmra.mxu1 %vm753_vm0, %v9762_v18  ;;  %v7221_v19 = vmin.f32 %v5989_v8, 1.7  ;;  %v7223_v20 = vmin.f32 %v5991_v9, 1.7  ;;  %v5990_v21 = vmax.f32 %v2402_v10, 1.5  ;;  %v5992_v22 = vmax.f32 %v2929_v11, 1.5 }
 0x32f   : > { %3289 = vmatprep.mubr.f32.mxu0 %v9958_v0  ;;  %3816 = vmatprep.mubr.f32.mxu1 %v9958_v0  ;;  %8438 = vst [vmem:[%s10763_s27 + $0x1828] sm:$0xff] %v7206_v12  ;;  %8440 = vst [vmem:[%s10763_s27 + $0x1838] sm:$0xff] %v7208_v13  ;;  %v2406_v23 = vadd.f32 %v2405_v14, %v11918_v28  ;;  %v2933_v24 = vadd.f32 %v2932_v15, %v11922_v29  ;;  %v2407_v25 = vpop.f32.mrf.mxu0  ;;  %v2934_v26 = vpop.f32.mrf.mxu1 }
 0x330   : > { %8453 = vst [vmem:[%s10763_s27 + $0x18a0] sm:$0xff] %v7221_v19  ;;  %8455 = vst [vmem:[%s10763_s27 + $0x18b0] sm:$0xff] %v7223_v20  ;;  %v7222_v27 = vmin.f32 %v5990_v21, 1.7  ;;  %v7224_v30 = vmin.f32 %v5992_v22, 1.7  ;;  %v2408_v31 = vadd.f32 %v2407_v25, %v11943_v47  ;;  %v2935_v32 = vadd.f32 %v2934_v26, %v11947_v62 }
 0x331   : > { %v6005_v33 = vmax.f32 %v2406_v23, 1.5  ;;  %v6007_v34 = vmax.f32 %v2933_v24, 1.5  ;;  %v2411_v35 = vpop.f32.mrf.mxu0  ;;  %v2938_v36 = vpop.f32.mrf.mxu1  ;;  %v9765_v19 = vld [vmem:[%s15190_s0 + $0xc0] sm:$0xff] }
 0x332   : > { %9327 = vmatmul.mubr.msk.f32.gmra.mxu0 %vm753_vm0, %v9763_v37  ;;  %9404 = vmatmul.mubr.msk.f32.gmra.mxu1 %vm753_vm0, %v9763_v37  ;;  %8454 = vst [vmem:[%s10763_s27 + $0x18a8] sm:$0xff] %v7222_v27  ;;  %8456 = vst [vmem:[%s10763_s27 + $0x18b8] sm:$0xff] %v7224_v30  ;;  %v6006_v38 = vmax.f32 %v2408_v31, 1.5  ;;  %v6008_v39 = vmax.f32 %v2935_v32, 1.5  ;;  %v2412_v40 = vadd.f32 %v2411_v35, %v11918_v28 }
 0x333   : > { %v2939_v41 = vadd.f32 %v2938_v36, %v11922_v29  ;;  %3295 = vmatprep.mubr.f32.mxu0 %v9958_v0  ;;  %3822 = vmatprep.mubr.f32.mxu1 %v9958_v0  ;;  %v7237_v42 = vmin.f32 %v6005_v33, 1.7  ;;  %v7239_v43 = vmin.f32 %v6007_v34, 1.7  ;;  %v2413_v44 = vpop.f32.mrf.mxu0  ;;  %v2940_v45 = vpop.f32.mrf.mxu1 }
 0x334   : > { %v7238_v46 = vmin.f32 %v6006_v38, 1.7  ;;  %v7240_v59 = vmin.f32 %v6008_v39, 1.7  ;;  %v6021_v61 = vmax.f32 %v2412_v40, 1.5  ;;  %v2414_v48 = vadd.f32 %v2413_v44, %v11943_v47  ;;  %v9766_v38 = vld [vmem:[%s15190_s0 + $0xc8] sm:$0xff] }
 0x335   : > { %v6023_v63 = vmax.f32 %v2939_v41, 1.5  ;;  %8469 = vst [vmem:[%s10763_s27 + $0x1920] sm:$0xff] %v7237_v42  ;;  %8471 = vst [vmem:[%s10763_s27 + $0x1930] sm:$0xff] %v7239_v43  ;;  %v2941_v49 = vadd.f32 %v2940_v45, %v11947_v62  ;;  %v2417_v51 = vpop.f32.mrf.mxu0  ;;  %v2944_v54 = vpop.f32.mrf.mxu1 }
 0x336   : > { %9328 = vmatmul.mubr.msk.f32.gmra.mxu0 %vm753_vm0, %v9764_v57  ;;  %9405 = vmatmul.mubr.msk.f32.gmra.mxu1 %vm753_vm0, %v9764_v57  ;;  %8470 = vst [vmem:[%s10763_s27 + $0x1928] sm:$0xff] %v7238_v46  ;;  %8472 = vst [vmem:[%s10763_s27 + $0x1938] sm:$0xff] %v7240_v59  ;;  %v7253_v58 = vmin.f32 %v6021_v61, 1.7  ;;  %v2418_v1 = vadd.f32 %v2417_v51, %v11918_v28  ;;  %v2945_v2 = vadd.f32 %v2944_v54, %v11922_v29 }
 0x337   : > { %v7255_v60 = vmin.f32 %v6023_v63, 1.7  ;;  %3301 = vmatprep.mubr.f32.mxu0 %v9958_v0  ;;  %3828 = vmatprep.mubr.f32.mxu1 %v9958_v0  ;;  %v6022_v3 = vmax.f32 %v2414_v48, 1.5  ;;  %v6024_v4 = vmax.f32 %v2941_v49, 1.5  ;;  %v2419_v5 = vpop.f32.mrf.mxu0  ;;  %v2946_v8 = vpop.f32.mrf.mxu1 }
 0x338   : > { %8485 = vst [vmem:[%s10763_s27 + $0x19a0] sm:$0xff] %v7253_v58  ;;  %v6037_v9 = vmax.f32 %v2418_v1, 1.5  ;;  %v6039_v10 = vmax.f32 %v2945_v2, 1.5  ;;  %v2420_v11 = vadd.f32 %v2419_v5, %v11943_v47  ;;  %v2947_v12 = vadd.f32 %v2946_v8, %v11947_v62  ;;  %v9767_v58 = vld [vmem:[%s15190_s0 + $0xd0] sm:$0xff] }
 0x339   : > { %8487 = vst [vmem:[%s10763_s27 + $0x19b0] sm:$0xff] %v7255_v60  ;;  %v7254_v13 = vmin.f32 %v6022_v3, 1.7  ;;  %v7256_v14 = vmin.f32 %v6024_v4, 1.7  ;;  %v2423_v15 = vpop.f32.mrf.mxu0  ;;  %v2950_v18 = vpop.f32.mrf.mxu1 }
 0x33a   : > { %9329 = vmatmul.mubr.msk.f32.gmra.mxu0 %vm753_vm0, %v9765_v19  ;;  %9406 = vmatmul.mubr.msk.f32.gmra.mxu1 %vm753_vm0, %v9765_v19  ;;  %v7269_v20 = vmin.f32 %v6037_v9, 1.7  ;;  %v7271_v21 = vmin.f32 %v6039_v10, 1.7  ;;  %v6038_v22 = vmax.f32 %v2420_v11, 1.5  ;;  %v6040_v23 = vmax.f32 %v2947_v12, 1.5 }
 0x33b   : > { %3307 = vmatprep.mubr.f32.mxu0 %v9958_v0  ;;  %3834 = vmatprep.mubr.f32.mxu1 %v9958_v0  ;;  %8486 = vst [vmem:[%s10763_s27 + $0x19a8] sm:$0xff] %v7254_v13  ;;  %8488 = vst [vmem:[%s10763_s27 + $0x19b8] sm:$0xff] %v7256_v14  ;;  %v2424_v24 = vadd.f32 %v2423_v15, %v11918_v28  ;;  %v2951_v25 = vadd.f32 %v2950_v18, %v11922_v29  ;;  %v2425_v26 = vpop.f32.mrf.mxu0  ;;  %v2952_v27 = vpop.f32.mrf.mxu1 }
 0x33c   : > { %8501 = vst [vmem:[%s10763_s27 + $0x1a20] sm:$0xff] %v7269_v20  ;;  %8503 = vst [vmem:[%s10763_s27 + $0x1a30] sm:$0xff] %v7271_v21  ;;  %v7270_v30 = vmin.f32 %v6038_v22, 1.7  ;;  %v7272_v31 = vmin.f32 %v6040_v23, 1.7  ;;  %v2426_v32 = vadd.f32 %v2425_v26, %v11943_v47  ;;  %v2953_v33 = vadd.f32 %v2952_v27, %v11947_v62 }
 0x33d   : > { %v6053_v34 = vmax.f32 %v2424_v24, 1.5  ;;  %v6055_v35 = vmax.f32 %v2951_v25, 1.5  ;;  %v2429_v36 = vpop.f32.mrf.mxu0  ;;  %v2956_v37 = vpop.f32.mrf.mxu1  ;;  %v9768_v20 = vld [vmem:[%s15190_s0 + $0xd8] sm:$0xff] }
 0x33e   : > { %9330 = vmatmul.mubr.msk.f32.gmra.mxu0 %vm753_vm0, %v9766_v38  ;;  %9407 = vmatmul.mubr.msk.f32.gmra.mxu1 %vm753_vm0, %v9766_v38  ;;  %8502 = vst [vmem:[%s10763_s27 + $0x1a28] sm:$0xff] %v7270_v30  ;;  %8504 = vst [vmem:[%s10763_s27 + $0x1a38] sm:$0xff] %v7272_v31  ;;  %v6054_v39 = vmax.f32 %v2426_v32, 1.5  ;;  %v6056_v40 = vmax.f32 %v2953_v33, 1.5  ;;  %v2430_v41 = vadd.f32 %v2429_v36, %v11918_v28  ;;  %v570_v31 = vld [vmem:[%s10304_s6 + $0xe8] sm:$0xff]  ;;  %v572_v32 = vld [vmem:[%s10304_s6 + $0xf8] sm:$0xff] }
 0x33f   : > { %v2957_v42 = vadd.f32 %v2956_v37, %v11922_v29  ;;  %3313 = vmatprep.mubr.f32.mxu0 %v9958_v0  ;;  %3840 = vmatprep.mubr.f32.mxu1 %v9958_v0  ;;  %v7285_v43 = vmin.f32 %v6053_v34, 1.7  ;;  %v7287_v44 = vmin.f32 %v6055_v35, 1.7  ;;  %v2431_v45 = vpop.f32.mrf.mxu0  ;;  %v2958_v46 = vpop.f32.mrf.mxu1  ;;  %v569_v37 = vld [vmem:[%s10304_s6 + $0xe0] sm:$0xff]  ;;  %v571_v38 = vld [vmem:[%s10304_s6 + $0xf0] sm:$0xff] }
 0x340   : > { %v7286_v59 = vmin.f32 %v6054_v39, 1.7  ;;  %v7288_v61 = vmin.f32 %v6056_v40, 1.7  ;;  %v6069_v63 = vmax.f32 %v2430_v41, 1.5  ;;  %v2432_v49 = vadd.f32 %v2431_v45, %v11943_v47  ;;  %4175 = vmatprep.subr.mxu0 %v570_v31  ;;  %4702 = vmatprep.subr.mxu1 %v572_v32 }
 0x341   : > { %v6071_v48 = vmax.f32 %v2957_v42, 1.5  ;;  %8517 = vst [vmem:[%s10763_s27 + $0x1aa0] sm:$0xff] %v7285_v43  ;;  %8519 = vst [vmem:[%s10763_s27 + $0x1ab0] sm:$0xff] %v7287_v44  ;;  %v2959_v51 = vadd.f32 %v2958_v46, %v11947_v62  ;;  %v2435_v54 = vpop.f32.mrf.mxu0  ;;  %v2962_v57 = vpop.f32.mrf.mxu1  ;;  %v9769_v43 = vld [vmem:[%s15190_s0 + $0xe0] sm:$0xff]  ;;  %4176 = vmatpush1.msra.mxu0 %v569_v37  ;;  %4703 = vmatpush1.msra.mxu1 %v571_v38 }
 0x342   : > { %9331 = vmatmul.mubr.msk.f32.gmra.mxu0 %vm753_vm0, %v9767_v58  ;;  %9408 = vmatmul.mubr.msk.f32.gmra.mxu1 %vm753_vm0, %v9767_v58  ;;  %8518 = vst [vmem:[%s10763_s27 + $0x1aa8] sm:$0xff] %v7286_v59  ;;  %8520 = vst [vmem:[%s10763_s27 + $0x1ab8] sm:$0xff] %v7288_v61  ;;  %v7301_v60 = vmin.f32 %v6069_v63, 1.7  ;;  %v2436_v2 = vadd.f32 %v2435_v54, %v11918_v28  ;;  %v2963_v3 = vadd.f32 %v2962_v57, %v11922_v29 }
 0x343   : > { %v7303_v1 = vmin.f32 %v6071_v48, 1.7  ;;  %3319 = vmatprep.mubr.f32.mxu0 %v9958_v0  ;;  %3846 = vmatprep.mubr.f32.mxu1 %v9958_v0  ;;  %v6070_v4 = vmax.f32 %v2432_v49, 1.5  ;;  %v6072_v5 = vmax.f32 %v2959_v51, 1.5  ;;  %v2437_v8 = vpop.f32.mrf.mxu0  ;;  %v2964_v9 = vpop.f32.mrf.mxu1 }
 0x344   : > { %8533 = vst [vmem:[%s10763_s27 + $0x1b20] sm:$0xff] %v7301_v60  ;;  %v6085_v10 = vmax.f32 %v2436_v2, 1.5  ;;  %v6087_v11 = vmax.f32 %v2963_v3, 1.5  ;;  %v2438_v12 = vadd.f32 %v2437_v8, %v11943_v47  ;;  %v2965_v13 = vadd.f32 %v2964_v9, %v11947_v62 }
 0x345   : > { %8535 = vst [vmem:[%s10763_s27 + $0x1b30] sm:$0xff] %v7303_v1  ;;  %v7302_v14 = vmin.f32 %v6070_v4, 1.7  ;;  %v7304_v15 = vmin.f32 %v6072_v5, 1.7  ;;  %v2441_v18 = vpop.f32.mrf.mxu0  ;;  %v2968_v19 = vpop.f32.mrf.mxu1  ;;  %v9770_v4 = vld [vmem:[%s15190_s0 + $0xe8] sm:$0xff] }
 0x346   : > { %9332 = vmatmul.mubr.msk.f32.gmra.mxu0 %vm753_vm0, %v9768_v20  ;;  %9409 = vmatmul.mubr.msk.f32.gmra.mxu1 %vm753_vm0, %v9768_v20  ;;  %v7317_v21 = vmin.f32 %v6085_v10, 1.7  ;;  %v7319_v22 = vmin.f32 %v6087_v11, 1.7  ;;  %v6086_v23 = vmax.f32 %v2438_v12, 1.5  ;;  %v6088_v24 = vmax.f32 %v2965_v13, 1.5 }
 0x347   : > { %3325 = vmatprep.mubr.f32.mxu0 %v9958_v0  ;;  %3852 = vmatprep.mubr.f32.mxu1 %v9958_v0  ;;  %8534 = vst [vmem:[%s10763_s27 + $0x1b28] sm:$0xff] %v7302_v14  ;;  %8536 = vst [vmem:[%s10763_s27 + $0x1b38] sm:$0xff] %v7304_v15  ;;  %v2442_v25 = vadd.f32 %v2441_v18, %v11918_v28  ;;  %v2969_v26 = vadd.f32 %v2968_v19, %v11922_v29  ;;  %v2443_v27 = vpop.f32.mrf.mxu0  ;;  %v2970_v30 = vpop.f32.mrf.mxu1 }
 0x348   : > { %8549 = vst [vmem:[%s10763_s27 + $0x1ba0] sm:$0xff] %v7317_v21  ;;  %8551 = vst [vmem:[%s10763_s27 + $0x1bb0] sm:$0xff] %v7319_v22  ;;  %v7318_v33 = vmin.f32 %v6086_v23, 1.7  ;;  %v7320_v34 = vmin.f32 %v6088_v24, 1.7  ;;  %v2444_v35 = vadd.f32 %v2443_v27, %v11943_v47  ;;  %v2971_v36 = vadd.f32 %v2970_v30, %v11947_v62 }
 0x349   : > { %v6101_v39 = vmax.f32 %v2442_v25, 1.5  ;;  %v6103_v40 = vmax.f32 %v2969_v26, 1.5  ;;  %v2447_v41 = vpop.f32.mrf.mxu0  ;;  %v2974_v42 = vpop.f32.mrf.mxu1  ;;  %v9771_v25 = vld [vmem:[%s15190_s0 + $0xf0] sm:$0xff] }
 0x34a   : > { %9333 = vmatmul.mubr.msk.f32.gmra.mxu0 %vm753_vm0, %v9769_v43  ;;  %9410 = vmatmul.mubr.msk.f32.gmra.mxu1 %vm753_vm0, %v9769_v43  ;;  %8550 = vst [vmem:[%s10763_s27 + $0x1ba8] sm:$0xff] %v7318_v33  ;;  %8552 = vst [vmem:[%s10763_s27 + $0x1bb8] sm:$0xff] %v7320_v34  ;;  %v6102_v44 = vmax.f32 %v2444_v35, 1.5  ;;  %v6104_v45 = vmax.f32 %v2971_v36, 1.5  ;;  %v2448_v46 = vadd.f32 %v2447_v41, %v11918_v28 }
 0x34b   : > { %v2975_v59 = vadd.f32 %v2974_v42, %v11922_v29  ;;  %3331 = vmatprep.mubr.f32.mxu0 %v9958_v0  ;;  %3858 = vmatprep.mubr.f32.mxu1 %v9958_v0  ;;  %v7333_v61 = vmin.f32 %v6101_v39, 1.7  ;;  %v7335_v63 = vmin.f32 %v6103_v40, 1.7  ;;  %v2449_v48 = vpop.f32.mrf.mxu0  ;;  %v2976_v49 = vpop.f32.mrf.mxu1 }
 0x34c   : > { %v7334_v51 = vmin.f32 %v6102_v44, 1.7  ;;  %v7336_v54 = vmin.f32 %v6104_v45, 1.7  ;;  %v6117_v57 = vmax.f32 %v2448_v46, 1.5  ;;  %v2450_v60 = vadd.f32 %v2449_v48, %v11943_v47  ;;  %v9772_v44 = vld [vmem:[%s15190_s0 + $0xf8] sm:$0xff] }
 0x34d   : > { %v6119_v58 = vmax.f32 %v2975_v59, 1.5  ;;  %8565 = vst [vmem:[%s10763_s27 + $0x1c20] sm:$0xff] %v7333_v61  ;;  %8567 = vst [vmem:[%s10763_s27 + $0x1c30] sm:$0xff] %v7335_v63  ;;  %v2977_v1 = vadd.f32 %v2976_v49, %v11947_v62  ;;  %v2453_v2 = vpop.f32.mrf.mxu0  ;;  %v2980_v3 = vpop.f32.mrf.mxu1 }
 0x34e   : > { %9334 = vmatmul.mubr.msk.f32.gmra.mxu0 %vm753_vm0, %v9770_v4  ;;  %9411 = vmatmul.mubr.msk.f32.gmra.mxu1 %vm753_vm0, %v9770_v4  ;;  %8566 = vst [vmem:[%s10763_s27 + $0x1c28] sm:$0xff] %v7334_v51  ;;  %8568 = vst [vmem:[%s10763_s27 + $0x1c38] sm:$0xff] %v7336_v54  ;;  %v7349_v5 = vmin.f32 %v6117_v57, 1.7  ;;  %v2454_v9 = vadd.f32 %v2453_v2, %v11918_v28  ;;  %v2981_v10 = vadd.f32 %v2980_v3, %v11922_v29 }
 0x34f   : > { %v7351_v8 = vmin.f32 %v6119_v58, 1.7  ;;  %3337 = vmatprep.mubr.f32.mxu0 %v9958_v0  ;;  %3864 = vmatprep.mubr.f32.mxu1 %v9958_v0  ;;  %v6118_v11 = vmax.f32 %v2450_v60, 1.5  ;;  %v6120_v12 = vmax.f32 %v2977_v1, 1.5  ;;  %v2455_v13 = vpop.f32.mrf.mxu0  ;;  %v2982_v14 = vpop.f32.mrf.mxu1 }
 0x350   : > { %8581 = vst [vmem:[%s10763_s27 + $0x1ca0] sm:$0xff] %v7349_v5  ;;  %v6133_v15 = vmax.f32 %v2454_v9, 1.5  ;;  %v6135_v18 = vmax.f32 %v2981_v10, 1.5  ;;  %v2456_v19 = vadd.f32 %v2455_v13, %v11943_v47  ;;  %v2983_v20 = vadd.f32 %v2982_v14, %v11947_v62  ;;  %v9773_v5 = vld [vmem:[%s15190_s0 + $0x100] sm:$0xff] }
 0x351   : > { %8583 = vst [vmem:[%s10763_s27 + $0x1cb0] sm:$0xff] %v7351_v8  ;;  %v7350_v21 = vmin.f32 %v6118_v11, 1.7  ;;  %v7352_v22 = vmin.f32 %v6120_v12, 1.7  ;;  %v2459_v23 = vpop.f32.mrf.mxu0  ;;  %v2986_v24 = vpop.f32.mrf.mxu1 }
 0x352   : > { %9335 = vmatmul.mubr.msk.f32.gmra.mxu0 %vm753_vm0, %v9771_v25  ;;  %9412 = vmatmul.mubr.msk.f32.gmra.mxu1 %vm753_vm0, %v9771_v25  ;;  %v7365_v26 = vmin.f32 %v6133_v15, 1.7  ;;  %v7367_v27 = vmin.f32 %v6135_v18, 1.7  ;;  %v6134_v30 = vmax.f32 %v2456_v19, 1.5  ;;  %v6136_v31 = vmax.f32 %v2983_v20, 1.5 }
 0x353   : > { %3343 = vmatprep.mubr.f32.mxu0 %v9958_v0  ;;  %3870 = vmatprep.mubr.f32.mxu1 %v9958_v0  ;;  %8582 = vst [vmem:[%s10763_s27 + $0x1ca8] sm:$0xff] %v7350_v21  ;;  %8584 = vst [vmem:[%s10763_s27 + $0x1cb8] sm:$0xff] %v7352_v22  ;;  %v2460_v32 = vadd.f32 %v2459_v23, %v11918_v28  ;;  %v2987_v33 = vadd.f32 %v2986_v24, %v11922_v29  ;;  %v2461_v34 = vpop.f32.mrf.mxu0  ;;  %v2988_v35 = vpop.f32.mrf.mxu1 }
 0x354   : > { %8597 = vst [vmem:[%s10763_s27 + $0x1d20] sm:$0xff] %v7365_v26  ;;  %8599 = vst [vmem:[%s10763_s27 + $0x1d30] sm:$0xff] %v7367_v27  ;;  %v7366_v36 = vmin.f32 %v6134_v30, 1.7  ;;  %v7368_v37 = vmin.f32 %v6136_v31, 1.7  ;;  %v2462_v38 = vadd.f32 %v2461_v34, %v11943_v47  ;;  %v2989_v39 = vadd.f32 %v2988_v35, %v11947_v62 }
 0x355   : > { %v6149_v40 = vmax.f32 %v2460_v32, 1.5  ;;  %v6151_v41 = vmax.f32 %v2987_v33, 1.5  ;;  %v2465_v42 = vpop.f32.mrf.mxu0  ;;  %v2992_v43 = vpop.f32.mrf.mxu1  ;;  %v9774_v26 = vld [vmem:[%s15190_s0 + $0x108] sm:$0xff] }
 0x356   : > { %9336 = vmatmul.mubr.msk.f32.gmra.mxu0 %vm753_vm0, %v9772_v44  ;;  %9413 = vmatmul.mubr.msk.f32.gmra.mxu1 %vm753_vm0, %v9772_v44  ;;  %8598 = vst [vmem:[%s10763_s27 + $0x1d28] sm:$0xff] %v7366_v36  ;;  %8600 = vst [vmem:[%s10763_s27 + $0x1d38] sm:$0xff] %v7368_v37  ;;  %v6150_v45 = vmax.f32 %v2462_v38, 1.5  ;;  %v6152_v46 = vmax.f32 %v2989_v39, 1.5  ;;  %v2466_v59 = vadd.f32 %v2465_v42, %v11918_v28 }
 0x357   : > { %v2993_v61 = vadd.f32 %v2992_v43, %v11922_v29  ;;  %3349 = vmatprep.mubr.f32.mxu0 %v9958_v0  ;;  %3876 = vmatprep.mubr.f32.mxu1 %v9958_v0  ;;  %v7381_v63 = vmin.f32 %v6149_v40, 1.7  ;;  %v7383_v48 = vmin.f32 %v6151_v41, 1.7  ;;  %v2467_v49 = vpop.f32.mrf.mxu0  ;;  %v2994_v51 = vpop.f32.mrf.mxu1 }
 0x358   : > { %v7382_v54 = vmin.f32 %v6150_v45, 1.7  ;;  %v7384_v57 = vmin.f32 %v6152_v46, 1.7  ;;  %v6165_v58 = vmax.f32 %v2466_v59, 1.5  ;;  %v2468_v1 = vadd.f32 %v2467_v49, %v11943_v47  ;;  %v9775_v45 = vld [vmem:[%s15190_s0 + $0x110] sm:$0xff] }
 0x359   : > { %v6167_v60 = vmax.f32 %v2993_v61, 1.5  ;;  %8613 = vst [vmem:[%s10763_s27 + $0x1da0] sm:$0xff] %v7381_v63  ;;  %8615 = vst [vmem:[%s10763_s27 + $0x1db0] sm:$0xff] %v7383_v48  ;;  %v2995_v2 = vadd.f32 %v2994_v51, %v11947_v62  ;;  %v2471_v3 = vpop.f32.mrf.mxu0  ;;  %v2998_v4 = vpop.f32.mrf.mxu1 }
 0x35a   : > { %9337 = vmatmul.mubr.msk.f32.gmra.mxu0 %vm753_vm0, %v9773_v5  ;;  %9414 = vmatmul.mubr.msk.f32.gmra.mxu1 %vm753_vm0, %v9773_v5  ;;  %8614 = vst [vmem:[%s10763_s27 + $0x1da8] sm:$0xff] %v7382_v54  ;;  %8616 = vst [vmem:[%s10763_s27 + $0x1db8] sm:$0xff] %v7384_v57  ;;  %v7397_v8 = vmin.f32 %v6165_v58, 1.7  ;;  %v2472_v10 = vadd.f32 %v2471_v3, %v11918_v28  ;;  %v2999_v11 = vadd.f32 %v2998_v4, %v11922_v29 }
 0x35b   : > { %v7399_v9 = vmin.f32 %v6167_v60, 1.7  ;;  %3355 = vmatprep.mubr.f32.mxu0 %v9958_v0  ;;  %3882 = vmatprep.mubr.f32.mxu1 %v9958_v0  ;;  %v6166_v12 = vmax.f32 %v2468_v1, 1.5  ;;  %v6168_v13 = vmax.f32 %v2995_v2, 1.5  ;;  %v2473_v14 = vpop.f32.mrf.mxu0  ;;  %v3000_v15 = vpop.f32.mrf.mxu1 }
 0x35c   : > { %8629 = vst [vmem:[%s10763_s27 + $0x1e20] sm:$0xff] %v7397_v8  ;;  %v6181_v18 = vmax.f32 %v2472_v10, 1.5  ;;  %v6183_v19 = vmax.f32 %v2999_v11, 1.5  ;;  %v2474_v20 = vadd.f32 %v2473_v14, %v11943_v47  ;;  %v3001_v21 = vadd.f32 %v3000_v15, %v11947_v62  ;;  %v9776_v8 = vld [vmem:[%s15190_s0 + $0x118] sm:$0xff] }
 0x35d   : > { %8631 = vst [vmem:[%s10763_s27 + $0x1e30] sm:$0xff] %v7399_v9  ;;  %v7398_v22 = vmin.f32 %v6166_v12, 1.7  ;;  %v7400_v23 = vmin.f32 %v6168_v13, 1.7  ;;  %v2477_v24 = vpop.f32.mrf.mxu0  ;;  %v3004_v25 = vpop.f32.mrf.mxu1 }
 0x35e   : > { %9338 = vmatmul.mubr.msk.f32.gmra.mxu0 %vm753_vm0, %v9774_v26  ;;  %9415 = vmatmul.mubr.msk.f32.gmra.mxu1 %vm753_vm0, %v9774_v26  ;;  %v7413_v27 = vmin.f32 %v6181_v18, 1.7  ;;  %v7415_v30 = vmin.f32 %v6183_v19, 1.7  ;;  %v6182_v31 = vmax.f32 %v2474_v20, 1.5  ;;  %v6184_v32 = vmax.f32 %v3001_v21, 1.5 }
 0x35f   : > { %3361 = vmatprep.mubr.f32.mxu0 %v9958_v0  ;;  %3888 = vmatprep.mubr.f32.mxu1 %v9958_v0  ;;  %8630 = vst [vmem:[%s10763_s27 + $0x1e28] sm:$0xff] %v7398_v22  ;;  %8632 = vst [vmem:[%s10763_s27 + $0x1e38] sm:$0xff] %v7400_v23  ;;  %v2478_v33 = vadd.f32 %v2477_v24, %v11918_v28  ;;  %v3005_v34 = vadd.f32 %v3004_v25, %v11922_v29  ;;  %v2479_v35 = vpop.f32.mrf.mxu0  ;;  %v3006_v36 = vpop.f32.mrf.mxu1 }
 0x360   : > { %8645 = vst [vmem:[%s10763_s27 + $0x1ea0] sm:$0xff] %v7413_v27  ;;  %8647 = vst [vmem:[%s10763_s27 + $0x1eb0] sm:$0xff] %v7415_v30  ;;  %v7414_v37 = vmin.f32 %v6182_v31, 1.7  ;;  %v7416_v38 = vmin.f32 %v6184_v32, 1.7  ;;  %v2480_v39 = vadd.f32 %v2479_v35, %v11943_v47  ;;  %v3007_v40 = vadd.f32 %v3006_v36, %v11947_v62 }
 0x361   : > { %v6197_v41 = vmax.f32 %v2478_v33, 1.5  ;;  %v6199_v42 = vmax.f32 %v3005_v34, 1.5  ;;  %v2483_v43 = vpop.f32.mrf.mxu0  ;;  %v3010_v44 = vpop.f32.mrf.mxu1  ;;  %v9777_v27 = vld [vmem:[%s15190_s0 + $0x120] sm:$0xff] }
 0x362   : > { %9339 = vmatmul.mubr.msk.f32.gmra.mxu0 %vm753_vm0, %v9775_v45  ;;  %9416 = vmatmul.mubr.msk.f32.gmra.mxu1 %vm753_vm0, %v9775_v45  ;;  %8646 = vst [vmem:[%s10763_s27 + $0x1ea8] sm:$0xff] %v7414_v37  ;;  %8648 = vst [vmem:[%s10763_s27 + $0x1eb8] sm:$0xff] %v7416_v38  ;;  %v6198_v46 = vmax.f32 %v2480_v39, 1.5  ;;  %v6200_v59 = vmax.f32 %v3007_v40, 1.5  ;;  %v2484_v61 = vadd.f32 %v2483_v43, %v11918_v28 }
 0x363   : > { %v3011_v63 = vadd.f32 %v3010_v44, %v11922_v29  ;;  %3367 = vmatprep.mubr.f32.mxu0 %v9958_v0  ;;  %3894 = vmatprep.mubr.f32.mxu1 %v9958_v0  ;;  %v7429_v48 = vmin.f32 %v6197_v41, 1.7  ;;  %v7431_v49 = vmin.f32 %v6199_v42, 1.7  ;;  %v2485_v51 = vpop.f32.mrf.mxu0  ;;  %v3012_v54 = vpop.f32.mrf.mxu1 }
 0x364   : > { %v7430_v57 = vmin.f32 %v6198_v46, 1.7  ;;  %v7432_v58 = vmin.f32 %v6200_v59, 1.7  ;;  %v6213_v60 = vmax.f32 %v2484_v61, 1.5  ;;  %v2486_v2 = vadd.f32 %v2485_v51, %v11943_v47  ;;  %v9778_v46 = vld [vmem:[%s15190_s0 + $0x128] sm:$0xff] }
 0x365   : > { %v6215_v1 = vmax.f32 %v3011_v63, 1.5  ;;  %8661 = vst [vmem:[%s10763_s27 + $0x1f20] sm:$0xff] %v7429_v48  ;;  %8663 = vst [vmem:[%s10763_s27 + $0x1f30] sm:$0xff] %v7431_v49  ;;  %v3013_v3 = vadd.f32 %v3012_v54, %v11947_v62  ;;  %v2489_v4 = vpop.f32.mrf.mxu0  ;;  %v3016_v5 = vpop.f32.mrf.mxu1 }
 0x366   : > { %9340 = vmatmul.mubr.msk.f32.gmra.mxu0 %vm753_vm0, %v9776_v8  ;;  %9417 = vmatmul.mubr.msk.f32.gmra.mxu1 %vm753_vm0, %v9776_v8  ;;  %8662 = vst [vmem:[%s10763_s27 + $0x1f28] sm:$0xff] %v7430_v57  ;;  %8664 = vst [vmem:[%s10763_s27 + $0x1f38] sm:$0xff] %v7432_v58  ;;  %v7445_v9 = vmin.f32 %v6213_v60, 1.7  ;;  %v2490_v11 = vadd.f32 %v2489_v4, %v11918_v28  ;;  %v3017_v12 = vadd.f32 %v3016_v5, %v11922_v29  ;;  %v554_v58 = vld [vmem:[%s10304_s6 + $0x68] sm:$0xff]  ;;  %v556_v60 = vld [vmem:[%s10304_s6 + $0x78] sm:$0xff] }
 0x367   : > { %v7447_v10 = vmin.f32 %v6215_v1, 1.7  ;;  %3373 = vmatprep.mubr.f32.mxu0 %v9958_v0  ;;  %3900 = vmatprep.mubr.f32.mxu1 %v9958_v0  ;;  %v6214_v13 = vmax.f32 %v2486_v2, 1.5  ;;  %v6216_v14 = vmax.f32 %v3013_v3, 1.5  ;;  %v2491_v15 = vpop.f32.mrf.mxu0  ;;  %v3018_v18 = vpop.f32.mrf.mxu1 }
 0x368   : > { %8677 = vst [vmem:[%s10763_s27 + $0x1fa0] sm:$0xff] %v7445_v9  ;;  %v6229_v19 = vmax.f32 %v2490_v11, 1.5  ;;  %v6231_v20 = vmax.f32 %v3017_v12, 1.5  ;;  %v2492_v21 = vadd.f32 %v2491_v15, %v11943_v47  ;;  %v3019_v22 = vadd.f32 %v3018_v18, %v11947_v62  ;;  %4177 = vmatprep.subr.mxu0 %v554_v58  ;;  %4704 = vmatprep.subr.mxu1 %v556_v60  ;;  %v9779_v11 = vld [vmem:[%s15190_s0 + $0x130] sm:$0xff]  ;;  %v553_v12 = vld [vmem:[%s10304_s6 + $0x60] sm:$0xff] }
 0x369   : > { %8679 = vst [vmem:[%s10763_s27 + $0x1fb0] sm:$0xff] %v7447_v10  ;;  %v7446_v23 = vmin.f32 %v6214_v13, 1.7  ;;  %v7448_v24 = vmin.f32 %v6216_v14, 1.7  ;;  %v2495_v25 = vpop.f32.mrf.mxu0  ;;  %v3022_v26 = vpop.f32.mrf.mxu1  ;;  %v555_v13 = vld [vmem:[%s10304_s6 + $0x70] sm:$0xff]  ;;  %4178 = vmatpush1.msra.mxu0 %v553_v12 }
 0x36a   : > { %9341 = vmatmul.mubr.msk.f32.gmra.mxu0 %vm753_vm0, %v9777_v27  ;;  %9418 = vmatmul.mubr.msk.f32.gmra.mxu1 %vm753_vm0, %v9777_v27  ;;  %v7461_v30 = vmin.f32 %v6229_v19, 1.7  ;;  %v7463_v31 = vmin.f32 %v6231_v20, 1.7  ;;  %v6230_v32 = vmax.f32 %v2492_v21, 1.5  ;;  %v6232_v33 = vmax.f32 %v3019_v22, 1.5 }
 0x36b   : > { %3379 = vmatprep.mubr.f32.mxu0 %v9958_v0  ;;  %3906 = vmatprep.mubr.f32.mxu1 %v9958_v0  ;;  %8678 = vst [vmem:[%s10763_s27 + $0x1fa8] sm:$0xff] %v7446_v23  ;;  %8680 = vst [vmem:[%s10763_s27 + $0x1fb8] sm:$0xff] %v7448_v24  ;;  %v2496_v34 = vadd.f32 %v2495_v25, %v11918_v28  ;;  %v3023_v35 = vadd.f32 %v3022_v26, %v11922_v29  ;;  %v2497_v36 = vpop.f32.mrf.mxu0  ;;  %v3024_v37 = vpop.f32.mrf.mxu1 }
 0x36c   : > { %8693 = vst [vmem:[%s10763_s27 + $0x2020] sm:$0xff] %v7461_v30  ;;  %8695 = vst [vmem:[%s10763_s27 + $0x2030] sm:$0xff] %v7463_v31  ;;  %v7462_v38 = vmin.f32 %v6230_v32, 1.7  ;;  %v7464_v39 = vmin.f32 %v6232_v33, 1.7  ;;  %v2498_v40 = vadd.f32 %v2497_v36, %v11943_v47  ;;  %v3025_v41 = vadd.f32 %v3024_v37, %v11947_v62  ;;  %4705 = vmatpush1.msra.mxu1 %v555_v13 }
 0x36d   : > { %v6245_v42 = vmax.f32 %v2496_v34, 1.5  ;;  %v6247_v43 = vmax.f32 %v3023_v35, 1.5  ;;  %v2501_v44 = vpop.f32.mrf.mxu0  ;;  %v3028_v45 = vpop.f32.mrf.mxu1  ;;  %v9780_v34 = vld [vmem:[%s15190_s0 + $0x138] sm:$0xff] }
 0x36e   : > { %9342 = vmatmul.mubr.msk.f32.gmra.mxu0 %vm753_vm0, %v9778_v46  ;;  %9419 = vmatmul.mubr.msk.f32.gmra.mxu1 %vm753_vm0, %v9778_v46  ;;  %8694 = vst [vmem:[%s10763_s27 + $0x2028] sm:$0xff] %v7462_v38  ;;  %8696 = vst [vmem:[%s10763_s27 + $0x2038] sm:$0xff] %v7464_v39  ;;  %v6246_v59 = vmax.f32 %v2498_v40, 1.5  ;;  %v6248_v61 = vmax.f32 %v3025_v41, 1.5  ;;  %v2502_v63 = vadd.f32 %v2501_v44, %v11918_v28 }
 0x36f   : > { %v3029_v48 = vadd.f32 %v3028_v45, %v11922_v29  ;;  %3385 = vmatprep.mubr.f32.mxu0 %v9958_v0  ;;  %3912 = vmatprep.mubr.f32.mxu1 %v9958_v0  ;;  %v7477_v49 = vmin.f32 %v6245_v42, 1.7  ;;  %v7479_v51 = vmin.f32 %v6247_v43, 1.7  ;;  %v2503_v54 = vpop.f32.mrf.mxu0  ;;  %v3030_v57 = vpop.f32.mrf.mxu1 }
 0x370   : > { %v7478_v1 = vmin.f32 %v6246_v59, 1.7  ;;  %v7480_v2 = vmin.f32 %v6248_v61, 1.7  ;;  %v6261_v3 = vmax.f32 %v2502_v63, 1.5  ;;  %v2504_v5 = vadd.f32 %v2503_v54, %v11943_v47 }
 0x371   : > { %v6263_v4 = vmax.f32 %v3029_v48, 1.5  ;;  %8709 = vst [vmem:[%s10763_s27 + $0x20a0] sm:$0xff] %v7477_v49  ;;  %8711 = vst [vmem:[%s10763_s27 + $0x20b0] sm:$0xff] %v7479_v51  ;;  %v3031_v8 = vadd.f32 %v3030_v57, %v11947_v62  ;;  %v2507_v9 = vpop.f32.mrf.mxu0  ;;  %v3034_v10 = vpop.f32.mrf.mxu1  ;;  %v9781_v49 = vld [vmem:[%s15190_s0 + $0x140] sm:$0xff] }
 0x372   : > { %9343 = vmatmul.mubr.msk.f32.gmra.mxu0 %vm753_vm0, %v9779_v11  ;;  %9420 = vmatmul.mubr.msk.f32.gmra.mxu1 %vm753_vm0, %v9779_v11  ;;  %8710 = vst [vmem:[%s10763_s27 + $0x20a8] sm:$0xff] %v7478_v1  ;;  %8712 = vst [vmem:[%s10763_s27 + $0x20b8] sm:$0xff] %v7480_v2  ;;  %v7493_v14 = vmin.f32 %v6261_v3, 1.7  ;;  %v2508_v18 = vadd.f32 %v2507_v9, %v11918_v28  ;;  %v3035_v19 = vadd.f32 %v3034_v10, %v11922_v29 }
 0x373   : > { %v7495_v15 = vmin.f32 %v6263_v4, 1.7  ;;  %3391 = vmatprep.mubr.f32.mxu0 %v9958_v0  ;;  %3918 = vmatprep.mubr.f32.mxu1 %v9958_v0  ;;  %v6262_v20 = vmax.f32 %v2504_v5, 1.5  ;;  %v6264_v21 = vmax.f32 %v3031_v8, 1.5  ;;  %v2509_v22 = vpop.f32.mrf.mxu0  ;;  %v3036_v23 = vpop.f32.mrf.mxu1 }
 0x374   : > { %8725 = vst [vmem:[%s10763_s27 + $0x2120] sm:$0xff] %v7493_v14  ;;  %v6277_v24 = vmax.f32 %v2508_v18, 1.5  ;;  %v6279_v25 = vmax.f32 %v3035_v19, 1.5  ;;  %v2510_v26 = vadd.f32 %v2509_v22, %v11943_v47  ;;  %v3037_v27 = vadd.f32 %v3036_v23, %v11947_v62  ;;  %v9782_v14 = vld [vmem:[%s15190_s0 + $0x148] sm:$0xff] }
 0x375   : > { %8727 = vst [vmem:[%s10763_s27 + $0x2130] sm:$0xff] %v7495_v15  ;;  %v7494_v30 = vmin.f32 %v6262_v20, 1.7  ;;  %v7496_v31 = vmin.f32 %v6264_v21, 1.7  ;;  %v2513_v32 = vpop.f32.mrf.mxu0  ;;  %v3040_v33 = vpop.f32.mrf.mxu1 }
 0x376   : > { %9344 = vmatmul.mubr.msk.f32.gmra.mxu0 %vm753_vm0, %v9780_v34  ;;  %9421 = vmatmul.mubr.msk.f32.gmra.mxu1 %vm753_vm0, %v9780_v34  ;;  %v7509_v35 = vmin.f32 %v6277_v24, 1.7  ;;  %v7511_v36 = vmin.f32 %v6279_v25, 1.7  ;;  %v6278_v37 = vmax.f32 %v2510_v26, 1.5  ;;  %v6280_v38 = vmax.f32 %v3037_v27, 1.5 }
 0x377   : > { %3397 = vmatprep.mubr.f32.mxu0 %v9958_v0  ;;  %3924 = vmatprep.mubr.f32.mxu1 %v9958_v0  ;;  %8726 = vst [vmem:[%s10763_s27 + $0x2128] sm:$0xff] %v7494_v30  ;;  %8728 = vst [vmem:[%s10763_s27 + $0x2138] sm:$0xff] %v7496_v31  ;;  %v2514_v39 = vadd.f32 %v2513_v32, %v11918_v28  ;;  %v3041_v40 = vadd.f32 %v3040_v33, %v11922_v29  ;;  %v2515_v41 = vpop.f32.mrf.mxu0  ;;  %v3042_v42 = vpop.f32.mrf.mxu1 }
 0x378   : > { %8741 = vst [vmem:[%s10763_s27 + $0x21a0] sm:$0xff] %v7509_v35  ;;  %8743 = vst [vmem:[%s10763_s27 + $0x21b0] sm:$0xff] %v7511_v36  ;;  %v7510_v43 = vmin.f32 %v6278_v37, 1.7  ;;  %v7512_v44 = vmin.f32 %v6280_v38, 1.7  ;;  %v2516_v45 = vadd.f32 %v2515_v41, %v11943_v47  ;;  %v3043_v46 = vadd.f32 %v3042_v42, %v11947_v62 }
 0x379   : > { %v6293_v59 = vmax.f32 %v2514_v39, 1.5  ;;  %v6295_v61 = vmax.f32 %v3041_v40, 1.5  ;;  %v2519_v63 = vpop.f32.mrf.mxu0  ;;  %v3046_v48 = vpop.f32.mrf.mxu1  ;;  %v9783_v35 = vld [vmem:[%s15190_s0 + $0x150] sm:$0xff] }
 0x37a   : > { %9345 = vmatmul.mubr.msk.f32.gmra.mxu0 %vm753_vm0, %v9781_v49  ;;  %9422 = vmatmul.mubr.msk.f32.gmra.mxu1 %vm753_vm0, %v9781_v49  ;;  %8742 = vst [vmem:[%s10763_s27 + $0x21a8] sm:$0xff] %v7510_v43  ;;  %8744 = vst [vmem:[%s10763_s27 + $0x21b8] sm:$0xff] %v7512_v44  ;;  %v6294_v51 = vmax.f32 %v2516_v45, 1.5  ;;  %v6296_v54 = vmax.f32 %v3043_v46, 1.5  ;;  %v2520_v57 = vadd.f32 %v2519_v63, %v11918_v28 }
 0x37b   : > { %v3047_v58 = vadd.f32 %v3046_v48, %v11922_v29  ;;  %3403 = vmatprep.mubr.f32.mxu0 %v9958_v0  ;;  %3930 = vmatprep.mubr.f32.mxu1 %v9958_v0  ;;  %v7525_v60 = vmin.f32 %v6293_v59, 1.7  ;;  %v7527_v1 = vmin.f32 %v6295_v61, 1.7  ;;  %v2521_v2 = vpop.f32.mrf.mxu0  ;;  %v3048_v3 = vpop.f32.mrf.mxu1 }
 0x37c   : > { %v7526_v4 = vmin.f32 %v6294_v51, 1.7  ;;  %v7528_v5 = vmin.f32 %v6296_v54, 1.7  ;;  %v6309_v8 = vmax.f32 %v2520_v57, 1.5  ;;  %v2522_v10 = vadd.f32 %v2521_v2, %v11943_v47  ;;  %v9784_v51 = vld [vmem:[%s15190_s0 + $0x158] sm:$0xff] }
 0x37d   : > { %v6311_v9 = vmax.f32 %v3047_v58, 1.5  ;;  %8757 = vst [vmem:[%s10763_s27 + $0x2220] sm:$0xff] %v7525_v60  ;;  %8759 = vst [vmem:[%s10763_s27 + $0x2230] sm:$0xff] %v7527_v1  ;;  %v3049_v11 = vadd.f32 %v3048_v3, %v11947_v62  ;;  %v2525_v12 = vpop.f32.mrf.mxu0  ;;  %v3052_v13 = vpop.f32.mrf.mxu1 }
 0x37e   : > { %9346 = vmatmul.mubr.msk.f32.gmra.mxu0 %vm753_vm0, %v9782_v14  ;;  %9423 = vmatmul.mubr.msk.f32.gmra.mxu1 %vm753_vm0, %v9782_v14  ;;  %8758 = vst [vmem:[%s10763_s27 + $0x2228] sm:$0xff] %v7526_v4  ;;  %8760 = vst [vmem:[%s10763_s27 + $0x2238] sm:$0xff] %v7528_v5  ;;  %v7541_v15 = vmin.f32 %v6309_v8, 1.7  ;;  %v2526_v19 = vadd.f32 %v2525_v12, %v11918_v28  ;;  %v3053_v20 = vadd.f32 %v3052_v13, %v11922_v29 }
 0x37f   : > { %v7543_v18 = vmin.f32 %v6311_v9, 1.7  ;;  %3409 = vmatprep.mubr.f32.mxu0 %v9958_v0  ;;  %3936 = vmatprep.mubr.f32.mxu1 %v9958_v0  ;;  %v6310_v21 = vmax.f32 %v2522_v10, 1.5  ;;  %v6312_v22 = vmax.f32 %v3049_v11, 1.5  ;;  %v2527_v23 = vpop.f32.mrf.mxu0  ;;  %v3054_v24 = vpop.f32.mrf.mxu1 }
 0x380   : > { %8773 = vst [vmem:[%s10763_s27 + $0x22a0] sm:$0xff] %v7541_v15  ;;  %v6325_v25 = vmax.f32 %v2526_v19, 1.5  ;;  %v6327_v26 = vmax.f32 %v3053_v20, 1.5  ;;  %v2528_v27 = vadd.f32 %v2527_v23, %v11943_v47  ;;  %v3055_v30 = vadd.f32 %v3054_v24, %v11947_v62  ;;  %v9785_v15 = vld [vmem:[%s15190_s0 + $0x160] sm:$0xff] }
 0x381   : > { %8775 = vst [vmem:[%s10763_s27 + $0x22b0] sm:$0xff] %v7543_v18  ;;  %v7542_v31 = vmin.f32 %v6310_v21, 1.7  ;;  %v7544_v32 = vmin.f32 %v6312_v22, 1.7  ;;  %v2531_v33 = vpop.f32.mrf.mxu0  ;;  %v3058_v34 = vpop.f32.mrf.mxu1 }
 0x382   : > { %9347 = vmatmul.mubr.msk.f32.gmra.mxu0 %vm753_vm0, %v9783_v35  ;;  %9424 = vmatmul.mubr.msk.f32.gmra.mxu1 %vm753_vm0, %v9783_v35  ;;  %v7557_v36 = vmin.f32 %v6325_v25, 1.7  ;;  %v7559_v37 = vmin.f32 %v6327_v26, 1.7  ;;  %v6326_v38 = vmax.f32 %v2528_v27, 1.5  ;;  %v6328_v39 = vmax.f32 %v3055_v30, 1.5 }
 0x383   : > { %3415 = vmatprep.mubr.f32.mxu0 %v9958_v0  ;;  %3942 = vmatprep.mubr.f32.mxu1 %v9958_v0  ;;  %8774 = vst [vmem:[%s10763_s27 + $0x22a8] sm:$0xff] %v7542_v31  ;;  %8776 = vst [vmem:[%s10763_s27 + $0x22b8] sm:$0xff] %v7544_v32  ;;  %v2532_v40 = vadd.f32 %v2531_v33, %v11918_v28  ;;  %v3059_v41 = vadd.f32 %v3058_v34, %v11922_v29  ;;  %v2533_v42 = vpop.f32.mrf.mxu0  ;;  %v3060_v43 = vpop.f32.mrf.mxu1 }
 0x384   : > { %8789 = vst [vmem:[%s10763_s27 + $0x2320] sm:$0xff] %v7557_v36  ;;  %8791 = vst [vmem:[%s10763_s27 + $0x2330] sm:$0xff] %v7559_v37  ;;  %v7558_v44 = vmin.f32 %v6326_v38, 1.7  ;;  %v7560_v45 = vmin.f32 %v6328_v39, 1.7  ;;  %v2534_v46 = vadd.f32 %v2533_v42, %v11943_v47  ;;  %v3061_v59 = vadd.f32 %v3060_v43, %v11947_v62 }
 0x385   : > { %v6341_v61 = vmax.f32 %v2532_v40, 1.5  ;;  %v6343_v63 = vmax.f32 %v3059_v41, 1.5  ;;  %v2537_v48 = vpop.f32.mrf.mxu0  ;;  %v3064_v49 = vpop.f32.mrf.mxu1  ;;  %v9786_v36 = vld [vmem:[%s15190_s0 + $0x168] sm:$0xff] }
 0x386   : > { %9348 = vmatmul.mubr.msk.f32.gmra.mxu0 %vm753_vm0, %v9784_v51  ;;  %9425 = vmatmul.mubr.msk.f32.gmra.mxu1 %vm753_vm0, %v9784_v51  ;;  %8790 = vst [vmem:[%s10763_s27 + $0x2328] sm:$0xff] %v7558_v44  ;;  %8792 = vst [vmem:[%s10763_s27 + $0x2338] sm:$0xff] %v7560_v45  ;;  %v6342_v54 = vmax.f32 %v2534_v46, 1.5  ;;  %v6344_v57 = vmax.f32 %v3061_v59, 1.5  ;;  %v2538_v58 = vadd.f32 %v2537_v48, %v11918_v28 }
 0x387   : > { %v3065_v60 = vadd.f32 %v3064_v49, %v11922_v29  ;;  %3421 = vmatprep.mubr.f32.mxu0 %v9958_v0  ;;  %3948 = vmatprep.mubr.f32.mxu1 %v9958_v0  ;;  %v7573_v1 = vmin.f32 %v6341_v61, 1.7  ;;  %v7575_v2 = vmin.f32 %v6343_v63, 1.7  ;;  %v2539_v3 = vpop.f32.mrf.mxu0  ;;  %v3066_v4 = vpop.f32.mrf.mxu1  ;;  %v670_v63 = vld [vmem:[%s10701_s8 + $0x8] sm:$0xff] }
 0x388   : > { %v7574_v5 = vmin.f32 %v6342_v54, 1.7  ;;  %v7576_v8 = vmin.f32 %v6344_v57, 1.7  ;;  %v6357_v9 = vmax.f32 %v2538_v58, 1.5  ;;  %v2540_v11 = vadd.f32 %v2539_v3, %v11943_v47  ;;  %v9787_v57 = vld [vmem:[%s15190_s0 + $0x170] sm:$0xff] }
 0x389   : > { %v6359_v10 = vmax.f32 %v3065_v60, 1.5  ;;  %8805 = vst [vmem:[%s10763_s27 + $0x23a0] sm:$0xff] %v7573_v1  ;;  %8807 = vst [vmem:[%s10763_s27 + $0x23b0] sm:$0xff] %v7575_v2  ;;  %v3067_v12 = vadd.f32 %v3066_v4, %v11947_v62  ;;  %v2543_v13 = vpop.f32.mrf.mxu0  ;;  %v3070_v14 = vpop.f32.mrf.mxu1 }
 0x38a   : > { %9349 = vmatmul.mubr.msk.f32.gmra.mxu0 %vm753_vm0, %v9785_v15  ;;  %9426 = vmatmul.mubr.msk.f32.gmra.mxu1 %vm753_vm0, %v9785_v15  ;;  %8806 = vst [vmem:[%s10763_s27 + $0x23a8] sm:$0xff] %v7574_v5  ;;  %8808 = vst [vmem:[%s10763_s27 + $0x23b8] sm:$0xff] %v7576_v8  ;;  %v7589_v18 = vmin.f32 %v6357_v9, 1.7  ;;  %v2544_v20 = vadd.f32 %v2543_v13, %v11918_v28  ;;  %v3071_v21 = vadd.f32 %v3070_v14, %v11922_v29 }
 0x38b   : > { %v7591_v19 = vmin.f32 %v6359_v10, 1.7  ;;  %3427 = vmatprep.mubr.f32.mxu0 %v9958_v0  ;;  %3954 = vmatprep.mubr.f32.mxu1 %v9958_v0  ;;  %v6358_v22 = vmax.f32 %v2540_v11, 1.5  ;;  %v6360_v23 = vmax.f32 %v3067_v12, 1.5  ;;  %v2545_v24 = vpop.f32.mrf.mxu0  ;;  %v3072_v25 = vpop.f32.mrf.mxu1  ;;  %v13113_v9 = vrot.slane %v670_v63, %v675_v52 }
 0x38c   : > { %8821 = vst [vmem:[%s10763_s27 + $0x2420] sm:$0xff] %v7589_v18  ;;  %v6373_v26 = vmax.f32 %v2544_v20, 1.5  ;;  %v6375_v27 = vmax.f32 %v3071_v21, 1.5  ;;  %v2546_v30 = vadd.f32 %v2545_v24, %v11943_v47  ;;  %v3073_v31 = vadd.f32 %v3072_v25, %v11947_v62  ;;  %v9788_v20 = vld [vmem:[%s15190_s0 + $0x178] sm:$0xff] }
 0x38d   : > { %8823 = vst [vmem:[%s10763_s27 + $0x2430] sm:$0xff] %v7591_v19  ;;  %v7590_v32 = vmin.f32 %v6358_v22, 1.7  ;;  %v7592_v33 = vmin.f32 %v6360_v23, 1.7  ;;  %v2549_v34 = vpop.f32.mrf.mxu0  ;;  %v3076_v35 = vpop.f32.mrf.mxu1  ;;  %v13126_v52 = vrot.slane %v670_v63, %v683_v53  ;;  %v13136_v53 = vrot.slane %v670_v63, %v679_v55  ;;  %v9789_v55 = vld [vmem:[%s15190_s0 + $0x180] sm:$0xff] }
 0x38e   : > { %9350 = vmatmul.mubr.msk.f32.gmra.mxu0 %vm753_vm0, %v9786_v36  ;;  %9427 = vmatmul.mubr.msk.f32.gmra.mxu1 %vm753_vm0, %v9786_v36  ;;  %v7605_v37 = vmin.f32 %v6373_v26, 1.7  ;;  %v7607_v38 = vmin.f32 %v6375_v27, 1.7  ;;  %v6374_v39 = vmax.f32 %v2546_v30, 1.5  ;;  %v6376_v40 = vmax.f32 %v3073_v31, 1.5 }
 0x38f   : > { %3433 = vmatprep.mubr.f32.mxu0 %v9958_v0  ;;  %3960 = vmatprep.mubr.f32.mxu1 %v9958_v0  ;;  %8822 = vst [vmem:[%s10763_s27 + $0x2428] sm:$0xff] %v7590_v32  ;;  %8824 = vst [vmem:[%s10763_s27 + $0x2438] sm:$0xff] %v7592_v33  ;;  %v2550_v41 = vadd.f32 %v2549_v34, %v11918_v28  ;;  %v3077_v42 = vadd.f32 %v3076_v35, %v11922_v29  ;;  %v2551_v43 = vpop.f32.mrf.mxu0  ;;  %v3078_v44 = vpop.f32.mrf.mxu1 }
 0x390   : > { %8837 = vst [vmem:[%s10763_s27 + $0x24a0] sm:$0xff] %v7605_v37  ;;  %8839 = vst [vmem:[%s10763_s27 + $0x24b0] sm:$0xff] %v7607_v38  ;;  %v7606_v45 = vmin.f32 %v6374_v39, 1.7  ;;  %v7608_v46 = vmin.f32 %v6376_v40, 1.7  ;;  %v2552_v59 = vadd.f32 %v2551_v43, %v11943_v47  ;;  %v3079_v61 = vadd.f32 %v3078_v44, %v11947_v62 }
 0x391   : > { %v6389_v48 = vmax.f32 %v2550_v41, 1.5  ;;  %v6391_v49 = vmax.f32 %v3077_v42, 1.5  ;;  %v2555_v51 = vpop.f32.mrf.mxu0  ;;  %v3082_v54 = vpop.f32.mrf.mxu1  ;;  %v13140_v31 = vrot.slane %v670_v63, %v687_v56 }
 0x392   : > { %9351 = vmatmul.mubr.msk.f32.gmra.mxu0 %vm753_vm0, %v9787_v57  ;;  %9428 = vmatmul.mubr.msk.f32.gmra.mxu1 %vm753_vm0, %v9787_v57  ;;  %8838 = vst [vmem:[%s10763_s27 + $0x24a8] sm:$0xff] %v7606_v45  ;;  %8840 = vst [vmem:[%s10763_s27 + $0x24b8] sm:$0xff] %v7608_v46  ;;  %v6390_v58 = vmax.f32 %v2552_v59, 1.5  ;;  %v6392_v60 = vmax.f32 %v3079_v61, 1.5  ;;  %v2556_v1 = vadd.f32 %v2555_v51, %v11918_v28 }
 0x393   : > { %v3083_v2 = vadd.f32 %v3082_v54, %v11922_v29  ;;  %3439 = vmatprep.mubr.f32.mxu0 %v9958_v0  ;;  %3966 = vmatprep.mubr.f32.mxu1 %v9958_v0  ;;  %v7621_v3 = vmin.f32 %v6389_v48, 1.7  ;;  %v7623_v4 = vmin.f32 %v6391_v49, 1.7  ;;  %v2557_v5 = vpop.f32.mrf.mxu0  ;;  %v3084_v8 = vpop.f32.mrf.mxu1  ;;  %v9790_v48 = vld [vmem:[%s15190_s0 + $0x188] sm:$0xff] }
 0x394   : > { %v7622_v10 = vmin.f32 %v6390_v58, 1.7  ;;  %v7624_v11 = vmin.f32 %v6392_v60, 1.7  ;;  %v6405_v12 = vmax.f32 %v2556_v1, 1.5  ;;  %v2558_v14 = vadd.f32 %v2557_v5, %v11943_v47 }
 0x395   : > { %v6407_v13 = vmax.f32 %v3083_v2, 1.5  ;;  %8853 = vst [vmem:[%s10763_s27 + $0x2520] sm:$0xff] %v7621_v3  ;;  %8855 = vst [vmem:[%s10763_s27 + $0x2530] sm:$0xff] %v7623_v4  ;;  %v3085_v15 = vadd.f32 %v3084_v8, %v11947_v62  ;;  %v2561_v18 = vpop.f32.mrf.mxu0  ;;  %v3088_v19 = vpop.f32.mrf.mxu1 }
 0x396   : > { %9352 = vmatmul.mubr.msk.f32.gmra.mxu0 %vm753_vm0, %v9788_v20  ;;  %9429 = vmatmul.mubr.msk.f32.gmra.mxu1 %vm753_vm0, %v9788_v20  ;;  %8854 = vst [vmem:[%s10763_s27 + $0x2528] sm:$0xff] %v7622_v10  ;;  %8856 = vst [vmem:[%s10763_s27 + $0x2538] sm:$0xff] %v7624_v11  ;;  %v7637_v21 = vmin.f32 %v6405_v12, 1.7  ;;  %v2562_v23 = vadd.f32 %v2561_v18, %v11918_v28  ;;  %v3089_v24 = vadd.f32 %v3088_v19, %v11922_v29 }
 0x397   : > { %v7639_v22 = vmin.f32 %v6407_v13, 1.7  ;;  %3445 = vmatprep.mubr.f32.mxu0 %v9958_v0  ;;  %3972 = vmatprep.mubr.f32.mxu1 %v9958_v0  ;;  %v6406_v25 = vmax.f32 %v2558_v14, 1.5  ;;  %v6408_v26 = vmax.f32 %v3085_v15, 1.5  ;;  %v2563_v27 = vpop.f32.mrf.mxu0  ;;  %v3090_v30 = vpop.f32.mrf.mxu1  ;;  %v9791_v14 = vld [vmem:[%s15190_s0 + $0x190] sm:$0xff] }
 0x398   : > { %8869 = vst [vmem:[%s10763_s27 + $0x25a0] sm:$0xff] %v7637_v21  ;;  %v6421_v28 = vmax.f32 %v2562_v23, 1.5  ;;  %v6423_v29 = vmax.f32 %v3089_v24, 1.5  ;;  %v2564_v32 = vadd.f32 %v2563_v27, %v11943_v47  ;;  %v3091_v33 = vadd.f32 %v3090_v30, %v11947_v62 }
 0x399   : > { %8871 = vst [vmem:[%s10763_s27 + $0x25b0] sm:$0xff] %v7639_v22  ;;  %v7638_v34 = vmin.f32 %v6406_v25, 1.7  ;;  %v7640_v35 = vmin.f32 %v6408_v26, 1.7  ;;  %v3159_v36 = vpop.f32.mrf.mxu0  ;;  %v3686_v56 = vpop.f32.mrf.mxu1 }
 0x39a   : > { %9353 = vmatmul.mubr.msk.f32.gmra.mxu0 %vm753_vm0, %v9789_v55  ;;  %9430 = vmatmul.mubr.msk.f32.gmra.mxu1 %vm753_vm0, %v9789_v55  ;;  %v7653_v37 = vmin.f32 %v6421_v28, 1.7  ;;  %v7655_v38 = vmin.f32 %v6423_v29, 1.7  ;;  %v6422_v47 = vmax.f32 %v2564_v32, 1.5  ;;  %v6424_v39 = vmax.f32 %v3091_v33, 1.5 }
 0x39b   : > { %3451 = vmatprep.mubr.f32.mxu0 %v9958_v0  ;;  %3978 = vmatprep.mubr.f32.mxu1 %v9958_v0  ;;  %8870 = vst [vmem:[%s10763_s27 + $0x25a8] sm:$0xff] %v7638_v34  ;;  %8872 = vst [vmem:[%s10763_s27 + $0x25b8] sm:$0xff] %v7640_v35  ;;  %v3160_v62 = vadd.f32 %v3159_v36, %v13113_v9  ;;  %v3687_v40 = vadd.f32 %v3686_v56, %v13126_v52  ;;  %v3161_v41 = vpop.f32.mrf.mxu0  ;;  %v3688_v42 = vpop.f32.mrf.mxu1  ;;  %v9792_v34 = vld [vmem:[%s15190_s0 + $0x198] sm:$0xff] }
 0x39c   : > { %8885 = vst [vmem:[%s10763_s27 + $0x2620] sm:$0x1] %v7653_v37  ;;  %8887 = vst [vmem:[%s10763_s27 + $0x2630] sm:$0x1] %v7655_v38  ;;  %v7654_v43 = vmin.f32 %v6422_v47, 1.7  ;;  %v3162_v45 = vadd.f32 %v3161_v41, %v13136_v53  ;;  %v3689_v46 = vadd.f32 %v3688_v42, %v13140_v31 }
 0x39d   : > { %v7656_v44 = vmin.f32 %v6424_v39, 1.7  ;;  %v5209_v59 = vmax.f32 %v3160_v62, 1.5  ;;  %v5211_v61 = vmax.f32 %v3687_v40, 1.5  ;;  %v3165_v63 = vpop.f32.mrf.mxu0 }
 0x39e   : > { %9354 = vmatmul.mubr.msk.f32.gmra.mxu0 %vm753_vm0, %v9790_v48  ;;  %v3692_v49 = vpop.f32.mrf.mxu1  ;;  %9431 = vmatmul.mubr.msk.f32.gmra.mxu1 %vm753_vm0, %v9790_v48  ;;  %8886 = vst [vmem:[%s10763_s27 + $0x2628] sm:$0x1] %v7654_v43  ;;  %v5210_v51 = vmax.f32 %v3162_v45, 1.5  ;;  %v5212_v54 = vmax.f32 %v3689_v46, 1.5  ;;  %v3166_v57 = vadd.f32 %v3165_v63, %v13113_v9 }
 0x39f   : > { %8888 = vst [vmem:[%s10763_s27 + $0x2638] sm:$0x1] %v7656_v44  ;;  %v3693_v58 = vadd.f32 %v3692_v49, %v13126_v52  ;;  %3457 = vmatprep.mubr.f32.mxu0 %v9958_v0  ;;  %3984 = vmatprep.mubr.f32.mxu1 %v9958_v0  ;;  %v6441_v60 = vmin.f32 %v5209_v59, 1.7  ;;  %v6443_v1 = vmin.f32 %v5211_v61, 1.7  ;;  %v3167_v2 = vpop.f32.mrf.mxu0 }
 0x3a0   : > { %v3694_v3 = vpop.f32.mrf.mxu1  ;;  %v6442_v4 = vmin.f32 %v5210_v51, 1.7  ;;  %v6444_v5 = vmin.f32 %v5212_v54, 1.7  ;;  %v5225_v8 = vmax.f32 %v3166_v57, 1.5  ;;  %v3168_v11 = vadd.f32 %v3167_v2, %v13136_v53  ;;  %v9793_v59 = vld [vmem:[%s15190_s0 + $0x1a0] sm:$0xff] }
 0x3a1   : > { %v5227_v10 = vmax.f32 %v3693_v58, 1.5  ;;  %7673 = vst [vmem:[%s10763_s27 + $0x40] sm:$0xff] %v6441_v60  ;;  %7675 = vst [vmem:[%s10763_s27 + $0x50] sm:$0xff] %v6443_v1  ;;  %v3695_v12 = vadd.f32 %v3694_v3, %v13140_v31 }
 0x3a2   : > { %v3171_v13 = vpop.f32.mrf.mxu0  ;;  %9355 = vmatmul.mubr.msk.f32.gmra.mxu0 %vm753_vm0, %v9791_v14  ;;  %v3698_v15 = vpop.f32.mrf.mxu1  ;;  %9432 = vmatmul.mubr.msk.f32.gmra.mxu1 %vm753_vm0, %v9791_v14  ;;  %7674 = vst [vmem:[%s10763_s27 + $0x48] sm:$0xff] %v6442_v4  ;;  %7676 = vst [vmem:[%s10763_s27 + $0x58] sm:$0xff] %v6444_v5  ;;  %v6457_v18 = vmin.f32 %v5225_v8, 1.7  ;;  %v5226_v22 = vmax.f32 %v3168_v11, 1.5  ;;  %v9794_v11 = vld [vmem:[%s15190_s0 + $0x1a8] sm:$0xff] }
 0x3a3   : > { %v6459_v19 = vmin.f32 %v5227_v10, 1.7  ;;  %v3172_v20 = vadd.f32 %v3171_v13, %v13113_v9  ;;  %v3699_v21 = vadd.f32 %v3698_v15, %v13126_v52  ;;  %3463 = vmatprep.mubr.f32.mxu0 %v9958_v0  ;;  %3990 = vmatprep.mubr.f32.mxu1 %v9958_v0  ;;  %v5228_v23 = vmax.f32 %v3695_v12, 1.5 }
 0x3a4   : > { %v3173_v24 = vpop.f32.mrf.mxu0  ;;  %v3700_v25 = vpop.f32.mrf.mxu1  ;;  %7689 = vst [vmem:[%s10763_s27 + $0xc0] sm:$0xff] %v6457_v18  ;;  %v6458_v29 = vmin.f32 %v5226_v22, 1.7 }
 0x3a5   : > { %7691 = vst [vmem:[%s10763_s27 + $0xd0] sm:$0xff] %v6459_v19  ;;  %v5241_v26 = vmax.f32 %v3172_v20, 1.5  ;;  %v5243_v27 = vmax.f32 %v3699_v21, 1.5  ;;  %v3174_v30 = vadd.f32 %v3173_v24, %v13136_v53  ;;  %v3701_v28 = vadd.f32 %v3700_v25, %v13140_v31 }
 0x3a6   : > { %v6460_v32 = vmin.f32 %v5228_v23, 1.7  ;;  %v3177_v33 = vpop.f32.mrf.mxu0  ;;  %9356 = vmatmul.mubr.msk.f32.gmra.mxu0 %vm753_vm0, %v9792_v34  ;;  %v3704_v35 = vpop.f32.mrf.mxu1  ;;  %9433 = vmatmul.mubr.msk.f32.gmra.mxu1 %vm753_vm0, %v9792_v34  ;;  %7690 = vst [vmem:[%s10763_s27 + $0xc8] sm:$0xff] %v6458_v29  ;;  %v9795_v29 = vld [vmem:[%s15190_s0 + $0x1b0] sm:$0xff] }
 0x3a7   : > { %v6473_v36 = vmin.f32 %v5241_v26, 1.7  ;;  %v6475_v55 = vmin.f32 %v5243_v27, 1.7  ;;  %v5242_v56 = vmax.f32 %v3174_v30, 1.5  ;;  %v5244_v37 = vmax.f32 %v3701_v28, 1.5  ;;  %3469 = vmatprep.mubr.f32.mxu0 %v9958_v0  ;;  %3996 = vmatprep.mubr.f32.mxu1 %v9958_v0 }
 0x3a8   : > { %7692 = vst [vmem:[%s10763_s27 + $0xd8] sm:$0xff] %v6460_v32  ;;  %v3178_v38 = vadd.f32 %v3177_v33, %v13113_v9  ;;  %v3705_v47 = vadd.f32 %v3704_v35, %v13126_v52  ;;  %v3179_v39 = vpop.f32.mrf.mxu0  ;;  %v3706_v62 = vpop.f32.mrf.mxu1 }
 0x3a9   : > { %7705 = vst [vmem:[%s10763_s27 + $0x140] sm:$0xff] %v6473_v36  ;;  %7707 = vst [vmem:[%s10763_s27 + $0x150] sm:$0xff] %v6475_v55  ;;  %v6474_v40 = vmin.f32 %v5242_v56, 1.7  ;;  %v6476_v41 = vmin.f32 %v5244_v37, 1.7  ;;  %v3180_v42 = vadd.f32 %v3179_v39, %v13136_v53  ;;  %v3707_v43 = vadd.f32 %v3706_v62, %v13140_v31 }
 0x3aa   : > { %v5257_v44 = vmax.f32 %v3178_v38, 1.5  ;;  %v5259_v45 = vmax.f32 %v3705_v47, 1.5  ;;  %v3183_v46 = vpop.f32.mrf.mxu0  ;;  %9357 = vmatmul.mubr.msk.f32.gmra.mxu0 %vm753_vm0, %v9793_v59  ;;  %v3710_v61 = vpop.f32.mrf.mxu1  ;;  %9434 = vmatmul.mubr.msk.f32.gmra.mxu1 %vm753_vm0, %v9793_v59 }
 0x3ab   : > { %7706 = vst [vmem:[%s10763_s27 + $0x148] sm:$0xff] %v6474_v40  ;;  %7708 = vst [vmem:[%s10763_s27 + $0x158] sm:$0xff] %v6476_v41  ;;  %v5258_v63 = vmax.f32 %v3180_v42, 1.5  ;;  %v5260_v48 = vmax.f32 %v3707_v43, 1.5  ;;  %v3184_v49 = vadd.f32 %v3183_v46, %v13113_v9  ;;  %v3711_v51 = vadd.f32 %v3710_v61, %v13126_v52  ;;  %3475 = vmatprep.mubr.f32.mxu0 %v9958_v0 }
 0x3ac   : > { %4002 = vmatprep.mubr.f32.mxu1 %v9958_v0  ;;  %v6489_v54 = vmin.f32 %v5257_v44, 1.7  ;;  %v6491_v57 = vmin.f32 %v5259_v45, 1.7  ;;  %v3185_v58 = vpop.f32.mrf.mxu0  ;;  %v3712_v60 = vpop.f32.mrf.mxu1  ;;  %v9796_v44 = vld [vmem:[%s15190_s0 + $0x1b8] sm:$0xff] }
 0x3ad   : > { %v6490_v1 = vmin.f32 %v5258_v63, 1.7  ;;  %v6492_v2 = vmin.f32 %v5260_v48, 1.7  ;;  %v5273_v3 = vmax.f32 %v3184_v49, 1.5  ;;  %v5275_v4 = vmax.f32 %v3711_v51, 1.5 }
 0x3ae   : > { %7721 = vst [vmem:[%s10763_s27 + $0x1c0] sm:$0xff] %v6489_v54  ;;  %7723 = vst [vmem:[%s10763_s27 + $0x1d0] sm:$0xff] %v6491_v57  ;;  %v3186_v5 = vadd.f32 %v3185_v58, %v13136_v53  ;;  %v3713_v8 = vadd.f32 %v3712_v60, %v13140_v31  ;;  %v3189_v10 = vpop.f32.mrf.mxu0  ;;  %9358 = vmatmul.mubr.msk.f32.gmra.mxu0 %vm753_vm0, %v9794_v11  ;;  %v3716_v12 = vpop.f32.mrf.mxu1  ;;  %9435 = vmatmul.mubr.msk.f32.gmra.mxu1 %vm753_vm0, %v9794_v11 }
 0x3af   : > { %7722 = vst [vmem:[%s10763_s27 + $0x1c8] sm:$0xff] %v6490_v1  ;;  %7724 = vst [vmem:[%s10763_s27 + $0x1d8] sm:$0xff] %v6492_v2  ;;  %v6505_v13 = vmin.f32 %v5273_v3, 1.7  ;;  %v6507_v14 = vmin.f32 %v5275_v4, 1.7  ;;  %v3190_v15 = vadd.f32 %v3189_v10, %v13113_v9  ;;  %v3717_v18 = vadd.f32 %v3716_v12, %v13126_v52  ;;  %3481 = vmatprep.mubr.f32.mxu0 %v9958_v0 }
 0x3b0   : > { %4008 = vmatprep.mubr.f32.mxu1 %v9958_v0  ;;  %v5274_v19 = vmax.f32 %v3186_v5, 1.5  ;;  %v5276_v20 = vmax.f32 %v3713_v8, 1.5  ;;  %v3191_v21 = vpop.f32.mrf.mxu0  ;;  %v3718_v22 = vpop.f32.mrf.mxu1  ;;  %v9797_v5 = vld [vmem:[%s15190_s0 + $0x1c0] sm:$0xff] }
 0x3b1   : > { %7737 = vst [vmem:[%s10763_s27 + $0x240] sm:$0xff] %v6505_v13  ;;  %7739 = vst [vmem:[%s10763_s27 + $0x250] sm:$0xff] %v6507_v14  ;;  %v5289_v23 = vmax.f32 %v3190_v15, 1.5  ;;  %v5291_v24 = vmax.f32 %v3717_v18, 1.5  ;;  %v3192_v25 = vadd.f32 %v3191_v21, %v13136_v53  ;;  %v3719_v26 = vadd.f32 %v3718_v22, %v13140_v31 }
 0x3b2   : > { %v6506_v27 = vmin.f32 %v5274_v19, 1.7  ;;  %v6508_v30 = vmin.f32 %v5276_v20, 1.7  ;;  %v3195_v28 = vpop.f32.mrf.mxu0  ;;  %9359 = vmatmul.mubr.msk.f32.gmra.mxu0 %vm753_vm0, %v9795_v29  ;;  %v3722_v32 = vpop.f32.mrf.mxu1  ;;  %9436 = vmatmul.mubr.msk.f32.gmra.mxu1 %vm753_vm0, %v9795_v29 }
 0x3b3   : > { %v6521_v33 = vmin.f32 %v5289_v23, 1.7  ;;  %v6523_v34 = vmin.f32 %v5291_v24, 1.7  ;;  %v5290_v35 = vmax.f32 %v3192_v25, 1.5  ;;  %v5292_v36 = vmax.f32 %v3719_v26, 1.5  ;;  %3487 = vmatprep.mubr.f32.mxu0 %v9958_v0  ;;  %4014 = vmatprep.mubr.f32.mxu1 %v9958_v0 }
 0x3b4   : > { %7738 = vst [vmem:[%s10763_s27 + $0x248] sm:$0xff] %v6506_v27  ;;  %7740 = vst [vmem:[%s10763_s27 + $0x258] sm:$0xff] %v6508_v30  ;;  %v3196_v55 = vadd.f32 %v3195_v28, %v13113_v9  ;;  %v3723_v56 = vadd.f32 %v3722_v32, %v13126_v52  ;;  %v3197_v37 = vpop.f32.mrf.mxu0  ;;  %v3724_v38 = vpop.f32.mrf.mxu1  ;;  %v9798_v27 = vld [vmem:[%s15190_s0 + $0x1c8] sm:$0xff] }
 0x3b5   : > { %7753 = vst [vmem:[%s10763_s27 + $0x2c0] sm:$0xff] %v6521_v33  ;;  %7755 = vst [vmem:[%s10763_s27 + $0x2d0] sm:$0xff] %v6523_v34  ;;  %v6522_v47 = vmin.f32 %v5290_v35, 1.7  ;;  %v6524_v39 = vmin.f32 %v5292_v36, 1.7  ;;  %v3198_v62 = vadd.f32 %v3197_v37, %v13136_v53  ;;  %v3725_v40 = vadd.f32 %v3724_v38, %v13140_v31 }
 0x3b6   : > { %v5305_v41 = vmax.f32 %v3196_v55, 1.5  ;;  %v5307_v42 = vmax.f32 %v3723_v56, 1.5  ;;  %v3201_v43 = vpop.f32.mrf.mxu0  ;;  %9360 = vmatmul.mubr.msk.f32.gmra.mxu0 %vm753_vm0, %v9796_v44  ;;  %v3728_v45 = vpop.f32.mrf.mxu1  ;;  %9437 = vmatmul.mubr.msk.f32.gmra.mxu1 %vm753_vm0, %v9796_v44 }
 0x3b7   : > { %7754 = vst [vmem:[%s10763_s27 + $0x2c8] sm:$0xff] %v6522_v47  ;;  %7756 = vst [vmem:[%s10763_s27 + $0x2d8] sm:$0xff] %v6524_v39  ;;  %v5306_v46 = vmax.f32 %v3198_v62, 1.5  ;;  %v5308_v59 = vmax.f32 %v3725_v40, 1.5  ;;  %v3202_v61 = vadd.f32 %v3201_v43, %v13113_v9  ;;  %v3729_v63 = vadd.f32 %v3728_v45, %v13126_v52  ;;  %3493 = vmatprep.mubr.f32.mxu0 %v9958_v0 }
 0x3b8   : > { %4020 = vmatprep.mubr.f32.mxu1 %v9958_v0  ;;  %v6537_v48 = vmin.f32 %v5305_v41, 1.7  ;;  %v6539_v49 = vmin.f32 %v5307_v42, 1.7  ;;  %v3203_v51 = vpop.f32.mrf.mxu0  ;;  %v3730_v54 = vpop.f32.mrf.mxu1  ;;  %v9799_v41 = vld [vmem:[%s15190_s0 + $0x1d0] sm:$0xff] }
 0x3b9   : > { %v6538_v57 = vmin.f32 %v5306_v46, 1.7  ;;  %v6540_v58 = vmin.f32 %v5308_v59, 1.7  ;;  %v5321_v60 = vmax.f32 %v3202_v61, 1.5  ;;  %v5323_v1 = vmax.f32 %v3729_v63, 1.5 }
 0x3ba   : > { %7769 = vst [vmem:[%s10763_s27 + $0x340] sm:$0xff] %v6537_v48  ;;  %7771 = vst [vmem:[%s10763_s27 + $0x350] sm:$0xff] %v6539_v49  ;;  %v3204_v2 = vadd.f32 %v3203_v51, %v13136_v53  ;;  %v3731_v3 = vadd.f32 %v3730_v54, %v13140_v31  ;;  %v3207_v4 = vpop.f32.mrf.mxu0  ;;  %9361 = vmatmul.mubr.msk.f32.gmra.mxu0 %vm753_vm0, %v9797_v5  ;;  %v3734_v8 = vpop.f32.mrf.mxu1  ;;  %9438 = vmatmul.mubr.msk.f32.gmra.mxu1 %vm753_vm0, %v9797_v5 }
 0x3bb   : > { %7770 = vst [vmem:[%s10763_s27 + $0x348] sm:$0xff] %v6538_v57  ;;  %7772 = vst [vmem:[%s10763_s27 + $0x358] sm:$0xff] %v6540_v58  ;;  %v6553_v10 = vmin.f32 %v5321_v60, 1.7  ;;  %v6555_v11 = vmin.f32 %v5323_v1, 1.7  ;;  %v3208_v12 = vadd.f32 %v3207_v4, %v13113_v9  ;;  %v3735_v13 = vadd.f32 %v3734_v8, %v13126_v52  ;;  %3499 = vmatprep.mubr.f32.mxu0 %v9958_v0 }
 0x3bc   : > { %4026 = vmatprep.mubr.f32.mxu1 %v9958_v0  ;;  %v5322_v14 = vmax.f32 %v3204_v2, 1.5  ;;  %v5324_v15 = vmax.f32 %v3731_v3, 1.5  ;;  %v3209_v18 = vpop.f32.mrf.mxu0  ;;  %v3736_v19 = vpop.f32.mrf.mxu1  ;;  %v9800_v2 = vld [vmem:[%s15190_s0 + $0x1d8] sm:$0xff] }
 0x3bd   : > { %7785 = vst [vmem:[%s10763_s27 + $0x3c0] sm:$0xff] %v6553_v10  ;;  %7787 = vst [vmem:[%s10763_s27 + $0x3d0] sm:$0xff] %v6555_v11  ;;  %v5337_v20 = vmax.f32 %v3208_v12, 1.5  ;;  %v5339_v21 = vmax.f32 %v3735_v13, 1.5  ;;  %v3210_v22 = vadd.f32 %v3209_v18, %v13136_v53  ;;  %v3737_v23 = vadd.f32 %v3736_v19, %v13140_v31 }
 0x3be   : > { %v6554_v24 = vmin.f32 %v5322_v14, 1.7  ;;  %v6556_v25 = vmin.f32 %v5324_v15, 1.7  ;;  %v3213_v26 = vpop.f32.mrf.mxu0  ;;  %9362 = vmatmul.mubr.msk.f32.gmra.mxu0 %vm753_vm0, %v9798_v27  ;;  %v3740_v30 = vpop.f32.mrf.mxu1  ;;  %9439 = vmatmul.mubr.msk.f32.gmra.mxu1 %vm753_vm0, %v9798_v27 }
 0x3bf   : > { %v6569_v28 = vmin.f32 %v5337_v20, 1.7  ;;  %v6571_v29 = vmin.f32 %v5339_v21, 1.7  ;;  %v5338_v32 = vmax.f32 %v3210_v22, 1.5  ;;  %v5340_v33 = vmax.f32 %v3737_v23, 1.5  ;;  %3505 = vmatprep.mubr.f32.mxu0 %v9958_v0  ;;  %4032 = vmatprep.mubr.f32.mxu1 %v9958_v0 }
 0x3c0   : > { %7786 = vst [vmem:[%s10763_s27 + $0x3c8] sm:$0xff] %v6554_v24  ;;  %7788 = vst [vmem:[%s10763_s27 + $0x3d8] sm:$0xff] %v6556_v25  ;;  %v3214_v34 = vadd.f32 %v3213_v26, %v13113_v9  ;;  %v3741_v35 = vadd.f32 %v3740_v30, %v13126_v52  ;;  %v3215_v36 = vpop.f32.mrf.mxu0  ;;  %v3742_v55 = vpop.f32.mrf.mxu1  ;;  %v9801_v24 = vld [vmem:[%s15190_s0 + $0x1e0] sm:$0xff] }
 0x3c1   : > { %7801 = vst [vmem:[%s10763_s27 + $0x440] sm:$0xff] %v6569_v28  ;;  %7803 = vst [vmem:[%s10763_s27 + $0x450] sm:$0xff] %v6571_v29  ;;  %v6570_v56 = vmin.f32 %v5338_v32, 1.7  ;;  %v6572_v37 = vmin.f32 %v5340_v33, 1.7  ;;  %v3216_v38 = vadd.f32 %v3215_v36, %v13136_v53  ;;  %v3743_v47 = vadd.f32 %v3742_v55, %v13140_v31 }
 0x3c2   : > { %v5353_v39 = vmax.f32 %v3214_v34, 1.5  ;;  %v5355_v62 = vmax.f32 %v3741_v35, 1.5  ;;  %v3219_v40 = vpop.f32.mrf.mxu0  ;;  %9363 = vmatmul.mubr.msk.f32.gmra.mxu0 %vm753_vm0, %v9799_v41  ;;  %v3746_v42 = vpop.f32.mrf.mxu1  ;;  %9440 = vmatmul.mubr.msk.f32.gmra.mxu1 %vm753_vm0, %v9799_v41 }
 0x3c3   : > { %7802 = vst [vmem:[%s10763_s27 + $0x448] sm:$0xff] %v6570_v56  ;;  %7804 = vst [vmem:[%s10763_s27 + $0x458] sm:$0xff] %v6572_v37  ;;  %v5354_v43 = vmax.f32 %v3216_v38, 1.5  ;;  %v5356_v44 = vmax.f32 %v3743_v47, 1.5  ;;  %v3220_v45 = vadd.f32 %v3219_v40, %v13113_v9  ;;  %v3747_v46 = vadd.f32 %v3746_v42, %v13126_v52  ;;  %3511 = vmatprep.mubr.f32.mxu0 %v9958_v0 }
 0x3c4   : > { %4038 = vmatprep.mubr.f32.mxu1 %v9958_v0  ;;  %v6585_v59 = vmin.f32 %v5353_v39, 1.7  ;;  %v6587_v61 = vmin.f32 %v5355_v62, 1.7  ;;  %v3221_v63 = vpop.f32.mrf.mxu0  ;;  %v3748_v48 = vpop.f32.mrf.mxu1  ;;  %v9802_v39 = vld [vmem:[%s15190_s0 + $0x1e8] sm:$0xff] }
 0x3c5   : > { %v6586_v49 = vmin.f32 %v5354_v43, 1.7  ;;  %v6588_v51 = vmin.f32 %v5356_v44, 1.7  ;;  %v5369_v54 = vmax.f32 %v3220_v45, 1.5  ;;  %v5371_v57 = vmax.f32 %v3747_v46, 1.5 }
 0x3c6   : > { %7817 = vst [vmem:[%s10763_s27 + $0x4c0] sm:$0xff] %v6585_v59  ;;  %7819 = vst [vmem:[%s10763_s27 + $0x4d0] sm:$0xff] %v6587_v61  ;;  %v3222_v58 = vadd.f32 %v3221_v63, %v13136_v53  ;;  %v3749_v60 = vadd.f32 %v3748_v48, %v13140_v31  ;;  %v3225_v1 = vpop.f32.mrf.mxu0  ;;  %9364 = vmatmul.mubr.msk.f32.gmra.mxu0 %vm753_vm0, %v9800_v2  ;;  %v3752_v3 = vpop.f32.mrf.mxu1  ;;  %9441 = vmatmul.mubr.msk.f32.gmra.mxu1 %vm753_vm0, %v9800_v2 }
 0x3c7   : > { %7818 = vst [vmem:[%s10763_s27 + $0x4c8] sm:$0xff] %v6586_v49  ;;  %7820 = vst [vmem:[%s10763_s27 + $0x4d8] sm:$0xff] %v6588_v51  ;;  %v6601_v4 = vmin.f32 %v5369_v54, 1.7  ;;  %v6603_v5 = vmin.f32 %v5371_v57, 1.7  ;;  %v3226_v8 = vadd.f32 %v3225_v1, %v13113_v9  ;;  %v3753_v10 = vadd.f32 %v3752_v3, %v13126_v52  ;;  %3517 = vmatprep.mubr.f32.mxu0 %v9958_v0 }
 0x3c8   : > { %4044 = vmatprep.mubr.f32.mxu1 %v9958_v0  ;;  %v5370_v11 = vmax.f32 %v3222_v58, 1.5  ;;  %v5372_v12 = vmax.f32 %v3749_v60, 1.5  ;;  %v3227_v13 = vpop.f32.mrf.mxu0  ;;  %v3754_v14 = vpop.f32.mrf.mxu1  ;;  %v9803_v58 = vld [vmem:[%s15190_s0 + $0x1f0] sm:$0xff] }
 0x3c9   : > { %7833 = vst [vmem:[%s10763_s27 + $0x540] sm:$0xff] %v6601_v4  ;;  %7835 = vst [vmem:[%s10763_s27 + $0x550] sm:$0xff] %v6603_v5  ;;  %v5385_v15 = vmax.f32 %v3226_v8, 1.5  ;;  %v5387_v18 = vmax.f32 %v3753_v10, 1.5  ;;  %v3228_v19 = vadd.f32 %v3227_v13, %v13136_v53  ;;  %v3755_v20 = vadd.f32 %v3754_v14, %v13140_v31 }
 0x3ca   : > { %v6602_v21 = vmin.f32 %v5370_v11, 1.7  ;;  %v6604_v22 = vmin.f32 %v5372_v12, 1.7  ;;  %v3231_v23 = vpop.f32.mrf.mxu0  ;;  %9365 = vmatmul.mubr.msk.f32.gmra.mxu0 %vm753_vm0, %v9801_v24  ;;  %v3758_v25 = vpop.f32.mrf.mxu1  ;;  %9442 = vmatmul.mubr.msk.f32.gmra.mxu1 %vm753_vm0, %v9801_v24 }
 0x3cb   : > { %v6617_v26 = vmin.f32 %v5385_v15, 1.7  ;;  %v6619_v27 = vmin.f32 %v5387_v18, 1.7  ;;  %v5386_v30 = vmax.f32 %v3228_v19, 1.5  ;;  %v5388_v28 = vmax.f32 %v3755_v20, 1.5  ;;  %3523 = vmatprep.mubr.f32.mxu0 %v9958_v0  ;;  %4050 = vmatprep.mubr.f32.mxu1 %v9958_v0 }
 0x3cc   : > { %7834 = vst [vmem:[%s10763_s27 + $0x548] sm:$0xff] %v6602_v21  ;;  %7836 = vst [vmem:[%s10763_s27 + $0x558] sm:$0xff] %v6604_v22  ;;  %v3232_v29 = vadd.f32 %v3231_v23, %v13113_v9  ;;  %v3759_v32 = vadd.f32 %v3758_v25, %v13126_v52  ;;  %v3233_v33 = vpop.f32.mrf.mxu0  ;;  %v3760_v34 = vpop.f32.mrf.mxu1  ;;  %v9804_v21 = vld [vmem:[%s15190_s0 + $0x1f8] sm:$0xff] }
 0x3cd   : > { %7849 = vst [vmem:[%s10763_s27 + $0x5c0] sm:$0xff] %v6617_v26  ;;  %7851 = vst [vmem:[%s10763_s27 + $0x5d0] sm:$0xff] %v6619_v27  ;;  %v6618_v35 = vmin.f32 %v5386_v30, 1.7  ;;  %v6620_v36 = vmin.f32 %v5388_v28, 1.7  ;;  %v3234_v55 = vadd.f32 %v3233_v33, %v13136_v53  ;;  %v3761_v56 = vadd.f32 %v3760_v34, %v13140_v31 }
 0x3ce   : > { %v5401_v37 = vmax.f32 %v3232_v29, 1.5  ;;  %v5403_v38 = vmax.f32 %v3759_v32, 1.5  ;;  %v3237_v47 = vpop.f32.mrf.mxu0  ;;  %9366 = vmatmul.mubr.msk.f32.gmra.mxu0 %vm753_vm0, %v9802_v39  ;;  %v3764_v62 = vpop.f32.mrf.mxu1  ;;  %9443 = vmatmul.mubr.msk.f32.gmra.mxu1 %vm753_vm0, %v9802_v39 }
 0x3cf   : > { %7850 = vst [vmem:[%s10763_s27 + $0x5c8] sm:$0xff] %v6618_v35  ;;  %7852 = vst [vmem:[%s10763_s27 + $0x5d8] sm:$0xff] %v6620_v36  ;;  %v5402_v40 = vmax.f32 %v3234_v55, 1.5  ;;  %v5404_v41 = vmax.f32 %v3761_v56, 1.5  ;;  %v3238_v42 = vadd.f32 %v3237_v47, %v13113_v9  ;;  %v3765_v43 = vadd.f32 %v3764_v62, %v13126_v52  ;;  %3529 = vmatprep.mubr.f32.mxu0 %v9958_v0 }
 0x3d0   : > { %4056 = vmatprep.mubr.f32.mxu1 %v9958_v0  ;;  %v6633_v44 = vmin.f32 %v5401_v37, 1.7  ;;  %v6635_v45 = vmin.f32 %v5403_v38, 1.7  ;;  %v3239_v46 = vpop.f32.mrf.mxu0  ;;  %v3766_v59 = vpop.f32.mrf.mxu1  ;;  %v9805_v37 = vld [vmem:[%s15190_s0 + $0x200] sm:$0xff] }
 0x3d1   : > { %v6634_v61 = vmin.f32 %v5402_v40, 1.7  ;;  %v6636_v63 = vmin.f32 %v5404_v41, 1.7  ;;  %v5417_v48 = vmax.f32 %v3238_v42, 1.5  ;;  %v5419_v49 = vmax.f32 %v3765_v43, 1.5 }
 0x3d2   : > { %7865 = vst [vmem:[%s10763_s27 + $0x640] sm:$0xff] %v6633_v44  ;;  %7867 = vst [vmem:[%s10763_s27 + $0x650] sm:$0xff] %v6635_v45  ;;  %v3240_v51 = vadd.f32 %v3239_v46, %v13136_v53  ;;  %v3767_v54 = vadd.f32 %v3766_v59, %v13140_v31  ;;  %v3243_v57 = vpop.f32.mrf.mxu0  ;;  %9367 = vmatmul.mubr.msk.f32.gmra.mxu0 %vm753_vm0, %v9803_v58  ;;  %v3770_v60 = vpop.f32.mrf.mxu1  ;;  %9444 = vmatmul.mubr.msk.f32.gmra.mxu1 %vm753_vm0, %v9803_v58 }
 0x3d3   : > { %7866 = vst [vmem:[%s10763_s27 + $0x648] sm:$0xff] %v6634_v61  ;;  %7868 = vst [vmem:[%s10763_s27 + $0x658] sm:$0xff] %v6636_v63  ;;  %v6649_v1 = vmin.f32 %v5417_v48, 1.7  ;;  %v6651_v2 = vmin.f32 %v5419_v49, 1.7  ;;  %v3244_v3 = vadd.f32 %v3243_v57, %v13113_v9  ;;  %v3771_v4 = vadd.f32 %v3770_v60, %v13126_v52  ;;  %3535 = vmatprep.mubr.f32.mxu0 %v9958_v0 }
 0x3d4   : > { %4062 = vmatprep.mubr.f32.mxu1 %v9958_v0  ;;  %v5418_v5 = vmax.f32 %v3240_v51, 1.5  ;;  %v5420_v8 = vmax.f32 %v3767_v54, 1.5  ;;  %v3245_v10 = vpop.f32.mrf.mxu0  ;;  %v3772_v11 = vpop.f32.mrf.mxu1  ;;  %v9806_v51 = vld [vmem:[%s15190_s0 + $0x208] sm:$0xff] }
 0x3d5   : > { %7881 = vst [vmem:[%s10763_s27 + $0x6c0] sm:$0xff] %v6649_v1  ;;  %7883 = vst [vmem:[%s10763_s27 + $0x6d0] sm:$0xff] %v6651_v2  ;;  %v5433_v12 = vmax.f32 %v3244_v3, 1.5  ;;  %v5435_v13 = vmax.f32 %v3771_v4, 1.5  ;;  %v3246_v14 = vadd.f32 %v3245_v10, %v13136_v53  ;;  %v3773_v15 = vadd.f32 %v3772_v11, %v13140_v31 }
 0x3d6   : > { %v6650_v18 = vmin.f32 %v5418_v5, 1.7  ;;  %v6652_v19 = vmin.f32 %v5420_v8, 1.7  ;;  %v3249_v20 = vpop.f32.mrf.mxu0  ;;  %9368 = vmatmul.mubr.msk.f32.gmra.mxu0 %vm753_vm0, %v9804_v21  ;;  %v3776_v22 = vpop.f32.mrf.mxu1  ;;  %9445 = vmatmul.mubr.msk.f32.gmra.mxu1 %vm753_vm0, %v9804_v21 }
 0x3d7   : > { %v6665_v23 = vmin.f32 %v5433_v12, 1.7  ;;  %v6667_v24 = vmin.f32 %v5435_v13, 1.7  ;;  %v5434_v25 = vmax.f32 %v3246_v14, 1.5  ;;  %v5436_v26 = vmax.f32 %v3773_v15, 1.5  ;;  %3541 = vmatprep.mubr.f32.mxu0 %v9958_v0  ;;  %4068 = vmatprep.mubr.f32.mxu1 %v9958_v0 }
 0x3d8   : > { %7882 = vst [vmem:[%s10763_s27 + $0x6c8] sm:$0xff] %v6650_v18  ;;  %7884 = vst [vmem:[%s10763_s27 + $0x6d8] sm:$0xff] %v6652_v19  ;;  %v3250_v27 = vadd.f32 %v3249_v20, %v13113_v9  ;;  %v3777_v30 = vadd.f32 %v3776_v22, %v13126_v52  ;;  %v3251_v28 = vpop.f32.mrf.mxu0  ;;  %v3778_v29 = vpop.f32.mrf.mxu1  ;;  %v9807_v18 = vld [vmem:[%s15190_s0 + $0x210] sm:$0xff] }
 0x3d9   : > { %7897 = vst [vmem:[%s10763_s27 + $0x740] sm:$0xff] %v6665_v23  ;;  %7899 = vst [vmem:[%s10763_s27 + $0x750] sm:$0xff] %v6667_v24  ;;  %v6666_v32 = vmin.f32 %v5434_v25, 1.7  ;;  %v6668_v33 = vmin.f32 %v5436_v26, 1.7  ;;  %v3252_v34 = vadd.f32 %v3251_v28, %v13136_v53  ;;  %v3779_v35 = vadd.f32 %v3778_v29, %v13140_v31 }
 0x3da   : > { %v5449_v36 = vmax.f32 %v3250_v27, 1.5  ;;  %v5451_v55 = vmax.f32 %v3777_v30, 1.5  ;;  %v3255_v56 = vpop.f32.mrf.mxu0  ;;  %9369 = vmatmul.mubr.msk.f32.gmra.mxu0 %vm753_vm0, %v9805_v37  ;;  %v3782_v38 = vpop.f32.mrf.mxu1  ;;  %9446 = vmatmul.mubr.msk.f32.gmra.mxu1 %vm753_vm0, %v9805_v37 }
 0x3db   : > { %7898 = vst [vmem:[%s10763_s27 + $0x748] sm:$0xff] %v6666_v32  ;;  %7900 = vst [vmem:[%s10763_s27 + $0x758] sm:$0xff] %v6668_v33  ;;  %v5450_v47 = vmax.f32 %v3252_v34, 1.5  ;;  %v5452_v39 = vmax.f32 %v3779_v35, 1.5  ;;  %v3256_v62 = vadd.f32 %v3255_v56, %v13113_v9  ;;  %v3783_v40 = vadd.f32 %v3782_v38, %v13126_v52  ;;  %3547 = vmatprep.mubr.f32.mxu0 %v9958_v0 }
 0x3dc   : > { %4074 = vmatprep.mubr.f32.mxu1 %v9958_v0  ;;  %v6681_v41 = vmin.f32 %v5449_v36, 1.7  ;;  %v6683_v42 = vmin.f32 %v5451_v55, 1.7  ;;  %v3257_v43 = vpop.f32.mrf.mxu0  ;;  %v3784_v44 = vpop.f32.mrf.mxu1  ;;  %v9808_v36 = vld [vmem:[%s15190_s0 + $0x218] sm:$0xff] }
 0x3dd   : > { %v6682_v45 = vmin.f32 %v5450_v47, 1.7  ;;  %v6684_v46 = vmin.f32 %v5452_v39, 1.7  ;;  %v5465_v59 = vmax.f32 %v3256_v62, 1.5  ;;  %v5467_v61 = vmax.f32 %v3783_v40, 1.5 }
 0x3de   : > { %7913 = vst [vmem:[%s10763_s27 + $0x7c0] sm:$0xff] %v6681_v41  ;;  %7915 = vst [vmem:[%s10763_s27 + $0x7d0] sm:$0xff] %v6683_v42  ;;  %v3258_v63 = vadd.f32 %v3257_v43, %v13136_v53  ;;  %v3785_v48 = vadd.f32 %v3784_v44, %v13140_v31  ;;  %v3261_v49 = vpop.f32.mrf.mxu0  ;;  %9370 = vmatmul.mubr.msk.f32.gmra.mxu0 %vm753_vm0, %v9806_v51  ;;  %v3788_v54 = vpop.f32.mrf.mxu1  ;;  %9447 = vmatmul.mubr.msk.f32.gmra.mxu1 %vm753_vm0, %v9806_v51 }
 0x3df   : > { %7914 = vst [vmem:[%s10763_s27 + $0x7c8] sm:$0xff] %v6682_v45  ;;  %7916 = vst [vmem:[%s10763_s27 + $0x7d8] sm:$0xff] %v6684_v46  ;;  %v6697_v57 = vmin.f32 %v5465_v59, 1.7  ;;  %v6699_v58 = vmin.f32 %v5467_v61, 1.7  ;;  %v3262_v60 = vadd.f32 %v3261_v49, %v13113_v9  ;;  %v3789_v1 = vadd.f32 %v3788_v54, %v13126_v52  ;;  %3553 = vmatprep.mubr.f32.mxu0 %v9958_v0 }
 0x3e0   : > { %4080 = vmatprep.mubr.f32.mxu1 %v9958_v0  ;;  %v5466_v2 = vmax.f32 %v3258_v63, 1.5  ;;  %v5468_v3 = vmax.f32 %v3785_v48, 1.5  ;;  %v3263_v4 = vpop.f32.mrf.mxu0  ;;  %v3790_v5 = vpop.f32.mrf.mxu1  ;;  %v9809_v63 = vld [vmem:[%s15190_s0 + $0x220] sm:$0xff] }
 0x3e1   : > { %7929 = vst [vmem:[%s10763_s27 + $0x840] sm:$0xff] %v6697_v57  ;;  %7931 = vst [vmem:[%s10763_s27 + $0x850] sm:$0xff] %v6699_v58  ;;  %v5481_v8 = vmax.f32 %v3262_v60, 1.5  ;;  %v5483_v10 = vmax.f32 %v3789_v1, 1.5  ;;  %v3264_v11 = vadd.f32 %v3263_v4, %v13136_v53  ;;  %v3791_v12 = vadd.f32 %v3790_v5, %v13140_v31 }
 0x3e2   : > { %v6698_v13 = vmin.f32 %v5466_v2, 1.7  ;;  %v6700_v14 = vmin.f32 %v5468_v3, 1.7  ;;  %v3267_v15 = vpop.f32.mrf.mxu0  ;;  %9371 = vmatmul.mubr.msk.f32.gmra.mxu0 %vm753_vm0, %v9807_v18  ;;  %v3794_v19 = vpop.f32.mrf.mxu1  ;;  %9448 = vmatmul.mubr.msk.f32.gmra.mxu1 %vm753_vm0, %v9807_v18 }
 0x3e3   : > { %v6713_v20 = vmin.f32 %v5481_v8, 1.7  ;;  %v6715_v21 = vmin.f32 %v5483_v10, 1.7  ;;  %v5482_v22 = vmax.f32 %v3264_v11, 1.5  ;;  %v5484_v23 = vmax.f32 %v3791_v12, 1.5  ;;  %3559 = vmatprep.mubr.f32.mxu0 %v9958_v0  ;;  %4086 = vmatprep.mubr.f32.mxu1 %v9958_v0 }
 0x3e4   : > { %7930 = vst [vmem:[%s10763_s27 + $0x848] sm:$0xff] %v6698_v13  ;;  %7932 = vst [vmem:[%s10763_s27 + $0x858] sm:$0xff] %v6700_v14  ;;  %v3268_v24 = vadd.f32 %v3267_v15, %v13113_v9  ;;  %v3795_v25 = vadd.f32 %v3794_v19, %v13126_v52  ;;  %v3269_v26 = vpop.f32.mrf.mxu0  ;;  %v3796_v27 = vpop.f32.mrf.mxu1  ;;  %v9810_v13 = vld [vmem:[%s15190_s0 + $0x228] sm:$0xff] }
 0x3e5   : > { %7945 = vst [vmem:[%s10763_s27 + $0x8c0] sm:$0xff] %v6713_v20  ;;  %7947 = vst [vmem:[%s10763_s27 + $0x8d0] sm:$0xff] %v6715_v21  ;;  %v6714_v30 = vmin.f32 %v5482_v22, 1.7  ;;  %v6716_v28 = vmin.f32 %v5484_v23, 1.7  ;;  %v3270_v29 = vadd.f32 %v3269_v26, %v13136_v53  ;;  %v3797_v32 = vadd.f32 %v3796_v27, %v13140_v31 }
 0x3e6   : > { %v5497_v33 = vmax.f32 %v3268_v24, 1.5  ;;  %v5499_v34 = vmax.f32 %v3795_v25, 1.5  ;;  %v3273_v35 = vpop.f32.mrf.mxu0  ;;  %9372 = vmatmul.mubr.msk.f32.gmra.mxu0 %vm753_vm0, %v9808_v36  ;;  %v3800_v55 = vpop.f32.mrf.mxu1  ;;  %9449 = vmatmul.mubr.msk.f32.gmra.mxu1 %vm753_vm0, %v9808_v36 }
 0x3e7   : > { %7946 = vst [vmem:[%s10763_s27 + $0x8c8] sm:$0xff] %v6714_v30  ;;  %7948 = vst [vmem:[%s10763_s27 + $0x8d8] sm:$0xff] %v6716_v28  ;;  %v5498_v56 = vmax.f32 %v3270_v29, 1.5  ;;  %v5500_v37 = vmax.f32 %v3797_v32, 1.5  ;;  %v3274_v38 = vadd.f32 %v3273_v35, %v13113_v9  ;;  %v3801_v47 = vadd.f32 %v3800_v55, %v13126_v52  ;;  %3565 = vmatprep.mubr.f32.mxu0 %v9958_v0 }
 0x3e8   : > { %4092 = vmatprep.mubr.f32.mxu1 %v9958_v0  ;;  %v6729_v39 = vmin.f32 %v5497_v33, 1.7  ;;  %v6731_v62 = vmin.f32 %v5499_v34, 1.7  ;;  %v3275_v40 = vpop.f32.mrf.mxu0  ;;  %v3802_v41 = vpop.f32.mrf.mxu1  ;;  %v9811_v33 = vld [vmem:[%s15190_s0 + $0x230] sm:$0xff] }
 0x3e9   : > { %v6730_v42 = vmin.f32 %v5498_v56, 1.7  ;;  %v6732_v43 = vmin.f32 %v5500_v37, 1.7  ;;  %v5513_v44 = vmax.f32 %v3274_v38, 1.5  ;;  %v5515_v45 = vmax.f32 %v3801_v47, 1.5 }
 0x3ea   : > { %7961 = vst [vmem:[%s10763_s27 + $0x940] sm:$0xff] %v6729_v39  ;;  %7963 = vst [vmem:[%s10763_s27 + $0x950] sm:$0xff] %v6731_v62  ;;  %v3276_v46 = vadd.f32 %v3275_v40, %v13136_v53  ;;  %v3803_v59 = vadd.f32 %v3802_v41, %v13140_v31  ;;  %v3279_v61 = vpop.f32.mrf.mxu0  ;;  %9373 = vmatmul.mubr.msk.f32.gmra.mxu0 %vm753_vm0, %v9809_v63  ;;  %v3806_v48 = vpop.f32.mrf.mxu1  ;;  %9450 = vmatmul.mubr.msk.f32.gmra.mxu1 %vm753_vm0, %v9809_v63 }
 0x3eb   : > { %7962 = vst [vmem:[%s10763_s27 + $0x948] sm:$0xff] %v6730_v42  ;;  %7964 = vst [vmem:[%s10763_s27 + $0x958] sm:$0xff] %v6732_v43  ;;  %v6745_v49 = vmin.f32 %v5513_v44, 1.7  ;;  %v6747_v51 = vmin.f32 %v5515_v45, 1.7  ;;  %v3280_v54 = vadd.f32 %v3279_v61, %v13113_v9  ;;  %v3807_v57 = vadd.f32 %v3806_v48, %v13126_v52  ;;  %3571 = vmatprep.mubr.f32.mxu0 %v9958_v0 }
 0x3ec   : > { %4098 = vmatprep.mubr.f32.mxu1 %v9958_v0  ;;  %v5514_v58 = vmax.f32 %v3276_v46, 1.5  ;;  %v5516_v60 = vmax.f32 %v3803_v59, 1.5  ;;  %v3281_v1 = vpop.f32.mrf.mxu0  ;;  %v3808_v2 = vpop.f32.mrf.mxu1  ;;  %v9812_v46 = vld [vmem:[%s15190_s0 + $0x238] sm:$0xff] }
 0x3ed   : > { %7977 = vst [vmem:[%s10763_s27 + $0x9c0] sm:$0xff] %v6745_v49  ;;  %7979 = vst [vmem:[%s10763_s27 + $0x9d0] sm:$0xff] %v6747_v51  ;;  %v5529_v3 = vmax.f32 %v3280_v54, 1.5  ;;  %v5531_v4 = vmax.f32 %v3807_v57, 1.5  ;;  %v3282_v5 = vadd.f32 %v3281_v1, %v13136_v53  ;;  %v3809_v8 = vadd.f32 %v3808_v2, %v13140_v31 }
 0x3ee   : > { %v6746_v10 = vmin.f32 %v5514_v58, 1.7  ;;  %v6748_v11 = vmin.f32 %v5516_v60, 1.7  ;;  %v3285_v12 = vpop.f32.mrf.mxu0  ;;  %9374 = vmatmul.mubr.msk.f32.gmra.mxu0 %vm753_vm0, %v9810_v13  ;;  %v3812_v14 = vpop.f32.mrf.mxu1  ;;  %9451 = vmatmul.mubr.msk.f32.gmra.mxu1 %vm753_vm0, %v9810_v13 }
 0x3ef   : > { %v6761_v15 = vmin.f32 %v5529_v3, 1.7  ;;  %v6763_v18 = vmin.f32 %v5531_v4, 1.7  ;;  %v5530_v19 = vmax.f32 %v3282_v5, 1.5  ;;  %v5532_v20 = vmax.f32 %v3809_v8, 1.5  ;;  %3577 = vmatprep.mubr.f32.mxu0 %v9958_v0  ;;  %4104 = vmatprep.mubr.f32.mxu1 %v9958_v0 }
 0x3f0   : > { %7978 = vst [vmem:[%s10763_s27 + $0x9c8] sm:$0xff] %v6746_v10  ;;  %7980 = vst [vmem:[%s10763_s27 + $0x9d8] sm:$0xff] %v6748_v11  ;;  %v3286_v21 = vadd.f32 %v3285_v12, %v13113_v9  ;;  %v3813_v22 = vadd.f32 %v3812_v14, %v13126_v52  ;;  %v3287_v23 = vpop.f32.mrf.mxu0  ;;  %v3814_v24 = vpop.f32.mrf.mxu1  ;;  %v9813_v10 = vld [vmem:[%s15190_s0 + $0x240] sm:$0xff] }
 0x3f1   : > { %7993 = vst [vmem:[%s10763_s27 + $0xa40] sm:$0xff] %v6761_v15  ;;  %7995 = vst [vmem:[%s10763_s27 + $0xa50] sm:$0xff] %v6763_v18  ;;  %v6762_v25 = vmin.f32 %v5530_v19, 1.7  ;;  %v6764_v26 = vmin.f32 %v5532_v20, 1.7  ;;  %v3288_v27 = vadd.f32 %v3287_v23, %v13136_v53  ;;  %v3815_v30 = vadd.f32 %v3814_v24, %v13140_v31 }
 0x3f2   : > { %v5545_v28 = vmax.f32 %v3286_v21, 1.5  ;;  %v5547_v29 = vmax.f32 %v3813_v22, 1.5  ;;  %v3291_v32 = vpop.f32.mrf.mxu0  ;;  %9375 = vmatmul.mubr.msk.f32.gmra.mxu0 %vm753_vm0, %v9811_v33  ;;  %v3818_v34 = vpop.f32.mrf.mxu1  ;;  %9452 = vmatmul.mubr.msk.f32.gmra.mxu1 %vm753_vm0, %v9811_v33 }
 0x3f3   : > { %7994 = vst [vmem:[%s10763_s27 + $0xa48] sm:$0xff] %v6762_v25  ;;  %7996 = vst [vmem:[%s10763_s27 + $0xa58] sm:$0xff] %v6764_v26  ;;  %v5546_v35 = vmax.f32 %v3288_v27, 1.5  ;;  %v5548_v36 = vmax.f32 %v3815_v30, 1.5  ;;  %v3292_v55 = vadd.f32 %v3291_v32, %v13113_v9  ;;  %v3819_v56 = vadd.f32 %v3818_v34, %v13126_v52  ;;  %3583 = vmatprep.mubr.f32.mxu0 %v9958_v0 }
 0x3f4   : > { %4110 = vmatprep.mubr.f32.mxu1 %v9958_v0  ;;  %v6777_v37 = vmin.f32 %v5545_v28, 1.7  ;;  %v6779_v38 = vmin.f32 %v5547_v29, 1.7  ;;  %v3293_v47 = vpop.f32.mrf.mxu0  ;;  %v3820_v39 = vpop.f32.mrf.mxu1  ;;  %v9814_v28 = vld [vmem:[%s15190_s0 + $0x248] sm:$0xff] }
 0x3f5   : > { %v6778_v62 = vmin.f32 %v5546_v35, 1.7  ;;  %v6780_v40 = vmin.f32 %v5548_v36, 1.7  ;;  %v5561_v41 = vmax.f32 %v3292_v55, 1.5  ;;  %v5563_v42 = vmax.f32 %v3819_v56, 1.5 }
 0x3f6   : > { %8009 = vst [vmem:[%s10763_s27 + $0xac0] sm:$0xff] %v6777_v37  ;;  %8011 = vst [vmem:[%s10763_s27 + $0xad0] sm:$0xff] %v6779_v38  ;;  %v3294_v43 = vadd.f32 %v3293_v47, %v13136_v53  ;;  %v3821_v44 = vadd.f32 %v3820_v39, %v13140_v31  ;;  %v3297_v45 = vpop.f32.mrf.mxu0  ;;  %9376 = vmatmul.mubr.msk.f32.gmra.mxu0 %vm753_vm0, %v9812_v46  ;;  %v3824_v59 = vpop.f32.mrf.mxu1  ;;  %9453 = vmatmul.mubr.msk.f32.gmra.mxu1 %vm753_vm0, %v9812_v46 }
 0x3f7   : > { %8010 = vst [vmem:[%s10763_s27 + $0xac8] sm:$0xff] %v6778_v62  ;;  %8012 = vst [vmem:[%s10763_s27 + $0xad8] sm:$0xff] %v6780_v40  ;;  %v6793_v61 = vmin.f32 %v5561_v41, 1.7  ;;  %v6795_v63 = vmin.f32 %v5563_v42, 1.7  ;;  %v3298_v48 = vadd.f32 %v3297_v45, %v13113_v9  ;;  %v3825_v49 = vadd.f32 %v3824_v59, %v13126_v52  ;;  %3589 = vmatprep.mubr.f32.mxu0 %v9958_v0 }
 0x3f8   : > { %4116 = vmatprep.mubr.f32.mxu1 %v9958_v0  ;;  %v5562_v51 = vmax.f32 %v3294_v43, 1.5  ;;  %v5564_v54 = vmax.f32 %v3821_v44, 1.5  ;;  %v3299_v57 = vpop.f32.mrf.mxu0  ;;  %v3826_v58 = vpop.f32.mrf.mxu1  ;;  %v9815_v43 = vld [vmem:[%s15190_s0 + $0x250] sm:$0xff] }
 0x3f9   : > { %8025 = vst [vmem:[%s10763_s27 + $0xb40] sm:$0xff] %v6793_v61  ;;  %8027 = vst [vmem:[%s10763_s27 + $0xb50] sm:$0xff] %v6795_v63  ;;  %v5577_v60 = vmax.f32 %v3298_v48, 1.5  ;;  %v5579_v1 = vmax.f32 %v3825_v49, 1.5  ;;  %v3300_v2 = vadd.f32 %v3299_v57, %v13136_v53  ;;  %v3827_v3 = vadd.f32 %v3826_v58, %v13140_v31 }
 0x3fa   : > { %v6794_v4 = vmin.f32 %v5562_v51, 1.7  ;;  %v6796_v5 = vmin.f32 %v5564_v54, 1.7  ;;  %v3303_v8 = vpop.f32.mrf.mxu0  ;;  %9377 = vmatmul.mubr.msk.f32.gmra.mxu0 %vm753_vm0, %v9813_v10  ;;  %v3830_v11 = vpop.f32.mrf.mxu1  ;;  %9454 = vmatmul.mubr.msk.f32.gmra.mxu1 %vm753_vm0, %v9813_v10 }
 0x3fb   : > { %v6809_v12 = vmin.f32 %v5577_v60, 1.7  ;;  %v6811_v13 = vmin.f32 %v5579_v1, 1.7  ;;  %v5578_v14 = vmax.f32 %v3300_v2, 1.5  ;;  %v5580_v15 = vmax.f32 %v3827_v3, 1.5  ;;  %3595 = vmatprep.mubr.f32.mxu0 %v9958_v0  ;;  %4122 = vmatprep.mubr.f32.mxu1 %v9958_v0 }
 0x3fc   : > { %8026 = vst [vmem:[%s10763_s27 + $0xb48] sm:$0xff] %v6794_v4  ;;  %8028 = vst [vmem:[%s10763_s27 + $0xb58] sm:$0xff] %v6796_v5  ;;  %v3304_v18 = vadd.f32 %v3303_v8, %v13113_v9  ;;  %v3831_v19 = vadd.f32 %v3830_v11, %v13126_v52  ;;  %v3305_v20 = vpop.f32.mrf.mxu0  ;;  %v3832_v21 = vpop.f32.mrf.mxu1  ;;  %v9816_v4 = vld [vmem:[%s15190_s0 + $0x258] sm:$0xff] }
 0x3fd   : > { %8041 = vst [vmem:[%s10763_s27 + $0xbc0] sm:$0xff] %v6809_v12  ;;  %8043 = vst [vmem:[%s10763_s27 + $0xbd0] sm:$0xff] %v6811_v13  ;;  %v6810_v22 = vmin.f32 %v5578_v14, 1.7  ;;  %v6812_v23 = vmin.f32 %v5580_v15, 1.7  ;;  %v3306_v24 = vadd.f32 %v3305_v20, %v13136_v53  ;;  %v3833_v25 = vadd.f32 %v3832_v21, %v13140_v31 }
 0x3fe   : > { %v5593_v26 = vmax.f32 %v3304_v18, 1.5  ;;  %v5595_v27 = vmax.f32 %v3831_v19, 1.5  ;;  %v3309_v30 = vpop.f32.mrf.mxu0  ;;  %9378 = vmatmul.mubr.msk.f32.gmra.mxu0 %vm753_vm0, %v9814_v28  ;;  %v3836_v29 = vpop.f32.mrf.mxu1  ;;  %9455 = vmatmul.mubr.msk.f32.gmra.mxu1 %vm753_vm0, %v9814_v28 }
 0x3ff   : > { %8042 = vst [vmem:[%s10763_s27 + $0xbc8] sm:$0xff] %v6810_v22  ;;  %8044 = vst [vmem:[%s10763_s27 + $0xbd8] sm:$0xff] %v6812_v23  ;;  %v5594_v32 = vmax.f32 %v3306_v24, 1.5  ;;  %v5596_v33 = vmax.f32 %v3833_v25, 1.5  ;;  %v3310_v34 = vadd.f32 %v3309_v30, %v13113_v9  ;;  %v3837_v35 = vadd.f32 %v3836_v29, %v13126_v52  ;;  %3601 = vmatprep.mubr.f32.mxu0 %v9958_v0 }
 0x400   : > { %4128 = vmatprep.mubr.f32.mxu1 %v9958_v0  ;;  %v6825_v36 = vmin.f32 %v5593_v26, 1.7  ;;  %v6827_v55 = vmin.f32 %v5595_v27, 1.7  ;;  %v3311_v56 = vpop.f32.mrf.mxu0  ;;  %v3838_v37 = vpop.f32.mrf.mxu1  ;;  %v9817_v26 = vld [vmem:[%s15190_s0 + $0x260] sm:$0x1] }
 0x401   : > { %v6826_v38 = vmin.f32 %v5594_v32, 1.7  ;;  %v6828_v47 = vmin.f32 %v5596_v33, 1.7  ;;  %v5609_v39 = vmax.f32 %v3310_v34, 1.5  ;;  %v5611_v62 = vmax.f32 %v3837_v35, 1.5 }
 0x402   : > { %8057 = vst [vmem:[%s10763_s27 + $0xc40] sm:$0xff] %v6825_v36  ;;  %8059 = vst [vmem:[%s10763_s27 + $0xc50] sm:$0xff] %v6827_v55  ;;  %v3312_v40 = vadd.f32 %v3311_v56, %v13136_v53  ;;  %v3839_v41 = vadd.f32 %v3838_v37, %v13140_v31  ;;  %v3315_v42 = vpop.f32.mrf.mxu0  ;;  %9379 = vmatmul.mubr.msk.f32.gmra.mxu0 %vm753_vm0, %v9815_v43  ;;  %v3842_v44 = vpop.f32.mrf.mxu1  ;;  %9456 = vmatmul.mubr.msk.f32.gmra.mxu1 %vm753_vm0, %v9815_v43 }
 0x403   : > { %8058 = vst [vmem:[%s10763_s27 + $0xc48] sm:$0xff] %v6826_v38  ;;  %8060 = vst [vmem:[%s10763_s27 + $0xc58] sm:$0xff] %v6828_v47  ;;  %v6841_v45 = vmin.f32 %v5609_v39, 1.7  ;;  %v6843_v46 = vmin.f32 %v5611_v62, 1.7  ;;  %v3316_v59 = vadd.f32 %v3315_v42, %v13113_v9  ;;  %v3843_v61 = vadd.f32 %v3842_v44, %v13126_v52  ;;  %3607 = vmatprep.mubr.f32.mxu0 %v9958_v0 }
 0x404   : > { %4134 = vmatprep.mubr.f32.mxu1 %v9958_v0  ;;  %v5610_v63 = vmax.f32 %v3312_v40, 1.5  ;;  %v5612_v48 = vmax.f32 %v3839_v41, 1.5  ;;  %v3317_v49 = vpop.f32.mrf.mxu0  ;;  %v3844_v51 = vpop.f32.mrf.mxu1  ;;  %v9818_v41 = vld [vmem:[%s15190_s0] sm:$0xff] }
 0x405   : > { %8073 = vst [vmem:[%s10763_s27 + $0xcc0] sm:$0xff] %v6841_v45  ;;  %8075 = vst [vmem:[%s10763_s27 + $0xcd0] sm:$0xff] %v6843_v46  ;;  %v5625_v54 = vmax.f32 %v3316_v59, 1.5  ;;  %v5627_v57 = vmax.f32 %v3843_v61, 1.5  ;;  %v3318_v58 = vadd.f32 %v3317_v49, %v13136_v53  ;;  %v3845_v60 = vadd.f32 %v3844_v51, %v13140_v31 }
 0x406   : > { %v6842_v1 = vmin.f32 %v5610_v63, 1.7  ;;  %v6844_v2 = vmin.f32 %v5612_v48, 1.7  ;;  %v3321_v3 = vpop.f32.mrf.mxu0  ;;  %9380 = vmatmul.mubr.msk.f32.gmra.mxu0 %vm753_vm0, %v9816_v4  ;;  %v3848_v5 = vpop.f32.mrf.mxu1  ;;  %9457 = vmatmul.mubr.msk.f32.gmra.mxu1 %vm753_vm0, %v9816_v4 }
 0x407   : > { %v6857_v8 = vmin.f32 %v5625_v54, 1.7  ;;  %v6859_v10 = vmin.f32 %v5627_v57, 1.7  ;;  %v5626_v11 = vmax.f32 %v3318_v58, 1.5  ;;  %v5628_v12 = vmax.f32 %v3845_v60, 1.5  ;;  %3613 = vmatprep.mubr.f32.mxu0 %v9958_v0  ;;  %4140 = vmatprep.mubr.f32.mxu1 %v9958_v0 }
 0x408   : > { %8074 = vst [vmem:[%s10763_s27 + $0xcc8] sm:$0xff] %v6842_v1  ;;  %8076 = vst [vmem:[%s10763_s27 + $0xcd8] sm:$0xff] %v6844_v2  ;;  %v3322_v13 = vadd.f32 %v3321_v3, %v13113_v9  ;;  %v3849_v14 = vadd.f32 %v3848_v5, %v13126_v52  ;;  %v3323_v15 = vpop.f32.mrf.mxu0  ;;  %v3850_v18 = vpop.f32.mrf.mxu1  ;;  %v9819_v2 = vld [vmem:[%s15190_s0 + $0x8] sm:$0xff] }
 0x409   : > { %8089 = vst [vmem:[%s10763_s27 + $0xd40] sm:$0xff] %v6857_v8  ;;  %8091 = vst [vmem:[%s10763_s27 + $0xd50] sm:$0xff] %v6859_v10  ;;  %v6858_v19 = vmin.f32 %v5626_v11, 1.7  ;;  %v6860_v20 = vmin.f32 %v5628_v12, 1.7  ;;  %v3324_v21 = vadd.f32 %v3323_v15, %v13136_v53  ;;  %v3851_v22 = vadd.f32 %v3850_v18, %v13140_v31 }
 0x40a   : > { %v5641_v23 = vmax.f32 %v3322_v13, 1.5  ;;  %v5643_v24 = vmax.f32 %v3849_v14, 1.5  ;;  %v3327_v25 = vpop.f32.mrf.mxu0  ;;  %9381 = vmatmul.mubr.msk.f32.gmra.mxu0 %vm753_vm0, %v9817_v26  ;;  %v3854_v27 = vpop.f32.mrf.mxu1  ;;  %9458 = vmatmul.mubr.msk.f32.gmra.mxu1 %vm753_vm0, %v9817_v26 }
 0x40b   : > { %8090 = vst [vmem:[%s10763_s27 + $0xd48] sm:$0xff] %v6858_v19  ;;  %8092 = vst [vmem:[%s10763_s27 + $0xd58] sm:$0xff] %v6860_v20  ;;  %v5642_v30 = vmax.f32 %v3324_v21, 1.5  ;;  %v5644_v28 = vmax.f32 %v3851_v22, 1.5  ;;  %v3328_v29 = vadd.f32 %v3327_v25, %v13113_v9  ;;  %v3855_v32 = vadd.f32 %v3854_v27, %v13126_v52  ;;  %4211 = vmatprep.mubr.f32.mxu0 %v9958_v0 }
 0x40c   : > { %4738 = vmatprep.mubr.f32.mxu1 %v9958_v0  ;;  %v6873_v33 = vmin.f32 %v5641_v23, 1.7  ;;  %v6875_v34 = vmin.f32 %v5643_v24, 1.7  ;;  %v3329_v35 = vpop.f32.mrf.mxu0  ;;  %v3856_v36 = vpop.f32.mrf.mxu1  ;;  %v9820_v24 = vld [vmem:[%s15190_s0 + $0x10] sm:$0xff] }
 0x40d   : > { %v6874_v55 = vmin.f32 %v5642_v30, 1.7  ;;  %v6876_v56 = vmin.f32 %v5644_v28, 1.7  ;;  %v5657_v37 = vmax.f32 %v3328_v29, 1.5  ;;  %v5659_v38 = vmax.f32 %v3855_v32, 1.5 }
 0x40e   : > { %8105 = vst [vmem:[%s10763_s27 + $0xdc0] sm:$0xff] %v6873_v33  ;;  %8107 = vst [vmem:[%s10763_s27 + $0xdd0] sm:$0xff] %v6875_v34  ;;  %v3330_v47 = vadd.f32 %v3329_v35, %v13136_v53  ;;  %v3857_v39 = vadd.f32 %v3856_v36, %v13140_v31  ;;  %v3333_v62 = vpop.f32.mrf.mxu0  ;;  %v3860_v40 = vpop.f32.mrf.mxu1  ;;  %9459 = vmatmul.mubr.msk.f32.vlgmr.msra.gmra.mxu0 %vm753_vm0, %v9818_v41  ;;  %9536 = vmatmul.mubr.msk.f32.vlgmr.msra.gmra.mxu1 %vm753_vm0, %v9818_v41 }
 0x40f   : > { %8106 = vst [vmem:[%s10763_s27 + $0xdc8] sm:$0xff] %v6874_v55  ;;  %8108 = vst [vmem:[%s10763_s27 + $0xdd8] sm:$0xff] %v6876_v56  ;;  %v6889_v42 = vmin.f32 %v5657_v37, 1.7  ;;  %v6891_v43 = vmin.f32 %v5659_v38, 1.7  ;;  %v3334_v44 = vadd.f32 %v3333_v62, %v13113_v9  ;;  %v3861_v45 = vadd.f32 %v3860_v40, %v13126_v52  ;;  %4217 = vmatprep.mubr.f32.mxu0 %v9958_v0 }
 0x410   : > { %4744 = vmatprep.mubr.f32.mxu1 %v9958_v0  ;;  %v5658_v46 = vmax.f32 %v3330_v47, 1.5  ;;  %v5660_v59 = vmax.f32 %v3857_v39, 1.5  ;;  %v3335_v61 = vpop.f32.mrf.mxu0  ;;  %v3862_v63 = vpop.f32.mrf.mxu1  ;;  %v9821_v39 = vld [vmem:[%s15190_s0 + $0x18] sm:$0xff] }
 0x411   : > { %8121 = vst [vmem:[%s10763_s27 + $0xe40] sm:$0xff] %v6889_v42  ;;  %8123 = vst [vmem:[%s10763_s27 + $0xe50] sm:$0xff] %v6891_v43  ;;  %v5673_v48 = vmax.f32 %v3334_v44, 1.5  ;;  %v5675_v49 = vmax.f32 %v3861_v45, 1.5  ;;  %v3336_v51 = vadd.f32 %v3335_v61, %v13136_v53  ;;  %v3863_v54 = vadd.f32 %v3862_v63, %v13140_v31 }
 0x412   : > { %v6890_v57 = vmin.f32 %v5658_v46, 1.7  ;;  %v6892_v58 = vmin.f32 %v5660_v59, 1.7  ;;  %v3339_v60 = vpop.f32.mrf.mxu0  ;;  %v3866_v1 = vpop.f32.mrf.mxu1  ;;  %9460 = vmatmul.mubr.msk.f32.gmra.mxu0 %vm753_vm0, %v9819_v2  ;;  %9537 = vmatmul.mubr.msk.f32.gmra.mxu1 %vm753_vm0, %v9819_v2 }
 0x413   : > { %v6905_v3 = vmin.f32 %v5673_v48, 1.7  ;;  %v6907_v4 = vmin.f32 %v5675_v49, 1.7  ;;  %v5674_v5 = vmax.f32 %v3336_v51, 1.5  ;;  %v5676_v8 = vmax.f32 %v3863_v54, 1.5  ;;  %4223 = vmatprep.mubr.f32.mxu0 %v9958_v0  ;;  %4750 = vmatprep.mubr.f32.mxu1 %v9958_v0 }
 0x414   : > { %8122 = vst [vmem:[%s10763_s27 + $0xe48] sm:$0xff] %v6890_v57  ;;  %8124 = vst [vmem:[%s10763_s27 + $0xe58] sm:$0xff] %v6892_v58  ;;  %v3340_v10 = vadd.f32 %v3339_v60, %v13113_v9  ;;  %v3867_v11 = vadd.f32 %v3866_v1, %v13126_v52  ;;  %v3341_v12 = vpop.f32.mrf.mxu0  ;;  %v3868_v13 = vpop.f32.mrf.mxu1  ;;  %v9822_v58 = vld [vmem:[%s15190_s0 + $0x20] sm:$0xff] }
 0x415   : > { %8137 = vst [vmem:[%s10763_s27 + $0xec0] sm:$0xff] %v6905_v3  ;;  %8139 = vst [vmem:[%s10763_s27 + $0xed0] sm:$0xff] %v6907_v4  ;;  %v6906_v14 = vmin.f32 %v5674_v5, 1.7  ;;  %v6908_v15 = vmin.f32 %v5676_v8, 1.7  ;;  %v3342_v18 = vadd.f32 %v3341_v12, %v13136_v53  ;;  %v3869_v19 = vadd.f32 %v3868_v13, %v13140_v31 }
 0x416   : > { %v5689_v20 = vmax.f32 %v3340_v10, 1.5  ;;  %v5691_v21 = vmax.f32 %v3867_v11, 1.5  ;;  %v3345_v22 = vpop.f32.mrf.mxu0  ;;  %v3872_v23 = vpop.f32.mrf.mxu1  ;;  %9461 = vmatmul.mubr.msk.f32.gmra.mxu0 %vm753_vm0, %v9820_v24  ;;  %9538 = vmatmul.mubr.msk.f32.gmra.mxu1 %vm753_vm0, %v9820_v24 }
 0x417   : > { %8138 = vst [vmem:[%s10763_s27 + $0xec8] sm:$0xff] %v6906_v14  ;;  %8140 = vst [vmem:[%s10763_s27 + $0xed8] sm:$0xff] %v6908_v15  ;;  %v5690_v25 = vmax.f32 %v3342_v18, 1.5  ;;  %v5692_v26 = vmax.f32 %v3869_v19, 1.5  ;;  %v3346_v27 = vadd.f32 %v3345_v22, %v13113_v9  ;;  %v3873_v30 = vadd.f32 %v3872_v23, %v13126_v52  ;;  %4229 = vmatprep.mubr.f32.mxu0 %v9958_v0 }
 0x418   : > { %4756 = vmatprep.mubr.f32.mxu1 %v9958_v0  ;;  %v6921_v28 = vmin.f32 %v5689_v20, 1.7  ;;  %v6923_v29 = vmin.f32 %v5691_v21, 1.7  ;;  %v3347_v32 = vpop.f32.mrf.mxu0  ;;  %v3874_v33 = vpop.f32.mrf.mxu1  ;;  %v9823_v21 = vld [vmem:[%s15190_s0 + $0x28] sm:$0xff] }
 0x419   : > { %v6922_v34 = vmin.f32 %v5690_v25, 1.7  ;;  %v6924_v35 = vmin.f32 %v5692_v26, 1.7  ;;  %v5705_v36 = vmax.f32 %v3346_v27, 1.5  ;;  %v5707_v55 = vmax.f32 %v3873_v30, 1.5 }
 0x41a   : > { %8153 = vst [vmem:[%s10763_s27 + $0xf40] sm:$0xff] %v6921_v28  ;;  %8155 = vst [vmem:[%s10763_s27 + $0xf50] sm:$0xff] %v6923_v29  ;;  %v3348_v56 = vadd.f32 %v3347_v32, %v13136_v53  ;;  %v3875_v37 = vadd.f32 %v3874_v33, %v13140_v31  ;;  %v3351_v38 = vpop.f32.mrf.mxu0  ;;  %v3878_v47 = vpop.f32.mrf.mxu1  ;;  %9462 = vmatmul.mubr.msk.f32.gmra.mxu0 %vm753_vm0, %v9821_v39  ;;  %9539 = vmatmul.mubr.msk.f32.gmra.mxu1 %vm753_vm0, %v9821_v39 }
 0x41b   : > { %8154 = vst [vmem:[%s10763_s27 + $0xf48] sm:$0xff] %v6922_v34  ;;  %8156 = vst [vmem:[%s10763_s27 + $0xf58] sm:$0xff] %v6924_v35  ;;  %v6937_v62 = vmin.f32 %v5705_v36, 1.7  ;;  %v6939_v40 = vmin.f32 %v5707_v55, 1.7  ;;  %v3352_v41 = vadd.f32 %v3351_v38, %v13113_v9  ;;  %v3879_v42 = vadd.f32 %v3878_v47, %v13126_v52  ;;  %4235 = vmatprep.mubr.f32.mxu0 %v9958_v0 }
 0x41c   : > { %4762 = vmatprep.mubr.f32.mxu1 %v9958_v0  ;;  %v5706_v43 = vmax.f32 %v3348_v56, 1.5  ;;  %v5708_v44 = vmax.f32 %v3875_v37, 1.5  ;;  %v3353_v45 = vpop.f32.mrf.mxu0  ;;  %v3880_v46 = vpop.f32.mrf.mxu1  ;;  %v9824_v37 = vld [vmem:[%s15190_s0 + $0x30] sm:$0xff] }
 0x41d   : > { %8169 = vst [vmem:[%s10763_s27 + $0xfc0] sm:$0xff] %v6937_v62  ;;  %8171 = vst [vmem:[%s10763_s27 + $0xfd0] sm:$0xff] %v6939_v40  ;;  %v5721_v59 = vmax.f32 %v3352_v41, 1.5  ;;  %v5723_v61 = vmax.f32 %v3879_v42, 1.5  ;;  %v3354_v63 = vadd.f32 %v3353_v45, %v13136_v53  ;;  %v3881_v48 = vadd.f32 %v3880_v46, %v13140_v31 }
 0x41e   : > { %v6938_v49 = vmin.f32 %v5706_v43, 1.7  ;;  %v6940_v51 = vmin.f32 %v5708_v44, 1.7  ;;  %v3357_v54 = vpop.f32.mrf.mxu0  ;;  %v3884_v57 = vpop.f32.mrf.mxu1  ;;  %9463 = vmatmul.mubr.msk.f32.gmra.mxu0 %vm753_vm0, %v9822_v58  ;;  %9540 = vmatmul.mubr.msk.f32.gmra.mxu1 %vm753_vm0, %v9822_v58 }
 0x41f   : > { %v6953_v60 = vmin.f32 %v5721_v59, 1.7  ;;  %v6955_v1 = vmin.f32 %v5723_v61, 1.7  ;;  %v5722_v2 = vmax.f32 %v3354_v63, 1.5  ;;  %v5724_v3 = vmax.f32 %v3881_v48, 1.5  ;;  %4241 = vmatprep.mubr.f32.mxu0 %v9958_v0  ;;  %4768 = vmatprep.mubr.f32.mxu1 %v9958_v0 }
 0x420   : > { %8170 = vst [vmem:[%s10763_s27 + $0xfc8] sm:$0xff] %v6938_v49  ;;  %8172 = vst [vmem:[%s10763_s27 + $0xfd8] sm:$0xff] %v6940_v51  ;;  %v3358_v4 = vadd.f32 %v3357_v54, %v13113_v9  ;;  %v3885_v5 = vadd.f32 %v3884_v57, %v13126_v52  ;;  %v3359_v8 = vpop.f32.mrf.mxu0  ;;  %v3886_v10 = vpop.f32.mrf.mxu1  ;;  %v9825_v51 = vld [vmem:[%s15190_s0 + $0x38] sm:$0xff] }
 0x421   : > { %8185 = vst [vmem:[%s10763_s27 + $0x1040] sm:$0xff] %v6953_v60  ;;  %8187 = vst [vmem:[%s10763_s27 + $0x1050] sm:$0xff] %v6955_v1  ;;  %v6954_v11 = vmin.f32 %v5722_v2, 1.7  ;;  %v6956_v12 = vmin.f32 %v5724_v3, 1.7  ;;  %v3360_v13 = vadd.f32 %v3359_v8, %v13136_v53  ;;  %v3887_v14 = vadd.f32 %v3886_v10, %v13140_v31 }
 0x422   : > { %v5737_v15 = vmax.f32 %v3358_v4, 1.5  ;;  %v5739_v18 = vmax.f32 %v3885_v5, 1.5  ;;  %v3363_v19 = vpop.f32.mrf.mxu0  ;;  %v3890_v20 = vpop.f32.mrf.mxu1  ;;  %9464 = vmatmul.mubr.msk.f32.gmra.mxu0 %vm753_vm0, %v9823_v21  ;;  %9541 = vmatmul.mubr.msk.f32.gmra.mxu1 %vm753_vm0, %v9823_v21 }
 0x423   : > { %8186 = vst [vmem:[%s10763_s27 + $0x1048] sm:$0xff] %v6954_v11  ;;  %8188 = vst [vmem:[%s10763_s27 + $0x1058] sm:$0xff] %v6956_v12  ;;  %v5738_v22 = vmax.f32 %v3360_v13, 1.5  ;;  %v5740_v23 = vmax.f32 %v3887_v14, 1.5  ;;  %v3364_v24 = vadd.f32 %v3363_v19, %v13113_v9  ;;  %v3891_v25 = vadd.f32 %v3890_v20, %v13126_v52  ;;  %4247 = vmatprep.mubr.f32.mxu0 %v9958_v0 }
 0x424   : > { %4774 = vmatprep.mubr.f32.mxu1 %v9958_v0  ;;  %v6969_v26 = vmin.f32 %v5737_v15, 1.7  ;;  %v6971_v27 = vmin.f32 %v5739_v18, 1.7  ;;  %v3365_v30 = vpop.f32.mrf.mxu0  ;;  %v3892_v28 = vpop.f32.mrf.mxu1  ;;  %v9826_v18 = vld [vmem:[%s15190_s0 + $0x40] sm:$0xff] }
 0x425   : > { %v6970_v29 = vmin.f32 %v5738_v22, 1.7  ;;  %v6972_v32 = vmin.f32 %v5740_v23, 1.7  ;;  %v5753_v33 = vmax.f32 %v3364_v24, 1.5  ;;  %v5755_v34 = vmax.f32 %v3891_v25, 1.5 }
 0x426   : > { %8201 = vst [vmem:[%s10763_s27 + $0x10c0] sm:$0xff] %v6969_v26  ;;  %8203 = vst [vmem:[%s10763_s27 + $0x10d0] sm:$0xff] %v6971_v27  ;;  %v3366_v35 = vadd.f32 %v3365_v30, %v13136_v53  ;;  %v3893_v36 = vadd.f32 %v3892_v28, %v13140_v31  ;;  %v3369_v55 = vpop.f32.mrf.mxu0  ;;  %v3896_v56 = vpop.f32.mrf.mxu1  ;;  %9465 = vmatmul.mubr.msk.f32.gmra.mxu0 %vm753_vm0, %v9824_v37  ;;  %9542 = vmatmul.mubr.msk.f32.gmra.mxu1 %vm753_vm0, %v9824_v37 }
 0x427   : > { %8202 = vst [vmem:[%s10763_s27 + $0x10c8] sm:$0xff] %v6970_v29  ;;  %8204 = vst [vmem:[%s10763_s27 + $0x10d8] sm:$0xff] %v6972_v32  ;;  %v6985_v38 = vmin.f32 %v5753_v33, 1.7  ;;  %v6987_v47 = vmin.f32 %v5755_v34, 1.7  ;;  %v3370_v39 = vadd.f32 %v3369_v55, %v13113_v9  ;;  %v3897_v62 = vadd.f32 %v3896_v56, %v13126_v52  ;;  %4253 = vmatprep.mubr.f32.mxu0 %v9958_v0 }
 0x428   : > { %4780 = vmatprep.mubr.f32.mxu1 %v9958_v0  ;;  %v5754_v40 = vmax.f32 %v3366_v35, 1.5  ;;  %v5756_v41 = vmax.f32 %v3893_v36, 1.5  ;;  %v3371_v42 = vpop.f32.mrf.mxu0  ;;  %v3898_v43 = vpop.f32.mrf.mxu1  ;;  %v9827_v36 = vld [vmem:[%s15190_s0 + $0x48] sm:$0xff] }
 0x429   : > { %8217 = vst [vmem:[%s10763_s27 + $0x1140] sm:$0xff] %v6985_v38  ;;  %8219 = vst [vmem:[%s10763_s27 + $0x1150] sm:$0xff] %v6987_v47  ;;  %v5769_v44 = vmax.f32 %v3370_v39, 1.5  ;;  %v5771_v45 = vmax.f32 %v3897_v62, 1.5  ;;  %v3372_v46 = vadd.f32 %v3371_v42, %v13136_v53  ;;  %v3899_v59 = vadd.f32 %v3898_v43, %v13140_v31 }
 0x42a   : > { %v6986_v61 = vmin.f32 %v5754_v40, 1.7  ;;  %v6988_v63 = vmin.f32 %v5756_v41, 1.7  ;;  %v3375_v48 = vpop.f32.mrf.mxu0  ;;  %v3902_v49 = vpop.f32.mrf.mxu1  ;;  %9466 = vmatmul.mubr.msk.f32.gmra.mxu0 %vm753_vm0, %v9825_v51  ;;  %9543 = vmatmul.mubr.msk.f32.gmra.mxu1 %vm753_vm0, %v9825_v51 }
 0x42b   : > { %v7001_v54 = vmin.f32 %v5769_v44, 1.7  ;;  %v7003_v57 = vmin.f32 %v5771_v45, 1.7  ;;  %v5770_v58 = vmax.f32 %v3372_v46, 1.5  ;;  %v5772_v60 = vmax.f32 %v3899_v59, 1.5  ;;  %4259 = vmatprep.mubr.f32.mxu0 %v9958_v0  ;;  %4786 = vmatprep.mubr.f32.mxu1 %v9958_v0 }
 0x42c   : > { %8218 = vst [vmem:[%s10763_s27 + $0x1148] sm:$0xff] %v6986_v61  ;;  %8220 = vst [vmem:[%s10763_s27 + $0x1158] sm:$0xff] %v6988_v63  ;;  %v3376_v1 = vadd.f32 %v3375_v48, %v13113_v9  ;;  %v3903_v2 = vadd.f32 %v3902_v49, %v13126_v52  ;;  %v3377_v3 = vpop.f32.mrf.mxu0  ;;  %v3904_v4 = vpop.f32.mrf.mxu1  ;;  %v9828_v63 = vld [vmem:[%s15190_s0 + $0x50] sm:$0xff] }
 0x42d   : > { %8233 = vst [vmem:[%s10763_s27 + $0x11c0] sm:$0xff] %v7001_v54  ;;  %8235 = vst [vmem:[%s10763_s27 + $0x11d0] sm:$0xff] %v7003_v57  ;;  %v7002_v5 = vmin.f32 %v5770_v58, 1.7  ;;  %v7004_v8 = vmin.f32 %v5772_v60, 1.7  ;;  %v3378_v10 = vadd.f32 %v3377_v3, %v13136_v53  ;;  %v3905_v11 = vadd.f32 %v3904_v4, %v13140_v31 }
 0x42e   : > { %v5785_v12 = vmax.f32 %v3376_v1, 1.5  ;;  %v5787_v13 = vmax.f32 %v3903_v2, 1.5  ;;  %v3381_v14 = vpop.f32.mrf.mxu0  ;;  %v3908_v15 = vpop.f32.mrf.mxu1  ;;  %9467 = vmatmul.mubr.msk.f32.gmra.mxu0 %vm753_vm0, %v9826_v18  ;;  %9544 = vmatmul.mubr.msk.f32.gmra.mxu1 %vm753_vm0, %v9826_v18 }
 0x42f   : > { %8234 = vst [vmem:[%s10763_s27 + $0x11c8] sm:$0xff] %v7002_v5  ;;  %8236 = vst [vmem:[%s10763_s27 + $0x11d8] sm:$0xff] %v7004_v8  ;;  %v5786_v19 = vmax.f32 %v3378_v10, 1.5  ;;  %v5788_v20 = vmax.f32 %v3905_v11, 1.5  ;;  %v3382_v21 = vadd.f32 %v3381_v14, %v13113_v9  ;;  %v3909_v22 = vadd.f32 %v3908_v15, %v13126_v52  ;;  %4265 = vmatprep.mubr.f32.mxu0 %v9958_v0 }
 0x430   : > { %4792 = vmatprep.mubr.f32.mxu1 %v9958_v0  ;;  %v7017_v23 = vmin.f32 %v5785_v12, 1.7  ;;  %v7019_v24 = vmin.f32 %v5787_v13, 1.7  ;;  %v3383_v25 = vpop.f32.mrf.mxu0  ;;  %v3910_v26 = vpop.f32.mrf.mxu1  ;;  %v9829_v13 = vld [vmem:[%s15190_s0 + $0x58] sm:$0xff] }
 0x431   : > { %v7018_v27 = vmin.f32 %v5786_v19, 1.7  ;;  %v7020_v30 = vmin.f32 %v5788_v20, 1.7  ;;  %v5801_v28 = vmax.f32 %v3382_v21, 1.5  ;;  %v5803_v29 = vmax.f32 %v3909_v22, 1.5 }
 0x432   : > { %8249 = vst [vmem:[%s10763_s27 + $0x1240] sm:$0xff] %v7017_v23  ;;  %8251 = vst [vmem:[%s10763_s27 + $0x1250] sm:$0xff] %v7019_v24  ;;  %v3384_v32 = vadd.f32 %v3383_v25, %v13136_v53  ;;  %v3911_v33 = vadd.f32 %v3910_v26, %v13140_v31  ;;  %v3387_v34 = vpop.f32.mrf.mxu0  ;;  %v3914_v35 = vpop.f32.mrf.mxu1  ;;  %9468 = vmatmul.mubr.msk.f32.gmra.mxu0 %vm753_vm0, %v9827_v36  ;;  %9545 = vmatmul.mubr.msk.f32.gmra.mxu1 %vm753_vm0, %v9827_v36 }
 0x433   : > { %8250 = vst [vmem:[%s10763_s27 + $0x1248] sm:$0xff] %v7018_v27  ;;  %8252 = vst [vmem:[%s10763_s27 + $0x1258] sm:$0xff] %v7020_v30  ;;  %v7033_v55 = vmin.f32 %v5801_v28, 1.7  ;;  %v7035_v56 = vmin.f32 %v5803_v29, 1.7  ;;  %v3388_v37 = vadd.f32 %v3387_v34, %v13113_v9  ;;  %v3915_v38 = vadd.f32 %v3914_v35, %v13126_v52  ;;  %4271 = vmatprep.mubr.f32.mxu0 %v9958_v0 }
 0x434   : > { %4798 = vmatprep.mubr.f32.mxu1 %v9958_v0  ;;  %v5802_v47 = vmax.f32 %v3384_v32, 1.5  ;;  %v5804_v39 = vmax.f32 %v3911_v33, 1.5  ;;  %v3389_v62 = vpop.f32.mrf.mxu0  ;;  %v3916_v40 = vpop.f32.mrf.mxu1  ;;  %v9830_v33 = vld [vmem:[%s15190_s0 + $0x60] sm:$0xff] }
 0x435   : > { %8265 = vst [vmem:[%s10763_s27 + $0x12c0] sm:$0xff] %v7033_v55  ;;  %8267 = vst [vmem:[%s10763_s27 + $0x12d0] sm:$0xff] %v7035_v56  ;;  %v5817_v41 = vmax.f32 %v3388_v37, 1.5  ;;  %v5819_v42 = vmax.f32 %v3915_v38, 1.5  ;;  %v3390_v43 = vadd.f32 %v3389_v62, %v13136_v53  ;;  %v3917_v44 = vadd.f32 %v3916_v40, %v13140_v31 }
 0x436   : > { %v7034_v45 = vmin.f32 %v5802_v47, 1.7  ;;  %v7036_v46 = vmin.f32 %v5804_v39, 1.7  ;;  %v3393_v59 = vpop.f32.mrf.mxu0  ;;  %v3920_v61 = vpop.f32.mrf.mxu1  ;;  %9469 = vmatmul.mubr.msk.f32.gmra.mxu0 %vm753_vm0, %v9828_v63  ;;  %9546 = vmatmul.mubr.msk.f32.gmra.mxu1 %vm753_vm0, %v9828_v63 }
 0x437   : > { %v7049_v48 = vmin.f32 %v5817_v41, 1.7  ;;  %v7051_v49 = vmin.f32 %v5819_v42, 1.7  ;;  %v5818_v51 = vmax.f32 %v3390_v43, 1.5  ;;  %v5820_v54 = vmax.f32 %v3917_v44, 1.5  ;;  %4277 = vmatprep.mubr.f32.mxu0 %v9958_v0  ;;  %4804 = vmatprep.mubr.f32.mxu1 %v9958_v0 }
 0x438   : > { %8266 = vst [vmem:[%s10763_s27 + $0x12c8] sm:$0xff] %v7034_v45  ;;  %8268 = vst [vmem:[%s10763_s27 + $0x12d8] sm:$0xff] %v7036_v46  ;;  %v3394_v57 = vadd.f32 %v3393_v59, %v13113_v9  ;;  %v3921_v58 = vadd.f32 %v3920_v61, %v13126_v52  ;;  %v3395_v60 = vpop.f32.mrf.mxu0  ;;  %v3922_v1 = vpop.f32.mrf.mxu1  ;;  %v9831_v46 = vld [vmem:[%s15190_s0 + $0x68] sm:$0xff] }
 0x439   : > { %8281 = vst [vmem:[%s10763_s27 + $0x1340] sm:$0xff] %v7049_v48  ;;  %8283 = vst [vmem:[%s10763_s27 + $0x1350] sm:$0xff] %v7051_v49  ;;  %v7050_v2 = vmin.f32 %v5818_v51, 1.7  ;;  %v7052_v3 = vmin.f32 %v5820_v54, 1.7  ;;  %v3396_v4 = vadd.f32 %v3395_v60, %v13136_v53  ;;  %v3923_v5 = vadd.f32 %v3922_v1, %v13140_v31 }
 0x43a   : > { %v5833_v8 = vmax.f32 %v3394_v57, 1.5  ;;  %v5835_v10 = vmax.f32 %v3921_v58, 1.5  ;;  %v3399_v11 = vpop.f32.mrf.mxu0  ;;  %v3926_v12 = vpop.f32.mrf.mxu1  ;;  %9470 = vmatmul.mubr.msk.f32.gmra.mxu0 %vm753_vm0, %v9829_v13  ;;  %9547 = vmatmul.mubr.msk.f32.gmra.mxu1 %vm753_vm0, %v9829_v13 }
 0x43b   : > { %8282 = vst [vmem:[%s10763_s27 + $0x1348] sm:$0xff] %v7050_v2  ;;  %8284 = vst [vmem:[%s10763_s27 + $0x1358] sm:$0xff] %v7052_v3  ;;  %v5834_v14 = vmax.f32 %v3396_v4, 1.5  ;;  %v5836_v15 = vmax.f32 %v3923_v5, 1.5  ;;  %v3400_v18 = vadd.f32 %v3399_v11, %v13113_v9  ;;  %v3927_v19 = vadd.f32 %v3926_v12, %v13126_v52  ;;  %4283 = vmatprep.mubr.f32.mxu0 %v9958_v0 }
 0x43c   : > { %4810 = vmatprep.mubr.f32.mxu1 %v9958_v0  ;;  %v7065_v20 = vmin.f32 %v5833_v8, 1.7  ;;  %v7067_v21 = vmin.f32 %v5835_v10, 1.7  ;;  %v3401_v22 = vpop.f32.mrf.mxu0  ;;  %v3928_v23 = vpop.f32.mrf.mxu1  ;;  %v9832_v10 = vld [vmem:[%s15190_s0 + $0x70] sm:$0xff] }
 0x43d   : > { %v7066_v24 = vmin.f32 %v5834_v14, 1.7  ;;  %v7068_v25 = vmin.f32 %v5836_v15, 1.7  ;;  %v5849_v26 = vmax.f32 %v3400_v18, 1.5  ;;  %v5851_v27 = vmax.f32 %v3927_v19, 1.5 }
 0x43e   : > { %8297 = vst [vmem:[%s10763_s27 + $0x13c0] sm:$0xff] %v7065_v20  ;;  %8299 = vst [vmem:[%s10763_s27 + $0x13d0] sm:$0xff] %v7067_v21  ;;  %v3402_v30 = vadd.f32 %v3401_v22, %v13136_v53  ;;  %v3929_v28 = vadd.f32 %v3928_v23, %v13140_v31  ;;  %v3405_v29 = vpop.f32.mrf.mxu0  ;;  %v3932_v32 = vpop.f32.mrf.mxu1  ;;  %9471 = vmatmul.mubr.msk.f32.gmra.mxu0 %vm753_vm0, %v9830_v33  ;;  %9548 = vmatmul.mubr.msk.f32.gmra.mxu1 %vm753_vm0, %v9830_v33 }
 0x43f   : > { %8298 = vst [vmem:[%s10763_s27 + $0x13c8] sm:$0xff] %v7066_v24  ;;  %8300 = vst [vmem:[%s10763_s27 + $0x13d8] sm:$0xff] %v7068_v25  ;;  %v7081_v34 = vmin.f32 %v5849_v26, 1.7  ;;  %v7083_v35 = vmin.f32 %v5851_v27, 1.7  ;;  %v3406_v36 = vadd.f32 %v3405_v29, %v13113_v9  ;;  %v3933_v55 = vadd.f32 %v3932_v32, %v13126_v52  ;;  %4289 = vmatprep.mubr.f32.mxu0 %v9958_v0 }
 0x440   : > { %4816 = vmatprep.mubr.f32.mxu1 %v9958_v0  ;;  %v5850_v56 = vmax.f32 %v3402_v30, 1.5  ;;  %v5852_v37 = vmax.f32 %v3929_v28, 1.5  ;;  %v3407_v38 = vpop.f32.mrf.mxu0  ;;  %v3934_v47 = vpop.f32.mrf.mxu1  ;;  %v9833_v28 = vld [vmem:[%s15190_s0 + $0x78] sm:$0xff] }
 0x441   : > { %8313 = vst [vmem:[%s10763_s27 + $0x1440] sm:$0xff] %v7081_v34  ;;  %8315 = vst [vmem:[%s10763_s27 + $0x1450] sm:$0xff] %v7083_v35  ;;  %v5865_v39 = vmax.f32 %v3406_v36, 1.5  ;;  %v5867_v62 = vmax.f32 %v3933_v55, 1.5  ;;  %v3408_v40 = vadd.f32 %v3407_v38, %v13136_v53  ;;  %v3935_v41 = vadd.f32 %v3934_v47, %v13140_v31 }
 0x442   : > { %v7082_v42 = vmin.f32 %v5850_v56, 1.7  ;;  %v7084_v43 = vmin.f32 %v5852_v37, 1.7  ;;  %v3411_v44 = vpop.f32.mrf.mxu0  ;;  %v3938_v45 = vpop.f32.mrf.mxu1  ;;  %9472 = vmatmul.mubr.msk.f32.gmra.mxu0 %vm753_vm0, %v9831_v46  ;;  %9549 = vmatmul.mubr.msk.f32.gmra.mxu1 %vm753_vm0, %v9831_v46 }
 0x443   : > { %v7097_v59 = vmin.f32 %v5865_v39, 1.7  ;;  %v7099_v61 = vmin.f32 %v5867_v62, 1.7  ;;  %v5866_v63 = vmax.f32 %v3408_v40, 1.5  ;;  %v5868_v48 = vmax.f32 %v3935_v41, 1.5  ;;  %4295 = vmatprep.mubr.f32.mxu0 %v9958_v0  ;;  %4822 = vmatprep.mubr.f32.mxu1 %v9958_v0 }
 0x444   : > { %8314 = vst [vmem:[%s10763_s27 + $0x1448] sm:$0xff] %v7082_v42  ;;  %8316 = vst [vmem:[%s10763_s27 + $0x1458] sm:$0xff] %v7084_v43  ;;  %v3412_v49 = vadd.f32 %v3411_v44, %v13113_v9  ;;  %v3939_v51 = vadd.f32 %v3938_v45, %v13126_v52  ;;  %v3413_v54 = vpop.f32.mrf.mxu0  ;;  %v3940_v57 = vpop.f32.mrf.mxu1  ;;  %v9834_v43 = vld [vmem:[%s15190_s0 + $0x80] sm:$0xff] }
 0x445   : > { %8329 = vst [vmem:[%s10763_s27 + $0x14c0] sm:$0xff] %v7097_v59  ;;  %8331 = vst [vmem:[%s10763_s27 + $0x14d0] sm:$0xff] %v7099_v61  ;;  %v7098_v58 = vmin.f32 %v5866_v63, 1.7  ;;  %v7100_v60 = vmin.f32 %v5868_v48, 1.7  ;;  %v3414_v1 = vadd.f32 %v3413_v54, %v13136_v53  ;;  %v3941_v2 = vadd.f32 %v3940_v57, %v13140_v31 }
 0x446   : > { %v5881_v3 = vmax.f32 %v3412_v49, 1.5  ;;  %v5883_v4 = vmax.f32 %v3939_v51, 1.5  ;;  %v3417_v5 = vpop.f32.mrf.mxu0  ;;  %v3944_v8 = vpop.f32.mrf.mxu1  ;;  %9473 = vmatmul.mubr.msk.f32.gmra.mxu0 %vm753_vm0, %v9832_v10  ;;  %9550 = vmatmul.mubr.msk.f32.gmra.mxu1 %vm753_vm0, %v9832_v10 }
 0x447   : > { %8330 = vst [vmem:[%s10763_s27 + $0x14c8] sm:$0xff] %v7098_v58  ;;  %8332 = vst [vmem:[%s10763_s27 + $0x14d8] sm:$0xff] %v7100_v60  ;;  %v5882_v11 = vmax.f32 %v3414_v1, 1.5  ;;  %v5884_v12 = vmax.f32 %v3941_v2, 1.5  ;;  %v3418_v13 = vadd.f32 %v3417_v5, %v13113_v9  ;;  %v3945_v14 = vadd.f32 %v3944_v8, %v13126_v52  ;;  %4301 = vmatprep.mubr.f32.mxu0 %v9958_v0 }
 0x448   : > { %4828 = vmatprep.mubr.f32.mxu1 %v9958_v0  ;;  %v7113_v15 = vmin.f32 %v5881_v3, 1.7  ;;  %v7115_v18 = vmin.f32 %v5883_v4, 1.7  ;;  %v3419_v19 = vpop.f32.mrf.mxu0  ;;  %v3946_v20 = vpop.f32.mrf.mxu1  ;;  %v9835_v4 = vld [vmem:[%s15190_s0 + $0x88] sm:$0xff] }
 0x449   : > { %v7114_v21 = vmin.f32 %v5882_v11, 1.7  ;;  %v7116_v22 = vmin.f32 %v5884_v12, 1.7  ;;  %v5897_v23 = vmax.f32 %v3418_v13, 1.5  ;;  %v5899_v24 = vmax.f32 %v3945_v14, 1.5 }
 0x44a   : > { %8345 = vst [vmem:[%s10763_s27 + $0x1540] sm:$0xff] %v7113_v15  ;;  %8347 = vst [vmem:[%s10763_s27 + $0x1550] sm:$0xff] %v7115_v18  ;;  %v3420_v25 = vadd.f32 %v3419_v19, %v13136_v53  ;;  %v3947_v26 = vadd.f32 %v3946_v20, %v13140_v31  ;;  %v3423_v27 = vpop.f32.mrf.mxu0  ;;  %v3950_v30 = vpop.f32.mrf.mxu1  ;;  %9474 = vmatmul.mubr.msk.f32.gmra.mxu0 %vm753_vm0, %v9833_v28  ;;  %9551 = vmatmul.mubr.msk.f32.gmra.mxu1 %vm753_vm0, %v9833_v28 }
 0x44b   : > { %8346 = vst [vmem:[%s10763_s27 + $0x1548] sm:$0xff] %v7114_v21  ;;  %8348 = vst [vmem:[%s10763_s27 + $0x1558] sm:$0xff] %v7116_v22  ;;  %v7129_v29 = vmin.f32 %v5897_v23, 1.7  ;;  %v7131_v32 = vmin.f32 %v5899_v24, 1.7  ;;  %v3424_v33 = vadd.f32 %v3423_v27, %v13113_v9  ;;  %v3951_v34 = vadd.f32 %v3950_v30, %v13126_v52  ;;  %4307 = vmatprep.mubr.f32.mxu0 %v9958_v0 }
 0x44c   : > { %4834 = vmatprep.mubr.f32.mxu1 %v9958_v0  ;;  %v5898_v35 = vmax.f32 %v3420_v25, 1.5  ;;  %v5900_v36 = vmax.f32 %v3947_v26, 1.5  ;;  %v3425_v55 = vpop.f32.mrf.mxu0  ;;  %v3952_v56 = vpop.f32.mrf.mxu1  ;;  %v9836_v26 = vld [vmem:[%s15190_s0 + $0x90] sm:$0xff] }
 0x44d   : > { %8361 = vst [vmem:[%s10763_s27 + $0x15c0] sm:$0xff] %v7129_v29  ;;  %8363 = vst [vmem:[%s10763_s27 + $0x15d0] sm:$0xff] %v7131_v32  ;;  %v5913_v37 = vmax.f32 %v3424_v33, 1.5  ;;  %v5915_v38 = vmax.f32 %v3951_v34, 1.5  ;;  %v3426_v47 = vadd.f32 %v3425_v55, %v13136_v53  ;;  %v3953_v39 = vadd.f32 %v3952_v56, %v13140_v31 }
 0x44e   : > { %v7130_v62 = vmin.f32 %v5898_v35, 1.7  ;;  %v7132_v40 = vmin.f32 %v5900_v36, 1.7  ;;  %v3429_v41 = vpop.f32.mrf.mxu0  ;;  %v3956_v42 = vpop.f32.mrf.mxu1  ;;  %9475 = vmatmul.mubr.msk.f32.gmra.mxu0 %vm753_vm0, %v9834_v43  ;;  %9552 = vmatmul.mubr.msk.f32.gmra.mxu1 %vm753_vm0, %v9834_v43 }
 0x44f   : > { %v7145_v44 = vmin.f32 %v5913_v37, 1.7  ;;  %v7147_v45 = vmin.f32 %v5915_v38, 1.7  ;;  %v5914_v46 = vmax.f32 %v3426_v47, 1.5  ;;  %v5916_v59 = vmax.f32 %v3953_v39, 1.5  ;;  %4313 = vmatprep.mubr.f32.mxu0 %v9958_v0  ;;  %4840 = vmatprep.mubr.f32.mxu1 %v9958_v0 }
 0x450   : > { %8362 = vst [vmem:[%s10763_s27 + $0x15c8] sm:$0xff] %v7130_v62  ;;  %8364 = vst [vmem:[%s10763_s27 + $0x15d8] sm:$0xff] %v7132_v40  ;;  %v3430_v61 = vadd.f32 %v3429_v41, %v13113_v9  ;;  %v3957_v63 = vadd.f32 %v3956_v42, %v13126_v52  ;;  %v3431_v48 = vpop.f32.mrf.mxu0  ;;  %v3958_v49 = vpop.f32.mrf.mxu1  ;;  %v9837_v40 = vld [vmem:[%s15190_s0 + $0x98] sm:$0xff] }
 0x451   : > { %8377 = vst [vmem:[%s10763_s27 + $0x1640] sm:$0xff] %v7145_v44  ;;  %8379 = vst [vmem:[%s10763_s27 + $0x1650] sm:$0xff] %v7147_v45  ;;  %v7146_v51 = vmin.f32 %v5914_v46, 1.7  ;;  %v7148_v54 = vmin.f32 %v5916_v59, 1.7  ;;  %v3432_v57 = vadd.f32 %v3431_v48, %v13136_v53  ;;  %v3959_v58 = vadd.f32 %v3958_v49, %v13140_v31 }
 0x452   : > { %v5929_v60 = vmax.f32 %v3430_v61, 1.5  ;;  %v5931_v1 = vmax.f32 %v3957_v63, 1.5  ;;  %v3435_v2 = vpop.f32.mrf.mxu0  ;;  %v3962_v3 = vpop.f32.mrf.mxu1  ;;  %9476 = vmatmul.mubr.msk.f32.gmra.mxu0 %vm753_vm0, %v9835_v4  ;;  %9553 = vmatmul.mubr.msk.f32.gmra.mxu1 %vm753_vm0, %v9835_v4 }
 0x453   : > { %8378 = vst [vmem:[%s10763_s27 + $0x1648] sm:$0xff] %v7146_v51  ;;  %8380 = vst [vmem:[%s10763_s27 + $0x1658] sm:$0xff] %v7148_v54  ;;  %v5930_v5 = vmax.f32 %v3432_v57, 1.5  ;;  %v5932_v8 = vmax.f32 %v3959_v58, 1.5  ;;  %v3436_v10 = vadd.f32 %v3435_v2, %v13113_v9  ;;  %v3963_v11 = vadd.f32 %v3962_v3, %v13126_v52  ;;  %4319 = vmatprep.mubr.f32.mxu0 %v9958_v0 }
 0x454   : > { %4846 = vmatprep.mubr.f32.mxu1 %v9958_v0  ;;  %v7161_v12 = vmin.f32 %v5929_v60, 1.7  ;;  %v7163_v13 = vmin.f32 %v5931_v1, 1.7  ;;  %v3437_v14 = vpop.f32.mrf.mxu0  ;;  %v3964_v15 = vpop.f32.mrf.mxu1  ;;  %v9838_v1 = vld [vmem:[%s15190_s0 + $0xa0] sm:$0xff] }
 0x455   : > { %v7162_v18 = vmin.f32 %v5930_v5, 1.7  ;;  %v7164_v19 = vmin.f32 %v5932_v8, 1.7  ;;  %v5945_v20 = vmax.f32 %v3436_v10, 1.5  ;;  %v5947_v21 = vmax.f32 %v3963_v11, 1.5 }
 0x456   : > { %8393 = vst [vmem:[%s10763_s27 + $0x16c0] sm:$0xff] %v7161_v12  ;;  %8395 = vst [vmem:[%s10763_s27 + $0x16d0] sm:$0xff] %v7163_v13  ;;  %v3438_v22 = vadd.f32 %v3437_v14, %v13136_v53  ;;  %v3965_v23 = vadd.f32 %v3964_v15, %v13140_v31  ;;  %v3441_v24 = vpop.f32.mrf.mxu0  ;;  %v3968_v25 = vpop.f32.mrf.mxu1  ;;  %9477 = vmatmul.mubr.msk.f32.gmra.mxu0 %vm753_vm0, %v9836_v26  ;;  %9554 = vmatmul.mubr.msk.f32.gmra.mxu1 %vm753_vm0, %v9836_v26 }
 0x457   : > { %8394 = vst [vmem:[%s10763_s27 + $0x16c8] sm:$0xff] %v7162_v18  ;;  %8396 = vst [vmem:[%s10763_s27 + $0x16d8] sm:$0xff] %v7164_v19  ;;  %v7177_v27 = vmin.f32 %v5945_v20, 1.7  ;;  %v7179_v30 = vmin.f32 %v5947_v21, 1.7  ;;  %v3442_v28 = vadd.f32 %v3441_v24, %v13113_v9  ;;  %v3969_v29 = vadd.f32 %v3968_v25, %v13126_v52  ;;  %4325 = vmatprep.mubr.f32.mxu0 %v9958_v0 }
 0x458   : > { %4852 = vmatprep.mubr.f32.mxu1 %v9958_v0  ;;  %v5946_v32 = vmax.f32 %v3438_v22, 1.5  ;;  %v5948_v33 = vmax.f32 %v3965_v23, 1.5  ;;  %v3443_v34 = vpop.f32.mrf.mxu0  ;;  %v3970_v35 = vpop.f32.mrf.mxu1  ;;  %v9839_v23 = vld [vmem:[%s15190_s0 + $0xa8] sm:$0xff] }
 0x459   : > { %8409 = vst [vmem:[%s10763_s27 + $0x1740] sm:$0xff] %v7177_v27  ;;  %8411 = vst [vmem:[%s10763_s27 + $0x1750] sm:$0xff] %v7179_v30  ;;  %v5961_v36 = vmax.f32 %v3442_v28, 1.5  ;;  %v5963_v55 = vmax.f32 %v3969_v29, 1.5  ;;  %v3444_v56 = vadd.f32 %v3443_v34, %v13136_v53  ;;  %v3971_v37 = vadd.f32 %v3970_v35, %v13140_v31 }
 0x45a   : > { %v7178_v38 = vmin.f32 %v5946_v32, 1.7  ;;  %v7180_v47 = vmin.f32 %v5948_v33, 1.7  ;;  %v3447_v39 = vpop.f32.mrf.mxu0  ;;  %v3974_v62 = vpop.f32.mrf.mxu1  ;;  %9478 = vmatmul.mubr.msk.f32.gmra.mxu0 %vm753_vm0, %v9837_v40  ;;  %9555 = vmatmul.mubr.msk.f32.gmra.mxu1 %vm753_vm0, %v9837_v40 }
 0x45b   : > { %v7193_v41 = vmin.f32 %v5961_v36, 1.7  ;;  %v7195_v42 = vmin.f32 %v5963_v55, 1.7  ;;  %v5962_v43 = vmax.f32 %v3444_v56, 1.5  ;;  %v5964_v44 = vmax.f32 %v3971_v37, 1.5  ;;  %4331 = vmatprep.mubr.f32.mxu0 %v9958_v0  ;;  %4858 = vmatprep.mubr.f32.mxu1 %v9958_v0 }
 0x45c   : > { %8410 = vst [vmem:[%s10763_s27 + $0x1748] sm:$0xff] %v7178_v38  ;;  %8412 = vst [vmem:[%s10763_s27 + $0x1758] sm:$0xff] %v7180_v47  ;;  %v3448_v45 = vadd.f32 %v3447_v39, %v13113_v9  ;;  %v3975_v46 = vadd.f32 %v3974_v62, %v13126_v52  ;;  %v3449_v59 = vpop.f32.mrf.mxu0  ;;  %v3976_v61 = vpop.f32.mrf.mxu1  ;;  %v9840_v47 = vld [vmem:[%s15190_s0 + $0xb0] sm:$0xff] }
 0x45d   : > { %8425 = vst [vmem:[%s10763_s27 + $0x17c0] sm:$0xff] %v7193_v41  ;;  %8427 = vst [vmem:[%s10763_s27 + $0x17d0] sm:$0xff] %v7195_v42  ;;  %v7194_v63 = vmin.f32 %v5962_v43, 1.7  ;;  %v7196_v48 = vmin.f32 %v5964_v44, 1.7  ;;  %v3450_v49 = vadd.f32 %v3449_v59, %v13136_v53  ;;  %v3977_v51 = vadd.f32 %v3976_v61, %v13140_v31 }
 0x45e   : > { %v5977_v54 = vmax.f32 %v3448_v45, 1.5  ;;  %v5979_v57 = vmax.f32 %v3975_v46, 1.5  ;;  %v3453_v58 = vpop.f32.mrf.mxu0  ;;  %v3980_v60 = vpop.f32.mrf.mxu1  ;;  %9479 = vmatmul.mubr.msk.f32.gmra.mxu0 %vm753_vm0, %v9838_v1  ;;  %9556 = vmatmul.mubr.msk.f32.gmra.mxu1 %vm753_vm0, %v9838_v1 }
 0x45f   : > { %8426 = vst [vmem:[%s10763_s27 + $0x17c8] sm:$0xff] %v7194_v63  ;;  %8428 = vst [vmem:[%s10763_s27 + $0x17d8] sm:$0xff] %v7196_v48  ;;  %v5978_v2 = vmax.f32 %v3450_v49, 1.5  ;;  %v5980_v3 = vmax.f32 %v3977_v51, 1.5  ;;  %v3454_v4 = vadd.f32 %v3453_v58, %v13113_v9  ;;  %v3981_v5 = vadd.f32 %v3980_v60, %v13126_v52  ;;  %4337 = vmatprep.mubr.f32.mxu0 %v9958_v0 }
 0x460   : > { %4864 = vmatprep.mubr.f32.mxu1 %v9958_v0  ;;  %v7209_v8 = vmin.f32 %v5977_v54, 1.7  ;;  %v7211_v10 = vmin.f32 %v5979_v57, 1.7  ;;  %v3455_v11 = vpop.f32.mrf.mxu0  ;;  %v3982_v12 = vpop.f32.mrf.mxu1  ;;  %v9841_v57 = vld [vmem:[%s15190_s0 + $0xb8] sm:$0xff] }
 0x461   : > { %v7210_v13 = vmin.f32 %v5978_v2, 1.7  ;;  %v7212_v14 = vmin.f32 %v5980_v3, 1.7  ;;  %v5993_v15 = vmax.f32 %v3454_v4, 1.5  ;;  %v5995_v18 = vmax.f32 %v3981_v5, 1.5 }
 0x462   : > { %8441 = vst [vmem:[%s10763_s27 + $0x1840] sm:$0xff] %v7209_v8  ;;  %8443 = vst [vmem:[%s10763_s27 + $0x1850] sm:$0xff] %v7211_v10  ;;  %v3456_v19 = vadd.f32 %v3455_v11, %v13136_v53  ;;  %v3983_v20 = vadd.f32 %v3982_v12, %v13140_v31  ;;  %v3459_v21 = vpop.f32.mrf.mxu0  ;;  %v3986_v22 = vpop.f32.mrf.mxu1  ;;  %9480 = vmatmul.mubr.msk.f32.gmra.mxu0 %vm753_vm0, %v9839_v23  ;;  %9557 = vmatmul.mubr.msk.f32.gmra.mxu1 %vm753_vm0, %v9839_v23 }
 0x463   : > { %8442 = vst [vmem:[%s10763_s27 + $0x1848] sm:$0xff] %v7210_v13  ;;  %8444 = vst [vmem:[%s10763_s27 + $0x1858] sm:$0xff] %v7212_v14  ;;  %v7225_v24 = vmin.f32 %v5993_v15, 1.7  ;;  %v7227_v25 = vmin.f32 %v5995_v18, 1.7  ;;  %v3460_v26 = vadd.f32 %v3459_v21, %v13113_v9  ;;  %v3987_v27 = vadd.f32 %v3986_v22, %v13126_v52  ;;  %4343 = vmatprep.mubr.f32.mxu0 %v9958_v0 }
 0x464   : > { %4870 = vmatprep.mubr.f32.mxu1 %v9958_v0  ;;  %v5994_v30 = vmax.f32 %v3456_v19, 1.5  ;;  %v5996_v28 = vmax.f32 %v3983_v20, 1.5  ;;  %v3461_v29 = vpop.f32.mrf.mxu0  ;;  %v3988_v32 = vpop.f32.mrf.mxu1  ;;  %v9842_v20 = vld [vmem:[%s15190_s0 + $0xc0] sm:$0xff] }
 0x465   : > { %8457 = vst [vmem:[%s10763_s27 + $0x18c0] sm:$0xff] %v7225_v24  ;;  %8459 = vst [vmem:[%s10763_s27 + $0x18d0] sm:$0xff] %v7227_v25  ;;  %v6009_v33 = vmax.f32 %v3460_v26, 1.5  ;;  %v6011_v34 = vmax.f32 %v3987_v27, 1.5  ;;  %v3462_v35 = vadd.f32 %v3461_v29, %v13136_v53  ;;  %v3989_v36 = vadd.f32 %v3988_v32, %v13140_v31 }
 0x466   : > { %v7226_v55 = vmin.f32 %v5994_v30, 1.7  ;;  %v7228_v56 = vmin.f32 %v5996_v28, 1.7  ;;  %v3465_v37 = vpop.f32.mrf.mxu0  ;;  %v3992_v38 = vpop.f32.mrf.mxu1  ;;  %9481 = vmatmul.mubr.msk.f32.gmra.mxu0 %vm753_vm0, %v9840_v47  ;;  %9558 = vmatmul.mubr.msk.f32.gmra.mxu1 %vm753_vm0, %v9840_v47 }
 0x467   : > { %v7241_v39 = vmin.f32 %v6009_v33, 1.7  ;;  %v7243_v62 = vmin.f32 %v6011_v34, 1.7  ;;  %v6010_v40 = vmax.f32 %v3462_v35, 1.5  ;;  %v6012_v41 = vmax.f32 %v3989_v36, 1.5  ;;  %4349 = vmatprep.mubr.f32.mxu0 %v9958_v0  ;;  %4876 = vmatprep.mubr.f32.mxu1 %v9958_v0 }
 0x468   : > { %8458 = vst [vmem:[%s10763_s27 + $0x18c8] sm:$0xff] %v7226_v55  ;;  %8460 = vst [vmem:[%s10763_s27 + $0x18d8] sm:$0xff] %v7228_v56  ;;  %v3466_v42 = vadd.f32 %v3465_v37, %v13113_v9  ;;  %v3993_v43 = vadd.f32 %v3992_v38, %v13126_v52  ;;  %v3467_v44 = vpop.f32.mrf.mxu0  ;;  %v3994_v45 = vpop.f32.mrf.mxu1  ;;  %v9843_v56 = vld [vmem:[%s15190_s0 + $0xc8] sm:$0xff] }
 0x469   : > { %8473 = vst [vmem:[%s10763_s27 + $0x1940] sm:$0xff] %v7241_v39  ;;  %8475 = vst [vmem:[%s10763_s27 + $0x1950] sm:$0xff] %v7243_v62  ;;  %v7242_v46 = vmin.f32 %v6010_v40, 1.7  ;;  %v7244_v59 = vmin.f32 %v6012_v41, 1.7  ;;  %v3468_v61 = vadd.f32 %v3467_v44, %v13136_v53  ;;  %v3995_v63 = vadd.f32 %v3994_v45, %v13140_v31 }
 0x46a   : > { %v6025_v48 = vmax.f32 %v3466_v42, 1.5  ;;  %v6027_v49 = vmax.f32 %v3993_v43, 1.5  ;;  %v3471_v51 = vpop.f32.mrf.mxu0  ;;  %v3998_v54 = vpop.f32.mrf.mxu1  ;;  %9482 = vmatmul.mubr.msk.f32.gmra.mxu0 %vm753_vm0, %v9841_v57  ;;  %9559 = vmatmul.mubr.msk.f32.gmra.mxu1 %vm753_vm0, %v9841_v57 }
 0x46b   : > { %8474 = vst [vmem:[%s10763_s27 + $0x1948] sm:$0xff] %v7242_v46  ;;  %8476 = vst [vmem:[%s10763_s27 + $0x1958] sm:$0xff] %v7244_v59  ;;  %v6026_v58 = vmax.f32 %v3468_v61, 1.5  ;;  %v6028_v60 = vmax.f32 %v3995_v63, 1.5  ;;  %v3472_v1 = vadd.f32 %v3471_v51, %v13113_v9  ;;  %v3999_v2 = vadd.f32 %v3998_v54, %v13126_v52  ;;  %4355 = vmatprep.mubr.f32.mxu0 %v9958_v0 }
 0x46c   : > { %4882 = vmatprep.mubr.f32.mxu1 %v9958_v0  ;;  %v7257_v3 = vmin.f32 %v6025_v48, 1.7  ;;  %v7259_v4 = vmin.f32 %v6027_v49, 1.7  ;;  %v3473_v5 = vpop.f32.mrf.mxu0  ;;  %v4000_v8 = vpop.f32.mrf.mxu1  ;;  %v9844_v49 = vld [vmem:[%s15190_s0 + $0xd0] sm:$0xff] }
 0x46d   : > { %v7258_v10 = vmin.f32 %v6026_v58, 1.7  ;;  %v7260_v11 = vmin.f32 %v6028_v60, 1.7  ;;  %v6041_v12 = vmax.f32 %v3472_v1, 1.5  ;;  %v6043_v13 = vmax.f32 %v3999_v2, 1.5 }
 0x46e   : > { %8489 = vst [vmem:[%s10763_s27 + $0x19c0] sm:$0xff] %v7257_v3  ;;  %8491 = vst [vmem:[%s10763_s27 + $0x19d0] sm:$0xff] %v7259_v4  ;;  %v3474_v14 = vadd.f32 %v3473_v5, %v13136_v53  ;;  %v4001_v15 = vadd.f32 %v4000_v8, %v13140_v31  ;;  %v3477_v18 = vpop.f32.mrf.mxu0  ;;  %v4004_v19 = vpop.f32.mrf.mxu1  ;;  %9483 = vmatmul.mubr.msk.f32.gmra.mxu0 %vm753_vm0, %v9842_v20  ;;  %9560 = vmatmul.mubr.msk.f32.gmra.mxu1 %vm753_vm0, %v9842_v20 }
 0x46f   : > { %8490 = vst [vmem:[%s10763_s27 + $0x19c8] sm:$0xff] %v7258_v10  ;;  %8492 = vst [vmem:[%s10763_s27 + $0x19d8] sm:$0xff] %v7260_v11  ;;  %v7273_v21 = vmin.f32 %v6041_v12, 1.7  ;;  %v7275_v22 = vmin.f32 %v6043_v13, 1.7  ;;  %v3478_v23 = vadd.f32 %v3477_v18, %v13113_v9  ;;  %v4005_v24 = vadd.f32 %v4004_v19, %v13126_v52  ;;  %4361 = vmatprep.mubr.f32.mxu0 %v9958_v0 }
 0x470   : > { %4888 = vmatprep.mubr.f32.mxu1 %v9958_v0  ;;  %v6042_v25 = vmax.f32 %v3474_v14, 1.5  ;;  %v6044_v26 = vmax.f32 %v4001_v15, 1.5  ;;  %v3479_v27 = vpop.f32.mrf.mxu0  ;;  %v4006_v30 = vpop.f32.mrf.mxu1  ;;  %v9845_v15 = vld [vmem:[%s15190_s0 + $0xd8] sm:$0xff] }
 0x471   : > { %8505 = vst [vmem:[%s10763_s27 + $0x1a40] sm:$0xff] %v7273_v21  ;;  %8507 = vst [vmem:[%s10763_s27 + $0x1a50] sm:$0xff] %v7275_v22  ;;  %v6057_v28 = vmax.f32 %v3478_v23, 1.5  ;;  %v6059_v29 = vmax.f32 %v4005_v24, 1.5  ;;  %v3480_v32 = vadd.f32 %v3479_v27, %v13136_v53  ;;  %v4007_v33 = vadd.f32 %v4006_v30, %v13140_v31 }
 0x472   : > { %v7274_v34 = vmin.f32 %v6042_v25, 1.7  ;;  %v7276_v35 = vmin.f32 %v6044_v26, 1.7  ;;  %v3483_v36 = vpop.f32.mrf.mxu0  ;;  %v4010_v55 = vpop.f32.mrf.mxu1  ;;  %9484 = vmatmul.mubr.msk.f32.gmra.mxu0 %vm753_vm0, %v9843_v56  ;;  %9561 = vmatmul.mubr.msk.f32.gmra.mxu1 %vm753_vm0, %v9843_v56 }
 0x473   : > { %v7289_v37 = vmin.f32 %v6057_v28, 1.7  ;;  %v7291_v38 = vmin.f32 %v6059_v29, 1.7  ;;  %v6058_v47 = vmax.f32 %v3480_v32, 1.5  ;;  %v6060_v39 = vmax.f32 %v4007_v33, 1.5  ;;  %4367 = vmatprep.mubr.f32.mxu0 %v9958_v0  ;;  %4894 = vmatprep.mubr.f32.mxu1 %v9958_v0 }
 0x474   : > { %8506 = vst [vmem:[%s10763_s27 + $0x1a48] sm:$0xff] %v7274_v34  ;;  %8508 = vst [vmem:[%s10763_s27 + $0x1a58] sm:$0xff] %v7276_v35  ;;  %v3484_v62 = vadd.f32 %v3483_v36, %v13113_v9  ;;  %v4011_v40 = vadd.f32 %v4010_v55, %v13126_v52  ;;  %v3485_v41 = vpop.f32.mrf.mxu0  ;;  %v4012_v42 = vpop.f32.mrf.mxu1  ;;  %v9846_v35 = vld [vmem:[%s15190_s0 + $0xe0] sm:$0xff] }
 0x475   : > { %8521 = vst [vmem:[%s10763_s27 + $0x1ac0] sm:$0xff] %v7289_v37  ;;  %8523 = vst [vmem:[%s10763_s27 + $0x1ad0] sm:$0xff] %v7291_v38  ;;  %v7290_v43 = vmin.f32 %v6058_v47, 1.7  ;;  %v7292_v44 = vmin.f32 %v6060_v39, 1.7  ;;  %v3486_v45 = vadd.f32 %v3485_v41, %v13136_v53  ;;  %v4013_v46 = vadd.f32 %v4012_v42, %v13140_v31 }
 0x476   : > { %v6073_v59 = vmax.f32 %v3484_v62, 1.5  ;;  %v6075_v61 = vmax.f32 %v4011_v40, 1.5  ;;  %v3489_v63 = vpop.f32.mrf.mxu0  ;;  %v4016_v48 = vpop.f32.mrf.mxu1  ;;  %9485 = vmatmul.mubr.msk.f32.gmra.mxu0 %vm753_vm0, %v9844_v49  ;;  %9562 = vmatmul.mubr.msk.f32.gmra.mxu1 %vm753_vm0, %v9844_v49 }
 0x477   : > { %8522 = vst [vmem:[%s10763_s27 + $0x1ac8] sm:$0xff] %v7290_v43  ;;  %8524 = vst [vmem:[%s10763_s27 + $0x1ad8] sm:$0xff] %v7292_v44  ;;  %v6074_v51 = vmax.f32 %v3486_v45, 1.5  ;;  %v6076_v54 = vmax.f32 %v4013_v46, 1.5  ;;  %v3490_v57 = vadd.f32 %v3489_v63, %v13113_v9  ;;  %v4017_v58 = vadd.f32 %v4016_v48, %v13126_v52  ;;  %4373 = vmatprep.mubr.f32.mxu0 %v9958_v0 }
 0x478   : > { %4900 = vmatprep.mubr.f32.mxu1 %v9958_v0  ;;  %v7305_v60 = vmin.f32 %v6073_v59, 1.7  ;;  %v7307_v1 = vmin.f32 %v6075_v61, 1.7  ;;  %v3491_v2 = vpop.f32.mrf.mxu0  ;;  %v4018_v3 = vpop.f32.mrf.mxu1  ;;  %v9847_v61 = vld [vmem:[%s15190_s0 + $0xe8] sm:$0xff] }
 0x479   : > { %v7306_v4 = vmin.f32 %v6074_v51, 1.7  ;;  %v7308_v5 = vmin.f32 %v6076_v54, 1.7  ;;  %v6089_v8 = vmax.f32 %v3490_v57, 1.5  ;;  %v6091_v10 = vmax.f32 %v4017_v58, 1.5 }
 0x47a   : > { %8537 = vst [vmem:[%s10763_s27 + $0x1b40] sm:$0xff] %v7305_v60  ;;  %8539 = vst [vmem:[%s10763_s27 + $0x1b50] sm:$0xff] %v7307_v1  ;;  %v3492_v11 = vadd.f32 %v3491_v2, %v13136_v53  ;;  %v4019_v12 = vadd.f32 %v4018_v3, %v13140_v31  ;;  %v3495_v13 = vpop.f32.mrf.mxu0  ;;  %v4022_v14 = vpop.f32.mrf.mxu1  ;;  %9486 = vmatmul.mubr.msk.f32.gmra.mxu0 %vm753_vm0, %v9845_v15  ;;  %9563 = vmatmul.mubr.msk.f32.gmra.mxu1 %vm753_vm0, %v9845_v15 }
 0x47b   : > { %8538 = vst [vmem:[%s10763_s27 + $0x1b48] sm:$0xff] %v7306_v4  ;;  %8540 = vst [vmem:[%s10763_s27 + $0x1b58] sm:$0xff] %v7308_v5  ;;  %v7321_v18 = vmin.f32 %v6089_v8, 1.7  ;;  %v7323_v19 = vmin.f32 %v6091_v10, 1.7  ;;  %v3496_v20 = vadd.f32 %v3495_v13, %v13113_v9  ;;  %v4023_v21 = vadd.f32 %v4022_v14, %v13126_v52  ;;  %4379 = vmatprep.mubr.f32.mxu0 %v9958_v0 }
 0x47c   : > { %4906 = vmatprep.mubr.f32.mxu1 %v9958_v0  ;;  %v6090_v22 = vmax.f32 %v3492_v11, 1.5  ;;  %v6092_v23 = vmax.f32 %v4019_v12, 1.5  ;;  %v3497_v24 = vpop.f32.mrf.mxu0  ;;  %v4024_v25 = vpop.f32.mrf.mxu1  ;;  %v9848_v12 = vld [vmem:[%s15190_s0 + $0xf0] sm:$0xff] }
 0x47d   : > { %8553 = vst [vmem:[%s10763_s27 + $0x1bc0] sm:$0xff] %v7321_v18  ;;  %8555 = vst [vmem:[%s10763_s27 + $0x1bd0] sm:$0xff] %v7323_v19  ;;  %v6105_v26 = vmax.f32 %v3496_v20, 1.5  ;;  %v6107_v27 = vmax.f32 %v4023_v21, 1.5  ;;  %v3498_v30 = vadd.f32 %v3497_v24, %v13136_v53  ;;  %v4025_v28 = vadd.f32 %v4024_v25, %v13140_v31 }
 0x47e   : > { %v7322_v29 = vmin.f32 %v6090_v22, 1.7  ;;  %v7324_v32 = vmin.f32 %v6092_v23, 1.7  ;;  %v3501_v33 = vpop.f32.mrf.mxu0  ;;  %v4028_v34 = vpop.f32.mrf.mxu1  ;;  %9487 = vmatmul.mubr.msk.f32.gmra.mxu0 %vm753_vm0, %v9846_v35  ;;  %9564 = vmatmul.mubr.msk.f32.gmra.mxu1 %vm753_vm0, %v9846_v35 }
 0x47f   : > { %v7337_v36 = vmin.f32 %v6105_v26, 1.7  ;;  %v7339_v55 = vmin.f32 %v6107_v27, 1.7  ;;  %v6106_v56 = vmax.f32 %v3498_v30, 1.5  ;;  %v6108_v37 = vmax.f32 %v4025_v28, 1.5  ;;  %4385 = vmatprep.mubr.f32.mxu0 %v9958_v0  ;;  %4912 = vmatprep.mubr.f32.mxu1 %v9958_v0 }
 0x480   : > { %8554 = vst [vmem:[%s10763_s27 + $0x1bc8] sm:$0xff] %v7322_v29  ;;  %8556 = vst [vmem:[%s10763_s27 + $0x1bd8] sm:$0xff] %v7324_v32  ;;  %v3502_v38 = vadd.f32 %v3501_v33, %v13113_v9  ;;  %v4029_v47 = vadd.f32 %v4028_v34, %v13126_v52  ;;  %v3503_v39 = vpop.f32.mrf.mxu0  ;;  %v4030_v62 = vpop.f32.mrf.mxu1  ;;  %v9849_v32 = vld [vmem:[%s15190_s0 + $0xf8] sm:$0xff] }
 0x481   : > { %8569 = vst [vmem:[%s10763_s27 + $0x1c40] sm:$0xff] %v7337_v36  ;;  %8571 = vst [vmem:[%s10763_s27 + $0x1c50] sm:$0xff] %v7339_v55  ;;  %v7338_v40 = vmin.f32 %v6106_v56, 1.7  ;;  %v7340_v41 = vmin.f32 %v6108_v37, 1.7  ;;  %v3504_v42 = vadd.f32 %v3503_v39, %v13136_v53  ;;  %v4031_v43 = vadd.f32 %v4030_v62, %v13140_v31 }
 0x482   : > { %v6121_v44 = vmax.f32 %v3502_v38, 1.5  ;;  %v6123_v45 = vmax.f32 %v4029_v47, 1.5  ;;  %v3507_v46 = vpop.f32.mrf.mxu0  ;;  %v4034_v59 = vpop.f32.mrf.mxu1  ;;  %9488 = vmatmul.mubr.msk.f32.gmra.mxu0 %vm753_vm0, %v9847_v61  ;;  %9565 = vmatmul.mubr.msk.f32.gmra.mxu1 %vm753_vm0, %v9847_v61 }
 0x483   : > { %8570 = vst [vmem:[%s10763_s27 + $0x1c48] sm:$0xff] %v7338_v40  ;;  %8572 = vst [vmem:[%s10763_s27 + $0x1c58] sm:$0xff] %v7340_v41  ;;  %v6122_v63 = vmax.f32 %v3504_v42, 1.5  ;;  %v6124_v48 = vmax.f32 %v4031_v43, 1.5  ;;  %v3508_v49 = vadd.f32 %v3507_v46, %v13113_v9  ;;  %v4035_v51 = vadd.f32 %v4034_v59, %v13126_v52  ;;  %4391 = vmatprep.mubr.f32.mxu0 %v9958_v0 }
 0x484   : > { %4918 = vmatprep.mubr.f32.mxu1 %v9958_v0  ;;  %v7353_v54 = vmin.f32 %v6121_v44, 1.7  ;;  %v7355_v57 = vmin.f32 %v6123_v45, 1.7  ;;  %v3509_v58 = vpop.f32.mrf.mxu0  ;;  %v4036_v60 = vpop.f32.mrf.mxu1  ;;  %v9850_v45 = vld [vmem:[%s15190_s0 + $0x100] sm:$0xff] }
 0x485   : > { %v7354_v1 = vmin.f32 %v6122_v63, 1.7  ;;  %v7356_v2 = vmin.f32 %v6124_v48, 1.7  ;;  %v6137_v3 = vmax.f32 %v3508_v49, 1.5  ;;  %v6139_v4 = vmax.f32 %v4035_v51, 1.5 }
 0x486   : > { %8585 = vst [vmem:[%s10763_s27 + $0x1cc0] sm:$0xff] %v7353_v54  ;;  %8587 = vst [vmem:[%s10763_s27 + $0x1cd0] sm:$0xff] %v7355_v57  ;;  %v3510_v5 = vadd.f32 %v3509_v58, %v13136_v53  ;;  %v4037_v8 = vadd.f32 %v4036_v60, %v13140_v31  ;;  %v3513_v10 = vpop.f32.mrf.mxu0  ;;  %v4040_v11 = vpop.f32.mrf.mxu1  ;;  %9489 = vmatmul.mubr.msk.f32.gmra.mxu0 %vm753_vm0, %v9848_v12  ;;  %9566 = vmatmul.mubr.msk.f32.gmra.mxu1 %vm753_vm0, %v9848_v12 }
 0x487   : > { %8586 = vst [vmem:[%s10763_s27 + $0x1cc8] sm:$0xff] %v7354_v1  ;;  %8588 = vst [vmem:[%s10763_s27 + $0x1cd8] sm:$0xff] %v7356_v2  ;;  %v7369_v13 = vmin.f32 %v6137_v3, 1.7  ;;  %v7371_v14 = vmin.f32 %v6139_v4, 1.7  ;;  %v3514_v15 = vadd.f32 %v3513_v10, %v13113_v9  ;;  %v4041_v18 = vadd.f32 %v4040_v11, %v13126_v52  ;;  %4397 = vmatprep.mubr.f32.mxu0 %v9958_v0 }
 0x488   : > { %4924 = vmatprep.mubr.f32.mxu1 %v9958_v0  ;;  %v6138_v19 = vmax.f32 %v3510_v5, 1.5  ;;  %v6140_v20 = vmax.f32 %v4037_v8, 1.5  ;;  %v3515_v21 = vpop.f32.mrf.mxu0  ;;  %v4042_v22 = vpop.f32.mrf.mxu1  ;;  %v9851_v8 = vld [vmem:[%s15190_s0 + $0x108] sm:$0xff] }
 0x489   : > { %8601 = vst [vmem:[%s10763_s27 + $0x1d40] sm:$0xff] %v7369_v13  ;;  %8603 = vst [vmem:[%s10763_s27 + $0x1d50] sm:$0xff] %v7371_v14  ;;  %v6153_v23 = vmax.f32 %v3514_v15, 1.5  ;;  %v6155_v24 = vmax.f32 %v4041_v18, 1.5  ;;  %v3516_v25 = vadd.f32 %v3515_v21, %v13136_v53  ;;  %v4043_v26 = vadd.f32 %v4042_v22, %v13140_v31 }
 0x48a   : > { %v7370_v27 = vmin.f32 %v6138_v19, 1.7  ;;  %v7372_v30 = vmin.f32 %v6140_v20, 1.7  ;;  %v3519_v28 = vpop.f32.mrf.mxu0  ;;  %v4046_v29 = vpop.f32.mrf.mxu1  ;;  %9490 = vmatmul.mubr.msk.f32.gmra.mxu0 %vm753_vm0, %v9849_v32  ;;  %9567 = vmatmul.mubr.msk.f32.gmra.mxu1 %vm753_vm0, %v9849_v32 }
 0x48b   : > { %v7385_v33 = vmin.f32 %v6153_v23, 1.7  ;;  %v7387_v34 = vmin.f32 %v6155_v24, 1.7  ;;  %v6154_v35 = vmax.f32 %v3516_v25, 1.5  ;;  %v6156_v36 = vmax.f32 %v4043_v26, 1.5  ;;  %4403 = vmatprep.mubr.f32.mxu0 %v9958_v0  ;;  %4930 = vmatprep.mubr.f32.mxu1 %v9958_v0 }
 0x48c   : > { %8602 = vst [vmem:[%s10763_s27 + $0x1d48] sm:$0xff] %v7370_v27  ;;  %8604 = vst [vmem:[%s10763_s27 + $0x1d58] sm:$0xff] %v7372_v30  ;;  %v3520_v55 = vadd.f32 %v3519_v28, %v13113_v9  ;;  %v4047_v56 = vadd.f32 %v4046_v29, %v13126_v52  ;;  %v3521_v37 = vpop.f32.mrf.mxu0  ;;  %v4048_v38 = vpop.f32.mrf.mxu1  ;;  %v9852_v30 = vld [vmem:[%s15190_s0 + $0x110] sm:$0xff] }
 0x48d   : > { %8617 = vst [vmem:[%s10763_s27 + $0x1dc0] sm:$0xff] %v7385_v33  ;;  %8619 = vst [vmem:[%s10763_s27 + $0x1dd0] sm:$0xff] %v7387_v34  ;;  %v7386_v47 = vmin.f32 %v6154_v35, 1.7  ;;  %v7388_v39 = vmin.f32 %v6156_v36, 1.7  ;;  %v3522_v62 = vadd.f32 %v3521_v37, %v13136_v53  ;;  %v4049_v40 = vadd.f32 %v4048_v38, %v13140_v31 }
 0x48e   : > { %v6169_v41 = vmax.f32 %v3520_v55, 1.5  ;;  %v6171_v42 = vmax.f32 %v4047_v56, 1.5  ;;  %v3525_v43 = vpop.f32.mrf.mxu0  ;;  %v4052_v44 = vpop.f32.mrf.mxu1  ;;  %9491 = vmatmul.mubr.msk.f32.gmra.mxu0 %vm753_vm0, %v9850_v45  ;;  %9568 = vmatmul.mubr.msk.f32.gmra.mxu1 %vm753_vm0, %v9850_v45 }
 0x48f   : > { %8618 = vst [vmem:[%s10763_s27 + $0x1dc8] sm:$0xff] %v7386_v47  ;;  %8620 = vst [vmem:[%s10763_s27 + $0x1dd8] sm:$0xff] %v7388_v39  ;;  %v6170_v46 = vmax.f32 %v3522_v62, 1.5  ;;  %v6172_v59 = vmax.f32 %v4049_v40, 1.5  ;;  %v3526_v61 = vadd.f32 %v3525_v43, %v13113_v9  ;;  %v4053_v63 = vadd.f32 %v4052_v44, %v13126_v52  ;;  %4409 = vmatprep.mubr.f32.mxu0 %v9958_v0 }
 0x490   : > { %4936 = vmatprep.mubr.f32.mxu1 %v9958_v0  ;;  %v7401_v48 = vmin.f32 %v6169_v41, 1.7  ;;  %v7403_v49 = vmin.f32 %v6171_v42, 1.7  ;;  %v3527_v51 = vpop.f32.mrf.mxu0  ;;  %v4054_v54 = vpop.f32.mrf.mxu1  ;;  %v9853_v42 = vld [vmem:[%s15190_s0 + $0x118] sm:$0xff] }
 0x491   : > { %v7402_v57 = vmin.f32 %v6170_v46, 1.7  ;;  %v7404_v58 = vmin.f32 %v6172_v59, 1.7  ;;  %v6185_v60 = vmax.f32 %v3526_v61, 1.5  ;;  %v6187_v1 = vmax.f32 %v4053_v63, 1.5 }
 0x492   : > { %8633 = vst [vmem:[%s10763_s27 + $0x1e40] sm:$0xff] %v7401_v48  ;;  %8635 = vst [vmem:[%s10763_s27 + $0x1e50] sm:$0xff] %v7403_v49  ;;  %v3528_v2 = vadd.f32 %v3527_v51, %v13136_v53  ;;  %v4055_v3 = vadd.f32 %v4054_v54, %v13140_v31  ;;  %v3531_v4 = vpop.f32.mrf.mxu0  ;;  %v4058_v5 = vpop.f32.mrf.mxu1  ;;  %9492 = vmatmul.mubr.msk.f32.gmra.mxu0 %vm753_vm0, %v9851_v8  ;;  %9569 = vmatmul.mubr.msk.f32.gmra.mxu1 %vm753_vm0, %v9851_v8 }
 0x493   : > { %8634 = vst [vmem:[%s10763_s27 + $0x1e48] sm:$0xff] %v7402_v57  ;;  %8636 = vst [vmem:[%s10763_s27 + $0x1e58] sm:$0xff] %v7404_v58  ;;  %v7417_v10 = vmin.f32 %v6185_v60, 1.7  ;;  %v7419_v11 = vmin.f32 %v6187_v1, 1.7  ;;  %v3532_v12 = vadd.f32 %v3531_v4, %v13113_v9  ;;  %v4059_v13 = vadd.f32 %v4058_v5, %v13126_v52  ;;  %4415 = vmatprep.mubr.f32.mxu0 %v9958_v0 }
 0x494   : > { %4942 = vmatprep.mubr.f32.mxu1 %v9958_v0  ;;  %v6186_v14 = vmax.f32 %v3528_v2, 1.5  ;;  %v6188_v15 = vmax.f32 %v4055_v3, 1.5  ;;  %v3533_v18 = vpop.f32.mrf.mxu0  ;;  %v4060_v19 = vpop.f32.mrf.mxu1  ;;  %v9854_v3 = vld [vmem:[%s15190_s0 + $0x120] sm:$0xff] }
 0x495   : > { %8649 = vst [vmem:[%s10763_s27 + $0x1ec0] sm:$0xff] %v7417_v10  ;;  %8651 = vst [vmem:[%s10763_s27 + $0x1ed0] sm:$0xff] %v7419_v11  ;;  %v6201_v20 = vmax.f32 %v3532_v12, 1.5  ;;  %v6203_v21 = vmax.f32 %v4059_v13, 1.5  ;;  %v3534_v22 = vadd.f32 %v3533_v18, %v13136_v53  ;;  %v4061_v23 = vadd.f32 %v4060_v19, %v13140_v31 }
 0x496   : > { %v7418_v24 = vmin.f32 %v6186_v14, 1.7  ;;  %v7420_v25 = vmin.f32 %v6188_v15, 1.7  ;;  %v3537_v26 = vpop.f32.mrf.mxu0  ;;  %v4064_v27 = vpop.f32.mrf.mxu1  ;;  %9493 = vmatmul.mubr.msk.f32.gmra.mxu0 %vm753_vm0, %v9852_v30  ;;  %9570 = vmatmul.mubr.msk.f32.gmra.mxu1 %vm753_vm0, %v9852_v30 }
 0x497   : > { %v7433_v28 = vmin.f32 %v6201_v20, 1.7  ;;  %v7435_v29 = vmin.f32 %v6203_v21, 1.7  ;;  %v6202_v32 = vmax.f32 %v3534_v22, 1.5  ;;  %v6204_v33 = vmax.f32 %v4061_v23, 1.5  ;;  %4421 = vmatprep.mubr.f32.mxu0 %v9958_v0  ;;  %4948 = vmatprep.mubr.f32.mxu1 %v9958_v0 }
 0x498   : > { %8650 = vst [vmem:[%s10763_s27 + $0x1ec8] sm:$0xff] %v7418_v24  ;;  %8652 = vst [vmem:[%s10763_s27 + $0x1ed8] sm:$0xff] %v7420_v25  ;;  %v3538_v34 = vadd.f32 %v3537_v26, %v13113_v9  ;;  %v4065_v35 = vadd.f32 %v4064_v27, %v13126_v52  ;;  %v3539_v36 = vpop.f32.mrf.mxu0  ;;  %v4066_v55 = vpop.f32.mrf.mxu1  ;;  %v9855_v25 = vld [vmem:[%s15190_s0 + $0x128] sm:$0xff] }
 0x499   : > { %8665 = vst [vmem:[%s10763_s27 + $0x1f40] sm:$0xff] %v7433_v28  ;;  %8667 = vst [vmem:[%s10763_s27 + $0x1f50] sm:$0xff] %v7435_v29  ;;  %v7434_v56 = vmin.f32 %v6202_v32, 1.7  ;;  %v7436_v37 = vmin.f32 %v6204_v33, 1.7  ;;  %v3540_v38 = vadd.f32 %v3539_v36, %v13136_v53  ;;  %v4067_v47 = vadd.f32 %v4066_v55, %v13140_v31 }
 0x49a   : > { %v6217_v39 = vmax.f32 %v3538_v34, 1.5  ;;  %v6219_v62 = vmax.f32 %v4065_v35, 1.5  ;;  %v3543_v40 = vpop.f32.mrf.mxu0  ;;  %v4070_v41 = vpop.f32.mrf.mxu1  ;;  %9494 = vmatmul.mubr.msk.f32.gmra.mxu0 %vm753_vm0, %v9853_v42  ;;  %9571 = vmatmul.mubr.msk.f32.gmra.mxu1 %vm753_vm0, %v9853_v42 }
 0x49b   : > { %8666 = vst [vmem:[%s10763_s27 + $0x1f48] sm:$0xff] %v7434_v56  ;;  %8668 = vst [vmem:[%s10763_s27 + $0x1f58] sm:$0xff] %v7436_v37  ;;  %v6218_v43 = vmax.f32 %v3540_v38, 1.5  ;;  %v6220_v44 = vmax.f32 %v4067_v47, 1.5  ;;  %v3544_v45 = vadd.f32 %v3543_v40, %v13113_v9  ;;  %v4071_v46 = vadd.f32 %v4070_v41, %v13126_v52  ;;  %4427 = vmatprep.mubr.f32.mxu0 %v9958_v0 }
 0x49c   : > { %4954 = vmatprep.mubr.f32.mxu1 %v9958_v0  ;;  %v7449_v59 = vmin.f32 %v6217_v39, 1.7  ;;  %v7451_v61 = vmin.f32 %v6219_v62, 1.7  ;;  %v3545_v63 = vpop.f32.mrf.mxu0  ;;  %v4072_v48 = vpop.f32.mrf.mxu1  ;;  %v9856_v62 = vld [vmem:[%s15190_s0 + $0x130] sm:$0xff] }
 0x49d   : > { %v7450_v49 = vmin.f32 %v6218_v43, 1.7  ;;  %v7452_v51 = vmin.f32 %v6220_v44, 1.7  ;;  %v6233_v54 = vmax.f32 %v3544_v45, 1.5  ;;  %v6235_v57 = vmax.f32 %v4071_v46, 1.5 }
 0x49e   : > { %8681 = vst [vmem:[%s10763_s27 + $0x1fc0] sm:$0xff] %v7449_v59  ;;  %8683 = vst [vmem:[%s10763_s27 + $0x1fd0] sm:$0xff] %v7451_v61  ;;  %v3546_v58 = vadd.f32 %v3545_v63, %v13136_v53  ;;  %v4073_v60 = vadd.f32 %v4072_v48, %v13140_v31  ;;  %v3549_v1 = vpop.f32.mrf.mxu0  ;;  %v4076_v2 = vpop.f32.mrf.mxu1  ;;  %9495 = vmatmul.mubr.msk.f32.gmra.mxu0 %vm753_vm0, %v9854_v3  ;;  %9572 = vmatmul.mubr.msk.f32.gmra.mxu1 %vm753_vm0, %v9854_v3 }
 0x49f   : > { %8682 = vst [vmem:[%s10763_s27 + $0x1fc8] sm:$0xff] %v7450_v49  ;;  %8684 = vst [vmem:[%s10763_s27 + $0x1fd8] sm:$0xff] %v7452_v51  ;;  %v7465_v4 = vmin.f32 %v6233_v54, 1.7  ;;  %v7467_v5 = vmin.f32 %v6235_v57, 1.7  ;;  %v3550_v8 = vadd.f32 %v3549_v1, %v13113_v9  ;;  %v4077_v10 = vadd.f32 %v4076_v2, %v13126_v52  ;;  %4433 = vmatprep.mubr.f32.mxu0 %v9958_v0 }
 0x4a0   : > { %4960 = vmatprep.mubr.f32.mxu1 %v9958_v0  ;;  %v6234_v11 = vmax.f32 %v3546_v58, 1.5  ;;  %v6236_v12 = vmax.f32 %v4073_v60, 1.5  ;;  %v3551_v13 = vpop.f32.mrf.mxu0  ;;  %v4078_v14 = vpop.f32.mrf.mxu1  ;;  %v9857_v60 = vld [vmem:[%s15190_s0 + $0x138] sm:$0xff] }
 0x4a1   : > { %8697 = vst [vmem:[%s10763_s27 + $0x2040] sm:$0xff] %v7465_v4  ;;  %8699 = vst [vmem:[%s10763_s27 + $0x2050] sm:$0xff] %v7467_v5  ;;  %v6249_v15 = vmax.f32 %v3550_v8, 1.5  ;;  %v6251_v18 = vmax.f32 %v4077_v10, 1.5  ;;  %v3552_v19 = vadd.f32 %v3551_v13, %v13136_v53  ;;  %v4079_v20 = vadd.f32 %v4078_v14, %v13140_v31 }
 0x4a2   : > { %v7466_v21 = vmin.f32 %v6234_v11, 1.7  ;;  %v7468_v22 = vmin.f32 %v6236_v12, 1.7  ;;  %v3555_v23 = vpop.f32.mrf.mxu0  ;;  %v4082_v24 = vpop.f32.mrf.mxu1  ;;  %9496 = vmatmul.mubr.msk.f32.gmra.mxu0 %vm753_vm0, %v9855_v25  ;;  %9573 = vmatmul.mubr.msk.f32.gmra.mxu1 %vm753_vm0, %v9855_v25 }
 0x4a3   : > { %v7481_v26 = vmin.f32 %v6249_v15, 1.7  ;;  %v7483_v27 = vmin.f32 %v6251_v18, 1.7  ;;  %v6250_v30 = vmax.f32 %v3552_v19, 1.5  ;;  %v6252_v28 = vmax.f32 %v4079_v20, 1.5  ;;  %4439 = vmatprep.mubr.f32.mxu0 %v9958_v0  ;;  %4966 = vmatprep.mubr.f32.mxu1 %v9958_v0 }
 0x4a4   : > { %8698 = vst [vmem:[%s10763_s27 + $0x2048] sm:$0xff] %v7466_v21  ;;  %8700 = vst [vmem:[%s10763_s27 + $0x2058] sm:$0xff] %v7468_v22  ;;  %v3556_v29 = vadd.f32 %v3555_v23, %v13113_v9  ;;  %v4083_v32 = vadd.f32 %v4082_v24, %v13126_v52  ;;  %v3557_v33 = vpop.f32.mrf.mxu0  ;;  %v4084_v34 = vpop.f32.mrf.mxu1  ;;  %v9858_v22 = vld [vmem:[%s15190_s0 + $0x140] sm:$0xff] }
 0x4a5   : > { %8713 = vst [vmem:[%s10763_s27 + $0x20c0] sm:$0xff] %v7481_v26  ;;  %8715 = vst [vmem:[%s10763_s27 + $0x20d0] sm:$0xff] %v7483_v27  ;;  %v7482_v35 = vmin.f32 %v6250_v30, 1.7  ;;  %v7484_v36 = vmin.f32 %v6252_v28, 1.7  ;;  %v3558_v55 = vadd.f32 %v3557_v33, %v13136_v53  ;;  %v4085_v56 = vadd.f32 %v4084_v34, %v13140_v31 }
 0x4a6   : > { %v6265_v37 = vmax.f32 %v3556_v29, 1.5  ;;  %v6267_v38 = vmax.f32 %v4083_v32, 1.5  ;;  %v3561_v47 = vpop.f32.mrf.mxu0  ;;  %v4088_v39 = vpop.f32.mrf.mxu1  ;;  %9497 = vmatmul.mubr.msk.f32.gmra.mxu0 %vm753_vm0, %v9856_v62  ;;  %9574 = vmatmul.mubr.msk.f32.gmra.mxu1 %vm753_vm0, %v9856_v62 }
 0x4a7   : > { %8714 = vst [vmem:[%s10763_s27 + $0x20c8] sm:$0xff] %v7482_v35  ;;  %8716 = vst [vmem:[%s10763_s27 + $0x20d8] sm:$0xff] %v7484_v36  ;;  %v6266_v40 = vmax.f32 %v3558_v55, 1.5  ;;  %v6268_v41 = vmax.f32 %v4085_v56, 1.5  ;;  %v3562_v42 = vadd.f32 %v3561_v47, %v13113_v9  ;;  %v4089_v43 = vadd.f32 %v4088_v39, %v13126_v52  ;;  %4445 = vmatprep.mubr.f32.mxu0 %v9958_v0 }
 0x4a8   : > { %4972 = vmatprep.mubr.f32.mxu1 %v9958_v0  ;;  %v7497_v44 = vmin.f32 %v6265_v37, 1.7  ;;  %v7499_v45 = vmin.f32 %v6267_v38, 1.7  ;;  %v3563_v46 = vpop.f32.mrf.mxu0  ;;  %v4090_v59 = vpop.f32.mrf.mxu1  ;;  %v9859_v38 = vld [vmem:[%s15190_s0 + $0x148] sm:$0xff] }
 0x4a9   : > { %v7498_v61 = vmin.f32 %v6266_v40, 1.7  ;;  %v7500_v63 = vmin.f32 %v6268_v41, 1.7  ;;  %v6281_v48 = vmax.f32 %v3562_v42, 1.5  ;;  %v6283_v49 = vmax.f32 %v4089_v43, 1.5 }
 0x4aa   : > { %8729 = vst [vmem:[%s10763_s27 + $0x2140] sm:$0xff] %v7497_v44  ;;  %8731 = vst [vmem:[%s10763_s27 + $0x2150] sm:$0xff] %v7499_v45  ;;  %v3564_v51 = vadd.f32 %v3563_v46, %v13136_v53  ;;  %v4091_v54 = vadd.f32 %v4090_v59, %v13140_v31  ;;  %v3567_v57 = vpop.f32.mrf.mxu0  ;;  %v4094_v58 = vpop.f32.mrf.mxu1  ;;  %9498 = vmatmul.mubr.msk.f32.gmra.mxu0 %vm753_vm0, %v9857_v60  ;;  %9575 = vmatmul.mubr.msk.f32.gmra.mxu1 %vm753_vm0, %v9857_v60 }
 0x4ab   : > { %8730 = vst [vmem:[%s10763_s27 + $0x2148] sm:$0xff] %v7498_v61  ;;  %8732 = vst [vmem:[%s10763_s27 + $0x2158] sm:$0xff] %v7500_v63  ;;  %v7513_v1 = vmin.f32 %v6281_v48, 1.7  ;;  %v7515_v2 = vmin.f32 %v6283_v49, 1.7  ;;  %v3568_v3 = vadd.f32 %v3567_v57, %v13113_v9  ;;  %v4095_v4 = vadd.f32 %v4094_v58, %v13126_v52  ;;  %4451 = vmatprep.mubr.f32.mxu0 %v9958_v0 }
 0x4ac   : > { %4978 = vmatprep.mubr.f32.mxu1 %v9958_v0  ;;  %v6282_v5 = vmax.f32 %v3564_v51, 1.5  ;;  %v6284_v8 = vmax.f32 %v4091_v54, 1.5  ;;  %v3569_v10 = vpop.f32.mrf.mxu0  ;;  %v4096_v11 = vpop.f32.mrf.mxu1  ;;  %v9860_v54 = vld [vmem:[%s15190_s0 + $0x150] sm:$0xff] }
 0x4ad   : > { %8745 = vst [vmem:[%s10763_s27 + $0x21c0] sm:$0xff] %v7513_v1  ;;  %8747 = vst [vmem:[%s10763_s27 + $0x21d0] sm:$0xff] %v7515_v2  ;;  %v6297_v12 = vmax.f32 %v3568_v3, 1.5  ;;  %v6299_v13 = vmax.f32 %v4095_v4, 1.5  ;;  %v3570_v14 = vadd.f32 %v3569_v10, %v13136_v53  ;;  %v4097_v15 = vadd.f32 %v4096_v11, %v13140_v31 }
 0x4ae   : > { %v7514_v18 = vmin.f32 %v6282_v5, 1.7  ;;  %v7516_v19 = vmin.f32 %v6284_v8, 1.7  ;;  %v3573_v20 = vpop.f32.mrf.mxu0  ;;  %v4100_v21 = vpop.f32.mrf.mxu1  ;;  %9499 = vmatmul.mubr.msk.f32.gmra.mxu0 %vm753_vm0, %v9858_v22  ;;  %9576 = vmatmul.mubr.msk.f32.gmra.mxu1 %vm753_vm0, %v9858_v22 }
 0x4af   : > { %v7529_v23 = vmin.f32 %v6297_v12, 1.7  ;;  %v7531_v24 = vmin.f32 %v6299_v13, 1.7  ;;  %v6298_v25 = vmax.f32 %v3570_v14, 1.5  ;;  %v6300_v26 = vmax.f32 %v4097_v15, 1.5  ;;  %4457 = vmatprep.mubr.f32.mxu0 %v9958_v0  ;;  %4984 = vmatprep.mubr.f32.mxu1 %v9958_v0 }
 0x4b0   : > { %8746 = vst [vmem:[%s10763_s27 + $0x21c8] sm:$0xff] %v7514_v18  ;;  %8748 = vst [vmem:[%s10763_s27 + $0x21d8] sm:$0xff] %v7516_v19  ;;  %v3574_v27 = vadd.f32 %v3573_v20, %v13113_v9  ;;  %v4101_v30 = vadd.f32 %v4100_v21, %v13126_v52  ;;  %v3575_v28 = vpop.f32.mrf.mxu0  ;;  %v4102_v29 = vpop.f32.mrf.mxu1  ;;  %v9861_v19 = vld [vmem:[%s15190_s0 + $0x158] sm:$0xff] }
 0x4b1   : > { %8761 = vst [vmem:[%s10763_s27 + $0x2240] sm:$0xff] %v7529_v23  ;;  %8763 = vst [vmem:[%s10763_s27 + $0x2250] sm:$0xff] %v7531_v24  ;;  %v7530_v32 = vmin.f32 %v6298_v25, 1.7  ;;  %v7532_v33 = vmin.f32 %v6300_v26, 1.7  ;;  %v3576_v34 = vadd.f32 %v3575_v28, %v13136_v53  ;;  %v4103_v35 = vadd.f32 %v4102_v29, %v13140_v31 }
 0x4b2   : > { %v6313_v36 = vmax.f32 %v3574_v27, 1.5  ;;  %v6315_v55 = vmax.f32 %v4101_v30, 1.5  ;;  %v3579_v56 = vpop.f32.mrf.mxu0  ;;  %v4106_v37 = vpop.f32.mrf.mxu1  ;;  %9500 = vmatmul.mubr.msk.f32.gmra.mxu0 %vm753_vm0, %v9859_v38  ;;  %9577 = vmatmul.mubr.msk.f32.gmra.mxu1 %vm753_vm0, %v9859_v38 }
 0x4b3   : > { %8762 = vst [vmem:[%s10763_s27 + $0x2248] sm:$0xff] %v7530_v32  ;;  %8764 = vst [vmem:[%s10763_s27 + $0x2258] sm:$0xff] %v7532_v33  ;;  %v6314_v47 = vmax.f32 %v3576_v34, 1.5  ;;  %v6316_v39 = vmax.f32 %v4103_v35, 1.5  ;;  %v3580_v62 = vadd.f32 %v3579_v56, %v13113_v9  ;;  %v4107_v40 = vadd.f32 %v4106_v37, %v13126_v52  ;;  %4463 = vmatprep.mubr.f32.mxu0 %v9958_v0 }
 0x4b4   : > { %4990 = vmatprep.mubr.f32.mxu1 %v9958_v0  ;;  %v7545_v41 = vmin.f32 %v6313_v36, 1.7  ;;  %v7547_v42 = vmin.f32 %v6315_v55, 1.7  ;;  %v3581_v43 = vpop.f32.mrf.mxu0  ;;  %v4108_v44 = vpop.f32.mrf.mxu1  ;;  %v9862_v55 = vld [vmem:[%s15190_s0 + $0x160] sm:$0xff] }
 0x4b5   : > { %v7546_v45 = vmin.f32 %v6314_v47, 1.7  ;;  %v7548_v46 = vmin.f32 %v6316_v39, 1.7  ;;  %v6329_v59 = vmax.f32 %v3580_v62, 1.5  ;;  %v6331_v61 = vmax.f32 %v4107_v40, 1.5 }
 0x4b6   : > { %8777 = vst [vmem:[%s10763_s27 + $0x22c0] sm:$0xff] %v7545_v41  ;;  %8779 = vst [vmem:[%s10763_s27 + $0x22d0] sm:$0xff] %v7547_v42  ;;  %v3582_v63 = vadd.f32 %v3581_v43, %v13136_v53  ;;  %v4109_v48 = vadd.f32 %v4108_v44, %v13140_v31  ;;  %v3585_v49 = vpop.f32.mrf.mxu0  ;;  %v4112_v51 = vpop.f32.mrf.mxu1  ;;  %9501 = vmatmul.mubr.msk.f32.gmra.mxu0 %vm753_vm0, %v9860_v54  ;;  %9578 = vmatmul.mubr.msk.f32.gmra.mxu1 %vm753_vm0, %v9860_v54 }
 0x4b7   : > { %8778 = vst [vmem:[%s10763_s27 + $0x22c8] sm:$0xff] %v7546_v45  ;;  %8780 = vst [vmem:[%s10763_s27 + $0x22d8] sm:$0xff] %v7548_v46  ;;  %v7561_v57 = vmin.f32 %v6329_v59, 1.7  ;;  %v7563_v58 = vmin.f32 %v6331_v61, 1.7  ;;  %v3586_v60 = vadd.f32 %v3585_v49, %v13113_v9  ;;  %v4113_v1 = vadd.f32 %v4112_v51, %v13126_v52  ;;  %4469 = vmatprep.mubr.f32.mxu0 %v9958_v0 }
 0x4b8   : > { %4996 = vmatprep.mubr.f32.mxu1 %v9958_v0  ;;  %v6330_v2 = vmax.f32 %v3582_v63, 1.5  ;;  %v6332_v3 = vmax.f32 %v4109_v48, 1.5  ;;  %v3587_v4 = vpop.f32.mrf.mxu0  ;;  %v4114_v5 = vpop.f32.mrf.mxu1  ;;  %v9863_v48 = vld [vmem:[%s15190_s0 + $0x168] sm:$0xff] }
 0x4b9   : > { %8793 = vst [vmem:[%s10763_s27 + $0x2340] sm:$0xff] %v7561_v57  ;;  %8795 = vst [vmem:[%s10763_s27 + $0x2350] sm:$0xff] %v7563_v58  ;;  %v6345_v8 = vmax.f32 %v3586_v60, 1.5  ;;  %v6347_v10 = vmax.f32 %v4113_v1, 1.5  ;;  %v3588_v11 = vadd.f32 %v3587_v4, %v13136_v53  ;;  %v4115_v12 = vadd.f32 %v4114_v5, %v13140_v31 }
 0x4ba   : > { %v7562_v13 = vmin.f32 %v6330_v2, 1.7  ;;  %v7564_v14 = vmin.f32 %v6332_v3, 1.7  ;;  %v3591_v15 = vpop.f32.mrf.mxu0  ;;  %v4118_v18 = vpop.f32.mrf.mxu1  ;;  %9502 = vmatmul.mubr.msk.f32.gmra.mxu0 %vm753_vm0, %v9861_v19  ;;  %9579 = vmatmul.mubr.msk.f32.gmra.mxu1 %vm753_vm0, %v9861_v19 }
 0x4bb   : > { %v7577_v20 = vmin.f32 %v6345_v8, 1.7  ;;  %v7579_v21 = vmin.f32 %v6347_v10, 1.7  ;;  %v6346_v22 = vmax.f32 %v3588_v11, 1.5  ;;  %v6348_v23 = vmax.f32 %v4115_v12, 1.5  ;;  %4475 = vmatprep.mubr.f32.mxu0 %v9958_v0  ;;  %5002 = vmatprep.mubr.f32.mxu1 %v9958_v0 }
 0x4bc   : > { %8794 = vst [vmem:[%s10763_s27 + $0x2348] sm:$0xff] %v7562_v13  ;;  %8796 = vst [vmem:[%s10763_s27 + $0x2358] sm:$0xff] %v7564_v14  ;;  %v3592_v24 = vadd.f32 %v3591_v15, %v13113_v9  ;;  %v4119_v25 = vadd.f32 %v4118_v18, %v13126_v52  ;;  %v3593_v26 = vpop.f32.mrf.mxu0  ;;  %v4120_v27 = vpop.f32.mrf.mxu1  ;;  %v9864_v14 = vld [vmem:[%s15190_s0 + $0x170] sm:$0xff] }
 0x4bd   : > { %8809 = vst [vmem:[%s10763_s27 + $0x23c0] sm:$0xff] %v7577_v20  ;;  %8811 = vst [vmem:[%s10763_s27 + $0x23d0] sm:$0xff] %v7579_v21  ;;  %v7578_v30 = vmin.f32 %v6346_v22, 1.7  ;;  %v7580_v28 = vmin.f32 %v6348_v23, 1.7  ;;  %v3594_v29 = vadd.f32 %v3593_v26, %v13136_v53  ;;  %v4121_v32 = vadd.f32 %v4120_v27, %v13140_v31 }
 0x4be   : > { %v6361_v33 = vmax.f32 %v3592_v24, 1.5  ;;  %v6363_v34 = vmax.f32 %v4119_v25, 1.5  ;;  %v3597_v35 = vpop.f32.mrf.mxu0  ;;  %v4124_v36 = vpop.f32.mrf.mxu1  ;;  %9503 = vmatmul.mubr.msk.f32.gmra.mxu0 %vm753_vm0, %v9862_v55  ;;  %9580 = vmatmul.mubr.msk.f32.gmra.mxu1 %vm753_vm0, %v9862_v55 }
 0x4bf   : > { %8810 = vst [vmem:[%s10763_s27 + $0x23c8] sm:$0xff] %v7578_v30  ;;  %8812 = vst [vmem:[%s10763_s27 + $0x23d8] sm:$0xff] %v7580_v28  ;;  %v6362_v56 = vmax.f32 %v3594_v29, 1.5  ;;  %v6364_v37 = vmax.f32 %v4121_v32, 1.5  ;;  %v3598_v38 = vadd.f32 %v3597_v35, %v13113_v9  ;;  %v4125_v47 = vadd.f32 %v4124_v36, %v13126_v52  ;;  %4481 = vmatprep.mubr.f32.mxu0 %v9958_v0  ;;  %v9866_v35 = vld [vmem:[%s10701_s8 + $0x8] sm:$0xff]  ;;  %s9959_s8 = smov [#allocation3]  }
 0x4c0   : > { %5008 = vmatprep.mubr.f32.mxu1 %v9958_v0  ;;  %v7593_v39 = vmin.f32 %v6361_v33, 1.7  ;;  %v7595_v62 = vmin.f32 %v6363_v34, 1.7  ;;  %v3599_v40 = vpop.f32.mrf.mxu0  ;;  %v4126_v41 = vpop.f32.mrf.mxu1  ;;  %v9865_v34 = vld [vmem:[%s15190_s0 + $0x178] sm:$0xff]  ;;  %v14294_v36 = vrot.slane %v9866_v35, %v691_v6  ;;  %v14298_v55 = vrot.slane %v9866_v35, %v699_v7  ;;  %s9900_s20 = sshll.u32 %s9959_s8, 4  ;;  %s9901_s20 = int_to_ptr.vmem [resolvable:$false] %s9900_s20 }
 0x4c1   : > { %v7594_v42 = vmin.f32 %v6362_v56, 1.7  ;;  %v7596_v43 = vmin.f32 %v6364_v37, 1.7  ;;  %v6377_v44 = vmax.f32 %v3598_v38, 1.5  ;;  %v6379_v45 = vmax.f32 %v4125_v47, 1.5  ;;  %p9903_p3 = scmp.lt.s32.totalorder %s15144_s9, %s9901_s20 }
 0x4c2   : > { %8825 = vst [vmem:[%s10763_s27 + $0x2440] sm:$0xff] %v7593_v39  ;;  %8827 = vst [vmem:[%s10763_s27 + $0x2450] sm:$0xff] %v7595_v62  ;;  %v3600_v46 = vadd.f32 %v3599_v40, %v13136_v53  ;;  %v4127_v59 = vadd.f32 %v4126_v41, %v13140_v31  ;;  %v3603_v61 = vpop.f32.mrf.mxu0  ;;  %v4130_v63 = vpop.f32.mrf.mxu1  ;;  %9504 = vmatmul.mubr.msk.f32.gmra.mxu0 %vm753_vm0, %v9863_v48  ;;  %9581 = vmatmul.mubr.msk.f32.gmra.mxu1 %vm753_vm0, %v9863_v48  ;;  %s9902_s24 = scalar_lea.vmem %s9901_s20, 315392 }
 0x4c3   : > { %8826 = vst [vmem:[%s10763_s27 + $0x2448] sm:$0xff] %v7594_v42  ;;  %8828 = vst [vmem:[%s10763_s27 + $0x2458] sm:$0xff] %v7596_v43  ;;  %v7609_v49 = vmin.f32 %v6377_v44, 1.7  ;;  %v7611_v51 = vmin.f32 %v6379_v45, 1.7  ;;  %v3604_v54 = vadd.f32 %v3603_v61, %v13113_v9  ;;  %v4131_v57 = vadd.f32 %v4130_v63, %v13126_v52  ;;  %4487 = vmatprep.mubr.f32.mxu0 %v9958_v0  ;;  %p9904_p4 = scmp.lt.s32.totalorder %s9902_s24, %s9896_s19 }
 0x4c4   : > { %5014 = vmatprep.mubr.f32.mxu1 %v9958_v0  ;;  %v6378_v58 = vmax.f32 %v3600_v46, 1.5  ;;  %v6380_v60 = vmax.f32 %v4127_v59, 1.5  ;;  %v3605_v1 = vpop.f32.mrf.mxu0  ;;  %v4132_v2 = vpop.f32.mrf.mxu1  ;;  %v14308_v7 = vrot.slane %v9866_v35, %v695_v16  ;;  %v14312_v41 = vrot.slane %v9866_v35, %v703_v17  ;;  %v9867_v16 = vld [vmem:[%s15190_s0 + $0x180] sm:$0xff] }
 0x4c5   : > { %8841 = vst [vmem:[%s10763_s27 + $0x24c0] sm:$0xff] %v7609_v49  ;;  %8843 = vst [vmem:[%s10763_s27 + $0x24d0] sm:$0xff] %v7611_v51  ;;  %v6393_v3 = vmax.f32 %v3604_v54, 1.5  ;;  %v6395_v4 = vmax.f32 %v4131_v57, 1.5  ;;  %v3606_v5 = vadd.f32 %v3605_v1, %v13136_v53  ;;  %v4133_v8 = vadd.f32 %v4132_v2, %v13140_v31  ;;  %p9905_p5 = por %p9904_p4, %p9903_p3 }
 0x4c6   : > { %v7610_v10 = vmin.f32 %v6378_v58, 1.7  ;;  %v7612_v11 = vmin.f32 %v6380_v60, 1.7  ;;  %v3609_v12 = vpop.f32.mrf.mxu0  ;;  %v4136_v13 = vpop.f32.mrf.mxu1  ;;  %9505 = vmatmul.mubr.msk.f32.gmra.mxu0 %vm753_vm0, %v9864_v14  ;;  %9582 = vmatmul.mubr.msk.f32.gmra.mxu1 %vm753_vm0, %v9864_v14 }
 0x4c7   : > { %v7625_v15 = vmin.f32 %v6393_v3, 1.7  ;;  %v7627_v18 = vmin.f32 %v6395_v4, 1.7  ;;  %v6394_v19 = vmax.f32 %v3606_v5, 1.5  ;;  %v6396_v20 = vmax.f32 %v4133_v8, 1.5  ;;  %4493 = vmatprep.mubr.f32.mxu0 %v9958_v0  ;;  %5020 = vmatprep.mubr.f32.mxu1 %v9958_v0  ;;  %p9906_p7 = pnand %p9905_p5, %p9899_p2 }
 0x4c8   : > { %8842 = vst [vmem:[%s10763_s27 + $0x24c8] sm:$0xff] %v7610_v10  ;;  %8844 = vst [vmem:[%s10763_s27 + $0x24d8] sm:$0xff] %v7612_v11  ;;  %v3610_v21 = vadd.f32 %v3609_v12, %v13113_v9  ;;  %v4137_v22 = vadd.f32 %v4136_v13, %v13126_v52  ;;  %v3611_v23 = vpop.f32.mrf.mxu0  ;;  %v4138_v24 = vpop.f32.mrf.mxu1  ;;  %v9868_v3 = vld [vmem:[%s15190_s0 + $0x188] sm:$0xff] }
 0x4c9   : > { %8857 = vst [vmem:[%s10763_s27 + $0x2540] sm:$0xff] %v7625_v15  ;;  %8859 = vst [vmem:[%s10763_s27 + $0x2550] sm:$0xff] %v7627_v18  ;;  %v7626_v25 = vmin.f32 %v6394_v19, 1.7  ;;  %v7628_v26 = vmin.f32 %v6396_v20, 1.7  ;;  %v3612_v27 = vadd.f32 %v3611_v23, %v13136_v53  ;;  %v4139_v30 = vadd.f32 %v4138_v24, %v13140_v31 }
 0x4ca   : > { %v6409_v28 = vmax.f32 %v3610_v21, 1.5  ;;  %v6411_v29 = vmax.f32 %v4137_v22, 1.5  ;;  %v3615_v32 = vpop.f32.mrf.mxu0  ;;  %v4142_v33 = vpop.f32.mrf.mxu1  ;;  %9506 = vmatmul.mubr.msk.f32.gmra.mxu0 %vm753_vm0, %v9865_v34  ;;  %9583 = vmatmul.mubr.msk.f32.gmra.mxu1 %vm753_vm0, %v9865_v34 }
 0x4cb   : > { %8858 = vst [vmem:[%s10763_s27 + $0x2548] sm:$0xff] %v7626_v25  ;;  %8860 = vst [vmem:[%s10763_s27 + $0x2558] sm:$0xff] %v7628_v26  ;;  %v6410_v56 = vmax.f32 %v3612_v27, 1.5  ;;  %v6412_v37 = vmax.f32 %v4139_v30, 1.5  ;;  %v3616_v38 = vadd.f32 %v3615_v32, %v13113_v9  ;;  %v4143_v47 = vadd.f32 %v4142_v33, %v13126_v52  ;;  %4499 = vmatprep.mubr.f32.mxu0 %v9958_v0  ;;  %v9869_v25 = vld [vmem:[%s15190_s0 + $0x190] sm:$0xff] }
 0x4cc   : > { %5026 = vmatprep.mubr.f32.mxu1 %v9958_v0  ;;  %v7641_v6 = vmin.f32 %v6409_v28, 1.7  ;;  %v7643_v39 = vmin.f32 %v6411_v29, 1.7  ;;  %v3617_v62 = vpop.f32.mrf.mxu0  ;;  %v4144_v40 = vpop.f32.mrf.mxu1 }
 0x4cd   : > { %v7642_v9 = vmin.f32 %v6410_v56, 1.7  ;;  %v7644_v52 = vmin.f32 %v6412_v37, 1.7  ;;  %v6425_v42 = vmax.f32 %v3616_v38, 1.5  ;;  %v6427_v43 = vmax.f32 %v4143_v47, 1.5 }
 0x4ce   : > { %8873 = vst [vmem:[%s10763_s27 + $0x25c0] sm:$0xff] %v7641_v6  ;;  %8875 = vst [vmem:[%s10763_s27 + $0x25d0] sm:$0xff] %v7643_v39  ;;  %v3618_v44 = vadd.f32 %v3617_v62, %v13136_v53  ;;  %v4145_v45 = vadd.f32 %v4144_v40, %v13140_v31  ;;  %v4213_v46 = vpop.f32.mrf.mxu0  ;;  %9507 = vmatmul.mubr.msk.f32.gmra.mxu0 %vm753_vm0, %v9867_v16  ;;  %v4740_v50 = vpop.f32.mrf.mxu1  ;;  %9584 = vmatmul.mubr.msk.f32.gmra.mxu1 %vm753_vm0, %v9867_v16  ;;  %v9870_v40 = vld [vmem:[%s15190_s0 + $0x198] sm:$0xff] }
 0x4cf   : > { %8874 = vst [vmem:[%s10763_s27 + $0x25c8] sm:$0xff] %v7642_v9  ;;  %8876 = vst [vmem:[%s10763_s27 + $0x25d8] sm:$0xff] %v7644_v52  ;;  %v7657_v17 = vmin.f32 %v6425_v42, 1.7  ;;  %v7659_v59 = vmin.f32 %v6427_v43, 1.7  ;;  %v4214_v53 = vadd.f32 %v4213_v46, %v14294_v36  ;;  %v4741_v31 = vadd.f32 %v4740_v50, %v14298_v55  ;;  %4505 = vmatprep.mubr.f32.mxu0 %v9958_v0 }
 0x4d0   : > { %5032 = vmatprep.mubr.f32.mxu1 %v9958_v0  ;;  %v6426_v61 = vmax.f32 %v3618_v44, 1.5  ;;  %v6428_v63 = vmax.f32 %v4145_v45, 1.5  ;;  %v4215_v48 = vpop.f32.mrf.mxu0  ;;  %v4742_v49 = vpop.f32.mrf.mxu1 }
 0x4d1   : > { %8889 = vst [vmem:[%s10763_s27 + $0x2640] sm:$0x1] %v7657_v17  ;;  %8891 = vst [vmem:[%s10763_s27 + $0x2650] sm:$0x1] %v7659_v59  ;;  %v5213_v51 = vmax.f32 %v4214_v53, 1.5  ;;  %v5215_v54 = vmax.f32 %v4741_v31, 1.5  ;;  %v4216_v57 = vadd.f32 %v4215_v48, %v14308_v7  ;;  %v4743_v58 = vadd.f32 %v4742_v49, %v14312_v41 }
 0x4d2   : > { %v7658_v60 = vmin.f32 %v6426_v61, 1.7  ;;  %v7660_v1 = vmin.f32 %v6428_v63, 1.7  ;;  %v4219_v2 = vpop.f32.mrf.mxu0  ;;  %9508 = vmatmul.mubr.msk.f32.gmra.mxu0 %vm753_vm0, %v9868_v3  ;;  %v4746_v4 = vpop.f32.mrf.mxu1  ;;  %9585 = vmatmul.mubr.msk.f32.gmra.mxu1 %vm753_vm0, %v9868_v3  ;;  %v9871_v49 = vld [vmem:[%s15190_s0 + $0x1a0] sm:$0xff] }
 0x4d3   : > { %v6445_v5 = vmin.f32 %v5213_v51, 1.7  ;;  %v6447_v8 = vmin.f32 %v5215_v54, 1.7  ;;  %v5214_v10 = vmax.f32 %v4216_v57, 1.5  ;;  %v5216_v11 = vmax.f32 %v4743_v58, 1.5  ;;  %4511 = vmatprep.mubr.f32.mxu0 %v9958_v0  ;;  %5038 = vmatprep.mubr.f32.mxu1 %v9958_v0 }
 0x4d4   : > { %8890 = vst [vmem:[%s10763_s27 + $0x2648] sm:$0x1] %v7658_v60  ;;  %8892 = vst [vmem:[%s10763_s27 + $0x2658] sm:$0x1] %v7660_v1  ;;  %v4220_v12 = vadd.f32 %v4219_v2, %v14294_v36  ;;  %v4747_v13 = vadd.f32 %v4746_v4, %v14298_v55  ;;  %v4221_v14 = vpop.f32.mrf.mxu0  ;;  %v4748_v15 = vpop.f32.mrf.mxu1 }
 0x4d5   : > { %7677 = vst [vmem:[%s10763_s27 + $0x60] sm:$0xff] %v6445_v5  ;;  %7679 = vst [vmem:[%s10763_s27 + $0x70] sm:$0xff] %v6447_v8  ;;  %v6446_v18 = vmin.f32 %v5214_v10, 1.7  ;;  %v6448_v19 = vmin.f32 %v5216_v11, 1.7  ;;  %v4222_v20 = vadd.f32 %v4221_v14, %v14308_v7  ;;  %v4749_v21 = vadd.f32 %v4748_v15, %v14312_v41 }
 0x4d6   : > { %v5229_v22 = vmax.f32 %v4220_v12, 1.5  ;;  %v5231_v23 = vmax.f32 %v4747_v13, 1.5  ;;  %v4225_v24 = vpop.f32.mrf.mxu0  ;;  %9509 = vmatmul.mubr.msk.f32.gmra.mxu0 %vm753_vm0, %v9869_v25  ;;  %v4752_v26 = vpop.f32.mrf.mxu1  ;;  %9586 = vmatmul.mubr.msk.f32.gmra.mxu1 %vm753_vm0, %v9869_v25  ;;  %v9872_v15 = vld [vmem:[%s15190_s0 + $0x1a8] sm:$0xff] }
 0x4d7   : > { %7678 = vst [vmem:[%s10763_s27 + $0x68] sm:$0xff] %v6446_v18  ;;  %7680 = vst [vmem:[%s10763_s27 + $0x78] sm:$0xff] %v6448_v19  ;;  %v5230_v27 = vmax.f32 %v4222_v20, 1.5  ;;  %v5232_v30 = vmax.f32 %v4749_v21, 1.5  ;;  %v4226_v28 = vadd.f32 %v4225_v24, %v14294_v36  ;;  %v4753_v29 = vadd.f32 %v4752_v26, %v14298_v55  ;;  %4517 = vmatprep.mubr.f32.mxu0 %v9958_v0 }
 0x4d8   : > { %5044 = vmatprep.mubr.f32.mxu1 %v9958_v0  ;;  %v6461_v32 = vmin.f32 %v5229_v22, 1.7  ;;  %v6463_v33 = vmin.f32 %v5231_v23, 1.7  ;;  %v4227_v34 = vpop.f32.mrf.mxu0  ;;  %v4754_v35 = vpop.f32.mrf.mxu1 }
 0x4d9   : > { %v6462_v56 = vmin.f32 %v5230_v27, 1.7  ;;  %v6464_v37 = vmin.f32 %v5232_v30, 1.7  ;;  %v5245_v38 = vmax.f32 %v4226_v28, 1.5  ;;  %v5247_v47 = vmax.f32 %v4753_v29, 1.5 }
 0x4da   : > { %7693 = vst [vmem:[%s10763_s27 + $0xe0] sm:$0xff] %v6461_v32  ;;  %7695 = vst [vmem:[%s10763_s27 + $0xf0] sm:$0xff] %v6463_v33  ;;  %v4228_v6 = vadd.f32 %v4227_v34, %v14308_v7  ;;  %v4755_v39 = vadd.f32 %v4754_v35, %v14312_v41  ;;  %v4231_v62 = vpop.f32.mrf.mxu0  ;;  %9510 = vmatmul.mubr.msk.f32.gmra.mxu0 %vm753_vm0, %v9870_v40  ;;  %v4758_v9 = vpop.f32.mrf.mxu1  ;;  %9587 = vmatmul.mubr.msk.f32.gmra.mxu1 %vm753_vm0, %v9870_v40  ;;  %v9873_v35 = vld [vmem:[%s15190_s0 + $0x1b0] sm:$0xff] }
 0x4db   : > { %7694 = vst [vmem:[%s10763_s27 + $0xe8] sm:$0xff] %v6462_v56  ;;  %7696 = vst [vmem:[%s10763_s27 + $0xf8] sm:$0xff] %v6464_v37  ;;  %v6477_v52 = vmin.f32 %v5245_v38, 1.7  ;;  %v6479_v42 = vmin.f32 %v5247_v47, 1.7  ;;  %v4232_v43 = vadd.f32 %v4231_v62, %v14294_v36  ;;  %v4759_v44 = vadd.f32 %v4758_v9, %v14298_v55  ;;  %4523 = vmatprep.mubr.f32.mxu0 %v9958_v0 }
 0x4dc   : > { %5050 = vmatprep.mubr.f32.mxu1 %v9958_v0  ;;  %v5246_v45 = vmax.f32 %v4228_v6, 1.5  ;;  %v5248_v46 = vmax.f32 %v4755_v39, 1.5  ;;  %v4233_v16 = vpop.f32.mrf.mxu0  ;;  %v4760_v50 = vpop.f32.mrf.mxu1 }
 0x4dd   : > { %7709 = vst [vmem:[%s10763_s27 + $0x160] sm:$0xff] %v6477_v52  ;;  %7711 = vst [vmem:[%s10763_s27 + $0x170] sm:$0xff] %v6479_v42  ;;  %v5261_v17 = vmax.f32 %v4232_v43, 1.5  ;;  %v5263_v59 = vmax.f32 %v4759_v44, 1.5  ;;  %v4234_v53 = vadd.f32 %v4233_v16, %v14308_v7  ;;  %v4761_v31 = vadd.f32 %v4760_v50, %v14312_v41  ;;  %v9874_v50 = vld [vmem:[%s15190_s0 + $0x1b8] sm:$0xff] }
 0x4de   : > { %v6478_v61 = vmin.f32 %v5246_v45, 1.7  ;;  %v6480_v63 = vmin.f32 %v5248_v46, 1.7  ;;  %v4237_v48 = vpop.f32.mrf.mxu0  ;;  %9511 = vmatmul.mubr.msk.f32.gmra.mxu0 %vm753_vm0, %v9871_v49  ;;  %v4764_v51 = vpop.f32.mrf.mxu1  ;;  %9588 = vmatmul.mubr.msk.f32.gmra.mxu1 %vm753_vm0, %v9871_v49 }
 0x4df   : > { %v6493_v54 = vmin.f32 %v5261_v17, 1.7  ;;  %v6495_v57 = vmin.f32 %v5263_v59, 1.7  ;;  %v5262_v58 = vmax.f32 %v4234_v53, 1.5  ;;  %v5264_v60 = vmax.f32 %v4761_v31, 1.5  ;;  %4529 = vmatprep.mubr.f32.mxu0 %v9958_v0  ;;  %5056 = vmatprep.mubr.f32.mxu1 %v9958_v0 }
 0x4e0   : > { %7710 = vst [vmem:[%s10763_s27 + $0x168] sm:$0xff] %v6478_v61  ;;  %7712 = vst [vmem:[%s10763_s27 + $0x178] sm:$0xff] %v6480_v63  ;;  %v4238_v1 = vadd.f32 %v4237_v48, %v14294_v36  ;;  %v4765_v2 = vadd.f32 %v4764_v51, %v14298_v55  ;;  %v4239_v3 = vpop.f32.mrf.mxu0  ;;  %v4766_v4 = vpop.f32.mrf.mxu1 }
 0x4e1   : > { %7725 = vst [vmem:[%s10763_s27 + $0x1e0] sm:$0xff] %v6493_v54  ;;  %7727 = vst [vmem:[%s10763_s27 + $0x1f0] sm:$0xff] %v6495_v57  ;;  %v6494_v5 = vmin.f32 %v5262_v58, 1.7  ;;  %v6496_v8 = vmin.f32 %v5264_v60, 1.7  ;;  %v4240_v10 = vadd.f32 %v4239_v3, %v14308_v7  ;;  %v4767_v11 = vadd.f32 %v4766_v4, %v14312_v41 }
 0x4e2   : > { %v5277_v12 = vmax.f32 %v4238_v1, 1.5  ;;  %v5279_v13 = vmax.f32 %v4765_v2, 1.5  ;;  %v4243_v14 = vpop.f32.mrf.mxu0  ;;  %9512 = vmatmul.mubr.msk.f32.gmra.mxu0 %vm753_vm0, %v9872_v15  ;;  %v4770_v18 = vpop.f32.mrf.mxu1  ;;  %9589 = vmatmul.mubr.msk.f32.gmra.mxu1 %vm753_vm0, %v9872_v15  ;;  %v9875_v4 = vld [vmem:[%s15190_s0 + $0x1c0] sm:$0xff] }
 0x4e3   : > { %7726 = vst [vmem:[%s10763_s27 + $0x1e8] sm:$0xff] %v6494_v5  ;;  %7728 = vst [vmem:[%s10763_s27 + $0x1f8] sm:$0xff] %v6496_v8  ;;  %v5278_v19 = vmax.f32 %v4240_v10, 1.5  ;;  %v5280_v20 = vmax.f32 %v4767_v11, 1.5  ;;  %v4244_v21 = vadd.f32 %v4243_v14, %v14294_v36  ;;  %v4771_v22 = vadd.f32 %v4770_v18, %v14298_v55  ;;  %4535 = vmatprep.mubr.f32.mxu0 %v9958_v0 }
 0x4e4   : > { %5062 = vmatprep.mubr.f32.mxu1 %v9958_v0  ;;  %v6509_v23 = vmin.f32 %v5277_v12, 1.7  ;;  %v6511_v24 = vmin.f32 %v5279_v13, 1.7  ;;  %v4245_v25 = vpop.f32.mrf.mxu0  ;;  %v4772_v26 = vpop.f32.mrf.mxu1 }
 0x4e5   : > { %v6510_v27 = vmin.f32 %v5278_v19, 1.7  ;;  %v6512_v30 = vmin.f32 %v5280_v20, 1.7  ;;  %v5293_v28 = vmax.f32 %v4244_v21, 1.5  ;;  %v5295_v29 = vmax.f32 %v4771_v22, 1.5 }
 0x4e6   : > { %7741 = vst [vmem:[%s10763_s27 + $0x260] sm:$0xff] %v6509_v23  ;;  %7743 = vst [vmem:[%s10763_s27 + $0x270] sm:$0xff] %v6511_v24  ;;  %v4246_v32 = vadd.f32 %v4245_v25, %v14308_v7  ;;  %v4773_v33 = vadd.f32 %v4772_v26, %v14312_v41  ;;  %v4249_v34 = vpop.f32.mrf.mxu0  ;;  %9513 = vmatmul.mubr.msk.f32.gmra.mxu0 %vm753_vm0, %v9873_v35  ;;  %v4776_v56 = vpop.f32.mrf.mxu1  ;;  %9590 = vmatmul.mubr.msk.f32.gmra.mxu1 %vm753_vm0, %v9873_v35  ;;  %v9876_v26 = vld [vmem:[%s15190_s0 + $0x1c8] sm:$0xff] }
 0x4e7   : > { %7742 = vst [vmem:[%s10763_s27 + $0x268] sm:$0xff] %v6510_v27  ;;  %7744 = vst [vmem:[%s10763_s27 + $0x278] sm:$0xff] %v6512_v30  ;;  %v6525_v37 = vmin.f32 %v5293_v28, 1.7  ;;  %v6527_v38 = vmin.f32 %v5295_v29, 1.7  ;;  %v4250_v47 = vadd.f32 %v4249_v34, %v14294_v36  ;;  %v4777_v6 = vadd.f32 %v4776_v56, %v14298_v55  ;;  %4541 = vmatprep.mubr.f32.mxu0 %v9958_v0 }
 0x4e8   : > { %5068 = vmatprep.mubr.f32.mxu1 %v9958_v0  ;;  %v5294_v39 = vmax.f32 %v4246_v32, 1.5  ;;  %v5296_v62 = vmax.f32 %v4773_v33, 1.5  ;;  %v4251_v40 = vpop.f32.mrf.mxu0  ;;  %v4778_v9 = vpop.f32.mrf.mxu1 }
 0x4e9   : > { %7757 = vst [vmem:[%s10763_s27 + $0x2e0] sm:$0xff] %v6525_v37  ;;  %7759 = vst [vmem:[%s10763_s27 + $0x2f0] sm:$0xff] %v6527_v38  ;;  %v5309_v52 = vmax.f32 %v4250_v47, 1.5  ;;  %v5311_v42 = vmax.f32 %v4777_v6, 1.5  ;;  %v4252_v43 = vadd.f32 %v4251_v40, %v14308_v7  ;;  %v4779_v44 = vadd.f32 %v4778_v9, %v14312_v41  ;;  %v9877_v9 = vld [vmem:[%s15190_s0 + $0x1d0] sm:$0xff] }
 0x4ea   : > { %v6526_v45 = vmin.f32 %v5294_v39, 1.7  ;;  %v6528_v46 = vmin.f32 %v5296_v62, 1.7  ;;  %v4255_v16 = vpop.f32.mrf.mxu0  ;;  %9514 = vmatmul.mubr.msk.f32.gmra.mxu0 %vm753_vm0, %v9874_v50  ;;  %v4782_v17 = vpop.f32.mrf.mxu1  ;;  %9591 = vmatmul.mubr.msk.f32.gmra.mxu1 %vm753_vm0, %v9874_v50 }
 0x4eb   : > { %v6541_v59 = vmin.f32 %v5309_v52, 1.7  ;;  %v6543_v53 = vmin.f32 %v5311_v42, 1.7  ;;  %v5310_v31 = vmax.f32 %v4252_v43, 1.5  ;;  %v5312_v61 = vmax.f32 %v4779_v44, 1.5  ;;  %4547 = vmatprep.mubr.f32.mxu0 %v9958_v0  ;;  %5074 = vmatprep.mubr.f32.mxu1 %v9958_v0 }
 0x4ec   : > { %7758 = vst [vmem:[%s10763_s27 + $0x2e8] sm:$0xff] %v6526_v45  ;;  %7760 = vst [vmem:[%s10763_s27 + $0x2f8] sm:$0xff] %v6528_v46  ;;  %v4256_v63 = vadd.f32 %v4255_v16, %v14294_v36  ;;  %v4783_v48 = vadd.f32 %v4782_v17, %v14298_v55  ;;  %v4257_v49 = vpop.f32.mrf.mxu0  ;;  %v4784_v51 = vpop.f32.mrf.mxu1 }
 0x4ed   : > { %7773 = vst [vmem:[%s10763_s27 + $0x360] sm:$0xff] %v6541_v59  ;;  %7775 = vst [vmem:[%s10763_s27 + $0x370] sm:$0xff] %v6543_v53  ;;  %v6542_v54 = vmin.f32 %v5310_v31, 1.7  ;;  %v6544_v57 = vmin.f32 %v5312_v61, 1.7  ;;  %v4258_v58 = vadd.f32 %v4257_v49, %v14308_v7  ;;  %v4785_v60 = vadd.f32 %v4784_v51, %v14312_v41 }
 0x4ee   : > { %v5325_v1 = vmax.f32 %v4256_v63, 1.5  ;;  %v5327_v2 = vmax.f32 %v4783_v48, 1.5  ;;  %v4261_v3 = vpop.f32.mrf.mxu0  ;;  %9515 = vmatmul.mubr.msk.f32.gmra.mxu0 %vm753_vm0, %v9875_v4  ;;  %v4788_v5 = vpop.f32.mrf.mxu1  ;;  %9592 = vmatmul.mubr.msk.f32.gmra.mxu1 %vm753_vm0, %v9875_v4  ;;  %v9878_v51 = vld [vmem:[%s15190_s0 + $0x1d8] sm:$0xff] }
 0x4ef   : > { %7774 = vst [vmem:[%s10763_s27 + $0x368] sm:$0xff] %v6542_v54  ;;  %7776 = vst [vmem:[%s10763_s27 + $0x378] sm:$0xff] %v6544_v57  ;;  %v5326_v8 = vmax.f32 %v4258_v58, 1.5  ;;  %v5328_v10 = vmax.f32 %v4785_v60, 1.5  ;;  %v4262_v11 = vadd.f32 %v4261_v3, %v14294_v36  ;;  %v4789_v12 = vadd.f32 %v4788_v5, %v14298_v55  ;;  %4553 = vmatprep.mubr.f32.mxu0 %v9958_v0 }
 0x4f0   : > { %5080 = vmatprep.mubr.f32.mxu1 %v9958_v0  ;;  %v6557_v13 = vmin.f32 %v5325_v1, 1.7  ;;  %v6559_v14 = vmin.f32 %v5327_v2, 1.7  ;;  %v4263_v15 = vpop.f32.mrf.mxu0  ;;  %v4790_v18 = vpop.f32.mrf.mxu1 }
 0x4f1   : > { %v6558_v19 = vmin.f32 %v5326_v8, 1.7  ;;  %v6560_v20 = vmin.f32 %v5328_v10, 1.7  ;;  %v5341_v21 = vmax.f32 %v4262_v11, 1.5  ;;  %v5343_v22 = vmax.f32 %v4789_v12, 1.5 }
 0x4f2   : > { %7789 = vst [vmem:[%s10763_s27 + $0x3e0] sm:$0xff] %v6557_v13  ;;  %7791 = vst [vmem:[%s10763_s27 + $0x3f0] sm:$0xff] %v6559_v14  ;;  %v4264_v23 = vadd.f32 %v4263_v15, %v14308_v7  ;;  %v4791_v24 = vadd.f32 %v4790_v18, %v14312_v41  ;;  %v4267_v25 = vpop.f32.mrf.mxu0  ;;  %9516 = vmatmul.mubr.msk.f32.gmra.mxu0 %vm753_vm0, %v9876_v26  ;;  %v4794_v27 = vpop.f32.mrf.mxu1  ;;  %9593 = vmatmul.mubr.msk.f32.gmra.mxu1 %vm753_vm0, %v9876_v26  ;;  %v9879_v18 = vld [vmem:[%s15190_s0 + $0x1e0] sm:$0xff] }
 0x4f3   : > { %7790 = vst [vmem:[%s10763_s27 + $0x3e8] sm:$0xff] %v6558_v19  ;;  %7792 = vst [vmem:[%s10763_s27 + $0x3f8] sm:$0xff] %v6560_v20  ;;  %v6573_v30 = vmin.f32 %v5341_v21, 1.7  ;;  %v6575_v28 = vmin.f32 %v5343_v22, 1.7  ;;  %v4268_v29 = vadd.f32 %v4267_v25, %v14294_v36  ;;  %v4795_v32 = vadd.f32 %v4794_v27, %v14298_v55  ;;  %4559 = vmatprep.mubr.f32.mxu0 %v9958_v0 }
 0x4f4   : > { %5086 = vmatprep.mubr.f32.mxu1 %v9958_v0  ;;  %v5342_v33 = vmax.f32 %v4264_v23, 1.5  ;;  %v5344_v34 = vmax.f32 %v4791_v24, 1.5  ;;  %v4269_v35 = vpop.f32.mrf.mxu0  ;;  %v4796_v56 = vpop.f32.mrf.mxu1 }
 0x4f5   : > { %7805 = vst [vmem:[%s10763_s27 + $0x460] sm:$0xff] %v6573_v30  ;;  %7807 = vst [vmem:[%s10763_s27 + $0x470] sm:$0xff] %v6575_v28  ;;  %v5357_v37 = vmax.f32 %v4268_v29, 1.5  ;;  %v5359_v38 = vmax.f32 %v4795_v32, 1.5  ;;  %v4270_v47 = vadd.f32 %v4269_v35, %v14308_v7  ;;  %v4797_v6 = vadd.f32 %v4796_v56, %v14312_v41  ;;  %v9880_v56 = vld [vmem:[%s15190_s0 + $0x1e8] sm:$0xff] }
 0x4f6   : > { %v6574_v39 = vmin.f32 %v5342_v33, 1.7  ;;  %v6576_v62 = vmin.f32 %v5344_v34, 1.7  ;;  %v4273_v40 = vpop.f32.mrf.mxu0  ;;  %9517 = vmatmul.mubr.msk.f32.gmra.mxu0 %vm753_vm0, %v9877_v9  ;;  %v4800_v52 = vpop.f32.mrf.mxu1  ;;  %9594 = vmatmul.mubr.msk.f32.gmra.mxu1 %vm753_vm0, %v9877_v9 }
 0x4f7   : > { %v6589_v42 = vmin.f32 %v5357_v37, 1.7  ;;  %v6591_v43 = vmin.f32 %v5359_v38, 1.7  ;;  %v5358_v44 = vmax.f32 %v4270_v47, 1.5  ;;  %v5360_v45 = vmax.f32 %v4797_v6, 1.5  ;;  %4565 = vmatprep.mubr.f32.mxu0 %v9958_v0  ;;  %5092 = vmatprep.mubr.f32.mxu1 %v9958_v0 }
 0x4f8   : > { %7806 = vst [vmem:[%s10763_s27 + $0x468] sm:$0xff] %v6574_v39  ;;  %7808 = vst [vmem:[%s10763_s27 + $0x478] sm:$0xff] %v6576_v62  ;;  %v4274_v46 = vadd.f32 %v4273_v40, %v14294_v36  ;;  %v4801_v16 = vadd.f32 %v4800_v52, %v14298_v55  ;;  %v4275_v50 = vpop.f32.mrf.mxu0  ;;  %v4802_v17 = vpop.f32.mrf.mxu1 }
 0x4f9   : > { %7821 = vst [vmem:[%s10763_s27 + $0x4e0] sm:$0xff] %v6589_v42  ;;  %7823 = vst [vmem:[%s10763_s27 + $0x4f0] sm:$0xff] %v6591_v43  ;;  %v6590_v59 = vmin.f32 %v5358_v44, 1.7  ;;  %v6592_v53 = vmin.f32 %v5360_v45, 1.7  ;;  %v4276_v31 = vadd.f32 %v4275_v50, %v14308_v7  ;;  %v4803_v61 = vadd.f32 %v4802_v17, %v14312_v41 }
 0x4fa   : > { %v5373_v63 = vmax.f32 %v4274_v46, 1.5  ;;  %v5375_v48 = vmax.f32 %v4801_v16, 1.5  ;;  %v4279_v49 = vpop.f32.mrf.mxu0  ;;  %9518 = vmatmul.mubr.msk.f32.gmra.mxu0 %vm753_vm0, %v9878_v51  ;;  %v4806_v54 = vpop.f32.mrf.mxu1  ;;  %9595 = vmatmul.mubr.msk.f32.gmra.mxu1 %vm753_vm0, %v9878_v51  ;;  %v9881_v17 = vld [vmem:[%s15190_s0 + $0x1f0] sm:$0xff] }
 0x4fb   : > { %7822 = vst [vmem:[%s10763_s27 + $0x4e8] sm:$0xff] %v6590_v59  ;;  %7824 = vst [vmem:[%s10763_s27 + $0x4f8] sm:$0xff] %v6592_v53  ;;  %v5374_v57 = vmax.f32 %v4276_v31, 1.5  ;;  %v5376_v58 = vmax.f32 %v4803_v61, 1.5  ;;  %v4280_v60 = vadd.f32 %v4279_v49, %v14294_v36  ;;  %v4807_v1 = vadd.f32 %v4806_v54, %v14298_v55  ;;  %4571 = vmatprep.mubr.f32.mxu0 %v9958_v0 }
 0x4fc   : > { %5098 = vmatprep.mubr.f32.mxu1 %v9958_v0  ;;  %v6605_v2 = vmin.f32 %v5373_v63, 1.7  ;;  %v6607_v3 = vmin.f32 %v5375_v48, 1.7  ;;  %v4281_v4 = vpop.f32.mrf.mxu0  ;;  %v4808_v5 = vpop.f32.mrf.mxu1 }
 0x4fd   : > { %v6606_v8 = vmin.f32 %v5374_v57, 1.7  ;;  %v6608_v10 = vmin.f32 %v5376_v58, 1.7  ;;  %v5389_v11 = vmax.f32 %v4280_v60, 1.5  ;;  %v5391_v12 = vmax.f32 %v4807_v1, 1.5 }
 0x4fe   : > { %7837 = vst [vmem:[%s10763_s27 + $0x560] sm:$0xff] %v6605_v2  ;;  %7839 = vst [vmem:[%s10763_s27 + $0x570] sm:$0xff] %v6607_v3  ;;  %v4282_v13 = vadd.f32 %v4281_v4, %v14308_v7  ;;  %v4809_v14 = vadd.f32 %v4808_v5, %v14312_v41  ;;  %v4285_v15 = vpop.f32.mrf.mxu0  ;;  %9519 = vmatmul.mubr.msk.f32.gmra.mxu0 %vm753_vm0, %v9879_v18  ;;  %v4812_v19 = vpop.f32.mrf.mxu1  ;;  %9596 = vmatmul.mubr.msk.f32.gmra.mxu1 %vm753_vm0, %v9879_v18  ;;  %v9882_v5 = vld [vmem:[%s15190_s0 + $0x1f8] sm:$0xff] }
 0x4ff   : > { %7838 = vst [vmem:[%s10763_s27 + $0x568] sm:$0xff] %v6606_v8  ;;  %7840 = vst [vmem:[%s10763_s27 + $0x578] sm:$0xff] %v6608_v10  ;;  %v6621_v20 = vmin.f32 %v5389_v11, 1.7  ;;  %v6623_v21 = vmin.f32 %v5391_v12, 1.7  ;;  %v4286_v22 = vadd.f32 %v4285_v15, %v14294_v36  ;;  %v4813_v23 = vadd.f32 %v4812_v19, %v14298_v55  ;;  %4577 = vmatprep.mubr.f32.mxu0 %v9958_v0 }
 0x500   : > { %5104 = vmatprep.mubr.f32.mxu1 %v9958_v0  ;;  %v5390_v24 = vmax.f32 %v4282_v13, 1.5  ;;  %v5392_v25 = vmax.f32 %v4809_v14, 1.5  ;;  %v4287_v26 = vpop.f32.mrf.mxu0  ;;  %v4814_v27 = vpop.f32.mrf.mxu1 }
 0x501   : > { %7853 = vst [vmem:[%s10763_s27 + $0x5e0] sm:$0xff] %v6621_v20  ;;  %7855 = vst [vmem:[%s10763_s27 + $0x5f0] sm:$0xff] %v6623_v21  ;;  %v5405_v30 = vmax.f32 %v4286_v22, 1.5  ;;  %v5407_v28 = vmax.f32 %v4813_v23, 1.5  ;;  %v4288_v29 = vadd.f32 %v4287_v26, %v14308_v7  ;;  %v4815_v32 = vadd.f32 %v4814_v27, %v14312_v41  ;;  %v9883_v27 = vld [vmem:[%s15190_s0 + $0x200] sm:$0xff] }
 0x502   : > { %v6622_v33 = vmin.f32 %v5390_v24, 1.7  ;;  %v6624_v34 = vmin.f32 %v5392_v25, 1.7  ;;  %v4291_v35 = vpop.f32.mrf.mxu0  ;;  %9520 = vmatmul.mubr.msk.f32.gmra.mxu0 %vm753_vm0, %v9880_v56  ;;  %v4818_v37 = vpop.f32.mrf.mxu1  ;;  %9597 = vmatmul.mubr.msk.f32.gmra.mxu1 %vm753_vm0, %v9880_v56 }
 0x503   : > { %v6637_v38 = vmin.f32 %v5405_v30, 1.7  ;;  %v6639_v47 = vmin.f32 %v5407_v28, 1.7  ;;  %v5406_v6 = vmax.f32 %v4288_v29, 1.5  ;;  %v5408_v39 = vmax.f32 %v4815_v32, 1.5  ;;  %4583 = vmatprep.mubr.f32.mxu0 %v9958_v0  ;;  %5110 = vmatprep.mubr.f32.mxu1 %v9958_v0 }
 0x504   : > { %7854 = vst [vmem:[%s10763_s27 + $0x5e8] sm:$0xff] %v6622_v33  ;;  %7856 = vst [vmem:[%s10763_s27 + $0x5f8] sm:$0xff] %v6624_v34  ;;  %v4292_v62 = vadd.f32 %v4291_v35, %v14294_v36  ;;  %v4819_v40 = vadd.f32 %v4818_v37, %v14298_v55  ;;  %v4293_v9 = vpop.f32.mrf.mxu0  ;;  %v4820_v52 = vpop.f32.mrf.mxu1 }
 0x505   : > { %7869 = vst [vmem:[%s10763_s27 + $0x660] sm:$0xff] %v6637_v38  ;;  %7871 = vst [vmem:[%s10763_s27 + $0x670] sm:$0xff] %v6639_v47  ;;  %v6638_v42 = vmin.f32 %v5406_v6, 1.7  ;;  %v6640_v43 = vmin.f32 %v5408_v39, 1.7  ;;  %v4294_v44 = vadd.f32 %v4293_v9, %v14308_v7  ;;  %v4821_v45 = vadd.f32 %v4820_v52, %v14312_v41 }
 0x506   : > { %v5421_v46 = vmax.f32 %v4292_v62, 1.5  ;;  %v5423_v16 = vmax.f32 %v4819_v40, 1.5  ;;  %v4297_v50 = vpop.f32.mrf.mxu0  ;;  %9521 = vmatmul.mubr.msk.f32.gmra.mxu0 %vm753_vm0, %v9881_v17  ;;  %v4824_v59 = vpop.f32.mrf.mxu1  ;;  %9598 = vmatmul.mubr.msk.f32.gmra.mxu1 %vm753_vm0, %v9881_v17  ;;  %v9884_v52 = vld [vmem:[%s15190_s0 + $0x208] sm:$0xff] }
 0x507   : > { %7870 = vst [vmem:[%s10763_s27 + $0x668] sm:$0xff] %v6638_v42  ;;  %7872 = vst [vmem:[%s10763_s27 + $0x678] sm:$0xff] %v6640_v43  ;;  %v5422_v53 = vmax.f32 %v4294_v44, 1.5  ;;  %v5424_v31 = vmax.f32 %v4821_v45, 1.5  ;;  %v4298_v61 = vadd.f32 %v4297_v50, %v14294_v36  ;;  %v4825_v63 = vadd.f32 %v4824_v59, %v14298_v55  ;;  %4589 = vmatprep.mubr.f32.mxu0 %v9958_v0 }
 0x508   : > { %5116 = vmatprep.mubr.f32.mxu1 %v9958_v0  ;;  %v6653_v48 = vmin.f32 %v5421_v46, 1.7  ;;  %v6655_v49 = vmin.f32 %v5423_v16, 1.7  ;;  %v4299_v51 = vpop.f32.mrf.mxu0  ;;  %v4826_v54 = vpop.f32.mrf.mxu1 }
 0x509   : > { %v6654_v57 = vmin.f32 %v5422_v53, 1.7  ;;  %v6656_v58 = vmin.f32 %v5424_v31, 1.7  ;;  %v5437_v60 = vmax.f32 %v4298_v61, 1.5  ;;  %v5439_v1 = vmax.f32 %v4825_v63, 1.5 }
 0x50a   : > { %7885 = vst [vmem:[%s10763_s27 + $0x6e0] sm:$0xff] %v6653_v48  ;;  %7887 = vst [vmem:[%s10763_s27 + $0x6f0] sm:$0xff] %v6655_v49  ;;  %v4300_v2 = vadd.f32 %v4299_v51, %v14308_v7  ;;  %v4827_v3 = vadd.f32 %v4826_v54, %v14312_v41  ;;  %v4303_v4 = vpop.f32.mrf.mxu0  ;;  %9522 = vmatmul.mubr.msk.f32.gmra.mxu0 %vm753_vm0, %v9882_v5  ;;  %v4830_v8 = vpop.f32.mrf.mxu1  ;;  %9599 = vmatmul.mubr.msk.f32.gmra.mxu1 %vm753_vm0, %v9882_v5  ;;  %v9885_v54 = vld [vmem:[%s15190_s0 + $0x210] sm:$0xff] }
 0x50b   : > { %7886 = vst [vmem:[%s10763_s27 + $0x6e8] sm:$0xff] %v6654_v57  ;;  %7888 = vst [vmem:[%s10763_s27 + $0x6f8] sm:$0xff] %v6656_v58  ;;  %v6669_v10 = vmin.f32 %v5437_v60, 1.7  ;;  %v6671_v11 = vmin.f32 %v5439_v1, 1.7  ;;  %v4304_v12 = vadd.f32 %v4303_v4, %v14294_v36  ;;  %v4831_v13 = vadd.f32 %v4830_v8, %v14298_v55  ;;  %4595 = vmatprep.mubr.f32.mxu0 %v9958_v0 }
 0x50c   : > { %5122 = vmatprep.mubr.f32.mxu1 %v9958_v0  ;;  %v5438_v14 = vmax.f32 %v4300_v2, 1.5  ;;  %v5440_v15 = vmax.f32 %v4827_v3, 1.5  ;;  %v4305_v18 = vpop.f32.mrf.mxu0  ;;  %v4832_v19 = vpop.f32.mrf.mxu1 }
 0x50d   : > { %7901 = vst [vmem:[%s10763_s27 + $0x760] sm:$0xff] %v6669_v10  ;;  %7903 = vst [vmem:[%s10763_s27 + $0x770] sm:$0xff] %v6671_v11  ;;  %v5453_v20 = vmax.f32 %v4304_v12, 1.5  ;;  %v5455_v21 = vmax.f32 %v4831_v13, 1.5  ;;  %v4306_v22 = vadd.f32 %v4305_v18, %v14308_v7  ;;  %v4833_v23 = vadd.f32 %v4832_v19, %v14312_v41  ;;  %v9886_v19 = vld [vmem:[%s15190_s0 + $0x218] sm:$0xff] }
 0x50e   : > { %v6670_v24 = vmin.f32 %v5438_v14, 1.7  ;;  %v6672_v25 = vmin.f32 %v5440_v15, 1.7  ;;  %v4309_v26 = vpop.f32.mrf.mxu0  ;;  %9523 = vmatmul.mubr.msk.f32.gmra.mxu0 %vm753_vm0, %v9883_v27  ;;  %v4836_v30 = vpop.f32.mrf.mxu1  ;;  %9600 = vmatmul.mubr.msk.f32.gmra.mxu1 %vm753_vm0, %v9883_v27 }
 0x50f   : > { %v6685_v28 = vmin.f32 %v5453_v20, 1.7  ;;  %v6687_v29 = vmin.f32 %v5455_v21, 1.7  ;;  %v5454_v32 = vmax.f32 %v4306_v22, 1.5  ;;  %v5456_v33 = vmax.f32 %v4833_v23, 1.5  ;;  %4601 = vmatprep.mubr.f32.mxu0 %v9958_v0  ;;  %5128 = vmatprep.mubr.f32.mxu1 %v9958_v0 }
 0x510   : > { %7902 = vst [vmem:[%s10763_s27 + $0x768] sm:$0xff] %v6670_v24  ;;  %7904 = vst [vmem:[%s10763_s27 + $0x778] sm:$0xff] %v6672_v25  ;;  %v4310_v34 = vadd.f32 %v4309_v26, %v14294_v36  ;;  %v4837_v35 = vadd.f32 %v4836_v30, %v14298_v55  ;;  %v4311_v56 = vpop.f32.mrf.mxu0  ;;  %v4838_v37 = vpop.f32.mrf.mxu1 }
 0x511   : > { %7917 = vst [vmem:[%s10763_s27 + $0x7e0] sm:$0xff] %v6685_v28  ;;  %7919 = vst [vmem:[%s10763_s27 + $0x7f0] sm:$0xff] %v6687_v29  ;;  %v6686_v38 = vmin.f32 %v5454_v32, 1.7  ;;  %v6688_v47 = vmin.f32 %v5456_v33, 1.7  ;;  %v4312_v6 = vadd.f32 %v4311_v56, %v14308_v7  ;;  %v4839_v39 = vadd.f32 %v4838_v37, %v14312_v41 }
 0x512   : > { %v5469_v62 = vmax.f32 %v4310_v34, 1.5  ;;  %v5471_v40 = vmax.f32 %v4837_v35, 1.5  ;;  %v4315_v9 = vpop.f32.mrf.mxu0  ;;  %9524 = vmatmul.mubr.msk.f32.gmra.mxu0 %vm753_vm0, %v9884_v52  ;;  %v4842_v42 = vpop.f32.mrf.mxu1  ;;  %9601 = vmatmul.mubr.msk.f32.gmra.mxu1 %vm753_vm0, %v9884_v52  ;;  %v9887_v37 = vld [vmem:[%s15190_s0 + $0x220] sm:$0xff] }
 0x513   : > { %7918 = vst [vmem:[%s10763_s27 + $0x7e8] sm:$0xff] %v6686_v38  ;;  %7920 = vst [vmem:[%s10763_s27 + $0x7f8] sm:$0xff] %v6688_v47  ;;  %v5470_v43 = vmax.f32 %v4312_v6, 1.5  ;;  %v5472_v44 = vmax.f32 %v4839_v39, 1.5  ;;  %v4316_v45 = vadd.f32 %v4315_v9, %v14294_v36  ;;  %v4843_v46 = vadd.f32 %v4842_v42, %v14298_v55  ;;  %4607 = vmatprep.mubr.f32.mxu0 %v9958_v0 }
 0x514   : > { %5134 = vmatprep.mubr.f32.mxu1 %v9958_v0  ;;  %v6701_v16 = vmin.f32 %v5469_v62, 1.7  ;;  %v6703_v50 = vmin.f32 %v5471_v40, 1.7  ;;  %v4317_v17 = vpop.f32.mrf.mxu0  ;;  %v4844_v59 = vpop.f32.mrf.mxu1 }
 0x515   : > { %v6702_v53 = vmin.f32 %v5470_v43, 1.7  ;;  %v6704_v31 = vmin.f32 %v5472_v44, 1.7  ;;  %v5485_v61 = vmax.f32 %v4316_v45, 1.5  ;;  %v5487_v63 = vmax.f32 %v4843_v46, 1.5 }
 0x516   : > { %7933 = vst [vmem:[%s10763_s27 + $0x860] sm:$0xff] %v6701_v16  ;;  %7935 = vst [vmem:[%s10763_s27 + $0x870] sm:$0xff] %v6703_v50  ;;  %v4318_v48 = vadd.f32 %v4317_v17, %v14308_v7  ;;  %v4845_v49 = vadd.f32 %v4844_v59, %v14312_v41  ;;  %v4321_v51 = vpop.f32.mrf.mxu0  ;;  %9525 = vmatmul.mubr.msk.f32.gmra.mxu0 %vm753_vm0, %v9885_v54  ;;  %v4848_v57 = vpop.f32.mrf.mxu1  ;;  %9602 = vmatmul.mubr.msk.f32.gmra.mxu1 %vm753_vm0, %v9885_v54  ;;  %v9888_v59 = vld [vmem:[%s15190_s0 + $0x228] sm:$0xff] }
 0x517   : > { %7934 = vst [vmem:[%s10763_s27 + $0x868] sm:$0xff] %v6702_v53  ;;  %7936 = vst [vmem:[%s10763_s27 + $0x878] sm:$0xff] %v6704_v31  ;;  %v6717_v58 = vmin.f32 %v5485_v61, 1.7  ;;  %v6719_v60 = vmin.f32 %v5487_v63, 1.7  ;;  %v4322_v1 = vadd.f32 %v4321_v51, %v14294_v36  ;;  %v4849_v2 = vadd.f32 %v4848_v57, %v14298_v55  ;;  %4613 = vmatprep.mubr.f32.mxu0 %v9958_v0 }
 0x518   : > { %5140 = vmatprep.mubr.f32.mxu1 %v9958_v0  ;;  %v5486_v3 = vmax.f32 %v4318_v48, 1.5  ;;  %v5488_v4 = vmax.f32 %v4845_v49, 1.5  ;;  %v4323_v5 = vpop.f32.mrf.mxu0  ;;  %v4850_v8 = vpop.f32.mrf.mxu1 }
 0x519   : > { %7949 = vst [vmem:[%s10763_s27 + $0x8e0] sm:$0xff] %v6717_v58  ;;  %7951 = vst [vmem:[%s10763_s27 + $0x8f0] sm:$0xff] %v6719_v60  ;;  %v5501_v10 = vmax.f32 %v4322_v1, 1.5  ;;  %v5503_v11 = vmax.f32 %v4849_v2, 1.5  ;;  %v4324_v12 = vadd.f32 %v4323_v5, %v14308_v7  ;;  %v4851_v13 = vadd.f32 %v4850_v8, %v14312_v41  ;;  %v9889_v8 = vld [vmem:[%s15190_s0 + $0x230] sm:$0xff] }
 0x51a   : > { %v6718_v14 = vmin.f32 %v5486_v3, 1.7  ;;  %v6720_v15 = vmin.f32 %v5488_v4, 1.7  ;;  %v4327_v18 = vpop.f32.mrf.mxu0  ;;  %9526 = vmatmul.mubr.msk.f32.gmra.mxu0 %vm753_vm0, %v9886_v19  ;;  %v4854_v20 = vpop.f32.mrf.mxu1  ;;  %9603 = vmatmul.mubr.msk.f32.gmra.mxu1 %vm753_vm0, %v9886_v19 }
 0x51b   : > { %v6733_v21 = vmin.f32 %v5501_v10, 1.7  ;;  %v6735_v22 = vmin.f32 %v5503_v11, 1.7  ;;  %v5502_v23 = vmax.f32 %v4324_v12, 1.5  ;;  %v5504_v24 = vmax.f32 %v4851_v13, 1.5  ;;  %4619 = vmatprep.mubr.f32.mxu0 %v9958_v0  ;;  %5146 = vmatprep.mubr.f32.mxu1 %v9958_v0 }
 0x51c   : > { %7950 = vst [vmem:[%s10763_s27 + $0x8e8] sm:$0xff] %v6718_v14  ;;  %7952 = vst [vmem:[%s10763_s27 + $0x8f8] sm:$0xff] %v6720_v15  ;;  %v4328_v25 = vadd.f32 %v4327_v18, %v14294_v36  ;;  %v4855_v26 = vadd.f32 %v4854_v20, %v14298_v55  ;;  %v4329_v27 = vpop.f32.mrf.mxu0  ;;  %v4856_v30 = vpop.f32.mrf.mxu1 }
 0x51d   : > { %7965 = vst [vmem:[%s10763_s27 + $0x960] sm:$0xff] %v6733_v21  ;;  %7967 = vst [vmem:[%s10763_s27 + $0x970] sm:$0xff] %v6735_v22  ;;  %v6734_v28 = vmin.f32 %v5502_v23, 1.7  ;;  %v6736_v29 = vmin.f32 %v5504_v24, 1.7  ;;  %v4330_v32 = vadd.f32 %v4329_v27, %v14308_v7  ;;  %v4857_v33 = vadd.f32 %v4856_v30, %v14312_v41 }
 0x51e   : > { %v5517_v34 = vmax.f32 %v4328_v25, 1.5  ;;  %v5519_v35 = vmax.f32 %v4855_v26, 1.5  ;;  %v4333_v56 = vpop.f32.mrf.mxu0  ;;  %9527 = vmatmul.mubr.msk.f32.gmra.mxu0 %vm753_vm0, %v9887_v37  ;;  %v4860_v38 = vpop.f32.mrf.mxu1  ;;  %9604 = vmatmul.mubr.msk.f32.gmra.mxu1 %vm753_vm0, %v9887_v37  ;;  %v9890_v30 = vld [vmem:[%s15190_s0 + $0x238] sm:$0xff] }
 0x51f   : > { %7966 = vst [vmem:[%s10763_s27 + $0x968] sm:$0xff] %v6734_v28  ;;  %7968 = vst [vmem:[%s10763_s27 + $0x978] sm:$0xff] %v6736_v29  ;;  %v5518_v47 = vmax.f32 %v4330_v32, 1.5  ;;  %v5520_v6 = vmax.f32 %v4857_v33, 1.5  ;;  %v4334_v39 = vadd.f32 %v4333_v56, %v14294_v36  ;;  %v4861_v62 = vadd.f32 %v4860_v38, %v14298_v55  ;;  %4625 = vmatprep.mubr.f32.mxu0 %v9958_v0 }
 0x520   : > { %5152 = vmatprep.mubr.f32.mxu1 %v9958_v0  ;;  %v6749_v40 = vmin.f32 %v5517_v34, 1.7  ;;  %v6751_v9 = vmin.f32 %v5519_v35, 1.7  ;;  %v4335_v52 = vpop.f32.mrf.mxu0  ;;  %v4862_v42 = vpop.f32.mrf.mxu1 }
 0x521   : > { %v6750_v43 = vmin.f32 %v5518_v47, 1.7  ;;  %v6752_v44 = vmin.f32 %v5520_v6, 1.7  ;;  %v5533_v45 = vmax.f32 %v4334_v39, 1.5  ;;  %v5535_v46 = vmax.f32 %v4861_v62, 1.5 }
 0x522   : > { %7981 = vst [vmem:[%s10763_s27 + $0x9e0] sm:$0xff] %v6749_v40  ;;  %7983 = vst [vmem:[%s10763_s27 + $0x9f0] sm:$0xff] %v6751_v9  ;;  %v4336_v16 = vadd.f32 %v4335_v52, %v14308_v7  ;;  %v4863_v50 = vadd.f32 %v4862_v42, %v14312_v41  ;;  %v4339_v17 = vpop.f32.mrf.mxu0  ;;  %9528 = vmatmul.mubr.msk.f32.gmra.mxu0 %vm753_vm0, %v9888_v59  ;;  %v4866_v53 = vpop.f32.mrf.mxu1  ;;  %9605 = vmatmul.mubr.msk.f32.gmra.mxu1 %vm753_vm0, %v9888_v59  ;;  %v9891_v42 = vld [vmem:[%s15190_s0 + $0x240] sm:$0xff] }
 0x523   : > { %7982 = vst [vmem:[%s10763_s27 + $0x9e8] sm:$0xff] %v6750_v43  ;;  %7984 = vst [vmem:[%s10763_s27 + $0x9f8] sm:$0xff] %v6752_v44  ;;  %v6765_v31 = vmin.f32 %v5533_v45, 1.7  ;;  %v6767_v61 = vmin.f32 %v5535_v46, 1.7  ;;  %v4340_v63 = vadd.f32 %v4339_v17, %v14294_v36  ;;  %v4867_v48 = vadd.f32 %v4866_v53, %v14298_v55  ;;  %4631 = vmatprep.mubr.f32.mxu0 %v9958_v0 }
 0x524   : > { %5158 = vmatprep.mubr.f32.mxu1 %v9958_v0  ;;  %v5534_v49 = vmax.f32 %v4336_v16, 1.5  ;;  %v5536_v51 = vmax.f32 %v4863_v50, 1.5  ;;  %v4341_v54 = vpop.f32.mrf.mxu0  ;;  %v4868_v57 = vpop.f32.mrf.mxu1 }
 0x525   : > { %7997 = vst [vmem:[%s10763_s27 + $0xa60] sm:$0xff] %v6765_v31  ;;  %7999 = vst [vmem:[%s10763_s27 + $0xa70] sm:$0xff] %v6767_v61  ;;  %v5549_v58 = vmax.f32 %v4340_v63, 1.5  ;;  %v5551_v60 = vmax.f32 %v4867_v48, 1.5  ;;  %v4342_v1 = vadd.f32 %v4341_v54, %v14308_v7  ;;  %v4869_v2 = vadd.f32 %v4868_v57, %v14312_v41  ;;  %v9892_v57 = vld [vmem:[%s15190_s0 + $0x248] sm:$0xff] }
 0x526   : > { %v6766_v3 = vmin.f32 %v5534_v49, 1.7  ;;  %v6768_v4 = vmin.f32 %v5536_v51, 1.7  ;;  %v4345_v5 = vpop.f32.mrf.mxu0  ;;  %9529 = vmatmul.mubr.msk.f32.gmra.mxu0 %vm753_vm0, %v9889_v8  ;;  %v4872_v10 = vpop.f32.mrf.mxu1  ;;  %9606 = vmatmul.mubr.msk.f32.gmra.mxu1 %vm753_vm0, %v9889_v8 }
 0x527   : > { %v6781_v11 = vmin.f32 %v5549_v58, 1.7  ;;  %v6783_v12 = vmin.f32 %v5551_v60, 1.7  ;;  %v5550_v13 = vmax.f32 %v4342_v1, 1.5  ;;  %v5552_v14 = vmax.f32 %v4869_v2, 1.5  ;;  %4637 = vmatprep.mubr.f32.mxu0 %v9958_v0  ;;  %5164 = vmatprep.mubr.f32.mxu1 %v9958_v0 }
 0x528   : > { %7998 = vst [vmem:[%s10763_s27 + $0xa68] sm:$0xff] %v6766_v3  ;;  %8000 = vst [vmem:[%s10763_s27 + $0xa78] sm:$0xff] %v6768_v4  ;;  %v4346_v15 = vadd.f32 %v4345_v5, %v14294_v36  ;;  %v4873_v18 = vadd.f32 %v4872_v10, %v14298_v55  ;;  %v4347_v19 = vpop.f32.mrf.mxu0  ;;  %v4874_v20 = vpop.f32.mrf.mxu1 }
 0x529   : > { %8013 = vst [vmem:[%s10763_s27 + $0xae0] sm:$0xff] %v6781_v11  ;;  %8015 = vst [vmem:[%s10763_s27 + $0xaf0] sm:$0xff] %v6783_v12  ;;  %v6782_v21 = vmin.f32 %v5550_v13, 1.7  ;;  %v6784_v22 = vmin.f32 %v5552_v14, 1.7  ;;  %v4348_v23 = vadd.f32 %v4347_v19, %v14308_v7  ;;  %v4875_v24 = vadd.f32 %v4874_v20, %v14312_v41 }
 0x52a   : > { %v5565_v25 = vmax.f32 %v4346_v15, 1.5  ;;  %v5567_v26 = vmax.f32 %v4873_v18, 1.5  ;;  %v4351_v27 = vpop.f32.mrf.mxu0  ;;  %9530 = vmatmul.mubr.msk.f32.gmra.mxu0 %vm753_vm0, %v9890_v30  ;;  %v4878_v28 = vpop.f32.mrf.mxu1  ;;  %9607 = vmatmul.mubr.msk.f32.gmra.mxu1 %vm753_vm0, %v9890_v30  ;;  %v9893_v20 = vld [vmem:[%s15190_s0 + $0x250] sm:$0xff] }
 0x52b   : > { %8014 = vst [vmem:[%s10763_s27 + $0xae8] sm:$0xff] %v6782_v21  ;;  %8016 = vst [vmem:[%s10763_s27 + $0xaf8] sm:$0xff] %v6784_v22  ;;  %v5566_v29 = vmax.f32 %v4348_v23, 1.5  ;;  %v5568_v32 = vmax.f32 %v4875_v24, 1.5  ;;  %v4352_v33 = vadd.f32 %v4351_v27, %v14294_v36  ;;  %v4879_v34 = vadd.f32 %v4878_v28, %v14298_v55  ;;  %4643 = vmatprep.mubr.f32.mxu0 %v9958_v0 }
 0x52c   : > { %5170 = vmatprep.mubr.f32.mxu1 %v9958_v0  ;;  %v6797_v35 = vmin.f32 %v5565_v25, 1.7  ;;  %v6799_v56 = vmin.f32 %v5567_v26, 1.7  ;;  %v4353_v37 = vpop.f32.mrf.mxu0  ;;  %v4880_v38 = vpop.f32.mrf.mxu1 }
 0x52d   : > { %v6798_v47 = vmin.f32 %v5566_v29, 1.7  ;;  %v6800_v6 = vmin.f32 %v5568_v32, 1.7  ;;  %v5581_v39 = vmax.f32 %v4352_v33, 1.5  ;;  %v5583_v62 = vmax.f32 %v4879_v34, 1.5 }
 0x52e   : > { %8029 = vst [vmem:[%s10763_s27 + $0xb60] sm:$0xff] %v6797_v35  ;;  %8031 = vst [vmem:[%s10763_s27 + $0xb70] sm:$0xff] %v6799_v56  ;;  %v4354_v40 = vadd.f32 %v4353_v37, %v14308_v7  ;;  %v4881_v9 = vadd.f32 %v4880_v38, %v14312_v41  ;;  %v4357_v52 = vpop.f32.mrf.mxu0  ;;  %9531 = vmatmul.mubr.msk.f32.gmra.mxu0 %vm753_vm0, %v9891_v42  ;;  %v4884_v43 = vpop.f32.mrf.mxu1  ;;  %9608 = vmatmul.mubr.msk.f32.gmra.mxu1 %vm753_vm0, %v9891_v42  ;;  %v9894_v38 = vld [vmem:[%s15190_s0 + $0x258] sm:$0xff] }
 0x52f   : > { %8030 = vst [vmem:[%s10763_s27 + $0xb68] sm:$0xff] %v6798_v47  ;;  %8032 = vst [vmem:[%s10763_s27 + $0xb78] sm:$0xff] %v6800_v6  ;;  %v6813_v44 = vmin.f32 %v5581_v39, 1.7  ;;  %v6815_v45 = vmin.f32 %v5583_v62, 1.7  ;;  %v4358_v46 = vadd.f32 %v4357_v52, %v14294_v36  ;;  %v4885_v16 = vadd.f32 %v4884_v43, %v14298_v55  ;;  %4649 = vmatprep.mubr.f32.mxu0 %v9958_v0 }
 0x530   : > { %5176 = vmatprep.mubr.f32.mxu1 %v9958_v0  ;;  %v5582_v50 = vmax.f32 %v4354_v40, 1.5  ;;  %v5584_v17 = vmax.f32 %v4881_v9, 1.5  ;;  %v4359_v59 = vpop.f32.mrf.mxu0  ;;  %v4886_v53 = vpop.f32.mrf.mxu1 }
 0x531   : > { %8045 = vst [vmem:[%s10763_s27 + $0xbe0] sm:$0xff] %v6813_v44  ;;  %8047 = vst [vmem:[%s10763_s27 + $0xbf0] sm:$0xff] %v6815_v45  ;;  %v5597_v31 = vmax.f32 %v4358_v46, 1.5  ;;  %v5599_v61 = vmax.f32 %v4885_v16, 1.5  ;;  %v4360_v63 = vadd.f32 %v4359_v59, %v14308_v7  ;;  %v4887_v48 = vadd.f32 %v4886_v53, %v14312_v41 }
 0x532   : > { %v6814_v49 = vmin.f32 %v5582_v50, 1.7  ;;  %v6816_v51 = vmin.f32 %v5584_v17, 1.7  ;;  %v4363_v54 = vpop.f32.mrf.mxu0  ;;  %9532 = vmatmul.mubr.msk.f32.gmra.mxu0 %vm753_vm0, %v9892_v57  ;;  %v4890_v58 = vpop.f32.mrf.mxu1  ;;  %9609 = vmatmul.mubr.msk.f32.gmra.mxu1 %vm753_vm0, %v9892_v57 }
 0x533   : > { %v6829_v60 = vmin.f32 %v5597_v31, 1.7  ;;  %v6831_v1 = vmin.f32 %v5599_v61, 1.7  ;;  %v5598_v2 = vmax.f32 %v4360_v63, 1.5  ;;  %v5600_v3 = vmax.f32 %v4887_v48, 1.5  ;;  %4655 = vmatprep.mubr.f32.mxu0 %v9958_v0  ;;  %5182 = vmatprep.mubr.f32.mxu1 %v9958_v0 }
 0x534   : > { %8046 = vst [vmem:[%s10763_s27 + $0xbe8] sm:$0xff] %v6814_v49  ;;  %8048 = vst [vmem:[%s10763_s27 + $0xbf8] sm:$0xff] %v6816_v51  ;;  %v4364_v4 = vadd.f32 %v4363_v54, %v14294_v36  ;;  %v4891_v5 = vadd.f32 %v4890_v58, %v14298_v55  ;;  %v4365_v8 = vpop.f32.mrf.mxu0  ;;  %v4892_v10 = vpop.f32.mrf.mxu1 }
 0x535   : > { %8061 = vst [vmem:[%s10763_s27 + $0xc60] sm:$0xff] %v6829_v60  ;;  %8063 = vst [vmem:[%s10763_s27 + $0xc70] sm:$0xff] %v6831_v1  ;;  %v6830_v11 = vmin.f32 %v5598_v2, 1.7  ;;  %v6832_v12 = vmin.f32 %v5600_v3, 1.7  ;;  %v4366_v13 = vadd.f32 %v4365_v8, %v14308_v7  ;;  %v4893_v14 = vadd.f32 %v4892_v10, %v14312_v41 }
 0x536   : > { %v5613_v15 = vmax.f32 %v4364_v4, 1.5  ;;  %v5615_v18 = vmax.f32 %v4891_v5, 1.5  ;;  %v4369_v19 = vpop.f32.mrf.mxu0  ;;  %9533 = vmatmul.mubr.msk.f32.gmra.mxu0 %vm753_vm0, %v9893_v20  ;;  %v4896_v21 = vpop.f32.mrf.mxu1  ;;  %9610 = vmatmul.mubr.msk.f32.gmra.mxu1 %vm753_vm0, %v9893_v20 }
 0x537   : > { %8062 = vst [vmem:[%s10763_s27 + $0xc68] sm:$0xff] %v6830_v11  ;;  %8064 = vst [vmem:[%s10763_s27 + $0xc78] sm:$0xff] %v6832_v12  ;;  %v5614_v22 = vmax.f32 %v4366_v13, 1.5  ;;  %v5616_v23 = vmax.f32 %v4893_v14, 1.5  ;;  %v4370_v24 = vadd.f32 %v4369_v19, %v14294_v36  ;;  %v4897_v25 = vadd.f32 %v4896_v21, %v14298_v55  ;;  %4661 = vmatprep.mubr.f32.mxu0 %v9958_v0 }
 0x538   : > { %5188 = vmatprep.mubr.f32.mxu1 %v9958_v0  ;;  %v6845_v26 = vmin.f32 %v5613_v15, 1.7  ;;  %v6847_v27 = vmin.f32 %v5615_v18, 1.7  ;;  %v4371_v30 = vpop.f32.mrf.mxu0  ;;  %v4898_v28 = vpop.f32.mrf.mxu1 }
 0x539   : > { %v6846_v29 = vmin.f32 %v5614_v22, 1.7  ;;  %v6848_v32 = vmin.f32 %v5616_v23, 1.7  ;;  %v5629_v33 = vmax.f32 %v4370_v24, 1.5  ;;  %v5631_v34 = vmax.f32 %v4897_v25, 1.5 }
 0x53a   : > { %8077 = vst [vmem:[%s10763_s27 + $0xce0] sm:$0xff] %v6845_v26  ;;  %8079 = vst [vmem:[%s10763_s27 + $0xcf0] sm:$0xff] %v6847_v27  ;;  %v4372_v35 = vadd.f32 %v4371_v30, %v14308_v7  ;;  %v4899_v56 = vadd.f32 %v4898_v28, %v14312_v41  ;;  %v4375_v37 = vpop.f32.mrf.mxu0  ;;  %9534 = vmatmul.mubr.msk.f32.gmra.mxu0 %vm753_vm0, %v9894_v38  ;;  %v4902_v47 = vpop.f32.mrf.mxu1  ;;  %9611 = vmatmul.mubr.msk.f32.gmra.mxu1 %vm753_vm0, %v9894_v38 }
 0x53b   : > { %8078 = vst [vmem:[%s10763_s27 + $0xce8] sm:$0xff] %v6846_v29  ;;  %8080 = vst [vmem:[%s10763_s27 + $0xcf8] sm:$0xff] %v6848_v32  ;;  %v6861_v6 = vmin.f32 %v5629_v33, 1.7  ;;  %v6863_v39 = vmin.f32 %v5631_v34, 1.7  ;;  %v4376_v62 = vadd.f32 %v4375_v37, %v14294_v36  ;;  %v4903_v40 = vadd.f32 %v4902_v47, %v14298_v55  ;;  %4667 = vmatprep.mubr.f32.mxu0 %v9958_v0 }
 0x53c   : > { %5194 = vmatprep.mubr.f32.mxu1 %v9958_v0  ;;  %v5630_v9 = vmax.f32 %v4372_v35, 1.5  ;;  %v5632_v52 = vmax.f32 %v4899_v56, 1.5  ;;  %v4377_v42 = vpop.f32.mrf.mxu0  ;;  %v4904_v43 = vpop.f32.mrf.mxu1  ;;  %v9895_v0 = vld [vmem:[%s15190_s0 + $0x260] sm:$0x1] }
 0x53d   : > { %8093 = vst [vmem:[%s10763_s27 + $0xd60] sm:$0xff] %v6861_v6  ;;  %8095 = vst [vmem:[%s10763_s27 + $0xd70] sm:$0xff] %v6863_v39  ;;  %v5645_v44 = vmax.f32 %v4376_v62, 1.5  ;;  %v5647_v45 = vmax.f32 %v4903_v40, 1.5  ;;  %v4378_v46 = vadd.f32 %v4377_v42, %v14308_v7  ;;  %v4905_v16 = vadd.f32 %v4904_v43, %v14312_v41 }
 0x53e   : > { %v6862_v50 = vmin.f32 %v5630_v9, 1.7  ;;  %v6864_v17 = vmin.f32 %v5632_v52, 1.7  ;;  %v4381_v59 = vpop.f32.mrf.mxu0  ;;  %9535 = vmatmul.mubr.msk.f32.gmra.mxu0 %vm753_vm0, %v9895_v0  ;;  %v4908_v53 = vpop.f32.mrf.mxu1  ;;  %9612 = vmatmul.mubr.msk.f32.gmra.mxu1 %vm753_vm0, %v9895_v0 }
 0x53f   : > { %v6877_v31 = vmin.f32 %v5645_v44, 1.7  ;;  %v6879_v61 = vmin.f32 %v5647_v45, 1.7  ;;  %v5646_v63 = vmax.f32 %v4378_v46, 1.5  ;;  %v5648_v48 = vmax.f32 %v4905_v16, 1.5 }
 0x540   : > { %8094 = vst [vmem:[%s10763_s27 + $0xd68] sm:$0xff] %v6862_v50  ;;  %8096 = vst [vmem:[%s10763_s27 + $0xd78] sm:$0xff] %v6864_v17  ;;  %v4382_v49 = vadd.f32 %v4381_v59, %v14294_v36  ;;  %v4909_v51 = vadd.f32 %v4908_v53, %v14298_v55  ;;  %v4383_v54 = vpop.f32.mrf.mxu0  ;;  %v4910_v57 = vpop.f32.mrf.mxu1 }
 0x541   : > { %8109 = vst [vmem:[%s10763_s27 + $0xde0] sm:$0xff] %v6877_v31  ;;  %8111 = vst [vmem:[%s10763_s27 + $0xdf0] sm:$0xff] %v6879_v61  ;;  %v6878_v58 = vmin.f32 %v5646_v63, 1.7  ;;  %v6880_v60 = vmin.f32 %v5648_v48, 1.7  ;;  %v4384_v1 = vadd.f32 %v4383_v54, %v14308_v7  ;;  %v4911_v2 = vadd.f32 %v4910_v57, %v14312_v41 }
 0x542   : > { %v5661_v3 = vmax.f32 %v4382_v49, 1.5  ;;  %v5663_v4 = vmax.f32 %v4909_v51, 1.5  ;;  %v4387_v5 = vpop.f32.mrf.mxu0  ;;  %v4914_v8 = vpop.f32.mrf.mxu1 }
 0x543   : > { %8110 = vst [vmem:[%s10763_s27 + $0xde8] sm:$0xff] %v6878_v58  ;;  %8112 = vst [vmem:[%s10763_s27 + $0xdf8] sm:$0xff] %v6880_v60  ;;  %v5662_v10 = vmax.f32 %v4384_v1, 1.5  ;;  %v5664_v11 = vmax.f32 %v4911_v2, 1.5  ;;  %v4388_v12 = vadd.f32 %v4387_v5, %v14294_v36  ;;  %v4915_v13 = vadd.f32 %v4914_v8, %v14298_v55 }
 0x544   : > { %v6893_v14 = vmin.f32 %v5661_v3, 1.7  ;;  %v6895_v15 = vmin.f32 %v5663_v4, 1.7  ;;  %v4389_v18 = vpop.f32.mrf.mxu0  ;;  %v4916_v19 = vpop.f32.mrf.mxu1 }
 0x545   : > { %v6894_v20 = vmin.f32 %v5662_v10, 1.7  ;;  %v6896_v21 = vmin.f32 %v5664_v11, 1.7  ;;  %v5677_v22 = vmax.f32 %v4388_v12, 1.5  ;;  %v5679_v23 = vmax.f32 %v4915_v13, 1.5 }
 0x546   : > { %8125 = vst [vmem:[%s10763_s27 + $0xe60] sm:$0xff] %v6893_v14  ;;  %8127 = vst [vmem:[%s10763_s27 + $0xe70] sm:$0xff] %v6895_v15  ;;  %v4390_v24 = vadd.f32 %v4389_v18, %v14308_v7  ;;  %v4917_v25 = vadd.f32 %v4916_v19, %v14312_v41  ;;  %v4393_v26 = vpop.f32.mrf.mxu0  ;;  %v4920_v27 = vpop.f32.mrf.mxu1 }
 0x547   : > { %8126 = vst [vmem:[%s10763_s27 + $0xe68] sm:$0xff] %v6894_v20  ;;  %8128 = vst [vmem:[%s10763_s27 + $0xe78] sm:$0xff] %v6896_v21  ;;  %v6909_v30 = vmin.f32 %v5677_v22, 1.7  ;;  %v6911_v28 = vmin.f32 %v5679_v23, 1.7  ;;  %v4394_v29 = vadd.f32 %v4393_v26, %v14294_v36  ;;  %v4921_v32 = vadd.f32 %v4920_v27, %v14298_v55 }
 0x548   : > { %v5678_v33 = vmax.f32 %v4390_v24, 1.5  ;;  %v5680_v34 = vmax.f32 %v4917_v25, 1.5  ;;  %v4395_v35 = vpop.f32.mrf.mxu0  ;;  %v4922_v56 = vpop.f32.mrf.mxu1 }
 0x549   : > { %8141 = vst [vmem:[%s10763_s27 + $0xee0] sm:$0xff] %v6909_v30  ;;  %8143 = vst [vmem:[%s10763_s27 + $0xef0] sm:$0xff] %v6911_v28  ;;  %v5693_v37 = vmax.f32 %v4394_v29, 1.5  ;;  %v5695_v38 = vmax.f32 %v4921_v32, 1.5  ;;  %v4396_v47 = vadd.f32 %v4395_v35, %v14308_v7  ;;  %v4923_v6 = vadd.f32 %v4922_v56, %v14312_v41 }
 0x54a   : > { %v6910_v39 = vmin.f32 %v5678_v33, 1.7  ;;  %v6912_v62 = vmin.f32 %v5680_v34, 1.7  ;;  %v4399_v40 = vpop.f32.mrf.mxu0  ;;  %v4926_v9 = vpop.f32.mrf.mxu1 }
 0x54b   : > { %v6925_v52 = vmin.f32 %v5693_v37, 1.7  ;;  %v6927_v42 = vmin.f32 %v5695_v38, 1.7  ;;  %v5694_v43 = vmax.f32 %v4396_v47, 1.5  ;;  %v5696_v44 = vmax.f32 %v4923_v6, 1.5 }
 0x54c   : > { %8142 = vst [vmem:[%s10763_s27 + $0xee8] sm:$0xff] %v6910_v39  ;;  %8144 = vst [vmem:[%s10763_s27 + $0xef8] sm:$0xff] %v6912_v62  ;;  %v4400_v45 = vadd.f32 %v4399_v40, %v14294_v36  ;;  %v4927_v46 = vadd.f32 %v4926_v9, %v14298_v55  ;;  %v4401_v16 = vpop.f32.mrf.mxu0  ;;  %v4928_v50 = vpop.f32.mrf.mxu1 }
 0x54d   : > { %8157 = vst [vmem:[%s10763_s27 + $0xf60] sm:$0xff] %v6925_v52  ;;  %8159 = vst [vmem:[%s10763_s27 + $0xf70] sm:$0xff] %v6927_v42  ;;  %v6926_v17 = vmin.f32 %v5694_v43, 1.7  ;;  %v6928_v59 = vmin.f32 %v5696_v44, 1.7  ;;  %v4402_v0 = vadd.f32 %v4401_v16, %v14308_v7  ;;  %v4929_v53 = vadd.f32 %v4928_v50, %v14312_v41 }
 0x54e   : > { %v5709_v31 = vmax.f32 %v4400_v45, 1.5  ;;  %v5711_v61 = vmax.f32 %v4927_v46, 1.5  ;;  %v4405_v63 = vpop.f32.mrf.mxu0  ;;  %v4932_v48 = vpop.f32.mrf.mxu1 }
 0x54f   : > { %8158 = vst [vmem:[%s10763_s27 + $0xf68] sm:$0xff] %v6926_v17  ;;  %8160 = vst [vmem:[%s10763_s27 + $0xf78] sm:$0xff] %v6928_v59  ;;  %v5710_v49 = vmax.f32 %v4402_v0, 1.5  ;;  %v5712_v51 = vmax.f32 %v4929_v53, 1.5  ;;  %v4406_v54 = vadd.f32 %v4405_v63, %v14294_v36  ;;  %v4933_v57 = vadd.f32 %v4932_v48, %v14298_v55 }
 0x550   : > { %v6941_v58 = vmin.f32 %v5709_v31, 1.7  ;;  %v6943_v60 = vmin.f32 %v5711_v61, 1.7  ;;  %v4407_v1 = vpop.f32.mrf.mxu0  ;;  %v4934_v2 = vpop.f32.mrf.mxu1 }
 0x551   : > { %v6942_v3 = vmin.f32 %v5710_v49, 1.7  ;;  %v6944_v4 = vmin.f32 %v5712_v51, 1.7  ;;  %v5725_v5 = vmax.f32 %v4406_v54, 1.5  ;;  %v5727_v8 = vmax.f32 %v4933_v57, 1.5 }
 0x552   : > { %8173 = vst [vmem:[%s10763_s27 + $0xfe0] sm:$0xff] %v6941_v58  ;;  %8175 = vst [vmem:[%s10763_s27 + $0xff0] sm:$0xff] %v6943_v60  ;;  %v4408_v10 = vadd.f32 %v4407_v1, %v14308_v7  ;;  %v4935_v11 = vadd.f32 %v4934_v2, %v14312_v41  ;;  %v4411_v12 = vpop.f32.mrf.mxu0  ;;  %v4938_v13 = vpop.f32.mrf.mxu1 }
 0x553   : > { %8174 = vst [vmem:[%s10763_s27 + $0xfe8] sm:$0xff] %v6942_v3  ;;  %8176 = vst [vmem:[%s10763_s27 + $0xff8] sm:$0xff] %v6944_v4  ;;  %v6957_v14 = vmin.f32 %v5725_v5, 1.7  ;;  %v6959_v15 = vmin.f32 %v5727_v8, 1.7  ;;  %v4412_v18 = vadd.f32 %v4411_v12, %v14294_v36  ;;  %v4939_v19 = vadd.f32 %v4938_v13, %v14298_v55 }
 0x554   : > { %v5726_v20 = vmax.f32 %v4408_v10, 1.5  ;;  %v5728_v21 = vmax.f32 %v4935_v11, 1.5  ;;  %v4413_v22 = vpop.f32.mrf.mxu0  ;;  %v4940_v23 = vpop.f32.mrf.mxu1 }
 0x555   : > { %8189 = vst [vmem:[%s10763_s27 + $0x1060] sm:$0xff] %v6957_v14  ;;  %8191 = vst [vmem:[%s10763_s27 + $0x1070] sm:$0xff] %v6959_v15  ;;  %v5741_v24 = vmax.f32 %v4412_v18, 1.5  ;;  %v5743_v25 = vmax.f32 %v4939_v19, 1.5  ;;  %v4414_v26 = vadd.f32 %v4413_v22, %v14308_v7  ;;  %v4941_v27 = vadd.f32 %v4940_v23, %v14312_v41 }
 0x556   : > { %v6958_v30 = vmin.f32 %v5726_v20, 1.7  ;;  %v6960_v28 = vmin.f32 %v5728_v21, 1.7  ;;  %v4417_v29 = vpop.f32.mrf.mxu0  ;;  %v4944_v32 = vpop.f32.mrf.mxu1 }
 0x557   : > { %v6973_v33 = vmin.f32 %v5741_v24, 1.7  ;;  %v6975_v34 = vmin.f32 %v5743_v25, 1.7  ;;  %v5742_v35 = vmax.f32 %v4414_v26, 1.5  ;;  %v5744_v56 = vmax.f32 %v4941_v27, 1.5 }
 0x558   : > { %8190 = vst [vmem:[%s10763_s27 + $0x1068] sm:$0xff] %v6958_v30  ;;  %8192 = vst [vmem:[%s10763_s27 + $0x1078] sm:$0xff] %v6960_v28  ;;  %v4418_v37 = vadd.f32 %v4417_v29, %v14294_v36  ;;  %v4945_v38 = vadd.f32 %v4944_v32, %v14298_v55  ;;  %v4419_v47 = vpop.f32.mrf.mxu0  ;;  %v4946_v6 = vpop.f32.mrf.mxu1 }
 0x559   : > { %8205 = vst [vmem:[%s10763_s27 + $0x10e0] sm:$0xff] %v6973_v33  ;;  %8207 = vst [vmem:[%s10763_s27 + $0x10f0] sm:$0xff] %v6975_v34  ;;  %v6974_v39 = vmin.f32 %v5742_v35, 1.7  ;;  %v6976_v62 = vmin.f32 %v5744_v56, 1.7  ;;  %v4420_v40 = vadd.f32 %v4419_v47, %v14308_v7  ;;  %v4947_v9 = vadd.f32 %v4946_v6, %v14312_v41 }
 0x55a   : > { %v5757_v52 = vmax.f32 %v4418_v37, 1.5  ;;  %v5759_v42 = vmax.f32 %v4945_v38, 1.5  ;;  %v4423_v43 = vpop.f32.mrf.mxu0  ;;  %v4950_v44 = vpop.f32.mrf.mxu1 }
 0x55b   : > { %8206 = vst [vmem:[%s10763_s27 + $0x10e8] sm:$0xff] %v6974_v39  ;;  %8208 = vst [vmem:[%s10763_s27 + $0x10f8] sm:$0xff] %v6976_v62  ;;  %v5758_v45 = vmax.f32 %v4420_v40, 1.5  ;;  %v5760_v46 = vmax.f32 %v4947_v9, 1.5  ;;  %v4424_v16 = vadd.f32 %v4423_v43, %v14294_v36  ;;  %v4951_v50 = vadd.f32 %v4950_v44, %v14298_v55 }
 0x55c   : > { %v6989_v17 = vmin.f32 %v5757_v52, 1.7  ;;  %v6991_v59 = vmin.f32 %v5759_v42, 1.7  ;;  %v4425_v0 = vpop.f32.mrf.mxu0  ;;  %v4952_v53 = vpop.f32.mrf.mxu1 }
 0x55d   : > { %v6990_v31 = vmin.f32 %v5758_v45, 1.7  ;;  %v6992_v61 = vmin.f32 %v5760_v46, 1.7  ;;  %v5773_v63 = vmax.f32 %v4424_v16, 1.5  ;;  %v5775_v48 = vmax.f32 %v4951_v50, 1.5 }
 0x55e   : > { %8221 = vst [vmem:[%s10763_s27 + $0x1160] sm:$0xff] %v6989_v17  ;;  %8223 = vst [vmem:[%s10763_s27 + $0x1170] sm:$0xff] %v6991_v59  ;;  %v4426_v49 = vadd.f32 %v4425_v0, %v14308_v7  ;;  %v4953_v51 = vadd.f32 %v4952_v53, %v14312_v41  ;;  %v4429_v54 = vpop.f32.mrf.mxu0  ;;  %v4956_v57 = vpop.f32.mrf.mxu1 }
 0x55f   : > { %8222 = vst [vmem:[%s10763_s27 + $0x1168] sm:$0xff] %v6990_v31  ;;  %8224 = vst [vmem:[%s10763_s27 + $0x1178] sm:$0xff] %v6992_v61  ;;  %v7005_v58 = vmin.f32 %v5773_v63, 1.7  ;;  %v7007_v60 = vmin.f32 %v5775_v48, 1.7  ;;  %v4430_v1 = vadd.f32 %v4429_v54, %v14294_v36  ;;  %v4957_v2 = vadd.f32 %v4956_v57, %v14298_v55 }
 0x560   : > { %v5774_v3 = vmax.f32 %v4426_v49, 1.5  ;;  %v5776_v4 = vmax.f32 %v4953_v51, 1.5  ;;  %v4431_v5 = vpop.f32.mrf.mxu0  ;;  %v4958_v8 = vpop.f32.mrf.mxu1 }
 0x561   : > { %8237 = vst [vmem:[%s10763_s27 + $0x11e0] sm:$0xff] %v7005_v58  ;;  %8239 = vst [vmem:[%s10763_s27 + $0x11f0] sm:$0xff] %v7007_v60  ;;  %v5789_v10 = vmax.f32 %v4430_v1, 1.5  ;;  %v5791_v11 = vmax.f32 %v4957_v2, 1.5  ;;  %v4432_v12 = vadd.f32 %v4431_v5, %v14308_v7  ;;  %v4959_v13 = vadd.f32 %v4958_v8, %v14312_v41 }
 0x562   : > { %v7006_v14 = vmin.f32 %v5774_v3, 1.7  ;;  %v7008_v15 = vmin.f32 %v5776_v4, 1.7  ;;  %v4435_v18 = vpop.f32.mrf.mxu0  ;;  %v4962_v19 = vpop.f32.mrf.mxu1 }
 0x563   : > { %v7021_v20 = vmin.f32 %v5789_v10, 1.7  ;;  %v7023_v21 = vmin.f32 %v5791_v11, 1.7  ;;  %v5790_v22 = vmax.f32 %v4432_v12, 1.5  ;;  %v5792_v23 = vmax.f32 %v4959_v13, 1.5 }
 0x564   : > { %8238 = vst [vmem:[%s10763_s27 + $0x11e8] sm:$0xff] %v7006_v14  ;;  %8240 = vst [vmem:[%s10763_s27 + $0x11f8] sm:$0xff] %v7008_v15  ;;  %v4436_v24 = vadd.f32 %v4435_v18, %v14294_v36  ;;  %v4963_v25 = vadd.f32 %v4962_v19, %v14298_v55  ;;  %v4437_v26 = vpop.f32.mrf.mxu0  ;;  %v4964_v27 = vpop.f32.mrf.mxu1 }
 0x565   : > { %8253 = vst [vmem:[%s10763_s27 + $0x1260] sm:$0xff] %v7021_v20  ;;  %8255 = vst [vmem:[%s10763_s27 + $0x1270] sm:$0xff] %v7023_v21  ;;  %v7022_v30 = vmin.f32 %v5790_v22, 1.7  ;;  %v7024_v28 = vmin.f32 %v5792_v23, 1.7  ;;  %v4438_v29 = vadd.f32 %v4437_v26, %v14308_v7  ;;  %v4965_v32 = vadd.f32 %v4964_v27, %v14312_v41 }
 0x566   : > { %v5805_v33 = vmax.f32 %v4436_v24, 1.5  ;;  %v5807_v34 = vmax.f32 %v4963_v25, 1.5  ;;  %v4441_v35 = vpop.f32.mrf.mxu0  ;;  %v4968_v56 = vpop.f32.mrf.mxu1 }
 0x567   : > { %8254 = vst [vmem:[%s10763_s27 + $0x1268] sm:$0xff] %v7022_v30  ;;  %8256 = vst [vmem:[%s10763_s27 + $0x1278] sm:$0xff] %v7024_v28  ;;  %v5806_v37 = vmax.f32 %v4438_v29, 1.5  ;;  %v5808_v38 = vmax.f32 %v4965_v32, 1.5  ;;  %v4442_v47 = vadd.f32 %v4441_v35, %v14294_v36  ;;  %v4969_v6 = vadd.f32 %v4968_v56, %v14298_v55 }
 0x568   : > { %v7037_v39 = vmin.f32 %v5805_v33, 1.7  ;;  %v7039_v62 = vmin.f32 %v5807_v34, 1.7  ;;  %v4443_v40 = vpop.f32.mrf.mxu0  ;;  %v4970_v9 = vpop.f32.mrf.mxu1 }
 0x569   : > { %v7038_v52 = vmin.f32 %v5806_v37, 1.7  ;;  %v7040_v42 = vmin.f32 %v5808_v38, 1.7  ;;  %v5821_v43 = vmax.f32 %v4442_v47, 1.5  ;;  %v5823_v44 = vmax.f32 %v4969_v6, 1.5 }
 0x56a   : > { %8269 = vst [vmem:[%s10763_s27 + $0x12e0] sm:$0xff] %v7037_v39  ;;  %8271 = vst [vmem:[%s10763_s27 + $0x12f0] sm:$0xff] %v7039_v62  ;;  %v4444_v45 = vadd.f32 %v4443_v40, %v14308_v7  ;;  %v4971_v46 = vadd.f32 %v4970_v9, %v14312_v41  ;;  %v4447_v16 = vpop.f32.mrf.mxu0  ;;  %v4974_v50 = vpop.f32.mrf.mxu1 }
 0x56b   : > { %8270 = vst [vmem:[%s10763_s27 + $0x12e8] sm:$0xff] %v7038_v52  ;;  %8272 = vst [vmem:[%s10763_s27 + $0x12f8] sm:$0xff] %v7040_v42  ;;  %v7053_v17 = vmin.f32 %v5821_v43, 1.7  ;;  %v7055_v59 = vmin.f32 %v5823_v44, 1.7  ;;  %v4448_v0 = vadd.f32 %v4447_v16, %v14294_v36  ;;  %v4975_v53 = vadd.f32 %v4974_v50, %v14298_v55 }
 0x56c   : > { %v5822_v31 = vmax.f32 %v4444_v45, 1.5  ;;  %v5824_v61 = vmax.f32 %v4971_v46, 1.5  ;;  %v4449_v63 = vpop.f32.mrf.mxu0  ;;  %v4976_v48 = vpop.f32.mrf.mxu1 }
 0x56d   : > { %8285 = vst [vmem:[%s10763_s27 + $0x1360] sm:$0xff] %v7053_v17  ;;  %8287 = vst [vmem:[%s10763_s27 + $0x1370] sm:$0xff] %v7055_v59  ;;  %v5837_v49 = vmax.f32 %v4448_v0, 1.5  ;;  %v5839_v51 = vmax.f32 %v4975_v53, 1.5  ;;  %v4450_v54 = vadd.f32 %v4449_v63, %v14308_v7  ;;  %v4977_v57 = vadd.f32 %v4976_v48, %v14312_v41 }
 0x56e   : > { %v7054_v58 = vmin.f32 %v5822_v31, 1.7  ;;  %v7056_v60 = vmin.f32 %v5824_v61, 1.7  ;;  %v4453_v1 = vpop.f32.mrf.mxu0  ;;  %v4980_v2 = vpop.f32.mrf.mxu1 }
 0x56f   : > { %v7069_v3 = vmin.f32 %v5837_v49, 1.7  ;;  %v7071_v4 = vmin.f32 %v5839_v51, 1.7  ;;  %v5838_v5 = vmax.f32 %v4450_v54, 1.5  ;;  %v5840_v8 = vmax.f32 %v4977_v57, 1.5 }
 0x570   : > { %8286 = vst [vmem:[%s10763_s27 + $0x1368] sm:$0xff] %v7054_v58  ;;  %8288 = vst [vmem:[%s10763_s27 + $0x1378] sm:$0xff] %v7056_v60  ;;  %v4454_v10 = vadd.f32 %v4453_v1, %v14294_v36  ;;  %v4981_v11 = vadd.f32 %v4980_v2, %v14298_v55  ;;  %v4455_v12 = vpop.f32.mrf.mxu0  ;;  %v4982_v13 = vpop.f32.mrf.mxu1 }
 0x571   : > { %8301 = vst [vmem:[%s10763_s27 + $0x13e0] sm:$0xff] %v7069_v3  ;;  %8303 = vst [vmem:[%s10763_s27 + $0x13f0] sm:$0xff] %v7071_v4  ;;  %v7070_v14 = vmin.f32 %v5838_v5, 1.7  ;;  %v7072_v15 = vmin.f32 %v5840_v8, 1.7  ;;  %v4456_v18 = vadd.f32 %v4455_v12, %v14308_v7  ;;  %v4983_v19 = vadd.f32 %v4982_v13, %v14312_v41 }
 0x572   : > { %v5853_v20 = vmax.f32 %v4454_v10, 1.5  ;;  %v5855_v21 = vmax.f32 %v4981_v11, 1.5  ;;  %v4459_v22 = vpop.f32.mrf.mxu0  ;;  %v4986_v23 = vpop.f32.mrf.mxu1 }
 0x573   : > { %8302 = vst [vmem:[%s10763_s27 + $0x13e8] sm:$0xff] %v7070_v14  ;;  %8304 = vst [vmem:[%s10763_s27 + $0x13f8] sm:$0xff] %v7072_v15  ;;  %v5854_v24 = vmax.f32 %v4456_v18, 1.5  ;;  %v5856_v25 = vmax.f32 %v4983_v19, 1.5  ;;  %v4460_v26 = vadd.f32 %v4459_v22, %v14294_v36  ;;  %v4987_v27 = vadd.f32 %v4986_v23, %v14298_v55 }
 0x574   : > { %v7085_v30 = vmin.f32 %v5853_v20, 1.7  ;;  %v7087_v28 = vmin.f32 %v5855_v21, 1.7  ;;  %v4461_v29 = vpop.f32.mrf.mxu0  ;;  %v4988_v32 = vpop.f32.mrf.mxu1 }
 0x575   : > { %v7086_v33 = vmin.f32 %v5854_v24, 1.7  ;;  %v7088_v34 = vmin.f32 %v5856_v25, 1.7  ;;  %v5869_v35 = vmax.f32 %v4460_v26, 1.5  ;;  %v5871_v56 = vmax.f32 %v4987_v27, 1.5 }
 0x576   : > { %8317 = vst [vmem:[%s10763_s27 + $0x1460] sm:$0xff] %v7085_v30  ;;  %8319 = vst [vmem:[%s10763_s27 + $0x1470] sm:$0xff] %v7087_v28  ;;  %v4462_v37 = vadd.f32 %v4461_v29, %v14308_v7  ;;  %v4989_v38 = vadd.f32 %v4988_v32, %v14312_v41  ;;  %v4465_v47 = vpop.f32.mrf.mxu0  ;;  %v4992_v6 = vpop.f32.mrf.mxu1 }
 0x577   : > { %8318 = vst [vmem:[%s10763_s27 + $0x1468] sm:$0xff] %v7086_v33  ;;  %8320 = vst [vmem:[%s10763_s27 + $0x1478] sm:$0xff] %v7088_v34  ;;  %v7101_v39 = vmin.f32 %v5869_v35, 1.7  ;;  %v7103_v62 = vmin.f32 %v5871_v56, 1.7  ;;  %v4466_v40 = vadd.f32 %v4465_v47, %v14294_v36  ;;  %v4993_v9 = vadd.f32 %v4992_v6, %v14298_v55 }
 0x578   : > { %v5870_v52 = vmax.f32 %v4462_v37, 1.5  ;;  %v5872_v42 = vmax.f32 %v4989_v38, 1.5  ;;  %v4467_v43 = vpop.f32.mrf.mxu0  ;;  %v4994_v44 = vpop.f32.mrf.mxu1 }
 0x579   : > { %8333 = vst [vmem:[%s10763_s27 + $0x14e0] sm:$0xff] %v7101_v39  ;;  %8335 = vst [vmem:[%s10763_s27 + $0x14f0] sm:$0xff] %v7103_v62  ;;  %v5885_v45 = vmax.f32 %v4466_v40, 1.5  ;;  %v5887_v46 = vmax.f32 %v4993_v9, 1.5  ;;  %v4468_v16 = vadd.f32 %v4467_v43, %v14308_v7  ;;  %v4995_v50 = vadd.f32 %v4994_v44, %v14312_v41 }
 0x57a   : > { %v7102_v17 = vmin.f32 %v5870_v52, 1.7  ;;  %v7104_v59 = vmin.f32 %v5872_v42, 1.7  ;;  %v4471_v0 = vpop.f32.mrf.mxu0  ;;  %v4998_v53 = vpop.f32.mrf.mxu1 }
 0x57b   : > { %v7117_v31 = vmin.f32 %v5885_v45, 1.7  ;;  %v7119_v61 = vmin.f32 %v5887_v46, 1.7  ;;  %v5886_v63 = vmax.f32 %v4468_v16, 1.5  ;;  %v5888_v48 = vmax.f32 %v4995_v50, 1.5 }
 0x57c   : > { %8334 = vst [vmem:[%s10763_s27 + $0x14e8] sm:$0xff] %v7102_v17  ;;  %8336 = vst [vmem:[%s10763_s27 + $0x14f8] sm:$0xff] %v7104_v59  ;;  %v4472_v49 = vadd.f32 %v4471_v0, %v14294_v36  ;;  %v4999_v51 = vadd.f32 %v4998_v53, %v14298_v55  ;;  %v4473_v54 = vpop.f32.mrf.mxu0  ;;  %v5000_v57 = vpop.f32.mrf.mxu1 }
 0x57d   : > { %8349 = vst [vmem:[%s10763_s27 + $0x1560] sm:$0xff] %v7117_v31  ;;  %8351 = vst [vmem:[%s10763_s27 + $0x1570] sm:$0xff] %v7119_v61  ;;  %v7118_v58 = vmin.f32 %v5886_v63, 1.7  ;;  %v7120_v60 = vmin.f32 %v5888_v48, 1.7  ;;  %v4474_v1 = vadd.f32 %v4473_v54, %v14308_v7  ;;  %v5001_v2 = vadd.f32 %v5000_v57, %v14312_v41 }
 0x57e   : > { %v5901_v3 = vmax.f32 %v4472_v49, 1.5  ;;  %v5903_v4 = vmax.f32 %v4999_v51, 1.5  ;;  %v4477_v5 = vpop.f32.mrf.mxu0  ;;  %v5004_v8 = vpop.f32.mrf.mxu1 }
 0x57f   : > { %8350 = vst [vmem:[%s10763_s27 + $0x1568] sm:$0xff] %v7118_v58  ;;  %8352 = vst [vmem:[%s10763_s27 + $0x1578] sm:$0xff] %v7120_v60  ;;  %v5902_v10 = vmax.f32 %v4474_v1, 1.5  ;;  %v5904_v11 = vmax.f32 %v5001_v2, 1.5  ;;  %v4478_v12 = vadd.f32 %v4477_v5, %v14294_v36  ;;  %v5005_v13 = vadd.f32 %v5004_v8, %v14298_v55 }
 0x580   : > { %v7133_v14 = vmin.f32 %v5901_v3, 1.7  ;;  %v7135_v15 = vmin.f32 %v5903_v4, 1.7  ;;  %v4479_v18 = vpop.f32.mrf.mxu0  ;;  %v5006_v19 = vpop.f32.mrf.mxu1 }
 0x581   : > { %v7134_v20 = vmin.f32 %v5902_v10, 1.7  ;;  %v7136_v21 = vmin.f32 %v5904_v11, 1.7  ;;  %v5917_v22 = vmax.f32 %v4478_v12, 1.5  ;;  %v5919_v23 = vmax.f32 %v5005_v13, 1.5 }
 0x582   : > { %8365 = vst [vmem:[%s10763_s27 + $0x15e0] sm:$0xff] %v7133_v14  ;;  %8367 = vst [vmem:[%s10763_s27 + $0x15f0] sm:$0xff] %v7135_v15  ;;  %v4480_v24 = vadd.f32 %v4479_v18, %v14308_v7  ;;  %v5007_v25 = vadd.f32 %v5006_v19, %v14312_v41  ;;  %v4483_v26 = vpop.f32.mrf.mxu0  ;;  %v5010_v27 = vpop.f32.mrf.mxu1 }
 0x583   : > { %8366 = vst [vmem:[%s10763_s27 + $0x15e8] sm:$0xff] %v7134_v20  ;;  %8368 = vst [vmem:[%s10763_s27 + $0x15f8] sm:$0xff] %v7136_v21  ;;  %v7149_v30 = vmin.f32 %v5917_v22, 1.7  ;;  %v7151_v28 = vmin.f32 %v5919_v23, 1.7  ;;  %v4484_v29 = vadd.f32 %v4483_v26, %v14294_v36  ;;  %v5011_v32 = vadd.f32 %v5010_v27, %v14298_v55 }
 0x584   : > { %v5918_v33 = vmax.f32 %v4480_v24, 1.5  ;;  %v5920_v34 = vmax.f32 %v5007_v25, 1.5  ;;  %v4485_v35 = vpop.f32.mrf.mxu0  ;;  %v5012_v56 = vpop.f32.mrf.mxu1 }
 0x585   : > { %8381 = vst [vmem:[%s10763_s27 + $0x1660] sm:$0xff] %v7149_v30  ;;  %8383 = vst [vmem:[%s10763_s27 + $0x1670] sm:$0xff] %v7151_v28  ;;  %v5933_v37 = vmax.f32 %v4484_v29, 1.5  ;;  %v5935_v38 = vmax.f32 %v5011_v32, 1.5  ;;  %v4486_v47 = vadd.f32 %v4485_v35, %v14308_v7  ;;  %v5013_v6 = vadd.f32 %v5012_v56, %v14312_v41 }
 0x586   : > { %v7150_v39 = vmin.f32 %v5918_v33, 1.7  ;;  %v7152_v62 = vmin.f32 %v5920_v34, 1.7  ;;  %v4489_v40 = vpop.f32.mrf.mxu0  ;;  %v5016_v9 = vpop.f32.mrf.mxu1 }
 0x587   : > { %v7165_v52 = vmin.f32 %v5933_v37, 1.7  ;;  %v7167_v42 = vmin.f32 %v5935_v38, 1.7  ;;  %v5934_v43 = vmax.f32 %v4486_v47, 1.5  ;;  %v5936_v44 = vmax.f32 %v5013_v6, 1.5 }
 0x588   : > { %8382 = vst [vmem:[%s10763_s27 + $0x1668] sm:$0xff] %v7150_v39  ;;  %8384 = vst [vmem:[%s10763_s27 + $0x1678] sm:$0xff] %v7152_v62  ;;  %v4490_v45 = vadd.f32 %v4489_v40, %v14294_v36  ;;  %v5017_v46 = vadd.f32 %v5016_v9, %v14298_v55  ;;  %v4491_v16 = vpop.f32.mrf.mxu0  ;;  %v5018_v50 = vpop.f32.mrf.mxu1 }
 0x589   : > { %8397 = vst [vmem:[%s10763_s27 + $0x16e0] sm:$0xff] %v7165_v52  ;;  %8399 = vst [vmem:[%s10763_s27 + $0x16f0] sm:$0xff] %v7167_v42  ;;  %v7166_v17 = vmin.f32 %v5934_v43, 1.7  ;;  %v7168_v59 = vmin.f32 %v5936_v44, 1.7  ;;  %v4492_v0 = vadd.f32 %v4491_v16, %v14308_v7  ;;  %v5019_v53 = vadd.f32 %v5018_v50, %v14312_v41 }
 0x58a   : > { %v5949_v31 = vmax.f32 %v4490_v45, 1.5  ;;  %v5951_v61 = vmax.f32 %v5017_v46, 1.5  ;;  %v4495_v63 = vpop.f32.mrf.mxu0  ;;  %v5022_v48 = vpop.f32.mrf.mxu1 }
 0x58b   : > { %8398 = vst [vmem:[%s10763_s27 + $0x16e8] sm:$0xff] %v7166_v17  ;;  %8400 = vst [vmem:[%s10763_s27 + $0x16f8] sm:$0xff] %v7168_v59  ;;  %v5950_v49 = vmax.f32 %v4492_v0, 1.5  ;;  %v5952_v51 = vmax.f32 %v5019_v53, 1.5  ;;  %v4496_v54 = vadd.f32 %v4495_v63, %v14294_v36  ;;  %v5023_v57 = vadd.f32 %v5022_v48, %v14298_v55 }
 0x58c   : > { %v7181_v58 = vmin.f32 %v5949_v31, 1.7  ;;  %v7183_v60 = vmin.f32 %v5951_v61, 1.7  ;;  %v4497_v1 = vpop.f32.mrf.mxu0  ;;  %v5024_v2 = vpop.f32.mrf.mxu1 }
 0x58d   : > { %v7182_v3 = vmin.f32 %v5950_v49, 1.7  ;;  %v7184_v4 = vmin.f32 %v5952_v51, 1.7  ;;  %v5965_v5 = vmax.f32 %v4496_v54, 1.5  ;;  %v5967_v8 = vmax.f32 %v5023_v57, 1.5 }
 0x58e   : > { %8413 = vst [vmem:[%s10763_s27 + $0x1760] sm:$0xff] %v7181_v58  ;;  %8415 = vst [vmem:[%s10763_s27 + $0x1770] sm:$0xff] %v7183_v60  ;;  %v4498_v10 = vadd.f32 %v4497_v1, %v14308_v7  ;;  %v5025_v11 = vadd.f32 %v5024_v2, %v14312_v41  ;;  %v4501_v12 = vpop.f32.mrf.mxu0  ;;  %v5028_v13 = vpop.f32.mrf.mxu1 }
 0x58f   : > { %8414 = vst [vmem:[%s10763_s27 + $0x1768] sm:$0xff] %v7182_v3  ;;  %8416 = vst [vmem:[%s10763_s27 + $0x1778] sm:$0xff] %v7184_v4  ;;  %v7197_v14 = vmin.f32 %v5965_v5, 1.7  ;;  %v7199_v15 = vmin.f32 %v5967_v8, 1.7  ;;  %v4502_v18 = vadd.f32 %v4501_v12, %v14294_v36  ;;  %v5029_v19 = vadd.f32 %v5028_v13, %v14298_v55 }
 0x590   : > { %v5966_v20 = vmax.f32 %v4498_v10, 1.5  ;;  %v5968_v21 = vmax.f32 %v5025_v11, 1.5  ;;  %v4503_v22 = vpop.f32.mrf.mxu0  ;;  %v5030_v23 = vpop.f32.mrf.mxu1 }
 0x591   : > { %8429 = vst [vmem:[%s10763_s27 + $0x17e0] sm:$0xff] %v7197_v14  ;;  %8431 = vst [vmem:[%s10763_s27 + $0x17f0] sm:$0xff] %v7199_v15  ;;  %v5981_v24 = vmax.f32 %v4502_v18, 1.5  ;;  %v5983_v25 = vmax.f32 %v5029_v19, 1.5  ;;  %v4504_v26 = vadd.f32 %v4503_v22, %v14308_v7  ;;  %v5031_v27 = vadd.f32 %v5030_v23, %v14312_v41 }
 0x592   : > { %v7198_v30 = vmin.f32 %v5966_v20, 1.7  ;;  %v7200_v28 = vmin.f32 %v5968_v21, 1.7  ;;  %v4507_v29 = vpop.f32.mrf.mxu0  ;;  %v5034_v32 = vpop.f32.mrf.mxu1 }
 0x593   : > { %v7213_v33 = vmin.f32 %v5981_v24, 1.7  ;;  %v7215_v34 = vmin.f32 %v5983_v25, 1.7  ;;  %v5982_v35 = vmax.f32 %v4504_v26, 1.5  ;;  %v5984_v56 = vmax.f32 %v5031_v27, 1.5 }
 0x594   : > { %8430 = vst [vmem:[%s10763_s27 + $0x17e8] sm:$0xff] %v7198_v30  ;;  %8432 = vst [vmem:[%s10763_s27 + $0x17f8] sm:$0xff] %v7200_v28  ;;  %v4508_v37 = vadd.f32 %v4507_v29, %v14294_v36  ;;  %v5035_v38 = vadd.f32 %v5034_v32, %v14298_v55  ;;  %v4509_v47 = vpop.f32.mrf.mxu0  ;;  %v5036_v6 = vpop.f32.mrf.mxu1 }
 0x595   : > { %8445 = vst [vmem:[%s10763_s27 + $0x1860] sm:$0xff] %v7213_v33  ;;  %8447 = vst [vmem:[%s10763_s27 + $0x1870] sm:$0xff] %v7215_v34  ;;  %v7214_v39 = vmin.f32 %v5982_v35, 1.7  ;;  %v7216_v62 = vmin.f32 %v5984_v56, 1.7  ;;  %v4510_v40 = vadd.f32 %v4509_v47, %v14308_v7  ;;  %v5037_v9 = vadd.f32 %v5036_v6, %v14312_v41 }
 0x596   : > { %v5997_v52 = vmax.f32 %v4508_v37, 1.5  ;;  %v5999_v42 = vmax.f32 %v5035_v38, 1.5  ;;  %v4513_v43 = vpop.f32.mrf.mxu0  ;;  %v5040_v44 = vpop.f32.mrf.mxu1 }
 0x597   : > { %8446 = vst [vmem:[%s10763_s27 + $0x1868] sm:$0xff] %v7214_v39  ;;  %8448 = vst [vmem:[%s10763_s27 + $0x1878] sm:$0xff] %v7216_v62  ;;  %v5998_v45 = vmax.f32 %v4510_v40, 1.5  ;;  %v6000_v46 = vmax.f32 %v5037_v9, 1.5  ;;  %v4514_v16 = vadd.f32 %v4513_v43, %v14294_v36  ;;  %v5041_v50 = vadd.f32 %v5040_v44, %v14298_v55 }
 0x598   : > { %v7229_v17 = vmin.f32 %v5997_v52, 1.7  ;;  %v7231_v59 = vmin.f32 %v5999_v42, 1.7  ;;  %v4515_v0 = vpop.f32.mrf.mxu0  ;;  %v5042_v53 = vpop.f32.mrf.mxu1 }
 0x599   : > { %v7230_v31 = vmin.f32 %v5998_v45, 1.7  ;;  %v7232_v61 = vmin.f32 %v6000_v46, 1.7  ;;  %v6013_v63 = vmax.f32 %v4514_v16, 1.5  ;;  %v6015_v48 = vmax.f32 %v5041_v50, 1.5 }
 0x59a   : > { %8461 = vst [vmem:[%s10763_s27 + $0x18e0] sm:$0xff] %v7229_v17  ;;  %8463 = vst [vmem:[%s10763_s27 + $0x18f0] sm:$0xff] %v7231_v59  ;;  %v4516_v49 = vadd.f32 %v4515_v0, %v14308_v7  ;;  %v5043_v51 = vadd.f32 %v5042_v53, %v14312_v41  ;;  %v4519_v54 = vpop.f32.mrf.mxu0  ;;  %v5046_v57 = vpop.f32.mrf.mxu1 }
 0x59b   : > { %8462 = vst [vmem:[%s10763_s27 + $0x18e8] sm:$0xff] %v7230_v31  ;;  %8464 = vst [vmem:[%s10763_s27 + $0x18f8] sm:$0xff] %v7232_v61  ;;  %v7245_v58 = vmin.f32 %v6013_v63, 1.7  ;;  %v7247_v60 = vmin.f32 %v6015_v48, 1.7  ;;  %v4520_v1 = vadd.f32 %v4519_v54, %v14294_v36  ;;  %v5047_v2 = vadd.f32 %v5046_v57, %v14298_v55 }
 0x59c   : > { %v6014_v3 = vmax.f32 %v4516_v49, 1.5  ;;  %v6016_v4 = vmax.f32 %v5043_v51, 1.5  ;;  %v4521_v5 = vpop.f32.mrf.mxu0  ;;  %v5048_v8 = vpop.f32.mrf.mxu1 }
 0x59d   : > { %8477 = vst [vmem:[%s10763_s27 + $0x1960] sm:$0xff] %v7245_v58  ;;  %8479 = vst [vmem:[%s10763_s27 + $0x1970] sm:$0xff] %v7247_v60  ;;  %v6029_v10 = vmax.f32 %v4520_v1, 1.5  ;;  %v6031_v11 = vmax.f32 %v5047_v2, 1.5  ;;  %v4522_v12 = vadd.f32 %v4521_v5, %v14308_v7  ;;  %v5049_v13 = vadd.f32 %v5048_v8, %v14312_v41 }
 0x59e   : > { %v7246_v14 = vmin.f32 %v6014_v3, 1.7  ;;  %v7248_v15 = vmin.f32 %v6016_v4, 1.7  ;;  %v4525_v18 = vpop.f32.mrf.mxu0  ;;  %v5052_v19 = vpop.f32.mrf.mxu1 }
 0x59f   : > { %v7261_v20 = vmin.f32 %v6029_v10, 1.7  ;;  %v7263_v21 = vmin.f32 %v6031_v11, 1.7  ;;  %v6030_v22 = vmax.f32 %v4522_v12, 1.5  ;;  %v6032_v23 = vmax.f32 %v5049_v13, 1.5 }
 0x5a0   : > { %8478 = vst [vmem:[%s10763_s27 + $0x1968] sm:$0xff] %v7246_v14  ;;  %8480 = vst [vmem:[%s10763_s27 + $0x1978] sm:$0xff] %v7248_v15  ;;  %v4526_v24 = vadd.f32 %v4525_v18, %v14294_v36  ;;  %v5053_v25 = vadd.f32 %v5052_v19, %v14298_v55  ;;  %v4527_v26 = vpop.f32.mrf.mxu0  ;;  %v5054_v27 = vpop.f32.mrf.mxu1 }
 0x5a1   : > { %8493 = vst [vmem:[%s10763_s27 + $0x19e0] sm:$0xff] %v7261_v20  ;;  %8495 = vst [vmem:[%s10763_s27 + $0x19f0] sm:$0xff] %v7263_v21  ;;  %v7262_v30 = vmin.f32 %v6030_v22, 1.7  ;;  %v7264_v28 = vmin.f32 %v6032_v23, 1.7  ;;  %v4528_v29 = vadd.f32 %v4527_v26, %v14308_v7  ;;  %v5055_v32 = vadd.f32 %v5054_v27, %v14312_v41 }
 0x5a2   : > { %v6045_v33 = vmax.f32 %v4526_v24, 1.5  ;;  %v6047_v34 = vmax.f32 %v5053_v25, 1.5  ;;  %v4531_v35 = vpop.f32.mrf.mxu0  ;;  %v5058_v56 = vpop.f32.mrf.mxu1 }
 0x5a3   : > { %8494 = vst [vmem:[%s10763_s27 + $0x19e8] sm:$0xff] %v7262_v30  ;;  %8496 = vst [vmem:[%s10763_s27 + $0x19f8] sm:$0xff] %v7264_v28  ;;  %v6046_v37 = vmax.f32 %v4528_v29, 1.5  ;;  %v6048_v38 = vmax.f32 %v5055_v32, 1.5  ;;  %v4532_v47 = vadd.f32 %v4531_v35, %v14294_v36  ;;  %v5059_v6 = vadd.f32 %v5058_v56, %v14298_v55 }
 0x5a4   : > { %v7277_v39 = vmin.f32 %v6045_v33, 1.7  ;;  %v7279_v62 = vmin.f32 %v6047_v34, 1.7  ;;  %v4533_v40 = vpop.f32.mrf.mxu0  ;;  %v5060_v9 = vpop.f32.mrf.mxu1 }
 0x5a5   : > { %v7278_v52 = vmin.f32 %v6046_v37, 1.7  ;;  %v7280_v42 = vmin.f32 %v6048_v38, 1.7  ;;  %v6061_v43 = vmax.f32 %v4532_v47, 1.5  ;;  %v6063_v44 = vmax.f32 %v5059_v6, 1.5 }
 0x5a6   : > { %8509 = vst [vmem:[%s10763_s27 + $0x1a60] sm:$0xff] %v7277_v39  ;;  %8511 = vst [vmem:[%s10763_s27 + $0x1a70] sm:$0xff] %v7279_v62  ;;  %v4534_v45 = vadd.f32 %v4533_v40, %v14308_v7  ;;  %v5061_v46 = vadd.f32 %v5060_v9, %v14312_v41  ;;  %v4537_v16 = vpop.f32.mrf.mxu0  ;;  %v5064_v50 = vpop.f32.mrf.mxu1 }
 0x5a7   : > { %8510 = vst [vmem:[%s10763_s27 + $0x1a68] sm:$0xff] %v7278_v52  ;;  %8512 = vst [vmem:[%s10763_s27 + $0x1a78] sm:$0xff] %v7280_v42  ;;  %v7293_v17 = vmin.f32 %v6061_v43, 1.7  ;;  %v7295_v59 = vmin.f32 %v6063_v44, 1.7  ;;  %v4538_v0 = vadd.f32 %v4537_v16, %v14294_v36  ;;  %v5065_v53 = vadd.f32 %v5064_v50, %v14298_v55 }
 0x5a8   : > { %v6062_v31 = vmax.f32 %v4534_v45, 1.5  ;;  %v6064_v61 = vmax.f32 %v5061_v46, 1.5  ;;  %v4539_v63 = vpop.f32.mrf.mxu0  ;;  %v5066_v48 = vpop.f32.mrf.mxu1 }
 0x5a9   : > { %8525 = vst [vmem:[%s10763_s27 + $0x1ae0] sm:$0xff] %v7293_v17  ;;  %8527 = vst [vmem:[%s10763_s27 + $0x1af0] sm:$0xff] %v7295_v59  ;;  %v6077_v49 = vmax.f32 %v4538_v0, 1.5  ;;  %v6079_v51 = vmax.f32 %v5065_v53, 1.5  ;;  %v4540_v54 = vadd.f32 %v4539_v63, %v14308_v7  ;;  %v5067_v57 = vadd.f32 %v5066_v48, %v14312_v41 }
 0x5aa   : > { %v7294_v58 = vmin.f32 %v6062_v31, 1.7  ;;  %v7296_v60 = vmin.f32 %v6064_v61, 1.7  ;;  %v4543_v1 = vpop.f32.mrf.mxu0  ;;  %v5070_v2 = vpop.f32.mrf.mxu1 }
 0x5ab   : > { %v7309_v3 = vmin.f32 %v6077_v49, 1.7  ;;  %v7311_v4 = vmin.f32 %v6079_v51, 1.7  ;;  %v6078_v5 = vmax.f32 %v4540_v54, 1.5  ;;  %v6080_v8 = vmax.f32 %v5067_v57, 1.5 }
 0x5ac   : > { %8526 = vst [vmem:[%s10763_s27 + $0x1ae8] sm:$0xff] %v7294_v58  ;;  %8528 = vst [vmem:[%s10763_s27 + $0x1af8] sm:$0xff] %v7296_v60  ;;  %v4544_v10 = vadd.f32 %v4543_v1, %v14294_v36  ;;  %v5071_v11 = vadd.f32 %v5070_v2, %v14298_v55  ;;  %v4545_v12 = vpop.f32.mrf.mxu0  ;;  %v5072_v13 = vpop.f32.mrf.mxu1 }
 0x5ad   : > { %8541 = vst [vmem:[%s10763_s27 + $0x1b60] sm:$0xff] %v7309_v3  ;;  %8543 = vst [vmem:[%s10763_s27 + $0x1b70] sm:$0xff] %v7311_v4  ;;  %v7310_v14 = vmin.f32 %v6078_v5, 1.7  ;;  %v7312_v15 = vmin.f32 %v6080_v8, 1.7  ;;  %v4546_v18 = vadd.f32 %v4545_v12, %v14308_v7  ;;  %v5073_v19 = vadd.f32 %v5072_v13, %v14312_v41 }
 0x5ae   : > { %v6093_v20 = vmax.f32 %v4544_v10, 1.5  ;;  %v6095_v21 = vmax.f32 %v5071_v11, 1.5  ;;  %v4549_v22 = vpop.f32.mrf.mxu0  ;;  %v5076_v23 = vpop.f32.mrf.mxu1 }
 0x5af   : > { %8542 = vst [vmem:[%s10763_s27 + $0x1b68] sm:$0xff] %v7310_v14  ;;  %8544 = vst [vmem:[%s10763_s27 + $0x1b78] sm:$0xff] %v7312_v15  ;;  %v6094_v24 = vmax.f32 %v4546_v18, 1.5  ;;  %v6096_v25 = vmax.f32 %v5073_v19, 1.5  ;;  %v4550_v26 = vadd.f32 %v4549_v22, %v14294_v36  ;;  %v5077_v27 = vadd.f32 %v5076_v23, %v14298_v55 }
 0x5b0   : > { %v7325_v30 = vmin.f32 %v6093_v20, 1.7  ;;  %v7327_v28 = vmin.f32 %v6095_v21, 1.7  ;;  %v4551_v29 = vpop.f32.mrf.mxu0  ;;  %v5078_v32 = vpop.f32.mrf.mxu1 }
 0x5b1   : > { %v7326_v33 = vmin.f32 %v6094_v24, 1.7  ;;  %v7328_v34 = vmin.f32 %v6096_v25, 1.7  ;;  %v6109_v35 = vmax.f32 %v4550_v26, 1.5  ;;  %v6111_v56 = vmax.f32 %v5077_v27, 1.5 }
 0x5b2   : > { %8557 = vst [vmem:[%s10763_s27 + $0x1be0] sm:$0xff] %v7325_v30  ;;  %8559 = vst [vmem:[%s10763_s27 + $0x1bf0] sm:$0xff] %v7327_v28  ;;  %v4552_v37 = vadd.f32 %v4551_v29, %v14308_v7  ;;  %v5079_v38 = vadd.f32 %v5078_v32, %v14312_v41  ;;  %v4555_v47 = vpop.f32.mrf.mxu0  ;;  %v5082_v6 = vpop.f32.mrf.mxu1 }
 0x5b3   : > { %8558 = vst [vmem:[%s10763_s27 + $0x1be8] sm:$0xff] %v7326_v33  ;;  %8560 = vst [vmem:[%s10763_s27 + $0x1bf8] sm:$0xff] %v7328_v34  ;;  %v7341_v39 = vmin.f32 %v6109_v35, 1.7  ;;  %v7343_v62 = vmin.f32 %v6111_v56, 1.7  ;;  %v4556_v40 = vadd.f32 %v4555_v47, %v14294_v36  ;;  %v5083_v9 = vadd.f32 %v5082_v6, %v14298_v55 }
 0x5b4   : > { %v6110_v52 = vmax.f32 %v4552_v37, 1.5  ;;  %v6112_v42 = vmax.f32 %v5079_v38, 1.5  ;;  %v4557_v43 = vpop.f32.mrf.mxu0  ;;  %v5084_v44 = vpop.f32.mrf.mxu1 }
 0x5b5   : > { %8573 = vst [vmem:[%s10763_s27 + $0x1c60] sm:$0xff] %v7341_v39  ;;  %8575 = vst [vmem:[%s10763_s27 + $0x1c70] sm:$0xff] %v7343_v62  ;;  %v6125_v45 = vmax.f32 %v4556_v40, 1.5  ;;  %v6127_v46 = vmax.f32 %v5083_v9, 1.5  ;;  %v4558_v16 = vadd.f32 %v4557_v43, %v14308_v7  ;;  %v5085_v50 = vadd.f32 %v5084_v44, %v14312_v41 }
 0x5b6   : > { %v7342_v17 = vmin.f32 %v6110_v52, 1.7  ;;  %v7344_v59 = vmin.f32 %v6112_v42, 1.7  ;;  %v4561_v0 = vpop.f32.mrf.mxu0  ;;  %v5088_v53 = vpop.f32.mrf.mxu1 }
 0x5b7   : > { %v7357_v31 = vmin.f32 %v6125_v45, 1.7  ;;  %v7359_v61 = vmin.f32 %v6127_v46, 1.7  ;;  %v6126_v63 = vmax.f32 %v4558_v16, 1.5  ;;  %v6128_v48 = vmax.f32 %v5085_v50, 1.5 }
 0x5b8   : > { %8574 = vst [vmem:[%s10763_s27 + $0x1c68] sm:$0xff] %v7342_v17  ;;  %8576 = vst [vmem:[%s10763_s27 + $0x1c78] sm:$0xff] %v7344_v59  ;;  %v4562_v49 = vadd.f32 %v4561_v0, %v14294_v36  ;;  %v5089_v51 = vadd.f32 %v5088_v53, %v14298_v55  ;;  %v4563_v54 = vpop.f32.mrf.mxu0  ;;  %v5090_v57 = vpop.f32.mrf.mxu1 }
 0x5b9   : > { %8589 = vst [vmem:[%s10763_s27 + $0x1ce0] sm:$0xff] %v7357_v31  ;;  %8591 = vst [vmem:[%s10763_s27 + $0x1cf0] sm:$0xff] %v7359_v61  ;;  %v7358_v58 = vmin.f32 %v6126_v63, 1.7  ;;  %v7360_v60 = vmin.f32 %v6128_v48, 1.7  ;;  %v4564_v1 = vadd.f32 %v4563_v54, %v14308_v7  ;;  %v5091_v2 = vadd.f32 %v5090_v57, %v14312_v41 }
 0x5ba   : > { %v6141_v3 = vmax.f32 %v4562_v49, 1.5  ;;  %v6143_v4 = vmax.f32 %v5089_v51, 1.5  ;;  %v4567_v5 = vpop.f32.mrf.mxu0  ;;  %v5094_v8 = vpop.f32.mrf.mxu1 }
 0x5bb   : > { %8590 = vst [vmem:[%s10763_s27 + $0x1ce8] sm:$0xff] %v7358_v58  ;;  %8592 = vst [vmem:[%s10763_s27 + $0x1cf8] sm:$0xff] %v7360_v60  ;;  %v6142_v10 = vmax.f32 %v4564_v1, 1.5  ;;  %v6144_v11 = vmax.f32 %v5091_v2, 1.5  ;;  %v4568_v12 = vadd.f32 %v4567_v5, %v14294_v36  ;;  %v5095_v13 = vadd.f32 %v5094_v8, %v14298_v55 }
 0x5bc   : > { %v7373_v14 = vmin.f32 %v6141_v3, 1.7  ;;  %v7375_v15 = vmin.f32 %v6143_v4, 1.7  ;;  %v4569_v18 = vpop.f32.mrf.mxu0  ;;  %v5096_v19 = vpop.f32.mrf.mxu1 }
 0x5bd   : > { %v7374_v20 = vmin.f32 %v6142_v10, 1.7  ;;  %v7376_v21 = vmin.f32 %v6144_v11, 1.7  ;;  %v6157_v22 = vmax.f32 %v4568_v12, 1.5  ;;  %v6159_v23 = vmax.f32 %v5095_v13, 1.5 }
 0x5be   : > { %8605 = vst [vmem:[%s10763_s27 + $0x1d60] sm:$0xff] %v7373_v14  ;;  %8607 = vst [vmem:[%s10763_s27 + $0x1d70] sm:$0xff] %v7375_v15  ;;  %v4570_v24 = vadd.f32 %v4569_v18, %v14308_v7  ;;  %v5097_v25 = vadd.f32 %v5096_v19, %v14312_v41  ;;  %v4573_v26 = vpop.f32.mrf.mxu0  ;;  %v5100_v27 = vpop.f32.mrf.mxu1 }
 0x5bf   : > { %8606 = vst [vmem:[%s10763_s27 + $0x1d68] sm:$0xff] %v7374_v20  ;;  %8608 = vst [vmem:[%s10763_s27 + $0x1d78] sm:$0xff] %v7376_v21  ;;  %v7389_v30 = vmin.f32 %v6157_v22, 1.7  ;;  %v7391_v28 = vmin.f32 %v6159_v23, 1.7  ;;  %v4574_v29 = vadd.f32 %v4573_v26, %v14294_v36  ;;  %v5101_v32 = vadd.f32 %v5100_v27, %v14298_v55 }
 0x5c0   : > { %v6158_v33 = vmax.f32 %v4570_v24, 1.5  ;;  %v6160_v34 = vmax.f32 %v5097_v25, 1.5  ;;  %v4575_v35 = vpop.f32.mrf.mxu0  ;;  %v5102_v56 = vpop.f32.mrf.mxu1 }
 0x5c1   : > { %8621 = vst [vmem:[%s10763_s27 + $0x1de0] sm:$0xff] %v7389_v30  ;;  %8623 = vst [vmem:[%s10763_s27 + $0x1df0] sm:$0xff] %v7391_v28  ;;  %v6173_v37 = vmax.f32 %v4574_v29, 1.5  ;;  %v6175_v38 = vmax.f32 %v5101_v32, 1.5  ;;  %v4576_v47 = vadd.f32 %v4575_v35, %v14308_v7  ;;  %v5103_v6 = vadd.f32 %v5102_v56, %v14312_v41 }
 0x5c2   : > { %v7390_v39 = vmin.f32 %v6158_v33, 1.7  ;;  %v7392_v62 = vmin.f32 %v6160_v34, 1.7  ;;  %v4579_v40 = vpop.f32.mrf.mxu0  ;;  %v5106_v9 = vpop.f32.mrf.mxu1 }
 0x5c3   : > { %v7405_v52 = vmin.f32 %v6173_v37, 1.7  ;;  %v7407_v42 = vmin.f32 %v6175_v38, 1.7  ;;  %v6174_v43 = vmax.f32 %v4576_v47, 1.5  ;;  %v6176_v44 = vmax.f32 %v5103_v6, 1.5 }
 0x5c4   : > { %8622 = vst [vmem:[%s10763_s27 + $0x1de8] sm:$0xff] %v7390_v39  ;;  %8624 = vst [vmem:[%s10763_s27 + $0x1df8] sm:$0xff] %v7392_v62  ;;  %v4580_v45 = vadd.f32 %v4579_v40, %v14294_v36  ;;  %v5107_v46 = vadd.f32 %v5106_v9, %v14298_v55  ;;  %v4581_v16 = vpop.f32.mrf.mxu0  ;;  %v5108_v50 = vpop.f32.mrf.mxu1 }
 0x5c5   : > { %8637 = vst [vmem:[%s10763_s27 + $0x1e60] sm:$0xff] %v7405_v52  ;;  %8639 = vst [vmem:[%s10763_s27 + $0x1e70] sm:$0xff] %v7407_v42  ;;  %v7406_v17 = vmin.f32 %v6174_v43, 1.7  ;;  %v7408_v59 = vmin.f32 %v6176_v44, 1.7  ;;  %v4582_v0 = vadd.f32 %v4581_v16, %v14308_v7  ;;  %v5109_v53 = vadd.f32 %v5108_v50, %v14312_v41 }
 0x5c6   : > { %v6189_v31 = vmax.f32 %v4580_v45, 1.5  ;;  %v6191_v61 = vmax.f32 %v5107_v46, 1.5  ;;  %v4585_v63 = vpop.f32.mrf.mxu0  ;;  %v5112_v48 = vpop.f32.mrf.mxu1 }
 0x5c7   : > { %8638 = vst [vmem:[%s10763_s27 + $0x1e68] sm:$0xff] %v7406_v17  ;;  %8640 = vst [vmem:[%s10763_s27 + $0x1e78] sm:$0xff] %v7408_v59  ;;  %v6190_v49 = vmax.f32 %v4582_v0, 1.5  ;;  %v6192_v51 = vmax.f32 %v5109_v53, 1.5  ;;  %v4586_v54 = vadd.f32 %v4585_v63, %v14294_v36  ;;  %v5113_v57 = vadd.f32 %v5112_v48, %v14298_v55 }
 0x5c8   : > { %v7421_v58 = vmin.f32 %v6189_v31, 1.7  ;;  %v7423_v60 = vmin.f32 %v6191_v61, 1.7  ;;  %v4587_v1 = vpop.f32.mrf.mxu0  ;;  %v5114_v2 = vpop.f32.mrf.mxu1 }
 0x5c9   : > { %v7422_v3 = vmin.f32 %v6190_v49, 1.7  ;;  %v7424_v4 = vmin.f32 %v6192_v51, 1.7  ;;  %v6205_v5 = vmax.f32 %v4586_v54, 1.5  ;;  %v6207_v8 = vmax.f32 %v5113_v57, 1.5 }
 0x5ca   : > { %8653 = vst [vmem:[%s10763_s27 + $0x1ee0] sm:$0xff] %v7421_v58  ;;  %8655 = vst [vmem:[%s10763_s27 + $0x1ef0] sm:$0xff] %v7423_v60  ;;  %v4588_v10 = vadd.f32 %v4587_v1, %v14308_v7  ;;  %v5115_v11 = vadd.f32 %v5114_v2, %v14312_v41  ;;  %v4591_v12 = vpop.f32.mrf.mxu0  ;;  %v5118_v13 = vpop.f32.mrf.mxu1 }
 0x5cb   : > { %8654 = vst [vmem:[%s10763_s27 + $0x1ee8] sm:$0xff] %v7422_v3  ;;  %8656 = vst [vmem:[%s10763_s27 + $0x1ef8] sm:$0xff] %v7424_v4  ;;  %v7437_v14 = vmin.f32 %v6205_v5, 1.7  ;;  %v7439_v15 = vmin.f32 %v6207_v8, 1.7  ;;  %v4592_v18 = vadd.f32 %v4591_v12, %v14294_v36  ;;  %v5119_v19 = vadd.f32 %v5118_v13, %v14298_v55 }
 0x5cc   : > { %v6206_v20 = vmax.f32 %v4588_v10, 1.5  ;;  %v6208_v21 = vmax.f32 %v5115_v11, 1.5  ;;  %v4593_v22 = vpop.f32.mrf.mxu0  ;;  %v5120_v23 = vpop.f32.mrf.mxu1 }
 0x5cd   : > { %8669 = vst [vmem:[%s10763_s27 + $0x1f60] sm:$0xff] %v7437_v14  ;;  %8671 = vst [vmem:[%s10763_s27 + $0x1f70] sm:$0xff] %v7439_v15  ;;  %v6221_v24 = vmax.f32 %v4592_v18, 1.5  ;;  %v6223_v25 = vmax.f32 %v5119_v19, 1.5  ;;  %v4594_v26 = vadd.f32 %v4593_v22, %v14308_v7  ;;  %v5121_v27 = vadd.f32 %v5120_v23, %v14312_v41 }
 0x5ce   : > { %v7438_v30 = vmin.f32 %v6206_v20, 1.7  ;;  %v7440_v28 = vmin.f32 %v6208_v21, 1.7  ;;  %v4597_v29 = vpop.f32.mrf.mxu0  ;;  %v5124_v32 = vpop.f32.mrf.mxu1 }
 0x5cf   : > { %v7453_v33 = vmin.f32 %v6221_v24, 1.7  ;;  %v7455_v34 = vmin.f32 %v6223_v25, 1.7  ;;  %v6222_v35 = vmax.f32 %v4594_v26, 1.5  ;;  %v6224_v56 = vmax.f32 %v5121_v27, 1.5 }
 0x5d0   : > { %8670 = vst [vmem:[%s10763_s27 + $0x1f68] sm:$0xff] %v7438_v30  ;;  %8672 = vst [vmem:[%s10763_s27 + $0x1f78] sm:$0xff] %v7440_v28  ;;  %v4598_v37 = vadd.f32 %v4597_v29, %v14294_v36  ;;  %v5125_v38 = vadd.f32 %v5124_v32, %v14298_v55  ;;  %v4599_v47 = vpop.f32.mrf.mxu0  ;;  %v5126_v6 = vpop.f32.mrf.mxu1 }
 0x5d1   : > { %8685 = vst [vmem:[%s10763_s27 + $0x1fe0] sm:$0xff] %v7453_v33  ;;  %8687 = vst [vmem:[%s10763_s27 + $0x1ff0] sm:$0xff] %v7455_v34  ;;  %v7454_v39 = vmin.f32 %v6222_v35, 1.7  ;;  %v7456_v62 = vmin.f32 %v6224_v56, 1.7  ;;  %v4600_v40 = vadd.f32 %v4599_v47, %v14308_v7  ;;  %v5127_v9 = vadd.f32 %v5126_v6, %v14312_v41 }
 0x5d2   : > { %v6237_v52 = vmax.f32 %v4598_v37, 1.5  ;;  %v6239_v42 = vmax.f32 %v5125_v38, 1.5  ;;  %v4603_v43 = vpop.f32.mrf.mxu0  ;;  %v5130_v44 = vpop.f32.mrf.mxu1 }
 0x5d3   : > { %8686 = vst [vmem:[%s10763_s27 + $0x1fe8] sm:$0xff] %v7454_v39  ;;  %8688 = vst [vmem:[%s10763_s27 + $0x1ff8] sm:$0xff] %v7456_v62  ;;  %v6238_v45 = vmax.f32 %v4600_v40, 1.5  ;;  %v6240_v46 = vmax.f32 %v5127_v9, 1.5  ;;  %v4604_v16 = vadd.f32 %v4603_v43, %v14294_v36  ;;  %v5131_v50 = vadd.f32 %v5130_v44, %v14298_v55 }
 0x5d4   : > { %v7469_v17 = vmin.f32 %v6237_v52, 1.7  ;;  %v7471_v59 = vmin.f32 %v6239_v42, 1.7  ;;  %v4605_v0 = vpop.f32.mrf.mxu0  ;;  %v5132_v53 = vpop.f32.mrf.mxu1 }
 0x5d5   : > { %v7470_v31 = vmin.f32 %v6238_v45, 1.7  ;;  %v7472_v61 = vmin.f32 %v6240_v46, 1.7  ;;  %v6253_v63 = vmax.f32 %v4604_v16, 1.5  ;;  %v6255_v48 = vmax.f32 %v5131_v50, 1.5 }
 0x5d6   : > { %8701 = vst [vmem:[%s10763_s27 + $0x2060] sm:$0xff] %v7469_v17  ;;  %8703 = vst [vmem:[%s10763_s27 + $0x2070] sm:$0xff] %v7471_v59  ;;  %v4606_v49 = vadd.f32 %v4605_v0, %v14308_v7  ;;  %v5133_v51 = vadd.f32 %v5132_v53, %v14312_v41  ;;  %v4609_v54 = vpop.f32.mrf.mxu0  ;;  %v5136_v57 = vpop.f32.mrf.mxu1 }
 0x5d7   : > { %8702 = vst [vmem:[%s10763_s27 + $0x2068] sm:$0xff] %v7470_v31  ;;  %8704 = vst [vmem:[%s10763_s27 + $0x2078] sm:$0xff] %v7472_v61  ;;  %v7485_v58 = vmin.f32 %v6253_v63, 1.7  ;;  %v7487_v60 = vmin.f32 %v6255_v48, 1.7  ;;  %v4610_v1 = vadd.f32 %v4609_v54, %v14294_v36  ;;  %v5137_v2 = vadd.f32 %v5136_v57, %v14298_v55 }
 0x5d8   : > { %v6254_v3 = vmax.f32 %v4606_v49, 1.5  ;;  %v6256_v4 = vmax.f32 %v5133_v51, 1.5  ;;  %v4611_v5 = vpop.f32.mrf.mxu0  ;;  %v5138_v8 = vpop.f32.mrf.mxu1 }
 0x5d9   : > { %8717 = vst [vmem:[%s10763_s27 + $0x20e0] sm:$0xff] %v7485_v58  ;;  %8719 = vst [vmem:[%s10763_s27 + $0x20f0] sm:$0xff] %v7487_v60  ;;  %v6269_v10 = vmax.f32 %v4610_v1, 1.5  ;;  %v6271_v11 = vmax.f32 %v5137_v2, 1.5  ;;  %v4612_v12 = vadd.f32 %v4611_v5, %v14308_v7  ;;  %v5139_v13 = vadd.f32 %v5138_v8, %v14312_v41 }
 0x5da   : > { %v7486_v14 = vmin.f32 %v6254_v3, 1.7  ;;  %v7488_v15 = vmin.f32 %v6256_v4, 1.7  ;;  %v4615_v18 = vpop.f32.mrf.mxu0  ;;  %v5142_v19 = vpop.f32.mrf.mxu1 }
 0x5db   : > { %v7501_v20 = vmin.f32 %v6269_v10, 1.7  ;;  %v7503_v21 = vmin.f32 %v6271_v11, 1.7  ;;  %v6270_v22 = vmax.f32 %v4612_v12, 1.5  ;;  %v6272_v23 = vmax.f32 %v5139_v13, 1.5 }
 0x5dc   : > { %8718 = vst [vmem:[%s10763_s27 + $0x20e8] sm:$0xff] %v7486_v14  ;;  %8720 = vst [vmem:[%s10763_s27 + $0x20f8] sm:$0xff] %v7488_v15  ;;  %v4616_v24 = vadd.f32 %v4615_v18, %v14294_v36  ;;  %v5143_v25 = vadd.f32 %v5142_v19, %v14298_v55  ;;  %v4617_v26 = vpop.f32.mrf.mxu0  ;;  %v5144_v27 = vpop.f32.mrf.mxu1 }
 0x5dd   : > { %8733 = vst [vmem:[%s10763_s27 + $0x2160] sm:$0xff] %v7501_v20  ;;  %8735 = vst [vmem:[%s10763_s27 + $0x2170] sm:$0xff] %v7503_v21  ;;  %v7502_v30 = vmin.f32 %v6270_v22, 1.7  ;;  %v7504_v28 = vmin.f32 %v6272_v23, 1.7  ;;  %v4618_v29 = vadd.f32 %v4617_v26, %v14308_v7  ;;  %v5145_v32 = vadd.f32 %v5144_v27, %v14312_v41 }
 0x5de   : > { %v6285_v33 = vmax.f32 %v4616_v24, 1.5  ;;  %v6287_v34 = vmax.f32 %v5143_v25, 1.5  ;;  %v4621_v35 = vpop.f32.mrf.mxu0  ;;  %v5148_v56 = vpop.f32.mrf.mxu1 }
 0x5df   : > { %8734 = vst [vmem:[%s10763_s27 + $0x2168] sm:$0xff] %v7502_v30  ;;  %8736 = vst [vmem:[%s10763_s27 + $0x2178] sm:$0xff] %v7504_v28  ;;  %v6286_v37 = vmax.f32 %v4618_v29, 1.5  ;;  %v6288_v38 = vmax.f32 %v5145_v32, 1.5  ;;  %v4622_v47 = vadd.f32 %v4621_v35, %v14294_v36  ;;  %v5149_v6 = vadd.f32 %v5148_v56, %v14298_v55 }
 0x5e0   : > { %v7517_v39 = vmin.f32 %v6285_v33, 1.7  ;;  %v7519_v62 = vmin.f32 %v6287_v34, 1.7  ;;  %v4623_v40 = vpop.f32.mrf.mxu0  ;;  %v5150_v9 = vpop.f32.mrf.mxu1 }
 0x5e1   : > { %v7518_v52 = vmin.f32 %v6286_v37, 1.7  ;;  %v7520_v42 = vmin.f32 %v6288_v38, 1.7  ;;  %v6301_v43 = vmax.f32 %v4622_v47, 1.5  ;;  %v6303_v44 = vmax.f32 %v5149_v6, 1.5 }
 0x5e2   : > { %8749 = vst [vmem:[%s10763_s27 + $0x21e0] sm:$0xff] %v7517_v39  ;;  %8751 = vst [vmem:[%s10763_s27 + $0x21f0] sm:$0xff] %v7519_v62  ;;  %v4624_v45 = vadd.f32 %v4623_v40, %v14308_v7  ;;  %v5151_v46 = vadd.f32 %v5150_v9, %v14312_v41  ;;  %v4627_v16 = vpop.f32.mrf.mxu0  ;;  %v5154_v50 = vpop.f32.mrf.mxu1 }
 0x5e3   : > { %8750 = vst [vmem:[%s10763_s27 + $0x21e8] sm:$0xff] %v7518_v52  ;;  %8752 = vst [vmem:[%s10763_s27 + $0x21f8] sm:$0xff] %v7520_v42  ;;  %v7533_v17 = vmin.f32 %v6301_v43, 1.7  ;;  %v7535_v59 = vmin.f32 %v6303_v44, 1.7  ;;  %v4628_v0 = vadd.f32 %v4627_v16, %v14294_v36  ;;  %v5155_v53 = vadd.f32 %v5154_v50, %v14298_v55 }
 0x5e4   : > { %v6302_v31 = vmax.f32 %v4624_v45, 1.5  ;;  %v6304_v61 = vmax.f32 %v5151_v46, 1.5  ;;  %v4629_v63 = vpop.f32.mrf.mxu0  ;;  %v5156_v48 = vpop.f32.mrf.mxu1 }
 0x5e5   : > { %8765 = vst [vmem:[%s10763_s27 + $0x2260] sm:$0xff] %v7533_v17  ;;  %8767 = vst [vmem:[%s10763_s27 + $0x2270] sm:$0xff] %v7535_v59  ;;  %v6317_v49 = vmax.f32 %v4628_v0, 1.5  ;;  %v6319_v51 = vmax.f32 %v5155_v53, 1.5  ;;  %v4630_v54 = vadd.f32 %v4629_v63, %v14308_v7  ;;  %v5157_v57 = vadd.f32 %v5156_v48, %v14312_v41 }
 0x5e6   : > { %v7534_v58 = vmin.f32 %v6302_v31, 1.7  ;;  %v7536_v60 = vmin.f32 %v6304_v61, 1.7  ;;  %v4633_v1 = vpop.f32.mrf.mxu0  ;;  %v5160_v2 = vpop.f32.mrf.mxu1 }
 0x5e7   : > { %v7549_v3 = vmin.f32 %v6317_v49, 1.7  ;;  %v7551_v4 = vmin.f32 %v6319_v51, 1.7  ;;  %v6318_v5 = vmax.f32 %v4630_v54, 1.5  ;;  %v6320_v8 = vmax.f32 %v5157_v57, 1.5 }
 0x5e8   : > { %8766 = vst [vmem:[%s10763_s27 + $0x2268] sm:$0xff] %v7534_v58  ;;  %8768 = vst [vmem:[%s10763_s27 + $0x2278] sm:$0xff] %v7536_v60  ;;  %v4634_v10 = vadd.f32 %v4633_v1, %v14294_v36  ;;  %v5161_v11 = vadd.f32 %v5160_v2, %v14298_v55  ;;  %v4635_v12 = vpop.f32.mrf.mxu0  ;;  %v5162_v13 = vpop.f32.mrf.mxu1 }
 0x5e9   : > { %8781 = vst [vmem:[%s10763_s27 + $0x22e0] sm:$0xff] %v7549_v3  ;;  %8783 = vst [vmem:[%s10763_s27 + $0x22f0] sm:$0xff] %v7551_v4  ;;  %v7550_v14 = vmin.f32 %v6318_v5, 1.7  ;;  %v7552_v15 = vmin.f32 %v6320_v8, 1.7  ;;  %v4636_v18 = vadd.f32 %v4635_v12, %v14308_v7  ;;  %v5163_v19 = vadd.f32 %v5162_v13, %v14312_v41 }
 0x5ea   : > { %v6333_v20 = vmax.f32 %v4634_v10, 1.5  ;;  %v6335_v21 = vmax.f32 %v5161_v11, 1.5  ;;  %v4639_v22 = vpop.f32.mrf.mxu0  ;;  %v5166_v23 = vpop.f32.mrf.mxu1 }
 0x5eb   : > { %8782 = vst [vmem:[%s10763_s27 + $0x22e8] sm:$0xff] %v7550_v14  ;;  %8784 = vst [vmem:[%s10763_s27 + $0x22f8] sm:$0xff] %v7552_v15  ;;  %v6334_v24 = vmax.f32 %v4636_v18, 1.5  ;;  %v6336_v25 = vmax.f32 %v5163_v19, 1.5  ;;  %v4640_v26 = vadd.f32 %v4639_v22, %v14294_v36  ;;  %v5167_v27 = vadd.f32 %v5166_v23, %v14298_v55 }
 0x5ec   : > { %v7565_v30 = vmin.f32 %v6333_v20, 1.7  ;;  %v7567_v28 = vmin.f32 %v6335_v21, 1.7  ;;  %v4641_v29 = vpop.f32.mrf.mxu0  ;;  %v5168_v32 = vpop.f32.mrf.mxu1 }
 0x5ed   : > { %v7566_v33 = vmin.f32 %v6334_v24, 1.7  ;;  %v7568_v34 = vmin.f32 %v6336_v25, 1.7  ;;  %v6349_v35 = vmax.f32 %v4640_v26, 1.5  ;;  %v6351_v56 = vmax.f32 %v5167_v27, 1.5 }
 0x5ee   : > { %8797 = vst [vmem:[%s10763_s27 + $0x2360] sm:$0xff] %v7565_v30  ;;  %8799 = vst [vmem:[%s10763_s27 + $0x2370] sm:$0xff] %v7567_v28  ;;  %v4642_v37 = vadd.f32 %v4641_v29, %v14308_v7  ;;  %v5169_v38 = vadd.f32 %v5168_v32, %v14312_v41  ;;  %v4645_v47 = vpop.f32.mrf.mxu0  ;;  %v5172_v6 = vpop.f32.mrf.mxu1 }
 0x5ef   : > { %8798 = vst [vmem:[%s10763_s27 + $0x2368] sm:$0xff] %v7566_v33  ;;  %8800 = vst [vmem:[%s10763_s27 + $0x2378] sm:$0xff] %v7568_v34  ;;  %v7581_v39 = vmin.f32 %v6349_v35, 1.7  ;;  %v7583_v62 = vmin.f32 %v6351_v56, 1.7  ;;  %v4646_v40 = vadd.f32 %v4645_v47, %v14294_v36  ;;  %v5173_v9 = vadd.f32 %v5172_v6, %v14298_v55 }
 0x5f0   : > { %v6350_v52 = vmax.f32 %v4642_v37, 1.5  ;;  %v6352_v42 = vmax.f32 %v5169_v38, 1.5  ;;  %v4647_v43 = vpop.f32.mrf.mxu0  ;;  %v5174_v44 = vpop.f32.mrf.mxu1 }
 0x5f1   : > { %8813 = vst [vmem:[%s10763_s27 + $0x23e0] sm:$0xff] %v7581_v39  ;;  %8815 = vst [vmem:[%s10763_s27 + $0x23f0] sm:$0xff] %v7583_v62  ;;  %v6365_v45 = vmax.f32 %v4646_v40, 1.5  ;;  %v6367_v46 = vmax.f32 %v5173_v9, 1.5  ;;  %v4648_v16 = vadd.f32 %v4647_v43, %v14308_v7  ;;  %v5175_v50 = vadd.f32 %v5174_v44, %v14312_v41 }
 0x5f2   : > { %v7582_v17 = vmin.f32 %v6350_v52, 1.7  ;;  %v7584_v59 = vmin.f32 %v6352_v42, 1.7  ;;  %v4651_v0 = vpop.f32.mrf.mxu0  ;;  %v5178_v53 = vpop.f32.mrf.mxu1 }
 0x5f3   : > { %v7597_v31 = vmin.f32 %v6365_v45, 1.7  ;;  %v7599_v61 = vmin.f32 %v6367_v46, 1.7  ;;  %v6366_v63 = vmax.f32 %v4648_v16, 1.5  ;;  %v6368_v48 = vmax.f32 %v5175_v50, 1.5 }
 0x5f4   : > { %8814 = vst [vmem:[%s10763_s27 + $0x23e8] sm:$0xff] %v7582_v17  ;;  %8816 = vst [vmem:[%s10763_s27 + $0x23f8] sm:$0xff] %v7584_v59  ;;  %v4652_v49 = vadd.f32 %v4651_v0, %v14294_v36  ;;  %v5179_v51 = vadd.f32 %v5178_v53, %v14298_v55  ;;  %v4653_v54 = vpop.f32.mrf.mxu0  ;;  %v5180_v57 = vpop.f32.mrf.mxu1 }
 0x5f5   : > { %8829 = vst [vmem:[%s10763_s27 + $0x2460] sm:$0xff] %v7597_v31  ;;  %8831 = vst [vmem:[%s10763_s27 + $0x2470] sm:$0xff] %v7599_v61  ;;  %v7598_v58 = vmin.f32 %v6366_v63, 1.7  ;;  %v7600_v60 = vmin.f32 %v6368_v48, 1.7  ;;  %v4654_v1 = vadd.f32 %v4653_v54, %v14308_v7  ;;  %v5181_v2 = vadd.f32 %v5180_v57, %v14312_v41 }
 0x5f6   : > { %v6381_v3 = vmax.f32 %v4652_v49, 1.5  ;;  %v6383_v4 = vmax.f32 %v5179_v51, 1.5  ;;  %v4657_v5 = vpop.f32.mrf.mxu0  ;;  %v5184_v8 = vpop.f32.mrf.mxu1 }
 0x5f7   : > { %8830 = vst [vmem:[%s10763_s27 + $0x2468] sm:$0xff] %v7598_v58  ;;  %8832 = vst [vmem:[%s10763_s27 + $0x2478] sm:$0xff] %v7600_v60  ;;  %v6382_v10 = vmax.f32 %v4654_v1, 1.5  ;;  %v6384_v11 = vmax.f32 %v5181_v2, 1.5  ;;  %v4658_v12 = vadd.f32 %v4657_v5, %v14294_v36  ;;  %v5185_v13 = vadd.f32 %v5184_v8, %v14298_v55 }
 0x5f8   : > { %v7613_v14 = vmin.f32 %v6381_v3, 1.7  ;;  %v7615_v15 = vmin.f32 %v6383_v4, 1.7  ;;  %v4659_v18 = vpop.f32.mrf.mxu0  ;;  %v5186_v19 = vpop.f32.mrf.mxu1 }
 0x5f9   : > { %v7614_v20 = vmin.f32 %v6382_v10, 1.7  ;;  %v7616_v21 = vmin.f32 %v6384_v11, 1.7  ;;  %v6397_v22 = vmax.f32 %v4658_v12, 1.5  ;;  %v6399_v23 = vmax.f32 %v5185_v13, 1.5 }
 0x5fa   : > { %8845 = vst [vmem:[%s10763_s27 + $0x24e0] sm:$0xff] %v7613_v14  ;;  %8847 = vst [vmem:[%s10763_s27 + $0x24f0] sm:$0xff] %v7615_v15  ;;  %v4660_v24 = vadd.f32 %v4659_v18, %v14308_v7  ;;  %v5187_v25 = vadd.f32 %v5186_v19, %v14312_v41  ;;  %v4663_v26 = vpop.f32.mrf.mxu0  ;;  %v5190_v27 = vpop.f32.mrf.mxu1 }
 0x5fb   : > { %8846 = vst [vmem:[%s10763_s27 + $0x24e8] sm:$0xff] %v7614_v20  ;;  %8848 = vst [vmem:[%s10763_s27 + $0x24f8] sm:$0xff] %v7616_v21  ;;  %v7629_v30 = vmin.f32 %v6397_v22, 1.7  ;;  %v7631_v28 = vmin.f32 %v6399_v23, 1.7  ;;  %v4664_v29 = vadd.f32 %v4663_v26, %v14294_v36  ;;  %v5191_v32 = vadd.f32 %v5190_v27, %v14298_v55 }
 0x5fc   : > { %v6398_v33 = vmax.f32 %v4660_v24, 1.5  ;;  %v6400_v34 = vmax.f32 %v5187_v25, 1.5  ;;  %v4665_v35 = vpop.f32.mrf.mxu0  ;;  %v5192_v56 = vpop.f32.mrf.mxu1 }
 0x5fd   : > { %8861 = vst [vmem:[%s10763_s27 + $0x2560] sm:$0xff] %v7629_v30  ;;  %8863 = vst [vmem:[%s10763_s27 + $0x2570] sm:$0xff] %v7631_v28  ;;  %v6413_v37 = vmax.f32 %v4664_v29, 1.5  ;;  %v6415_v38 = vmax.f32 %v5191_v32, 1.5  ;;  %v4666_v47 = vadd.f32 %v4665_v35, %v14308_v7  ;;  %v5193_v6 = vadd.f32 %v5192_v56, %v14312_v41 }
 0x5fe   : > { %v7630_v39 = vmin.f32 %v6398_v33, 1.7  ;;  %v7632_v62 = vmin.f32 %v6400_v34, 1.7  ;;  %v4669_v40 = vpop.f32.mrf.mxu0  ;;  %v5196_v9 = vpop.f32.mrf.mxu1 }
 0x5ff   : > { %v7645_v52 = vmin.f32 %v6413_v37, 1.7  ;;  %v7647_v42 = vmin.f32 %v6415_v38, 1.7  ;;  %v6414_v43 = vmax.f32 %v4666_v47, 1.5  ;;  %v6416_v44 = vmax.f32 %v5193_v6, 1.5 }
 0x600   : > { %8862 = vst [vmem:[%s10763_s27 + $0x2568] sm:$0xff] %v7630_v39  ;;  %8864 = vst [vmem:[%s10763_s27 + $0x2578] sm:$0xff] %v7632_v62  ;;  %v4670_v45 = vadd.f32 %v4669_v40, %v14294_v36  ;;  %v5197_v46 = vadd.f32 %v5196_v9, %v14298_v55  ;;  %v4671_v16 = vpop.f32.mrf.mxu0  ;;  %v5198_v50 = vpop.f32.mrf.mxu1 }
 0x601   : > { %8877 = vst [vmem:[%s10763_s27 + $0x25e0] sm:$0xff] %v7645_v52  ;;  %8879 = vst [vmem:[%s10763_s27 + $0x25f0] sm:$0xff] %v7647_v42  ;;  %v7646_v17 = vmin.f32 %v6414_v43, 1.7  ;;  %v7648_v59 = vmin.f32 %v6416_v44, 1.7  ;;  %v4672_v0 = vadd.f32 %v4671_v16, %v14308_v7  ;;  %v5199_v53 = vadd.f32 %v5198_v50, %v14312_v41 }
 0x602   : > { %v6429_v31 = vmax.f32 %v4670_v45, 1.5  ;;  %v6431_v36 = vmax.f32 %v5197_v46, 1.5 }
 0x603   : > { %8878 = vst [vmem:[%s10763_s27 + $0x25e8] sm:$0xff] %v7646_v17  ;;  %8880 = vst [vmem:[%s10763_s27 + $0x25f8] sm:$0xff] %v7648_v59  ;;  %v6430_v55 = vmax.f32 %v4672_v0, 1.5  ;;  %v6432_v61 = vmax.f32 %v5199_v53, 1.5 }
 0x604   : > { %v7661_v7 = vmin.f32 %v6429_v31, 1.7  ;;  %v7663_v63 = vmin.f32 %v6431_v36, 1.7 }
 0x605   : > { %v7662_v41 = vmin.f32 %v6430_v55, 1.7  ;;  %v7664_v48 = vmin.f32 %v6432_v61, 1.7 }
 0x606   : > { %8893 = vst [vmem:[%s10763_s27 + $0x2660] sm:$0x1] %v7661_v7  ;;  %8895 = vst [vmem:[%s10763_s27 + $0x2670] sm:$0x1] %v7663_v63 }
 0x607   : > { %8894 = vst [vmem:[%s10763_s27 + $0x2668] sm:$0x1] %v7662_v41  ;;  %8896 = vst [vmem:[%s10763_s27 + $0x2678] sm:$0x1] %v7664_v48 }
 0x608   : > { %9909 = shalt.err (!%p9906_p7)
}
 0x609   : > { %s9910_s27 = scalar_lea.hbm %s15142_s11, 157696  ;;  %s9914_s28 = scalar_lea.hbm %s15193_s3, 1576960 }
 0x60a   : > { %p9911_p9 = scmp.ne.s32.totalorder %s15142_s11, %s9910_s27  ;;  %p9915_p12 = scmp.lt.s32.totalorder %s15142_s11, %s15193_s3 }
 0x60b   : > { %p9916_p13 = scmp.lt.s32.totalorder %s9914_s28, %s9910_s27 }
 0x60c   : > { %p9912_p10 = pnand %p9911_p9, %p10022_p6 }
 0x60d   : > { %p9917_p0 = por %p9916_p13, %p9915_p12 }
 0x60e   : > { %p9913_p11 = pneg %p9912_p10 }
 0x610   : > { %p9918_p1 = pnand %p9917_p0, %p9913_p11 }
 0x612   : > { %9921 = shalt.err (!%p9918_p1)
}
 0x613   : > { %s9960_s5 = smov 2048   ;;  %s9961_s6 = smov 20480  }
 0x614   : > { %s9962_s7 = smov 128  }
 0x615   : > { %9620 = dma.vmem_to_hbm [thread:$0]  (%p10022_p6), %s15144_s9, 157696, %s15142_s11, %s8898_s17, %s9960_s5, %s9961_s6, %s9962_s7  }
 0x616 PF: > { %p9626_p2 = scmp.ge.s32.totalorder %s9956_s15, 2  ;;  %s8926_s16 = sand.u32 1, %s9944_s12  }
 0x617   : > { %s8927_s10 = scalar_lea.sflag [#allocation4], %s8926_s16 }
 0x618   : > { %p9623_p3 = pnand %p9626_p2, %p10026_p8 }
 0x61a   : > { %p9624_p4 = pneg %p9623_p3 }
 0x61c   : > { %9939 = dma.done.wait (%p9624_p4), %s8927_s10, 157696  }
 0x61d   : > { %9941 = vsyncadd (%p9624_p4), %s8927_s10, 4294809600  ;;  %p13_p5 = scmp.ge.s32.totalorder %s10008_s18, 12   ;;  %s15196_s12 = smov %s9948_s13 }
 0x61e   : > { %s15197_s13 = smov %s9952_s14  ;;  %s15198_s14 = smov %s10020_s21 }
 0x61f   : > { %s15199_s15 = smov %s10008_s18  ;;  %15 = sbr.rel (!%p13_p5) target bundleno = 3 (0x3), region = 98 }
 0x624   :  { %8932 = vsyncpa [#allocation4], 1 }
 0x625   :  { %8934 = vsyncpa [#allocation4 + $0x1], 1 }

</bundles_post_ra>
